<compile_context>
chip_gen: v5e
topology: v5e:2x2
jax: 0.10.0
libtpu: 0.0.40
codegen_flags: <defaults>
</compile_context>

<pallas_src>
import functools
import math

import jax
import jax.numpy as jnp
import numpy as np
from jax import lax
from jax.experimental import pallas as pl
from jax.experimental.pallas import tpu as pltpu


def _corr_kernel(f1_ref, f2_ref, coords_ref, dapw_ref, qy_ref, *rest,
                 H, W, radius, use_reshape):
    # f1_ref     : (C, TQ)    query features (queries in lanes)
    # f2_ref     : (HW, C)    source features, q = y*W + x (resident per batch)
    # coords_ref : (2, TQ)    row 0 = x, row 1 = y sample coordinates
    # dapw_ref   : (D, D)     DAP weight pre-scaled by 1/sqrt(C)
    # qy_ref     : (H, 1, 1)  source-row indices          (W % 8 == 0 path)
    #              (HW, 1)    per-source-pixel row index  (fallback path)
    # msel_ref   : (W, HW)    0/1 column-selection matrix (fallback path only)
    # out_ref    : (D, TQ)    lane-dense output block
    if use_reshape:
        (out_ref,) = rest
        msel = None
    else:
        msel_ref, out_ref = rest
        msel = msel_ref[...].astype(jnp.float32)

    C, TQ = f1_ref.shape
    HW = H * W
    R = 2 * radius + 1
    D = R * R

    f1 = f1_ref[...].astype(jnp.float32)                  # (C, TQ)
    f2 = f2_ref[...].astype(jnp.float32)                  # (HW, C)
    cx = coords_ref[0:1, :].astype(jnp.float32)           # (1, TQ) sample x (width)
    cy = coords_ref[1:2, :].astype(jnp.float32)           # (1, TQ) sample y (height)
    dapw = dapw_ref[...].astype(jnp.float32)              # (D, D)

    # Score matrix: S[q, p] = <f2[q, :], f1[:, p]>  -- the single large MXU matmul,
    # N = TQ lanes (TQ >= 256 keeps the 256-wide MXU of v6e/v7x full).
    s = jnp.dot(f2, f1, preferred_element_type=jnp.float32)            # (HW, TQ)

    # Separable bilinear tents (grid_sample zeros / align_corners=True == tent).
    qx = lax.broadcasted_iota(jnp.int32, (W, 1), 0).astype(jnp.float32)
    dxb = cx - qx                                                      # (W, TQ)
    wx = [jnp.maximum(0.0, 1.0 - jnp.abs(dxb + float(i - radius)))     # (W, TQ) each
          for i in range(R)]

    if use_reshape:
        # Free relayout (W is a sublane multiple): reduce over source rows on the
        # VPU; the y-tent lives only at (H, 1, TQ).
        s3 = s.reshape(H, W, TQ)                                       # (H, W, TQ)
        dy3 = cy.reshape(1, 1, TQ) - qy_ref[...]                       # (H, 1, TQ)
    else:
        # Fallback: precomputed selection-matmul reduction.
        dyb = cy - qy_ref[...]                                         # (HW, TQ)

    use_matmul_dap = D >= 49
    acc = None if use_matmul_dap else jnp.zeros((D, TQ), jnp.float32)

    for j in range(R):                               # y displacement dy = j - radius
        if use_reshape:
            wy3 = jnp.maximum(0.0, 1.0 - jnp.abs(dy3 + float(j - radius)))   # (H,1,TQ)
            t_j = jnp.sum(wy3 * s3, axis=0)                                  # (W, TQ)
        else:
            wy = jnp.maximum(0.0, 1.0 - jnp.abs(dyb + float(j - radius)))    # (HW,TQ)
            t_j = jnp.dot(msel, wy * s, preferred_element_type=jnp.float32)  # (W, TQ)
        for i in range(R):                           # x displacement dx = i - radius
            d = i * R + j
            corr_row = jnp.sum(wx[i] * t_j, axis=0, keepdims=True)           # (1, TQ)
            if use_matmul_dap:
                # Stage raw corr rows in the output block; DAP applied once below.
                out_ref[d:d + 1, :] = corr_row.astype(out_ref.dtype)
            else:
                # DAP fused as a rank-1 update (cheap for D <= 25).
                acc = acc + dapw[:, d:d + 1] * corr_row                      # (D, TQ)

    if use_matmul_dap:
        corr = out_ref[...].astype(jnp.float32)                              # (D, TQ)
        out_ref[...] = jnp.dot(dapw, corr,
                               preferred_element_type=jnp.float32).astype(out_ref.dtype)
    else:
        out_ref[...] = acc.astype(out_ref.dtype)     # single lane-dense store


def _default_vmem_limit():
    """~7/8 of physical VMEM: ~112 MiB on v5e/v6e (128 MiB), ~56 MiB on v7x (64 MiB)."""
    cap = None
    try:
        cap = getattr(pltpu.get_tpu_info(), "vmem_capacity_bytes", None)
    except Exception:
        cap = None
    if not cap:
        cap = 64 * 1024 * 1024          # conservative fallback = v7x physical VMEM
    return (int(cap) * 7) // 8


def _choose_query_tile(hw, C, D, W, use_reshape, vmem_limit_bytes):
    """Largest TQ in {512, 384, 256, 128} whose full VMEM footprint fits the budget.

    Footprint counts the resident f2 block (conservatively x2 buffers even when
    Buffered(1) is applied), the f1/coords/out double buffers, msel / qy helper
    inputs, and ~4 live (HW, TQ) f32 in-kernel slabs (score matrix, tent, product,
    slack)."""
    def footprint(tq):
        f2_b = 2 * hw * C * 4
        aux_b = 0 if use_reshape else 2 * (W * hw + hw * 128) * 4
        io_b = 2 * 4 * tq * (C + 8 + max(D, 8))
        inter_b = 4 * hw * tq * 4
        misc_b = 4 * D * D * 4 + (2 << 20)
        return f2_b + aux_b + io_b + inter_b + misc_b

    hw_ceil = -(-hw // 128) * 128
    for tq in (512, 384, 256, 128):
        if tq <= hw_ceil and footprint(tq) <= vmem_limit_bytes:
            return tq
    # TODO(synk): for extreme HW*C even TQ=128 overflows; that regime needs
    # source-axis tiling with online accumulation (not required for flow-sized maps).
    return 128


def correlation_pallas(f1, f2, coords, dap_weight, radius, *, tq=None,
                       vmem_limit_bytes=None):
    B, C, H, W = f1.shape
    R = 2 * radius + 1
    D = R * R
    HW = H * W
    use_reshape = (W % 8 == 0)          # (HW,TQ)->(H,W,TQ) is a free relayout

    if vmem_limit_bytes is None:
        vmem_limit_bytes = _default_vmem_limit()
    if tq is None:
        tq = _choose_query_tile(HW, C, D, W, use_reshape, vmem_limit_bytes)

    # Pad the query axis to a multiple of TQ (padded queries: zero f1 -> zero
    # output, dropped below), so any H*W works without blowing up the tile size.
    hw_pad = -(-HW // tq) * tq

    # Kernel-facing layouts:
    #   f1     -> (B, C, HWp)  queries in lanes
    #   f2     -> (B, HW, C)   source pixels in sublanes (resident per batch)
    #   coords -> (B, 2, HWp)  lane-dense cx / cy rows
    #   dap    -> (D, D)       pre-scaled by 1/sqrt(C)
    # TODO(synk): the f2 NCHW->channels-last transpose is an extra HBM read+write of
    # f2; feed channels-last features from the producer to remove it.
    f1_cq = f1.reshape(B, C, HW)
    coords_q = coords.reshape(B, 2, HW)
    if hw_pad != HW:
        f1_cq = jnp.pad(f1_cq, ((0, 0), (0, 0), (0, hw_pad - HW)))
        coords_q = jnp.pad(coords_q, ((0, 0), (0, 0), (0, hw_pad - HW)))
    f2_qc = jnp.transpose(f2, (0, 2, 3, 1)).reshape(B, HW, C)
    dap_scaled = (dap_weight / math.sqrt(C)).astype(jnp.float32)

    inputs = [f1_cq, f2_qc, coords_q, dap_scaled]
    aux_specs = []
    if use_reshape:
        qy_arr = jnp.arange(H, dtype=jnp.float32).reshape(H, 1, 1)
        inputs.append(qy_arr)
        aux_specs.append(pl.BlockSpec((H, 1, 1), lambda b, t: (0, 0, 0)))
    else:
        # Grid-invariant helpers, precomputed once (no per-step iota / int-div).
        qy_arr = (jnp.arange(HW, dtype=jnp.int32) // W).astype(jnp.float32).reshape(HW, 1)
        msel = (jnp.arange(HW, dtype=jnp.int32)[None, :] % W
                == jnp.arange(W, dtype=jnp.int32)[:, None]).astype(jnp.float32)
        inputs.extend([qy_arr, msel])
        aux_specs.append(pl.BlockSpec((HW, 1), lambda b, t: (0, 0)))
        aux_specs.append(pl.BlockSpec((W, HW), lambda b, t: (0, 0)))

    kernel = functools.partial(_corr_kernel, H=H, W=W, radius=radius,
                               use_reshape=use_reshape)

    grid = (B, hw_pad // tq)
    # v7x megacore: with B >= 2 split the cores over batches (one resident f2 copy
    # per core per batch); with B == 1 the query-tile axis carries the parallelism.
    # v5e/v6e (single TensorCore) are unaffected.
    dim_sem = ("parallel", "arbitrary") if B > 1 else ("parallel", "parallel")

    # Advisory cost estimate: score matmuls dominate flops; f2 read once per batch.
    flops = 2 * B * hw_pad * HW * C + 2 * B * R * hw_pad * HW + 2 * B * hw_pad * D * D
    bytes_accessed = 4 * (f1_cq.size + f2_qc.size + coords_q.size
                          + dap_scaled.size + B * D * hw_pad)
    cost = pl.CostEstimate(flops=int(flops), transcendentals=0,
                           bytes_accessed=int(bytes_accessed))

    def build(single_buffer_f2):
        f2_kw = {}
        if single_buffer_f2 and hasattr(pl, "Buffered"):
            # f2's block index only changes with the batch: single-buffer it so the
            # largest VMEM consumer is not doubled (matters inside v7x's 64 MiB).
            f2_kw["pipeline_mode"] = pl.Buffered(1)
        in_specs = [
            pl.BlockSpec((None, C, tq), lambda b, t: (b, 0, t)),
            pl.BlockSpec((None, HW, C), lambda b, t: (b, 0, 0), **f2_kw),
            pl.BlockSpec((None, 2, tq), lambda b, t: (b, 0, t)),
            pl.BlockSpec((D, D), lambda b, t: (0, 0)),
        ] + aux_specs
        return pl.pallas_call(
            kernel,
            out_shape=jax.ShapeDtypeStruct((B, D, hw_pad), jnp.float32),
            grid_spec=pltpu.PrefetchScalarGridSpec(
                num_scalar_prefetch=0,
                grid=grid,
                in_specs=in_specs,
                out_specs=pl.BlockSpec((None, D, tq), lambda b, t: (b, 0, t)),
            ),
            compiler_params=pltpu.CompilerParams(
                dimension_semantics=dim_sem,
                vmem_limit_bytes=int(vmem_limit_bytes),
            ),
            cost_estimate=cost,
        )

    try:
        out = build(True)(*inputs)
    except Exception:
        out = build(False)(*inputs)      # fallback if Buffered(1) is unsupported

    # (B, D, HWp) already matches the PyTorch channel order: drop query padding,
    # un-flatten space.
    return out[:, :, :HW].reshape(B, D, H, W)


def correlation_reference(f1, f2, coords, dap_weight, radius):
    """Pure-JAX reference with identical math (bilinear tent == grid_sample zeros,
    align_corners=True); output channel d = i*(2r+1)+j with dx = i-r, dy = j-r."""
    B, C, H, W = f1.shape
    R = 2 * radius + 1
    xs = jnp.arange(W, dtype=jnp.float32)
    ys = jnp.arange(H, dtype=jnp.float32)
    hi = jax.lax.Precision.HIGHEST
    cols = []
    for i in range(R):
        for j in range(R):
            px = coords[:, 0] + float(i - radius)                      # (B,H,W)
            py = coords[:, 1] + float(j - radius)
            wx = jnp.maximum(0.0, 1.0 - jnp.abs(px[..., None] - xs))   # (B,H,W,W)
            wy = jnp.maximum(0.0, 1.0 - jnp.abs(py[..., None] - ys))   # (B,H,W,H)
            sampled = jnp.einsum('bhwy,bhwx,bcyx->bchw', wy, wx, f2, precision=hi)
            cols.append(jnp.sum(sampled * f1, axis=1) / math.sqrt(C))
    corr = jnp.stack(cols, axis=1)                                     # (B,D,H,W)
    return jnp.einsum('oi,bihw->bohw', dap_weight, corr, precision=hi)


if __name__ == "__main__":
    def run_case(key, B, C, H, W, radius, tq=None):
        R = 2 * radius + 1
        D = R * R
        k1, k2, k3, k4 = jax.random.split(key, 4)
        f1 = jax.random.normal(k1, (B, C, H, W), jnp.float32)
        f2 = jax.random.normal(k2, (B, C, H, W), jnp.float32)

        ys, xs = jnp.meshgrid(jnp.arange(H, dtype=jnp.float32),
                              jnp.arange(W, dtype=jnp.float32), indexing='ij')
        base = jnp.stack([xs, ys], axis=0)[None]              # (1,2,H,W): ch0=x, ch1=y
        coords = base + 3.0 * jax.random.normal(k3, (B, 2, H, W), jnp.float32)

        # DAP 1x1-conv weight: identity init plus a small perturbation so the
        # projection path is numerically exercised.
        dap_weight = (jnp.eye(D, dtype=jnp.float32)
                      + 0.01 * jax.random.normal(k4, (D, D), jnp.float32))

        out = jax.block_until_ready(
            correlation_pallas(f1, f2, coords, dap_weight, radius, tq=tq))
        ref = correlation_reference(f1, f2, coords, dap_weight, radius)
        assert out.shape == (B, D, H, W), (out.shape, (B, D, H, W))
        np.testing.assert_allclose(np.asarray(out), np.asarray(ref),
                                   rtol=1e-3, atol=1e-3)

    key = jax.random.PRNGKey(0)
    k_a, k_b, k_c, k_d = jax.random.split(key, 4)
    # W % 8 == 0 fast path, B > 1 (cores split on batch), auto TQ = 256.
    run_case(k_a, B=2, C=8, H=16, W=16, radius=2)
    # Non-square map, single batch, auto TQ = 128 (HW = 128).
    run_case(k_b, B=1, C=16, H=8, W=16, radius=1)
    # W % 8 != 0 -> precomputed selection-matmul fallback + query padding (120 -> 128).
    run_case(k_c, B=1, C=8, H=10, W=12, radius=1)
    # radius >= 3 (D = 49): DAP applied as a single (D,D)x(D,TQ) matmul.
    run_case(k_d, B=1, C=8, H=16, W=16, radius=3)
    print("KERNEL_OK")
</pallas_src>

<mosaic_0001>
module attributes {stable_mosaic.version = 11 : i64} {
  func.func @_corr_kernel(%arg0: i32, %arg1: i32, %arg2: memref<1x8x256xf32, #tpu.memory_space<vmem>>, %arg3: memref<1x256x8xf32, #tpu.memory_space<vmem>>, %arg4: memref<1x2x256xf32, #tpu.memory_space<vmem>>, %arg5: memref<25x25xf32, #tpu.memory_space<vmem>>, %arg6: memref<16x1x1xf32, #tpu.memory_space<vmem>>, %arg7: memref<1x25x256xf32, #tpu.memory_space<vmem>>) attributes {dimension_semantics = [#tpu.dimension_semantics<parallel>, #tpu.dimension_semantics<arbitrary>], iteration_bounds = array<i64: 2, 1>, scalar_prefetch = 0 : i64, scratch_operands = 0 : i64, tpu.core_type = #tpu.core_type<tc>, window_params = [{transform_indices = @transform_0, window_bounds = array<i64: 1, 8, 256>}, {pipeline_mode = #tpu.pipeline_mode<synchronous>, transform_indices = @transform_1, window_bounds = array<i64: 1, 256, 8>}, {transform_indices = @transform_2, window_bounds = array<i64: 1, 2, 256>}, {pipeline_mode = #tpu.pipeline_mode<synchronous>, transform_indices = @transform_3, window_bounds = array<i64: 25, 25>}, {pipeline_mode = #tpu.pipeline_mode<synchronous>, transform_indices = @transform_4, window_bounds = array<i64: 16, 1, 1>}, {transform_indices = @transform_5, window_bounds = array<i64: 1, 25, 256>}]} {
    %c0 = arith.constant 0 : index
    %c0_0 = arith.constant 0 : index
    %c0_1 = arith.constant 0 : index
    %0 = vector.load %arg2[%c0, %c0_0, %c0_1] : memref<1x8x256xf32, #tpu.memory_space<vmem>>, vector<1x8x256xf32>
    %1 = vector.shape_cast %0 : vector<1x8x256xf32> to vector<8x256xf32>
    %c0_2 = arith.constant 0 : index
    %c0_3 = arith.constant 0 : index
    %c0_4 = arith.constant 0 : index
    %2 = vector.load %arg3[%c0_2, %c0_3, %c0_4] : memref<1x256x8xf32, #tpu.memory_space<vmem>>, vector<1x256x8xf32>
    %3 = vector.shape_cast %2 : vector<1x256x8xf32> to vector<256x8xf32>
    %c0_5 = arith.constant 0 : index
    %c0_6 = arith.constant 0 : index
    %c0_7 = arith.constant 0 : index
    %4 = vector.load %arg4[%c0_5, %c0_6, %c0_7] : memref<1x2x256xf32, #tpu.memory_space<vmem>>, vector<1x1x256xf32>
    %5 = vector.shape_cast %4 : vector<1x1x256xf32> to vector<1x256xf32>
    %c0_8 = arith.constant 0 : index
    %c1 = arith.constant 1 : index
    %c0_9 = arith.constant 0 : index
    %6 = vector.load %arg4[%c0_8, %c1, %c0_9] : memref<1x2x256xf32, #tpu.memory_space<vmem>>, vector<1x1x256xf32>
    %7 = vector.shape_cast %6 : vector<1x1x256xf32> to vector<1x256xf32>
    %c0_10 = arith.constant 0 : index
    %c0_11 = arith.constant 0 : index
    %8 = vector.load %arg5[%c0_10, %c0_11] : memref<25x25xf32, #tpu.memory_space<vmem>>, vector<25x25xf32>
    %cst = arith.constant dense<0.000000e+00> : vector<256x256xf32>
    %9 = tpu.matmul %3, %1, %cst {dimension_numbers = #tpu.dot_dimension_numbers<[1], [0], [0], [1], [0, 0, 1, 1], [], []>} : vector<256x8xf32>, vector<8x256xf32>, vector<256x256xf32> -> vector<256x256xf32>
    %10 = tpu.iota {dimensions = array<i32: 0>} : vector<16x1xi32>
    %11 = arith.sitofp %10 : vector<16x1xi32> to vector<16x1xf32>
    %12 = vector.broadcast %5 : vector<1x256xf32> to vector<16x256xf32>
    %13 = vector.broadcast %11 : vector<16x1xf32> to vector<16x256xf32>
    %14 = arith.subf %12, %13 : vector<16x256xf32>
    %cst_12 = arith.constant -2.000000e+00 : f32
    %15 = vector.broadcast %cst_12 : f32 to vector<16x256xf32>
    %16 = arith.addf %14, %15 : vector<16x256xf32>
    %17 = math.absf %16 : vector<16x256xf32>
    %cst_13 = arith.constant 1.000000e+00 : f32
    %18 = vector.broadcast %cst_13 : f32 to vector<16x256xf32>
    %19 = arith.subf %18, %17 : vector<16x256xf32>
    %cst_14 = arith.constant 0.000000e+00 : f32
    %20 = vector.broadcast %cst_14 : f32 to vector<16x256xf32>
    %21 = arith.maximumf %20, %19 : vector<16x256xf32>
    %cst_15 = arith.constant -1.000000e+00 : f32
    %22 = vector.broadcast %cst_15 : f32 to vector<16x256xf32>
    %23 = arith.addf %14, %22 : vector<16x256xf32>
    %24 = math.absf %23 : vector<16x256xf32>
    %cst_16 = arith.constant 1.000000e+00 : f32
    %25 = vector.broadcast %cst_16 : f32 to vector<16x256xf32>
    %26 = arith.subf %25, %24 : vector<16x256xf32>
    %cst_17 = arith.constant 0.000000e+00 : f32
    %27 = vector.broadcast %cst_17 : f32 to vector<16x256xf32>
    %28 = arith.maximumf %27, %26 : vector<16x256xf32>
    %cst_18 = arith.constant 0.000000e+00 : f32
    %29 = vector.broadcast %cst_18 : f32 to vector<16x256xf32>
    %30 = arith.addf %14, %29 : vector<16x256xf32>
    %31 = math.absf %30 : vector<16x256xf32>
    %cst_19 = arith.constant 1.000000e+00 : f32
    %32 = vector.broadcast %cst_19 : f32 to vector<16x256xf32>
    %33 = arith.subf %32, %31 : vector<16x256xf32>
    %cst_20 = arith.constant 0.000000e+00 : f32
    %34 = vector.broadcast %cst_20 : f32 to vector<16x256xf32>
    %35 = arith.maximumf %34, %33 : vector<16x256xf32>
    %cst_21 = arith.constant 1.000000e+00 : f32
    %36 = vector.broadcast %cst_21 : f32 to vector<16x256xf32>
    %37 = arith.addf %14, %36 : vector<16x256xf32>
    %38 = math.absf %37 : vector<16x256xf32>
    %cst_22 = arith.constant 1.000000e+00 : f32
    %39 = vector.broadcast %cst_22 : f32 to vector<16x256xf32>
    %40 = arith.subf %39, %38 : vector<16x256xf32>
    %cst_23 = arith.constant 0.000000e+00 : f32
    %41 = vector.broadcast %cst_23 : f32 to vector<16x256xf32>
    %42 = arith.maximumf %41, %40 : vector<16x256xf32>
    %cst_24 = arith.constant 2.000000e+00 : f32
    %43 = vector.broadcast %cst_24 : f32 to vector<16x256xf32>
    %44 = arith.addf %14, %43 : vector<16x256xf32>
    %45 = math.absf %44 : vector<16x256xf32>
    %cst_25 = arith.constant 1.000000e+00 : f32
    %46 = vector.broadcast %cst_25 : f32 to vector<16x256xf32>
    %47 = arith.subf %46, %45 : vector<16x256xf32>
    %cst_26 = arith.constant 0.000000e+00 : f32
    %48 = vector.broadcast %cst_26 : f32 to vector<16x256xf32>
    %49 = arith.maximumf %48, %47 : vector<16x256xf32>
    %50 = vector.shape_cast %9 : vector<256x256xf32> to vector<16x16x256xf32>
    %51 = vector.shape_cast %7 : vector<1x256xf32> to vector<1x1x256xf32>
    %c0_27 = arith.constant 0 : index
    %c0_28 = arith.constant 0 : index
    %c0_29 = arith.constant 0 : index
    %52 = vector.load %arg6[%c0_27, %c0_28, %c0_29] : memref<16x1x1xf32, #tpu.memory_space<vmem>>, vector<16x1x1xf32>
    %53 = vector.broadcast %51 : vector<1x1x256xf32> to vector<16x1x256xf32>
    %54 = vector.broadcast %52 : vector<16x1x1xf32> to vector<16x1x256xf32>
    %55 = arith.subf %53, %54 : vector<16x1x256xf32>
    %cst_30 = arith.constant 0.000000e+00 : f32
    %56 = vector.broadcast %cst_30 : f32 to vector<25x256xf32>
    %cst_31 = arith.constant -2.000000e+00 : f32
    %57 = vector.broadcast %cst_31 : f32 to vector<16x1x256xf32>
    %58 = arith.addf %55, %57 : vector<16x1x256xf32>
    %59 = math.absf %58 : vector<16x1x256xf32>
    %cst_32 = arith.constant 1.000000e+00 : f32
    %60 = vector.broadcast %cst_32 : f32 to vector<16x1x256xf32>
    %61 = arith.subf %60, %59 : vector<16x1x256xf32>
    %cst_33 = arith.constant 0.000000e+00 : f32
    %62 = vector.broadcast %cst_33 : f32 to vector<16x1x256xf32>
    %63 = arith.maximumf %62, %61 : vector<16x1x256xf32>
    %64 = vector.broadcast %63 : vector<16x1x256xf32> to vector<16x16x256xf32>
    %65 = arith.mulf %64, %50 : vector<16x16x256xf32>
    %cst_34 = arith.constant dense<0.000000e+00> : vector<16x256xf32>
    %66 = vector.multi_reduction <add>, %65, %cst_34 [0] : vector<16x16x256xf32> to vector<16x256xf32>
    %67 = arith.mulf %21, %66 : vector<16x256xf32>
    %cst_35 = arith.constant dense<0.000000e+00> : vector<256xf32>
    %68 = vector.multi_reduction <add>, %67, %cst_35 [0] : vector<16x256xf32> to vector<256xf32>
    %69 = vector.shape_cast %68 : vector<256xf32> to vector<1x256xf32>
    %70 = vector.extract_strided_slice %8 {offsets = [0, 0], sizes = [25, 1], strides = [1, 1]} : vector<25x25xf32> to vector<25x1xf32>
    %71 = vector.broadcast %70 : vector<25x1xf32> to vector<25x256xf32>
    %72 = vector.broadcast %69 : vector<1x256xf32> to vector<25x256xf32>
    %73 = arith.mulf %71, %72 : vector<25x256xf32>
    %74 = arith.addf %56, %73 : vector<25x256xf32>
    %75 = arith.mulf %28, %66 : vector<16x256xf32>
    %cst_36 = arith.constant dense<0.000000e+00> : vector<256xf32>
    %76 = vector.multi_reduction <add>, %75, %cst_36 [0] : vector<16x256xf32> to vector<256xf32>
    %77 = vector.shape_cast %76 : vector<256xf32> to vector<1x256xf32>
    %78 = vector.extract_strided_slice %8 {offsets = [0, 5], sizes = [25, 1], strides = [1, 1]} : vector<25x25xf32> to vector<25x1xf32>
    %79 = vector.broadcast %78 : vector<25x1xf32> to vector<25x256xf32>
    %80 = vector.broadcast %77 : vector<1x256xf32> to vector<25x256xf32>
    %81 = arith.mulf %79, %80 : vector<25x256xf32>
    %82 = arith.addf %74, %81 : vector<25x256xf32>
    %83 = arith.mulf %35, %66 : vector<16x256xf32>
    %cst_37 = arith.constant dense<0.000000e+00> : vector<256xf32>
    %84 = vector.multi_reduction <add>, %83, %cst_37 [0] : vector<16x256xf32> to vector<256xf32>
    %85 = vector.shape_cast %84 : vector<256xf32> to vector<1x256xf32>
    %86 = vector.extract_strided_slice %8 {offsets = [0, 10], sizes = [25, 1], strides = [1, 1]} : vector<25x25xf32> to vector<25x1xf32>
    %87 = vector.broadcast %86 : vector<25x1xf32> to vector<25x256xf32>
    %88 = vector.broadcast %85 : vector<1x256xf32> to vector<25x256xf32>
    %89 = arith.mulf %87, %88 : vector<25x256xf32>
    %90 = arith.addf %82, %89 : vector<25x256xf32>
    %91 = arith.mulf %42, %66 : vector<16x256xf32>
    %cst_38 = arith.constant dense<0.000000e+00> : vector<256xf32>
    %92 = vector.multi_reduction <add>, %91, %cst_38 [0] : vector<16x256xf32> to vector<256xf32>
    %93 = vector.shape_cast %92 : vector<256xf32> to vector<1x256xf32>
    %94 = vector.extract_strided_slice %8 {offsets = [0, 15], sizes = [25, 1], strides = [1, 1]} : vector<25x25xf32> to vector<25x1xf32>
    %95 = vector.broadcast %94 : vector<25x1xf32> to vector<25x256xf32>
    %96 = vector.broadcast %93 : vector<1x256xf32> to vector<25x256xf32>
    %97 = arith.mulf %95, %96 : vector<25x256xf32>
    %98 = arith.addf %90, %97 : vector<25x256xf32>
    %99 = arith.mulf %49, %66 : vector<16x256xf32>
    %cst_39 = arith.constant dense<0.000000e+00> : vector<256xf32>
    %100 = vector.multi_reduction <add>, %99, %cst_39 [0] : vector<16x256xf32> to vector<256xf32>
    %101 = vector.shape_cast %100 : vector<256xf32> to vector<1x256xf32>
    %102 = vector.extract_strided_slice %8 {offsets = [0, 20], sizes = [25, 1], strides = [1, 1]} : vector<25x25xf32> to vector<25x1xf32>
    %103 = vector.broadcast %102 : vector<25x1xf32> to vector<25x256xf32>
    %104 = vector.broadcast %101 : vector<1x256xf32> to vector<25x256xf32>
    %105 = arith.mulf %103, %104 : vector<25x256xf32>
    %106 = arith.addf %98, %105 : vector<25x256xf32>
    %cst_40 = arith.constant -1.000000e+00 : f32
    %107 = vector.broadcast %cst_40 : f32 to vector<16x1x256xf32>
    %108 = arith.addf %55, %107 : vector<16x1x256xf32>
    %109 = math.absf %108 : vector<16x1x256xf32>
    %cst_41 = arith.constant 1.000000e+00 : f32
    %110 = vector.broadcast %cst_41 : f32 to vector<16x1x256xf32>
    %111 = arith.subf %110, %109 : vector<16x1x256xf32>
    %cst_42 = arith.constant 0.000000e+00 : f32
    %112 = vector.broadcast %cst_42 : f32 to vector<16x1x256xf32>
    %113 = arith.maximumf %112, %111 : vector<16x1x256xf32>
    %114 = vector.broadcast %113 : vector<16x1x256xf32> to vector<16x16x256xf32>
    %115 = arith.mulf %114, %50 : vector<16x16x256xf32>
    %cst_43 = arith.constant dense<0.000000e+00> : vector<16x256xf32>
    %116 = vector.multi_reduction <add>, %115, %cst_43 [0] : vector<16x16x256xf32> to vector<16x256xf32>
    %117 = arith.mulf %21, %116 : vector<16x256xf32>
    %cst_44 = arith.constant dense<0.000000e+00> : vector<256xf32>
    %118 = vector.multi_reduction <add>, %117, %cst_44 [0] : vector<16x256xf32> to vector<256xf32>
    %119 = vector.shape_cast %118 : vector<256xf32> to vector<1x256xf32>
    %120 = vector.extract_strided_slice %8 {offsets = [0, 1], sizes = [25, 1], strides = [1, 1]} : vector<25x25xf32> to vector<25x1xf32>
    %121 = vector.broadcast %120 : vector<25x1xf32> to vector<25x256xf32>
    %122 = vector.broadcast %119 : vector<1x256xf32> to vector<25x256xf32>
    %123 = arith.mulf %121, %122 : vector<25x256xf32>
    %124 = arith.addf %106, %123 : vector<25x256xf32>
    %125 = arith.mulf %28, %116 : vector<16x256xf32>
    %cst_45 = arith.constant dense<0.000000e+00> : vector<256xf32>
    %126 = vector.multi_reduction <add>, %125, %cst_45 [0] : vector<16x256xf32> to vector<256xf32>
    %127 = vector.shape_cast %126 : vector<256xf32> to vector<1x256xf32>
    %128 = vector.extract_strided_slice %8 {offsets = [0, 6], sizes = [25, 1], strides = [1, 1]} : vector<25x25xf32> to vector<25x1xf32>
    %129 = vector.broadcast %128 : vector<25x1xf32> to vector<25x256xf32>
    %130 = vector.broadcast %127 : vector<1x256xf32> to vector<25x256xf32>
    %131 = arith.mulf %129, %130 : vector<25x256xf32>
    %132 = arith.addf %124, %131 : vector<25x256xf32>
    %133 = arith.mulf %35, %116 : vector<16x256xf32>
    %cst_46 = arith.constant dense<0.000000e+00> : vector<256xf32>
    %134 = vector.multi_reduction <add>, %133, %cst_46 [0] : vector<16x256xf32> to vector<256xf32>
    %135 = vector.shape_cast %134 : vector<256xf32> to vector<1x256xf32>
    %136 = vector.extract_strided_slice %8 {offsets = [0, 11], sizes = [25, 1], strides = [1, 1]} : vector<25x25xf32> to vector<25x1xf32>
    %137 = vector.broadcast %136 : vector<25x1xf32> to vector<25x256xf32>
    %138 = vector.broadcast %135 : vector<1x256xf32> to vector<25x256xf32>
    %139 = arith.mulf %137, %138 : vector<25x256xf32>
    %140 = arith.addf %132, %139 : vector<25x256xf32>
    %141 = arith.mulf %42, %116 : vector<16x256xf32>
    %cst_47 = arith.constant dense<0.000000e+00> : vector<256xf32>
    %142 = vector.multi_reduction <add>, %141, %cst_47 [0] : vector<16x256xf32> to vector<256xf32>
    %143 = vector.shape_cast %142 : vector<256xf32> to vector<1x256xf32>
    %144 = vector.extract_strided_slice %8 {offsets = [0, 16], sizes = [25, 1], strides = [1, 1]} : vector<25x25xf32> to vector<25x1xf32>
    %145 = vector.broadcast %144 : vector<25x1xf32> to vector<25x256xf32>
    %146 = vector.broadcast %143 : vector<1x256xf32> to vector<25x256xf32>
    %147 = arith.mulf %145, %146 : vector<25x256xf32>
    %148 = arith.addf %140, %147 : vector<25x256xf32>
    %149 = arith.mulf %49, %116 : vector<16x256xf32>
    %cst_48 = arith.constant dense<0.000000e+00> : vector<256xf32>
    %150 = vector.multi_reduction <add>, %149, %cst_48 [0] : vector<16x256xf32> to vector<256xf32>
    %151 = vector.shape_cast %150 : vector<256xf32> to vector<1x256xf32>
    %152 = vector.extract_strided_slice %8 {offsets = [0, 21], sizes = [25, 1], strides = [1, 1]} : vector<25x25xf32> to vector<25x1xf32>
    %153 = vector.broadcast %152 : vector<25x1xf32> to vector<25x256xf32>
    %154 = vector.broadcast %151 : vector<1x256xf32> to vector<25x256xf32>
    %155 = arith.mulf %153, %154 : vector<25x256xf32>
    %156 = arith.addf %148, %155 : vector<25x256xf32>
    %cst_49 = arith.constant 0.000000e+00 : f32
    %157 = vector.broadcast %cst_49 : f32 to vector<16x1x256xf32>
    %158 = arith.addf %55, %157 : vector<16x1x256xf32>
    %159 = math.absf %158 : vector<16x1x256xf32>
    %cst_50 = arith.constant 1.000000e+00 : f32
    %160 = vector.broadcast %cst_50 : f32 to vector<16x1x256xf32>
    %161 = arith.subf %160, %159 : vector<16x1x256xf32>
    %cst_51 = arith.constant 0.000000e+00 : f32
    %162 = vector.broadcast %cst_51 : f32 to vector<16x1x256xf32>
    %163 = arith.maximumf %162, %161 : vector<16x1x256xf32>
    %164 = vector.broadcast %163 : vector<16x1x256xf32> to vector<16x16x256xf32>
    %165 = arith.mulf %164, %50 : vector<16x16x256xf32>
    %cst_52 = arith.constant dense<0.000000e+00> : vector<16x256xf32>
    %166 = vector.multi_reduction <add>, %165, %cst_52 [0] : vector<16x16x256xf32> to vector<16x256xf32>
    %167 = arith.mulf %21, %166 : vector<16x256xf32>
    %cst_53 = arith.constant dense<0.000000e+00> : vector<256xf32>
    %168 = vector.multi_reduction <add>, %167, %cst_53 [0] : vector<16x256xf32> to vector<256xf32>
    %169 = vector.shape_cast %168 : vector<256xf32> to vector<1x256xf32>
    %170 = vector.extract_strided_slice %8 {offsets = [0, 2], sizes = [25, 1], strides = [1, 1]} : vector<25x25xf32> to vector<25x1xf32>
    %171 = vector.broadcast %170 : vector<25x1xf32> to vector<25x256xf32>
    %172 = vector.broadcast %169 : vector<1x256xf32> to vector<25x256xf32>
    %173 = arith.mulf %171, %172 : vector<25x256xf32>
    %174 = arith.addf %156, %173 : vector<25x256xf32>
    %175 = arith.mulf %28, %166 : vector<16x256xf32>
    %cst_54 = arith.constant dense<0.000000e+00> : vector<256xf32>
    %176 = vector.multi_reduction <add>, %175, %cst_54 [0] : vector<16x256xf32> to vector<256xf32>
    %177 = vector.shape_cast %176 : vector<256xf32> to vector<1x256xf32>
    %178 = vector.extract_strided_slice %8 {offsets = [0, 7], sizes = [25, 1], strides = [1, 1]} : vector<25x25xf32> to vector<25x1xf32>
    %179 = vector.broadcast %178 : vector<25x1xf32> to vector<25x256xf32>
    %180 = vector.broadcast %177 : vector<1x256xf32> to vector<25x256xf32>
    %181 = arith.mulf %179, %180 : vector<25x256xf32>
    %182 = arith.addf %174, %181 : vector<25x256xf32>
    %183 = arith.mulf %35, %166 : vector<16x256xf32>
    %cst_55 = arith.constant dense<0.000000e+00> : vector<256xf32>
    %184 = vector.multi_reduction <add>, %183, %cst_55 [0] : vector<16x256xf32> to vector<256xf32>
    %185 = vector.shape_cast %184 : vector<256xf32> to vector<1x256xf32>
    %186 = vector.extract_strided_slice %8 {offsets = [0, 12], sizes = [25, 1], strides = [1, 1]} : vector<25x25xf32> to vector<25x1xf32>
    %187 = vector.broadcast %186 : vector<25x1xf32> to vector<25x256xf32>
    %188 = vector.broadcast %185 : vector<1x256xf32> to vector<25x256xf32>
    %189 = arith.mulf %187, %188 : vector<25x256xf32>
    %190 = arith.addf %182, %189 : vector<25x256xf32>
    %191 = arith.mulf %42, %166 : vector<16x256xf32>
    %cst_56 = arith.constant dense<0.000000e+00> : vector<256xf32>
    %192 = vector.multi_reduction <add>, %191, %cst_56 [0] : vector<16x256xf32> to vector<256xf32>
    %193 = vector.shape_cast %192 : vector<256xf32> to vector<1x256xf32>
    %194 = vector.extract_strided_slice %8 {offsets = [0, 17], sizes = [25, 1], strides = [1, 1]} : vector<25x25xf32> to vector<25x1xf32>
    %195 = vector.broadcast %194 : vector<25x1xf32> to vector<25x256xf32>
    %196 = vector.broadcast %193 : vector<1x256xf32> to vector<25x256xf32>
    %197 = arith.mulf %195, %196 : vector<25x256xf32>
    %198 = arith.addf %190, %197 : vector<25x256xf32>
    %199 = arith.mulf %49, %166 : vector<16x256xf32>
    %cst_57 = arith.constant dense<0.000000e+00> : vector<256xf32>
    %200 = vector.multi_reduction <add>, %199, %cst_57 [0] : vector<16x256xf32> to vector<256xf32>
    %201 = vector.shape_cast %200 : vector<256xf32> to vector<1x256xf32>
    %202 = vector.extract_strided_slice %8 {offsets = [0, 22], sizes = [25, 1], strides = [1, 1]} : vector<25x25xf32> to vector<25x1xf32>
    %203 = vector.broadcast %202 : vector<25x1xf32> to vector<25x256xf32>
    %204 = vector.broadcast %201 : vector<1x256xf32> to vector<25x256xf32>
    %205 = arith.mulf %203, %204 : vector<25x256xf32>
    %206 = arith.addf %198, %205 : vector<25x256xf32>
    %cst_58 = arith.constant 1.000000e+00 : f32
    %207 = vector.broadcast %cst_58 : f32 to vector<16x1x256xf32>
    %208 = arith.addf %55, %207 : vector<16x1x256xf32>
    %209 = math.absf %208 : vector<16x1x256xf32>
    %cst_59 = arith.constant 1.000000e+00 : f32
    %210 = vector.broadcast %cst_59 : f32 to vector<16x1x256xf32>
    %211 = arith.subf %210, %209 : vector<16x1x256xf32>
    %cst_60 = arith.constant 0.000000e+00 : f32
    %212 = vector.broadcast %cst_60 : f32 to vector<16x1x256xf32>
    %213 = arith.maximumf %212, %211 : vector<16x1x256xf32>
    %214 = vector.broadcast %213 : vector<16x1x256xf32> to vector<16x16x256xf32>
    %215 = arith.mulf %214, %50 : vector<16x16x256xf32>
    %cst_61 = arith.constant dense<0.000000e+00> : vector<16x256xf32>
    %216 = vector.multi_reduction <add>, %215, %cst_61 [0] : vector<16x16x256xf32> to vector<16x256xf32>
    %217 = arith.mulf %21, %216 : vector<16x256xf32>
    %cst_62 = arith.constant dense<0.000000e+00> : vector<256xf32>
    %218 = vector.multi_reduction <add>, %217, %cst_62 [0] : vector<16x256xf32> to vector<256xf32>
    %219 = vector.shape_cast %218 : vector<256xf32> to vector<1x256xf32>
    %220 = vector.extract_strided_slice %8 {offsets = [0, 3], sizes = [25, 1], strides = [1, 1]} : vector<25x25xf32> to vector<25x1xf32>
    %221 = vector.broadcast %220 : vector<25x1xf32> to vector<25x256xf32>
    %222 = vector.broadcast %219 : vector<1x256xf32> to vector<25x256xf32>
    %223 = arith.mulf %221, %222 : vector<25x256xf32>
    %224 = arith.addf %206, %223 : vector<25x256xf32>
    %225 = arith.mulf %28, %216 : vector<16x256xf32>
    %cst_63 = arith.constant dense<0.000000e+00> : vector<256xf32>
    %226 = vector.multi_reduction <add>, %225, %cst_63 [0] : vector<16x256xf32> to vector<256xf32>
    %227 = vector.shape_cast %226 : vector<256xf32> to vector<1x256xf32>
    %228 = vector.extract_strided_slice %8 {offsets = [0, 8], sizes = [25, 1], strides = [1, 1]} : vector<25x25xf32> to vector<25x1xf32>
    %229 = vector.broadcast %228 : vector<25x1xf32> to vector<25x256xf32>
    %230 = vector.broadcast %227 : vector<1x256xf32> to vector<25x256xf32>
    %231 = arith.mulf %229, %230 : vector<25x256xf32>
    %232 = arith.addf %224, %231 : vector<25x256xf32>
    %233 = arith.mulf %35, %216 : vector<16x256xf32>
    %cst_64 = arith.constant dense<0.000000e+00> : vector<256xf32>
    %234 = vector.multi_reduction <add>, %233, %cst_64 [0] : vector<16x256xf32> to vector<256xf32>
    %235 = vector.shape_cast %234 : vector<256xf32> to vector<1x256xf32>
    %236 = vector.extract_strided_slice %8 {offsets = [0, 13], sizes = [25, 1], strides = [1, 1]} : vector<25x25xf32> to vector<25x1xf32>
    %237 = vector.broadcast %236 : vector<25x1xf32> to vector<25x256xf32>
    %238 = vector.broadcast %235 : vector<1x256xf32> to vector<25x256xf32>
    %239 = arith.mulf %237, %238 : vector<25x256xf32>
    %240 = arith.addf %232, %239 : vector<25x256xf32>
    %241 = arith.mulf %42, %216 : vector<16x256xf32>
    %cst_65 = arith.constant dense<0.000000e+00> : vector<256xf32>
    %242 = vector.multi_reduction <add>, %241, %cst_65 [0] : vector<16x256xf32> to vector<256xf32>
    %243 = vector.shape_cast %242 : vector<256xf32> to vector<1x256xf32>
    %244 = vector.extract_strided_slice %8 {offsets = [0, 18], sizes = [25, 1], strides = [1, 1]} : vector<25x25xf32> to vector<25x1xf32>
    %245 = vector.broadcast %244 : vector<25x1xf32> to vector<25x256xf32>
    %246 = vector.broadcast %243 : vector<1x256xf32> to vector<25x256xf32>
    %247 = arith.mulf %245, %246 : vector<25x256xf32>
    %248 = arith.addf %240, %247 : vector<25x256xf32>
    %249 = arith.mulf %49, %216 : vector<16x256xf32>
    %cst_66 = arith.constant dense<0.000000e+00> : vector<256xf32>
    %250 = vector.multi_reduction <add>, %249, %cst_66 [0] : vector<16x256xf32> to vector<256xf32>
    %251 = vector.shape_cast %250 : vector<256xf32> to vector<1x256xf32>
    %252 = vector.extract_strided_slice %8 {offsets = [0, 23], sizes = [25, 1], strides = [1, 1]} : vector<25x25xf32> to vector<25x1xf32>
    %253 = vector.broadcast %252 : vector<25x1xf32> to vector<25x256xf32>
    %254 = vector.broadcast %251 : vector<1x256xf32> to vector<25x256xf32>
    %255 = arith.mulf %253, %254 : vector<25x256xf32>
    %256 = arith.addf %248, %255 : vector<25x256xf32>
    %cst_67 = arith.constant 2.000000e+00 : f32
    %257 = vector.broadcast %cst_67 : f32 to vector<16x1x256xf32>
    %258 = arith.addf %55, %257 : vector<16x1x256xf32>
    %259 = math.absf %258 : vector<16x1x256xf32>
    %cst_68 = arith.constant 1.000000e+00 : f32
    %260 = vector.broadcast %cst_68 : f32 to vector<16x1x256xf32>
    %261 = arith.subf %260, %259 : vector<16x1x256xf32>
    %cst_69 = arith.constant 0.000000e+00 : f32
    %262 = vector.broadcast %cst_69 : f32 to vector<16x1x256xf32>
    %263 = arith.maximumf %262, %261 : vector<16x1x256xf32>
    %264 = vector.broadcast %263 : vector<16x1x256xf32> to vector<16x16x256xf32>
    %265 = arith.mulf %264, %50 : vector<16x16x256xf32>
    %cst_70 = arith.constant dense<0.000000e+00> : vector<16x256xf32>
    %266 = vector.multi_reduction <add>, %265, %cst_70 [0] : vector<16x16x256xf32> to vector<16x256xf32>
    %267 = arith.mulf %21, %266 : vector<16x256xf32>
    %cst_71 = arith.constant dense<0.000000e+00> : vector<256xf32>
    %268 = vector.multi_reduction <add>, %267, %cst_71 [0] : vector<16x256xf32> to vector<256xf32>
    %269 = vector.shape_cast %268 : vector<256xf32> to vector<1x256xf32>
    %270 = vector.extract_strided_slice %8 {offsets = [0, 4], sizes = [25, 1], strides = [1, 1]} : vector<25x25xf32> to vector<25x1xf32>
    %271 = vector.broadcast %270 : vector<25x1xf32> to vector<25x256xf32>
    %272 = vector.broadcast %269 : vector<1x256xf32> to vector<25x256xf32>
    %273 = arith.mulf %271, %272 : vector<25x256xf32>
    %274 = arith.addf %256, %273 : vector<25x256xf32>
    %275 = arith.mulf %28, %266 : vector<16x256xf32>
    %cst_72 = arith.constant dense<0.000000e+00> : vector<256xf32>
    %276 = vector.multi_reduction <add>, %275, %cst_72 [0] : vector<16x256xf32> to vector<256xf32>
    %277 = vector.shape_cast %276 : vector<256xf32> to vector<1x256xf32>
    %278 = vector.extract_strided_slice %8 {offsets = [0, 9], sizes = [25, 1], strides = [1, 1]} : vector<25x25xf32> to vector<25x1xf32>
    %279 = vector.broadcast %278 : vector<25x1xf32> to vector<25x256xf32>
    %280 = vector.broadcast %277 : vector<1x256xf32> to vector<25x256xf32>
    %281 = arith.mulf %279, %280 : vector<25x256xf32>
    %282 = arith.addf %274, %281 : vector<25x256xf32>
    %283 = arith.mulf %35, %266 : vector<16x256xf32>
    %cst_73 = arith.constant dense<0.000000e+00> : vector<256xf32>
    %284 = vector.multi_reduction <add>, %283, %cst_73 [0] : vector<16x256xf32> to vector<256xf32>
    %285 = vector.shape_cast %284 : vector<256xf32> to vector<1x256xf32>
    %286 = vector.extract_strided_slice %8 {offsets = [0, 14], sizes = [25, 1], strides = [1, 1]} : vector<25x25xf32> to vector<25x1xf32>
    %287 = vector.broadcast %286 : vector<25x1xf32> to vector<25x256xf32>
    %288 = vector.broadcast %285 : vector<1x256xf32> to vector<25x256xf32>
    %289 = arith.mulf %287, %288 : vector<25x256xf32>
    %290 = arith.addf %282, %289 : vector<25x256xf32>
    %291 = arith.mulf %42, %266 : vector<16x256xf32>
    %cst_74 = arith.constant dense<0.000000e+00> : vector<256xf32>
    %292 = vector.multi_reduction <add>, %291, %cst_74 [0] : vector<16x256xf32> to vector<256xf32>
    %293 = vector.shape_cast %292 : vector<256xf32> to vector<1x256xf32>
    %294 = vector.extract_strided_slice %8 {offsets = [0, 19], sizes = [25, 1], strides = [1, 1]} : vector<25x25xf32> to vector<25x1xf32>
    %295 = vector.broadcast %294 : vector<25x1xf32> to vector<25x256xf32>
    %296 = vector.broadcast %293 : vector<1x256xf32> to vector<25x256xf32>
    %297 = arith.mulf %295, %296 : vector<25x256xf32>
    %298 = arith.addf %290, %297 : vector<25x256xf32>
    %299 = arith.mulf %49, %266 : vector<16x256xf32>
    %cst_75 = arith.constant dense<0.000000e+00> : vector<256xf32>
    %300 = vector.multi_reduction <add>, %299, %cst_75 [0] : vector<16x256xf32> to vector<256xf32>
    %301 = vector.shape_cast %300 : vector<256xf32> to vector<1x256xf32>
    %302 = vector.extract_strided_slice %8 {offsets = [0, 24], sizes = [25, 1], strides = [1, 1]} : vector<25x25xf32> to vector<25x1xf32>
    %303 = vector.broadcast %302 : vector<25x1xf32> to vector<25x256xf32>
    %304 = vector.broadcast %301 : vector<1x256xf32> to vector<25x256xf32>
    %305 = arith.mulf %303, %304 : vector<25x256xf32>
    %306 = arith.addf %298, %305 : vector<25x256xf32>
    %c0_76 = arith.constant 0 : index
    %c0_77 = arith.constant 0 : index
    %c0_78 = arith.constant 0 : index
    %307 = vector.load %arg7[%c0_76, %c0_77, %c0_78] : memref<1x25x256xf32, #tpu.memory_space<vmem>>, vector<1x25x256xf32>
    %308 = vector.shape_cast %307 : vector<1x25x256xf32> to vector<25x256xf32>
    %309 = vector.shape_cast %306 : vector<25x256xf32> to vector<1x25x256xf32>
    tpu.vector_store %arg7[%c0_76, %c0_77, %c0_78], %309 {strides = array<i32>} : memref<1x25x256xf32, #tpu.memory_space<vmem>>, vector<1x25x256xf32>,
    return
  }
  func.func @transform_0(%arg0: i32, %arg1: i32) -> (i32, i32, i32) {
    %c0_i32 = arith.constant 0 : i32
    %c0_i32_0 = arith.constant 0 : i32
    return %arg0, %c0_i32, %arg1 : i32, i32, i32
  }
  func.func @transform_1(%arg0: i32, %arg1: i32) -> (i32, i32, i32) {
    %c0_i32 = arith.constant 0 : i32
    %c0_i32_0 = arith.constant 0 : i32
    %c0_i32_1 = arith.constant 0 : i32
    return %arg0, %c0_i32, %c0_i32_0 : i32, i32, i32
  }
  func.func @transform_2(%arg0: i32, %arg1: i32) -> (i32, i32, i32) {
    %c0_i32 = arith.constant 0 : i32
    %c0_i32_0 = arith.constant 0 : i32
    return %arg0, %c0_i32, %arg1 : i32, i32, i32
  }
  func.func @transform_3(%arg0: i32, %arg1: i32) -> (i32, i32) {
    %c0_i32 = arith.constant 0 : i32
    %c0_i32_0 = arith.constant 0 : i32
    %c0_i32_1 = arith.constant 0 : i32
    return %c0_i32, %c0_i32_0 : i32, i32
  }
  func.func @transform_4(%arg0: i32, %arg1: i32) -> (i32, i32, i32) {
    %c0_i32 = arith.constant 0 : i32
    %c0_i32_0 = arith.constant 0 : i32
    %c0_i32_1 = arith.constant 0 : i32
    %c0_i32_2 = arith.constant 0 : i32
    return %c0_i32, %c0_i32_0, %c0_i32_1 : i32, i32, i32
  }
  func.func @transform_5(%arg0: i32, %arg1: i32) -> (i32, i32, i32) {
    %c0_i32 = arith.constant 0 : i32
    %c0_i32_0 = arith.constant 0 : i32
    return %arg0, %c0_i32, %arg1 : i32, i32, i32
  }
}

module attributes {stable_mosaic.version = 11 : i64} {
  func.func @_corr_kernel(%arg0: i32, %arg1: i32, %arg2: memref<1x8x256xf32, #tpu.memory_space<vmem>>, %arg3: memref<1x256x8xf32, #tpu.memory_space<vmem>>, %arg4: memref<1x2x256xf32, #tpu.memory_space<vmem>>, %arg5: memref<25x25xf32, #tpu.memory_space<vmem>>, %arg6: memref<16x1x1xf32, #tpu.memory_space<vmem>>, %arg7: memref<1x25x256xf32, #tpu.memory_space<vmem>>) attributes {dimension_semantics = [#tpu.dimension_semantics<parallel>, #tpu.dimension_semantics<arbitrary>], iteration_bounds = array<i64: 2, 1>, scalar_prefetch = 0 : i64, scratch_operands = 0 : i64, tpu.core_type = #tpu.core_type<tc>, window_params = [{transform_indices = @transform_0, window_bounds = array<i64: 1, 8, 256>}, {transform_indices = @transform_1, window_bounds = array<i64: 1, 256, 8>}, {transform_indices = @transform_2, window_bounds = array<i64: 1, 2, 256>}, {pipeline_mode = #tpu.pipeline_mode<synchronous>, transform_indices = @transform_3, window_bounds = array<i64: 25, 25>}, {pipeline_mode = #tpu.pipeline_mode<synchronous>, transform_indices = @transform_4, window_bounds = array<i64: 16, 1, 1>}, {transform_indices = @transform_5, window_bounds = array<i64: 1, 25, 256>}]} {
    %c0 = arith.constant 0 : index
    %c0_0 = arith.constant 0 : index
    %c0_1 = arith.constant 0 : index
    %0 = vector.load %arg2[%c0, %c0_0, %c0_1] : memref<1x8x256xf32, #tpu.memory_space<vmem>>, vector<1x8x256xf32>
    %1 = vector.shape_cast %0 : vector<1x8x256xf32> to vector<8x256xf32>
    %c0_2 = arith.constant 0 : index
    %c0_3 = arith.constant 0 : index
    %c0_4 = arith.constant 0 : index
    %2 = vector.load %arg3[%c0_2, %c0_3, %c0_4] : memref<1x256x8xf32, #tpu.memory_space<vmem>>, vector<1x256x8xf32>
    %3 = vector.shape_cast %2 : vector<1x256x8xf32> to vector<256x8xf32>
    %c0_5 = arith.constant 0 : index
    %c0_6 = arith.constant 0 : index
    %c0_7 = arith.constant 0 : index
    %4 = vector.load %arg4[%c0_5, %c0_6, %c0_7] : memref<1x2x256xf32, #tpu.memory_space<vmem>>, vector<1x1x256xf32>
    %5 = vector.shape_cast %4 : vector<1x1x256xf32> to vector<1x256xf32>
    %c0_8 = arith.constant 0 : index
    %c1 = arith.constant 1 : index
    %c0_9 = arith.constant 0 : index
    %6 = vector.load %arg4[%c0_8, %c1, %c0_9] : memref<1x2x256xf32, #tpu.memory_space<vmem>>, vector<1x1x256xf32>
    %7 = vector.shape_cast %6 : vector<1x1x256xf32> to vector<1x256xf32>
    %c0_10 = arith.constant 0 : index
    %c0_11 = arith.constant 0 : index
    %8 = vector.load %arg5[%c0_10, %c0_11] : memref<25x25xf32, #tpu.memory_space<vmem>>, vector<25x25xf32>
    %cst = arith.constant dense<0.000000e+00> : vector<256x256xf32>
    %9 = tpu.matmul %3, %1, %cst {dimension_numbers = #tpu.dot_dimension_numbers<[1], [0], [0], [1], [0, 0, 1, 1], [], []>} : vector<256x8xf32>, vector<8x256xf32>, vector<256x256xf32> -> vector<256x256xf32>
    %10 = tpu.iota {dimensions = array<i32: 0>} : vector<16x1xi32>
    %11 = arith.sitofp %10 : vector<16x1xi32> to vector<16x1xf32>
    %12 = vector.broadcast %5 : vector<1x256xf32> to vector<16x256xf32>
    %13 = vector.broadcast %11 : vector<16x1xf32> to vector<16x256xf32>
    %14 = arith.subf %12, %13 : vector<16x256xf32>
    %cst_12 = arith.constant -2.000000e+00 : f32
    %15 = vector.broadcast %cst_12 : f32 to vector<16x256xf32>
    %16 = arith.addf %14, %15 : vector<16x256xf32>
    %17 = math.absf %16 : vector<16x256xf32>
    %cst_13 = arith.constant 1.000000e+00 : f32
    %18 = vector.broadcast %cst_13 : f32 to vector<16x256xf32>
    %19 = arith.subf %18, %17 : vector<16x256xf32>
    %cst_14 = arith.constant 0.000000e+00 : f32
    %20 = vector.broadcast %cst_14 : f32 to vector<16x256xf32>
    %21 = arith.maximumf %20, %19 : vector<16x256xf32>
    %cst_15 = arith.constant -1.000000e+00 : f32
    %22 = vector.broadcast %cst_15 : f32 to vector<16x256xf32>
    %23 = arith.addf %14, %22 : vector<16x256xf32>
    %24 = math.absf %23 : vector<16x256xf32>
    %cst_16 = arith.constant 1.000000e+00 : f32
    %25 = vector.broadcast %cst_16 : f32 to vector<16x256xf32>
    %26 = arith.subf %25, %24 : vector<16x256xf32>
    %cst_17 = arith.constant 0.000000e+00 : f32
    %27 = vector.broadcast %cst_17 : f32 to vector<16x256xf32>
    %28 = arith.maximumf %27, %26 : vector<16x256xf32>
    %cst_18 = arith.constant 0.000000e+00 : f32
    %29 = vector.broadcast %cst_18 : f32 to vector<16x256xf32>
    %30 = arith.addf %14, %29 : vector<16x256xf32>
    %31 = math.absf %30 : vector<16x256xf32>
    %cst_19 = arith.constant 1.000000e+00 : f32
    %32 = vector.broadcast %cst_19 : f32 to vector<16x256xf32>
    %33 = arith.subf %32, %31 : vector<16x256xf32>
    %cst_20 = arith.constant 0.000000e+00 : f32
    %34 = vector.broadcast %cst_20 : f32 to vector<16x256xf32>
    %35 = arith.maximumf %34, %33 : vector<16x256xf32>
    %cst_21 = arith.constant 1.000000e+00 : f32
    %36 = vector.broadcast %cst_21 : f32 to vector<16x256xf32>
    %37 = arith.addf %14, %36 : vector<16x256xf32>
    %38 = math.absf %37 : vector<16x256xf32>
    %cst_22 = arith.constant 1.000000e+00 : f32
    %39 = vector.broadcast %cst_22 : f32 to vector<16x256xf32>
    %40 = arith.subf %39, %38 : vector<16x256xf32>
    %cst_23 = arith.constant 0.000000e+00 : f32
    %41 = vector.broadcast %cst_23 : f32 to vector<16x256xf32>
    %42 = arith.maximumf %41, %40 : vector<16x256xf32>
    %cst_24 = arith.constant 2.000000e+00 : f32
    %43 = vector.broadcast %cst_24 : f32 to vector<16x256xf32>
    %44 = arith.addf %14, %43 : vector<16x256xf32>
    %45 = math.absf %44 : vector<16x256xf32>
    %cst_25 = arith.constant 1.000000e+00 : f32
    %46 = vector.broadcast %cst_25 : f32 to vector<16x256xf32>
    %47 = arith.subf %46, %45 : vector<16x256xf32>
    %cst_26 = arith.constant 0.000000e+00 : f32
    %48 = vector.broadcast %cst_26 : f32 to vector<16x256xf32>
    %49 = arith.maximumf %48, %47 : vector<16x256xf32>
    %50 = vector.shape_cast %9 : vector<256x256xf32> to vector<16x16x256xf32>
    %51 = vector.shape_cast %7 : vector<1x256xf32> to vector<1x1x256xf32>
    %c0_27 = arith.constant 0 : index
    %c0_28 = arith.constant 0 : index
    %c0_29 = arith.constant 0 : index
    %52 = vector.load %arg6[%c0_27, %c0_28, %c0_29] : memref<16x1x1xf32, #tpu.memory_space<vmem>>, vector<16x1x1xf32>
    %53 = vector.broadcast %51 : vector<1x1x256xf32> to vector<16x1x256xf32>
    %54 = vector.broadcast %52 : vector<16x1x1xf32> to vector<16x1x256xf32>
    %55 = arith.subf %53, %54 : vector<16x1x256xf32>
    %cst_30 = arith.constant 0.000000e+00 : f32
    %56 = vector.broadcast %cst_30 : f32 to vector<25x256xf32>
    %cst_31 = arith.constant -2.000000e+00 : f32
    %57 = vector.broadcast %cst_31 : f32 to vector<16x1x256xf32>
    %58 = arith.addf %55, %57 : vector<16x1x256xf32>
    %59 = math.absf %58 : vector<16x1x256xf32>
    %cst_32 = arith.constant 1.000000e+00 : f32
    %60 = vector.broadcast %cst_32 : f32 to vector<16x1x256xf32>
    %61 = arith.subf %60, %59 : vector<16x1x256xf32>
    %cst_33 = arith.constant 0.000000e+00 : f32
    %62 = vector.broadcast %cst_33 : f32 to vector<16x1x256xf32>
    %63 = arith.maximumf %62, %61 : vector<16x1x256xf32>
    %64 = vector.broadcast %63 : vector<16x1x256xf32> to vector<16x16x256xf32>
    %65 = arith.mulf %64, %50 : vector<16x16x256xf32>
    %cst_34 = arith.constant dense<0.000000e+00> : vector<16x256xf32>
    %66 = vector.multi_reduction <add>, %65, %cst_34 [0] : vector<16x16x256xf32> to vector<16x256xf32>
    %67 = arith.mulf %21, %66 : vector<16x256xf32>
    %cst_35 = arith.constant dense<0.000000e+00> : vector<256xf32>
    %68 = vector.multi_reduction <add>, %67, %cst_35 [0] : vector<16x256xf32> to vector<256xf32>
    %69 = vector.shape_cast %68 : vector<256xf32> to vector<1x256xf32>
    %70 = vector.extract_strided_slice %8 {offsets = [0, 0], sizes = [25, 1], strides = [1, 1]} : vector<25x25xf32> to vector<25x1xf32>
    %71 = vector.broadcast %70 : vector<25x1xf32> to vector<25x256xf32>
    %72 = vector.broadcast %69 : vector<1x256xf32> to vector<25x256xf32>
    %73 = arith.mulf %71, %72 : vector<25x256xf32>
    %74 = arith.addf %56, %73 : vector<25x256xf32>
    %75 = arith.mulf %28, %66 : vector<16x256xf32>
    %cst_36 = arith.constant dense<0.000000e+00> : vector<256xf32>
    %76 = vector.multi_reduction <add>, %75, %cst_36 [0] : vector<16x256xf32> to vector<256xf32>
    %77 = vector.shape_cast %76 : vector<256xf32> to vector<1x256xf32>
    %78 = vector.extract_strided_slice %8 {offsets = [0, 5], sizes = [25, 1], strides = [1, 1]} : vector<25x25xf32> to vector<25x1xf32>
    %79 = vector.broadcast %78 : vector<25x1xf32> to vector<25x256xf32>
    %80 = vector.broadcast %77 : vector<1x256xf32> to vector<25x256xf32>
    %81 = arith.mulf %79, %80 : vector<25x256xf32>
    %82 = arith.addf %74, %81 : vector<25x256xf32>
    %83 = arith.mulf %35, %66 : vector<16x256xf32>
    %cst_37 = arith.constant dense<0.000000e+00> : vector<256xf32>
    %84 = vector.multi_reduction <add>, %83, %cst_37 [0] : vector<16x256xf32> to vector<256xf32>
    %85 = vector.shape_cast %84 : vector<256xf32> to vector<1x256xf32>
    %86 = vector.extract_strided_slice %8 {offsets = [0, 10], sizes = [25, 1], strides = [1, 1]} : vector<25x25xf32> to vector<25x1xf32>
    %87 = vector.broadcast %86 : vector<25x1xf32> to vector<25x256xf32>
    %88 = vector.broadcast %85 : vector<1x256xf32> to vector<25x256xf32>
    %89 = arith.mulf %87, %88 : vector<25x256xf32>
    %90 = arith.addf %82, %89 : vector<25x256xf32>
    %91 = arith.mulf %42, %66 : vector<16x256xf32>
    %cst_38 = arith.constant dense<0.000000e+00> : vector<256xf32>
    %92 = vector.multi_reduction <add>, %91, %cst_38 [0] : vector<16x256xf32> to vector<256xf32>
    %93 = vector.shape_cast %92 : vector<256xf32> to vector<1x256xf32>
    %94 = vector.extract_strided_slice %8 {offsets = [0, 15], sizes = [25, 1], strides = [1, 1]} : vector<25x25xf32> to vector<25x1xf32>
    %95 = vector.broadcast %94 : vector<25x1xf32> to vector<25x256xf32>
    %96 = vector.broadcast %93 : vector<1x256xf32> to vector<25x256xf32>
    %97 = arith.mulf %95, %96 : vector<25x256xf32>
    %98 = arith.addf %90, %97 : vector<25x256xf32>
    %99 = arith.mulf %49, %66 : vector<16x256xf32>
    %cst_39 = arith.constant dense<0.000000e+00> : vector<256xf32>
    %100 = vector.multi_reduction <add>, %99, %cst_39 [0] : vector<16x256xf32> to vector<256xf32>
    %101 = vector.shape_cast %100 : vector<256xf32> to vector<1x256xf32>
    %102 = vector.extract_strided_slice %8 {offsets = [0, 20], sizes = [25, 1], strides = [1, 1]} : vector<25x25xf32> to vector<25x1xf32>
    %103 = vector.broadcast %102 : vector<25x1xf32> to vector<25x256xf32>
    %104 = vector.broadcast %101 : vector<1x256xf32> to vector<25x256xf32>
    %105 = arith.mulf %103, %104 : vector<25x256xf32>
    %106 = arith.addf %98, %105 : vector<25x256xf32>
    %cst_40 = arith.constant -1.000000e+00 : f32
    %107 = vector.broadcast %cst_40 : f32 to vector<16x1x256xf32>
    %108 = arith.addf %55, %107 : vector<16x1x256xf32>
    %109 = math.absf %108 : vector<16x1x256xf32>
    %cst_41 = arith.constant 1.000000e+00 : f32
    %110 = vector.broadcast %cst_41 : f32 to vector<16x1x256xf32>
    %111 = arith.subf %110, %109 : vector<16x1x256xf32>
    %cst_42 = arith.constant 0.000000e+00 : f32
    %112 = vector.broadcast %cst_42 : f32 to vector<16x1x256xf32>
    %113 = arith.maximumf %112, %111 : vector<16x1x256xf32>
    %114 = vector.broadcast %113 : vector<16x1x256xf32> to vector<16x16x256xf32>
    %115 = arith.mulf %114, %50 : vector<16x16x256xf32>
    %cst_43 = arith.constant dense<0.000000e+00> : vector<16x256xf32>
    %116 = vector.multi_reduction <add>, %115, %cst_43 [0] : vector<16x16x256xf32> to vector<16x256xf32>
    %117 = arith.mulf %21, %116 : vector<16x256xf32>
    %cst_44 = arith.constant dense<0.000000e+00> : vector<256xf32>
    %118 = vector.multi_reduction <add>, %117, %cst_44 [0] : vector<16x256xf32> to vector<256xf32>
    %119 = vector.shape_cast %118 : vector<256xf32> to vector<1x256xf32>
    %120 = vector.extract_strided_slice %8 {offsets = [0, 1], sizes = [25, 1], strides = [1, 1]} : vector<25x25xf32> to vector<25x1xf32>
    %121 = vector.broadcast %120 : vector<25x1xf32> to vector<25x256xf32>
    %122 = vector.broadcast %119 : vector<1x256xf32> to vector<25x256xf32>
    %123 = arith.mulf %121, %122 : vector<25x256xf32>
    %124 = arith.addf %106, %123 : vector<25x256xf32>
    %125 = arith.mulf %28, %116 : vector<16x256xf32>
    %cst_45 = arith.constant dense<0.000000e+00> : vector<256xf32>
    %126 = vector.multi_reduction <add>, %125, %cst_45 [0] : vector<16x256xf32> to vector<256xf32>
    %127 = vector.shape_cast %126 : vector<256xf32> to vector<1x256xf32>
    %128 = vector.extract_strided_slice %8 {offsets = [0, 6], sizes = [25, 1], strides = [1, 1]} : vector<25x25xf32> to vector<25x1xf32>
    %129 = vector.broadcast %128 : vector<25x1xf32> to vector<25x256xf32>
    %130 = vector.broadcast %127 : vector<1x256xf32> to vector<25x256xf32>
    %131 = arith.mulf %129, %130 : vector<25x256xf32>
    %132 = arith.addf %124, %131 : vector<25x256xf32>
    %133 = arith.mulf %35, %116 : vector<16x256xf32>
    %cst_46 = arith.constant dense<0.000000e+00> : vector<256xf32>
    %134 = vector.multi_reduction <add>, %133, %cst_46 [0] : vector<16x256xf32> to vector<256xf32>
    %135 = vector.shape_cast %134 : vector<256xf32> to vector<1x256xf32>
    %136 = vector.extract_strided_slice %8 {offsets = [0, 11], sizes = [25, 1], strides = [1, 1]} : vector<25x25xf32> to vector<25x1xf32>
    %137 = vector.broadcast %136 : vector<25x1xf32> to vector<25x256xf32>
    %138 = vector.broadcast %135 : vector<1x256xf32> to vector<25x256xf32>
    %139 = arith.mulf %137, %138 : vector<25x256xf32>
    %140 = arith.addf %132, %139 : vector<25x256xf32>
    %141 = arith.mulf %42, %116 : vector<16x256xf32>
    %cst_47 = arith.constant dense<0.000000e+00> : vector<256xf32>
    %142 = vector.multi_reduction <add>, %141, %cst_47 [0] : vector<16x256xf32> to vector<256xf32>
    %143 = vector.shape_cast %142 : vector<256xf32> to vector<1x256xf32>
    %144 = vector.extract_strided_slice %8 {offsets = [0, 16], sizes = [25, 1], strides = [1, 1]} : vector<25x25xf32> to vector<25x1xf32>
    %145 = vector.broadcast %144 : vector<25x1xf32> to vector<25x256xf32>
    %146 = vector.broadcast %143 : vector<1x256xf32> to vector<25x256xf32>
    %147 = arith.mulf %145, %146 : vector<25x256xf32>
    %148 = arith.addf %140, %147 : vector<25x256xf32>
    %149 = arith.mulf %49, %116 : vector<16x256xf32>
    %cst_48 = arith.constant dense<0.000000e+00> : vector<256xf32>
    %150 = vector.multi_reduction <add>, %149, %cst_48 [0] : vector<16x256xf32> to vector<256xf32>
    %151 = vector.shape_cast %150 : vector<256xf32> to vector<1x256xf32>
    %152 = vector.extract_strided_slice %8 {offsets = [0, 21], sizes = [25, 1], strides = [1, 1]} : vector<25x25xf32> to vector<25x1xf32>
    %153 = vector.broadcast %152 : vector<25x1xf32> to vector<25x256xf32>
    %154 = vector.broadcast %151 : vector<1x256xf32> to vector<25x256xf32>
    %155 = arith.mulf %153, %154 : vector<25x256xf32>
    %156 = arith.addf %148, %155 : vector<25x256xf32>
    %cst_49 = arith.constant 0.000000e+00 : f32
    %157 = vector.broadcast %cst_49 : f32 to vector<16x1x256xf32>
    %158 = arith.addf %55, %157 : vector<16x1x256xf32>
    %159 = math.absf %158 : vector<16x1x256xf32>
    %cst_50 = arith.constant 1.000000e+00 : f32
    %160 = vector.broadcast %cst_50 : f32 to vector<16x1x256xf32>
    %161 = arith.subf %160, %159 : vector<16x1x256xf32>
    %cst_51 = arith.constant 0.000000e+00 : f32
    %162 = vector.broadcast %cst_51 : f32 to vector<16x1x256xf32>
    %163 = arith.maximumf %162, %161 : vector<16x1x256xf32>
    %164 = vector.broadcast %163 : vector<16x1x256xf32> to vector<16x16x256xf32>
    %165 = arith.mulf %164, %50 : vector<16x16x256xf32>
    %cst_52 = arith.constant dense<0.000000e+00> : vector<16x256xf32>
    %166 = vector.multi_reduction <add>, %165, %cst_52 [0] : vector<16x16x256xf32> to vector<16x256xf32>
    %167 = arith.mulf %21, %166 : vector<16x256xf32>
    %cst_53 = arith.constant dense<0.000000e+00> : vector<256xf32>
    %168 = vector.multi_reduction <add>, %167, %cst_53 [0] : vector<16x256xf32> to vector<256xf32>
    %169 = vector.shape_cast %168 : vector<256xf32> to vector<1x256xf32>
    %170 = vector.extract_strided_slice %8 {offsets = [0, 2], sizes = [25, 1], strides = [1, 1]} : vector<25x25xf32> to vector<25x1xf32>
    %171 = vector.broadcast %170 : vector<25x1xf32> to vector<25x256xf32>
    %172 = vector.broadcast %169 : vector<1x256xf32> to vector<25x256xf32>
    %173 = arith.mulf %171, %172 : vector<25x256xf32>
    %174 = arith.addf %156, %173 : vector<25x256xf32>
    %175 = arith.mulf %28, %166 : vector<16x256xf32>
    %cst_54 = arith.constant dense<0.000000e+00> : vector<256xf32>
    %176 = vector.multi_reduction <add>, %175, %cst_54 [0] : vector<16x256xf32> to vector<256xf32>
    %177 = vector.shape_cast %176 : vector<256xf32> to vector<1x256xf32>
    %178 = vector.extract_strided_slice %8 {offsets = [0, 7], sizes = [25, 1], strides = [1, 1]} : vector<25x25xf32> to vector<25x1xf32>
    %179 = vector.broadcast %178 : vector<25x1xf32> to vector<25x256xf32>
    %180 = vector.broadcast %177 : vector<1x256xf32> to vector<25x256xf32>
    %181 = arith.mulf %179, %180 : vector<25x256xf32>
    %182 = arith.addf %174, %181 : vector<25x256xf32>
    %183 = arith.mulf %35, %166 : vector<16x256xf32>
    %cst_55 = arith.constant dense<0.000000e+00> : vector<256xf32>
    %184 = vector.multi_reduction <add>, %183, %cst_55 [0] : vector<16x256xf32> to vector<256xf32>
    %185 = vector.shape_cast %184 : vector<256xf32> to vector<1x256xf32>
    %186 = vector.extract_strided_slice %8 {offsets = [0, 12], sizes = [25, 1], strides = [1, 1]} : vector<25x25xf32> to vector<25x1xf32>
    %187 = vector.broadcast %186 : vector<25x1xf32> to vector<25x256xf32>
    %188 = vector.broadcast %185 : vector<1x256xf32> to vector<25x256xf32>
    %189 = arith.mulf %187, %188 : vector<25x256xf32>
    %190 = arith.addf %182, %189 : vector<25x256xf32>
    %191 = arith.mulf %42, %166 : vector<16x256xf32>
    %cst_56 = arith.constant dense<0.000000e+00> : vector<256xf32>
    %192 = vector.multi_reduction <add>, %191, %cst_56 [0] : vector<16x256xf32> to vector<256xf32>
    %193 = vector.shape_cast %192 : vector<256xf32> to vector<1x256xf32>
    %194 = vector.extract_strided_slice %8 {offsets = [0, 17], sizes = [25, 1], strides = [1, 1]} : vector<25x25xf32> to vector<25x1xf32>
    %195 = vector.broadcast %194 : vector<25x1xf32> to vector<25x256xf32>
    %196 = vector.broadcast %193 : vector<1x256xf32> to vector<25x256xf32>
    %197 = arith.mulf %195, %196 : vector<25x256xf32>
    %198 = arith.addf %190, %197 : vector<25x256xf32>
    %199 = arith.mulf %49, %166 : vector<16x256xf32>
    %cst_57 = arith.constant dense<0.000000e+00> : vector<256xf32>
    %200 = vector.multi_reduction <add>, %199, %cst_57 [0] : vector<16x256xf32> to vector<256xf32>
    %201 = vector.shape_cast %200 : vector<256xf32> to vector<1x256xf32>
    %202 = vector.extract_strided_slice %8 {offsets = [0, 22], sizes = [25, 1], strides = [1, 1]} : vector<25x25xf32> to vector<25x1xf32>
    %203 = vector.broadcast %202 : vector<25x1xf32> to vector<25x256xf32>
    %204 = vector.broadcast %201 : vector<1x256xf32> to vector<25x256xf32>
    %205 = arith.mulf %203, %204 : vector<25x256xf32>
    %206 = arith.addf %198, %205 : vector<25x256xf32>
    %cst_58 = arith.constant 1.000000e+00 : f32
    %207 = vector.broadcast %cst_58 : f32 to vector<16x1x256xf32>
    %208 = arith.addf %55, %207 : vector<16x1x256xf32>
    %209 = math.absf %208 : vector<16x1x256xf32>
    %cst_59 = arith.constant 1.000000e+00 : f32
    %210 = vector.broadcast %cst_59 : f32 to vector<16x1x256xf32>
    %211 = arith.subf %210, %209 : vector<16x1x256xf32>
    %cst_60 = arith.constant 0.000000e+00 : f32
    %212 = vector.broadcast %cst_60 : f32 to vector<16x1x256xf32>
    %213 = arith.maximumf %212, %211 : vector<16x1x256xf32>
    %214 = vector.broadcast %213 : vector<16x1x256xf32> to vector<16x16x256xf32>
    %215 = arith.mulf %214, %50 : vector<16x16x256xf32>
    %cst_61 = arith.constant dense<0.000000e+00> : vector<16x256xf32>
    %216 = vector.multi_reduction <add>, %215, %cst_61 [0] : vector<16x16x256xf32> to vector<16x256xf32>
    %217 = arith.mulf %21, %216 : vector<16x256xf32>
    %cst_62 = arith.constant dense<0.000000e+00> : vector<256xf32>
    %218 = vector.multi_reduction <add>, %217, %cst_62 [0] : vector<16x256xf32> to vector<256xf32>
    %219 = vector.shape_cast %218 : vector<256xf32> to vector<1x256xf32>
    %220 = vector.extract_strided_slice %8 {offsets = [0, 3], sizes = [25, 1], strides = [1, 1]} : vector<25x25xf32> to vector<25x1xf32>
    %221 = vector.broadcast %220 : vector<25x1xf32> to vector<25x256xf32>
    %222 = vector.broadcast %219 : vector<1x256xf32> to vector<25x256xf32>
    %223 = arith.mulf %221, %222 : vector<25x256xf32>
    %224 = arith.addf %206, %223 : vector<25x256xf32>
    %225 = arith.mulf %28, %216 : vector<16x256xf32>
    %cst_63 = arith.constant dense<0.000000e+00> : vector<256xf32>
    %226 = vector.multi_reduction <add>, %225, %cst_63 [0] : vector<16x256xf32> to vector<256xf32>
    %227 = vector.shape_cast %226 : vector<256xf32> to vector<1x256xf32>
    %228 = vector.extract_strided_slice %8 {offsets = [0, 8], sizes = [25, 1], strides = [1, 1]} : vector<25x25xf32> to vector<25x1xf32>
    %229 = vector.broadcast %228 : vector<25x1xf32> to vector<25x256xf32>
    %230 = vector.broadcast %227 : vector<1x256xf32> to vector<25x256xf32>
    %231 = arith.mulf %229, %230 : vector<25x256xf32>
    %232 = arith.addf %224, %231 : vector<25x256xf32>
    %233 = arith.mulf %35, %216 : vector<16x256xf32>
    %cst_64 = arith.constant dense<0.000000e+00> : vector<256xf32>
    %234 = vector.multi_reduction <add>, %233, %cst_64 [0] : vector<16x256xf32> to vector<256xf32>
    %235 = vector.shape_cast %234 : vector<256xf32> to vector<1x256xf32>
    %236 = vector.extract_strided_slice %8 {offsets = [0, 13], sizes = [25, 1], strides = [1, 1]} : vector<25x25xf32> to vector<25x1xf32>
    %237 = vector.broadcast %236 : vector<25x1xf32> to vector<25x256xf32>
    %238 = vector.broadcast %235 : vector<1x256xf32> to vector<25x256xf32>
    %239 = arith.mulf %237, %238 : vector<25x256xf32>
    %240 = arith.addf %232, %239 : vector<25x256xf32>
    %241 = arith.mulf %42, %216 : vector<16x256xf32>
    %cst_65 = arith.constant dense<0.000000e+00> : vector<256xf32>
    %242 = vector.multi_reduction <add>, %241, %cst_65 [0] : vector<16x256xf32> to vector<256xf32>
    %243 = vector.shape_cast %242 : vector<256xf32> to vector<1x256xf32>
    %244 = vector.extract_strided_slice %8 {offsets = [0, 18], sizes = [25, 1], strides = [1, 1]} : vector<25x25xf32> to vector<25x1xf32>
    %245 = vector.broadcast %244 : vector<25x1xf32> to vector<25x256xf32>
    %246 = vector.broadcast %243 : vector<1x256xf32> to vector<25x256xf32>
    %247 = arith.mulf %245, %246 : vector<25x256xf32>
    %248 = arith.addf %240, %247 : vector<25x256xf32>
    %249 = arith.mulf %49, %216 : vector<16x256xf32>
    %cst_66 = arith.constant dense<0.000000e+00> : vector<256xf32>
    %250 = vector.multi_reduction <add>, %249, %cst_66 [0] : vector<16x256xf32> to vector<256xf32>
    %251 = vector.shape_cast %250 : vector<256xf32> to vector<1x256xf32>
    %252 = vector.extract_strided_slice %8 {offsets = [0, 23], sizes = [25, 1], strides = [1, 1]} : vector<25x25xf32> to vector<25x1xf32>
    %253 = vector.broadcast %252 : vector<25x1xf32> to vector<25x256xf32>
    %254 = vector.broadcast %251 : vector<1x256xf32> to vector<25x256xf32>
    %255 = arith.mulf %253, %254 : vector<25x256xf32>
    %256 = arith.addf %248, %255 : vector<25x256xf32>
    %cst_67 = arith.constant 2.000000e+00 : f32
    %257 = vector.broadcast %cst_67 : f32 to vector<16x1x256xf32>
    %258 = arith.addf %55, %257 : vector<16x1x256xf32>
    %259 = math.absf %258 : vector<16x1x256xf32>
    %cst_68 = arith.constant 1.000000e+00 : f32
    %260 = vector.broadcast %cst_68 : f32 to vector<16x1x256xf32>
    %261 = arith.subf %260, %259 : vector<16x1x256xf32>
    %cst_69 = arith.constant 0.000000e+00 : f32
    %262 = vector.broadcast %cst_69 : f32 to vector<16x1x256xf32>
    %263 = arith.maximumf %262, %261 : vector<16x1x256xf32>
    %264 = vector.broadcast %263 : vector<16x1x256xf32> to vector<16x16x256xf32>
    %265 = arith.mulf %264, %50 : vector<16x16x256xf32>
    %cst_70 = arith.constant dense<0.000000e+00> : vector<16x256xf32>
    %266 = vector.multi_reduction <add>, %265, %cst_70 [0] : vector<16x16x256xf32> to vector<16x256xf32>
    %267 = arith.mulf %21, %266 : vector<16x256xf32>
    %cst_71 = arith.constant dense<0.000000e+00> : vector<256xf32>
    %268 = vector.multi_reduction <add>, %267, %cst_71 [0] : vector<16x256xf32> to vector<256xf32>
    %269 = vector.shape_cast %268 : vector<256xf32> to vector<1x256xf32>
    %270 = vector.extract_strided_slice %8 {offsets = [0, 4], sizes = [25, 1], strides = [1, 1]} : vector<25x25xf32> to vector<25x1xf32>
    %271 = vector.broadcast %270 : vector<25x1xf32> to vector<25x256xf32>
    %272 = vector.broadcast %269 : vector<1x256xf32> to vector<25x256xf32>
    %273 = arith.mulf %271, %272 : vector<25x256xf32>
    %274 = arith.addf %256, %273 : vector<25x256xf32>
    %275 = arith.mulf %28, %266 : vector<16x256xf32>
    %cst_72 = arith.constant dense<0.000000e+00> : vector<256xf32>
    %276 = vector.multi_reduction <add>, %275, %cst_72 [0] : vector<16x256xf32> to vector<256xf32>
    %277 = vector.shape_cast %276 : vector<256xf32> to vector<1x256xf32>
    %278 = vector.extract_strided_slice %8 {offsets = [0, 9], sizes = [25, 1], strides = [1, 1]} : vector<25x25xf32> to vector<25x1xf32>
    %279 = vector.broadcast %278 : vector<25x1xf32> to vector<25x256xf32>
    %280 = vector.broadcast %277 : vector<1x256xf32> to vector<25x256xf32>
    %281 = arith.mulf %279, %280 : vector<25x256xf32>
    %282 = arith.addf %274, %281 : vector<25x256xf32>
    %283 = arith.mulf %35, %266 : vector<16x256xf32>
    %cst_73 = arith.constant dense<0.000000e+00> : vector<256xf32>
    %284 = vector.multi_reduction <add>, %283, %cst_73 [0] : vector<16x256xf32> to vector<256xf32>
    %285 = vector.shape_cast %284 : vector<256xf32> to vector<1x256xf32>
    %286 = vector.extract_strided_slice %8 {offsets = [0, 14], sizes = [25, 1], strides = [1, 1]} : vector<25x25xf32> to vector<25x1xf32>
    %287 = vector.broadcast %286 : vector<25x1xf32> to vector<25x256xf32>
    %288 = vector.broadcast %285 : vector<1x256xf32> to vector<25x256xf32>
    %289 = arith.mulf %287, %288 : vector<25x256xf32>
    %290 = arith.addf %282, %289 : vector<25x256xf32>
    %291 = arith.mulf %42, %266 : vector<16x256xf32>
    %cst_74 = arith.constant dense<0.000000e+00> : vector<256xf32>
    %292 = vector.multi_reduction <add>, %291, %cst_74 [0] : vector<16x256xf32> to vector<256xf32>
    %293 = vector.shape_cast %292 : vector<256xf32> to vector<1x256xf32>
    %294 = vector.extract_strided_slice %8 {offsets = [0, 19], sizes = [25, 1], strides = [1, 1]} : vector<25x25xf32> to vector<25x1xf32>
    %295 = vector.broadcast %294 : vector<25x1xf32> to vector<25x256xf32>
    %296 = vector.broadcast %293 : vector<1x256xf32> to vector<25x256xf32>
    %297 = arith.mulf %295, %296 : vector<25x256xf32>
    %298 = arith.addf %290, %297 : vector<25x256xf32>
    %299 = arith.mulf %49, %266 : vector<16x256xf32>
    %cst_75 = arith.constant dense<0.000000e+00> : vector<256xf32>
    %300 = vector.multi_reduction <add>, %299, %cst_75 [0] : vector<16x256xf32> to vector<256xf32>
    %301 = vector.shape_cast %300 : vector<256xf32> to vector<1x256xf32>
    %302 = vector.extract_strided_slice %8 {offsets = [0, 24], sizes = [25, 1], strides = [1, 1]} : vector<25x25xf32> to vector<25x1xf32>
    %303 = vector.broadcast %302 : vector<25x1xf32> to vector<25x256xf32>
    %304 = vector.broadcast %301 : vector<1x256xf32> to vector<25x256xf32>
    %305 = arith.mulf %303, %304 : vector<25x256xf32>
    %306 = arith.addf %298, %305 : vector<25x256xf32>
    %c0_76 = arith.constant 0 : index
    %c0_77 = arith.constant 0 : index
    %c0_78 = arith.constant 0 : index
    %307 = vector.load %arg7[%c0_76, %c0_77, %c0_78] : memref<1x25x256xf32, #tpu.memory_space<vmem>>, vector<1x25x256xf32>
    %308 = vector.shape_cast %307 : vector<1x25x256xf32> to vector<25x256xf32>
    %309 = vector.shape_cast %306 : vector<25x256xf32> to vector<1x25x256xf32>
    tpu.vector_store %arg7[%c0_76, %c0_77, %c0_78], %309 {strides = array<i32>} : memref<1x25x256xf32, #tpu.memory_space<vmem>>, vector<1x25x256xf32>,
    return
  }
  func.func @transform_0(%arg0: i32, %arg1: i32) -> (i32, i32, i32) {
    %c0_i32 = arith.constant 0 : i32
    %c0_i32_0 = arith.constant 0 : i32
    return %arg0, %c0_i32, %arg1 : i32, i32, i32
  }
  func.func @transform_1(%arg0: i32, %arg1: i32) -> (i32, i32, i32) {
    %c0_i32 = arith.constant 0 : i32
    %c0_i32_0 = arith.constant 0 : i32
    %c0_i32_1 = arith.constant 0 : i32
    return %arg0, %c0_i32, %c0_i32_0 : i32, i32, i32
  }
  func.func @transform_2(%arg0: i32, %arg1: i32) -> (i32, i32, i32) {
    %c0_i32 = arith.constant 0 : i32
    %c0_i32_0 = arith.constant 0 : i32
    return %arg0, %c0_i32, %arg1 : i32, i32, i32
  }
  func.func @transform_3(%arg0: i32, %arg1: i32) -> (i32, i32) {
    %c0_i32 = arith.constant 0 : i32
    %c0_i32_0 = arith.constant 0 : i32
    %c0_i32_1 = arith.constant 0 : i32
    return %c0_i32, %c0_i32_0 : i32, i32
  }
  func.func @transform_4(%arg0: i32, %arg1: i32) -> (i32, i32, i32) {
    %c0_i32 = arith.constant 0 : i32
    %c0_i32_0 = arith.constant 0 : i32
    %c0_i32_1 = arith.constant 0 : i32
    %c0_i32_2 = arith.constant 0 : i32
    return %c0_i32, %c0_i32_0, %c0_i32_1 : i32, i32, i32
  }
  func.func @transform_5(%arg0: i32, %arg1: i32) -> (i32, i32, i32) {
    %c0_i32 = arith.constant 0 : i32
    %c0_i32_0 = arith.constant 0 : i32
    return %arg0, %c0_i32, %arg1 : i32, i32, i32
  }
}

</mosaic_0001>

<bundles_post_ra>
// kernel: tpu_custom_call.1
= control target key start
LH: loop header
LB: loop body
LE: loop exit
PB: predicated region body
PF: predicated region fallthrough
CT: control target
= control target key end

     0   :  { %s3925_s18 = smov 0   ;;  %s3927_s19 = smov 0   ;;  %s7072_s0 = inlined_call_operand.vmem [shape: f32[2,8,256], index: 0, kind: input, shape index: {}]   ;;  %s7073_s1 = inlined_call_operand.vmem [shape: f32[2,256,8], index: 1, kind: input, shape index: {}]   ;;  %s7074_s2 = inlined_call_operand.vmem [shape: f32[2,2,256], index: 2, kind: input, shape index: {}]   ;;  %s7075_s3 = inlined_call_operand.vmem [shape: f32[25,25], index: 3, kind: input, shape index: {}]   ;;  %s7076_s4 = inlined_call_operand.vmem [shape: f32[16,1,1], index: 4, kind: input, shape index: {}]   ;;  %s7077_s5 = inlined_call_operand.vmem [shape: f32[2,25,256], index: 5, kind: output, shape index: {}]  }
   0x1   :  { %s3929_s20 = smov 0  }
   0x2 LB: > { %s27_s21 = sadd.s32 1, %s3864_s19  ;;  %p3632_p0 = scmp.ge.s32.totalorder %s3868_s20, 1  ;;  %s3868_s20 = sphi %s3929_s20, %s15_s20   ;;  %s3864_s19 = sphi %s3927_s19, %s7829_s19   ;;  %s3860_s18 = sphi %s3925_s18, %s7828_s18  }
   0x3   : > { %p29_p1 = scmp.ge.s32.totalorder %s27_s21, 2  ;;  %p235_p2 = scmp.lt.s32.totalorder %s3868_s20, 3 }
   0x5   : > { %s7831_s21 = smov (%p29_p1, %s27_s21), 0  ;;  %p236_p3 = pnand %p3632_p0, %p235_p2 }
   0x7   : > { %239 = sbr.rel (%p236_p3) target bundleno = 747 (0x2eb), region = 40 }
   0xc   : > { %v782_v0 = vld [vmem:[%s7076_s4 + $0x4] sm:$0x1]  ;;  %v780_v1 = vld [vmem:[%s7076_s4 + $0x2] sm:$0x1]  ;;  %p286_p4 = scmp.lt.s32.totalorder %s3860_s18, 1  ;;  %v3870_v2 = vmov 0   ;;  %v684_v52 = vlaneseq }
   0xd   : > { %3765 = vset.pattern.permute.xlu2 %v3870_v2  ;;  %3764 = vset.pattern.permute.xlu1 %v3870_v2  ;;  %v778_v3 = vld [vmem:[%s7076_s4] sm:$0x1]  ;;  %vm361_vm0 = vcmask 64512   ;;  %v783_v8 = vld [vmem:[%s7076_s4 + $0x5] sm:$0x1]  ;;  %v4029_v28 = vld [vmem:[%s7075_s3 + $0x8] sm:$0xff] }
   0xe   : > { %3763 = vset.pattern.permute.xlu0 %v3870_v2  ;;  %820 = vperm.xlu2 %3765, %v782_v0   ;;  %s7833_s18 = smov (!%p286_p4, %s3860_s18), 1  ;;  %v781_v9 = vld [vmem:[%s7076_s4 + $0x3] sm:$0x1]  ;;  %v779_v10 = vld [vmem:[%s7076_s4 + $0x1] sm:$0x1]  ;;  %v4052_v33 = vld [vmem:[%s7075_s3 + $0x10] sm:$0xff] }
   0xf   : > { %808 = vperm.xlu1 %3764, %v780_v1   ;;  %796 = vperm.xlu0 %3763, %v778_v3   ;;  %s3708_s28 = sshll.u32 %s7833_s18, 4  ;;  %s3709_s29 = sshll.u32 %s7833_s18, 8  ;;  %v786_v13 = vld [vmem:[%s7076_s4 + $0x8] sm:$0x1]  ;;  %v785_v14 = vld [vmem:[%s7076_s4 + $0x7] sm:$0x1] }
  0x10   : > { %s293_s7 = scalar_lea.vmem %s7072_s0, %s3708_s28  ;;  %s3962_s10 = scalar_lea.vmem %s7073_s1, %s3709_s29  ;;  %v784_v15 = vld [vmem:[%s7076_s4 + $0x6] sm:$0x1]  ;;  %v789_v18 = vld [vmem:[%s7076_s4 + $0xb] sm:$0x1]  ;;  %v788_v19 = vld [vmem:[%s7076_s4 + $0xa] sm:$0x1] }
  0x11   : > { %v320_v4 = vld [vmem:[%s293_s7] sm:$0xff]  ;;  %v321_v5 = vld [vmem:[%s293_s7 + $0x8] sm:$0xff]  ;;  %v324_v16 = vld [vmem:[%s3962_s10 + $0x10] sm:$0xff]  ;;  %v3871_v35 = vmov 5   ;;  %v3872_v40 = vmov 10   ;;  %v3873_v43 = vmov 15  }
  0x12   : > { %v322_v6 = vld [vmem:[%s3962_s10] sm:$0xff]  ;;  %473 = vmatpush.msra.mxu0 %v320_v4  ;;  %3712 = vmatpush.msra.mxu2 %v320_v4  ;;  %v323_v11 = vld [vmem:[%s3962_s10 + $0x8] sm:$0xff]  ;;  %v340_v17 = vld [vmem:[%s3962_s10 + $0x90] sm:$0xff]  ;;  %s3710_s29 = sshll.u32 %s7833_s18, 2  ;;  %v3874_v48 = vmov 1   ;;  %v3875_v54 = vmov 20  }
  0x13   : > { %v338_v7 = vld [vmem:[%s3962_s10 + $0x80] sm:$0xff]  ;;  %586 = vmatpush.msra.mxu1 %v321_v5  ;;  %3713 = vmatpush.msra.mxu3 %v321_v5  ;;  %v339_v12 = vld [vmem:[%s3962_s10 + $0x88] sm:$0xff]  ;;  %v325_v21 = vld [vmem:[%s3962_s10 + $0x18] sm:$0xff]  ;;  %s308_s7 = scalar_lea.vmem %s7074_s2, %s3710_s29  ;;  %v3876_v56 = vmov 6   ;;  %v685_v58 = vshrl.u32 %v684_v52, 7  ;;  %s3711_s11 = sshll.u32 %s7833_s18, 6 }
  0x14   : > { %3642 = vmatmul.msk.f32.vlgmr.msra.gmra.mxu0 %vm361_vm0, %v322_v6  ;;  %3658 = vmatmul.msk.f32.vlgmr.msra.gmra.mxu2 %vm361_vm0, %v338_v7  ;;  %v787_v20 = vld [vmem:[%s7076_s4 + $0x9] sm:$0x1]  ;;  %v341_v22 = vld [vmem:[%s3962_s10 + $0x98] sm:$0xff]  ;;  %v792_v23 = vld [vmem:[%s7076_s4 + $0xe] sm:$0x1]  ;;  %s318_s14 = scalar_lea.vmem %s7077_s5, %s3711_s11 }
  0x15   : > { %3674 = vmatmul.msk.f32.vlgmr.msra.gmra.mxu1 %vm361_vm0, %v322_v6  ;;  %3690 = vmatmul.msk.f32.vlgmr.msra.gmra.mxu3 %vm361_vm0, %v338_v7  ;;  %v791_v24 = vld [vmem:[%s7076_s4 + $0xd] sm:$0x1]  ;;  %v790_v25 = vld [vmem:[%s7076_s4 + $0xc] sm:$0x1]  ;;  %v326_v26 = vld [vmem:[%s3962_s10 + $0x20] sm:$0xff]  ;;  %v687_v62 = vcvt.s32.f32 %v685_v58  ;;  %v4128_v0 = vadd.s32 8, %v685_v58 }
  0x16   : > { %826 = vperm.xlu2 %3765, %v783_v8   ;;  %v342_v27 = vld [vmem:[%s3962_s10 + $0xa0] sm:$0xff]  ;;  %v793_v29 = vld [vmem:[%s7076_s4 + $0xf] sm:$0x1]  ;;  %v4057_v34 = vld [vmem:[%s7075_s3 + $0x18] sm:$0x1]  ;;  %v7086_v6 = vmov 11  }
  0x17   : > { %814 = vperm.xlu1 %3764, %v781_v9   ;;  %802 = vperm.xlu0 %3763, %v779_v10   ;;  %v4039_v30 = vld [vmem:[%s7075_s3] sm:$0xff]  ;;  %v327_v31 = vld [vmem:[%s3962_s10 + $0x28] sm:$0xff]  ;;  %v328_v36 = vld [vmem:[%s3962_s10 + $0x30] sm:$0xff]  ;;  %v7079_v7 = vcvt.s32.f32 %v4128_v0 }
  0x18   : > { %v343_v32 = vld [vmem:[%s3962_s10 + $0xa8] sm:$0xff]  ;;  %v344_v37 = vld [vmem:[%s3962_s10 + $0xb0] sm:$0xff]  ;;  %v329_v38 = vld [vmem:[%s3962_s10 + $0x38] sm:$0xff] }
  0x19   : > { %v345_v39 = vld [vmem:[%s3962_s10 + $0xb8] sm:$0xff]  ;;  %v330_v41 = vld [vmem:[%s3962_s10 + $0x40] sm:$0xff]  ;;  %v331_v44 = vld [vmem:[%s3962_s10 + $0x48] sm:$0xff] }
  0x1a   : > { %v346_v42 = vld [vmem:[%s3962_s10 + $0xc0] sm:$0xff]  ;;  %v347_v45 = vld [vmem:[%s3962_s10 + $0xc8] sm:$0xff]  ;;  %v332_v46 = vld [vmem:[%s3962_s10 + $0x50] sm:$0xff] }
  0x1b   : > { %v348_v47 = vld [vmem:[%s3962_s10 + $0xd0] sm:$0xff]  ;;  %v4110_v49 = vld [vmem:[%s308_s7 + $0x1] ss:$2 sm:$0x3]  ;;  %v333_v55 = vld [vmem:[%s3962_s10 + $0x58] sm:$0xff] }
  0x1c   : > { %3643 = vmatmul.msk.f32.gmra.mxu0 %vm361_vm0, %v323_v11  ;;  %3659 = vmatmul.msk.f32.gmra.mxu2 %vm361_vm0, %v339_v12  ;;  %v349_v57 = vld [vmem:[%s3962_s10 + $0xd8] sm:$0xff]  ;;  %v4122_v59 = vld [vmem:[%s308_s7] ss:$2 sm:$0x3] }
  0x1d   : > { %3675 = vmatmul.msk.f32.gmra.mxu1 %vm361_vm0, %v323_v11  ;;  %3691 = vmatmul.msk.f32.gmra.mxu3 %vm361_vm0, %v339_v12  ;;  %v690_v63 = vperm.slane %v4122_v59, 0  ;;  %v7078_v1 = vperm.slane %v4122_v59, 1  ;;  %v334_v3 = vld [vmem:[%s3962_s10 + $0x60] sm:$0xff] }
  0x1e   : > { %844 = vperm.xlu2 %3765, %v786_v13   ;;  %v350_v4 = vld [vmem:[%s3962_s10 + $0xe0] sm:$0xff] }
  0x1f   : > { %838 = vperm.xlu1 %3764, %v785_v14   ;;  %832 = vperm.xlu0 %3763, %v784_v15   ;;  %v4138_v5 = vsub.f32 %v690_v63, %v687_v62  ;;  %v4145_v8 = vsub.f32 %v7078_v1, %v687_v62  ;;  %v4156_v12 = vsub.f32 %v690_v63, %v7079_v7  ;;  %v352_v62 = vld [vmem:[%s3962_s10 + $0xf0] sm:$0xff] }
  0x21   : > { %7257 = vst [vmem:[#allocation4_spill] sm:$0xff] %v4138_v5  ;;  %v4152_v11 = vadd.f32 -2.0, %v4138_v5  ;;  %v4159_v13 = vadd.f32 -2.0, %v4145_v8  ;;  %v4163_v15 = vadd.f32 -1.0, %v4138_v5 }
  0x22   : > { %7258 = vst [vmem:[#allocation5_spill] sm:$0xff] %v4145_v8 }
  0x23   : > { %7259 = vst [vmem:[#allocation6_spill] sm:$0xff] %v4152_v11 }
  0x24   : > { %3644 = vmatmul.msk.f32.gmra.mxu0 %vm361_vm0, %v324_v16  ;;  %3660 = vmatmul.msk.f32.gmra.mxu2 %vm361_vm0, %v340_v17  ;;  %7260 = vst [vmem:[#allocation7_spill] sm:$0xff] %v4156_v12 }
  0x25   : > { %3676 = vmatmul.msk.f32.gmra.mxu1 %vm361_vm0, %v324_v16  ;;  %3692 = vmatmul.msk.f32.gmra.mxu3 %vm361_vm0, %v340_v17  ;;  %7261 = vst [vmem:[#allocation8_spill] sm:$0xff] %v4159_v13  ;;  %v4166_v16 = vadd.f32 -1.0, %v4145_v8 }
  0x26   : > { %862 = vperm.xlu2 %3765, %v789_v18   ;;  %7262 = vst [vmem:[#allocation9_spill] sm:$0xff] %v4163_v15  ;;  %v335_v18 = vld [vmem:[%s3962_s10 + $0x68] sm:$0xff] }
  0x27   : > { %856 = vperm.xlu1 %3764, %v788_v19   ;;  %850 = vperm.xlu0 %3763, %v787_v20   ;;  %7263 = vst [vmem:[#allocation10_spill] sm:$0xff] %v4166_v16  ;;  %v351_v19 = vld [vmem:[%s3962_s10 + $0xe8] sm:$0xff]  ;;  %v7280_v16 = vmov 16  }
  0x2c   : > { %3645 = vmatmul.msk.f32.gmra.mxu0 %vm361_vm0, %v325_v21  ;;  %3661 = vmatmul.msk.f32.gmra.mxu2 %vm361_vm0, %v341_v22 }
  0x2d   : > { %3677 = vmatmul.msk.f32.gmra.mxu1 %vm361_vm0, %v325_v21  ;;  %3693 = vmatmul.msk.f32.gmra.mxu3 %vm361_vm0, %v341_v22 }
  0x2e   : > { %880 = vperm.xlu2 %3765, %v792_v23  }
  0x2f   : > { %874 = vperm.xlu1 %3764, %v791_v24   ;;  %868 = vperm.xlu0 %3763, %v790_v25  }
  0x34   : > { %3646 = vmatmul.msk.f32.gmra.mxu0 %vm361_vm0, %v326_v26  ;;  %3662 = vmatmul.msk.f32.gmra.mxu2 %vm361_vm0, %v342_v27 }
  0x35   : > { %3678 = vmatmul.msk.f32.gmra.mxu1 %vm361_vm0, %v326_v26  ;;  %3694 = vmatmul.msk.f32.gmra.mxu3 %vm361_vm0, %v342_v27  ;;  %v4174_v26 = vadd.f32 1.0, %v4138_v5 }
  0x36   : > { %1199 = vperm.xlu2 %3765, %v4029_v28  }
  0x37   : > { %886 = vperm.xlu0 %3763, %v793_v29   ;;  %1194 = vperm.xlu1 %3764, %v4039_v30   ;;  %7264 = vst [vmem:[#allocation11_spill] sm:$0xff] %v4174_v26  ;;  %v4179_v29 = vadd.f32 1.0, %v4145_v8 }
  0x39   : > { %7265 = vst [vmem:[#allocation12_spill] sm:$0xff] %v4179_v29 }
  0x3c   : > { %3647 = vmatmul.msk.f32.gmra.mxu0 %vm361_vm0, %v327_v31  ;;  %3663 = vmatmul.msk.f32.gmra.mxu2 %vm361_vm0, %v343_v32 }
  0x3d   : > { %3679 = vmatmul.msk.f32.gmra.mxu1 %vm361_vm0, %v327_v31  ;;  %3695 = vmatmul.msk.f32.gmra.mxu3 %vm361_vm0, %v343_v32  ;;  %v7084_v31 = vmov 16  }
  0x3e   : > { %3766 = vset.pattern.permute.xlu2 %v3871_v35 }
  0x3f   : > { %1204 = vperm.xlu0 %3763, %v4052_v33   ;;  %1209 = vperm.xlu1 %3764, %v4057_v34  }
  0x40   : > { %1247 = vperm.xlu2 %3766, %v4039_v30  }
  0x44   : > { %3648 = vmatmul.msk.f32.gmra.mxu0 %vm361_vm0, %v328_v36  ;;  %3664 = vmatmul.msk.f32.gmra.mxu2 %vm361_vm0, %v344_v37 }
  0x45   : > { %3680 = vmatmul.msk.f32.gmra.mxu1 %vm361_vm0, %v328_v36  ;;  %3696 = vmatmul.msk.f32.gmra.mxu3 %vm361_vm0, %v344_v37 }
  0x47   : > { %3767 = vset.pattern.permute.xlu0 %v3871_v35  ;;  %3768 = vset.pattern.permute.xlu1 %v3871_v35 }
  0x48   : > { %1251 = vperm.xlu0 %3767, %v4029_v28   ;;  %1259 = vperm.xlu2 %3766, %v4057_v34  }
  0x49   : > { %1255 = vperm.xlu1 %3768, %v4052_v33  }
  0x4c   : > { %3649 = vmatmul.msk.f32.gmra.mxu0 %vm361_vm0, %v329_v38  ;;  %3665 = vmatmul.msk.f32.gmra.mxu2 %vm361_vm0, %v345_v39 }
  0x4d   : > { %3681 = vmatmul.msk.f32.gmra.mxu1 %vm361_vm0, %v329_v38  ;;  %3697 = vmatmul.msk.f32.gmra.mxu3 %vm361_vm0, %v345_v39 }
  0x50   : > { %3771 = vset.pattern.permute.xlu0 %v3872_v40  ;;  %3770 = vset.pattern.permute.xlu2 %v3872_v40 }
  0x51   : > { %3769 = vset.pattern.permute.xlu1 %v3872_v40  ;;  %1305 = vperm.xlu0 %3771, %v4052_v33  }
  0x52   : > { %1301 = vperm.xlu2 %3770, %v4029_v28   ;;  %1297 = vperm.xlu1 %3769, %v4039_v30  }
  0x54   : > { %3650 = vmatmul.msk.f32.gmra.mxu0 %vm361_vm0, %v330_v41  ;;  %3666 = vmatmul.msk.f32.gmra.mxu2 %vm361_vm0, %v346_v42 }
  0x55   : > { %3682 = vmatmul.msk.f32.gmra.mxu1 %vm361_vm0, %v330_v41  ;;  %3698 = vmatmul.msk.f32.gmra.mxu3 %vm361_vm0, %v346_v42 }
  0x59   : > { %3774 = vset.pattern.permute.xlu0 %v3873_v43 }
  0x5a   : > { %3772 = vset.pattern.permute.xlu2 %v3873_v43  ;;  %1309 = vperm.xlu1 %3769, %v4057_v34  }
  0x5b   : > { %1359 = vperm.xlu0 %3774, %v4057_v34   ;;  %1347 = vperm.xlu2 %3772, %v4039_v30  }
  0x5c   : > { %3651 = vmatmul.msk.f32.gmra.mxu0 %vm361_vm0, %v331_v44  ;;  %3667 = vmatmul.msk.f32.gmra.mxu2 %vm361_vm0, %v347_v45 }
  0x5d   : > { %3683 = vmatmul.msk.f32.gmra.mxu1 %vm361_vm0, %v331_v44  ;;  %3699 = vmatmul.msk.f32.gmra.mxu3 %vm361_vm0, %v347_v45 }
  0x62   : > { %3773 = vset.pattern.permute.xlu1 %v3873_v43 }
  0x63   : > { %3777 = vset.pattern.permute.xlu0 %v3874_v48  ;;  %1355 = vperm.xlu2 %3772, %v4052_v33  }
  0x64   : > { %1351 = vperm.xlu1 %3773, %v4029_v28   ;;  %1715 = vperm.xlu0 %3777, %v4039_v30  }
  0x65   : > { %3652 = vmatmul.msk.f32.gmra.mxu0 %vm361_vm0, %v332_v46  ;;  %3668 = vmatmul.msk.f32.gmra.mxu2 %vm361_vm0, %v348_v47 }
  0x66   : > { %3684 = vmatmul.msk.f32.gmra.mxu1 %vm361_vm0, %v332_v46  ;;  %3700 = vmatmul.msk.f32.gmra.mxu3 %vm361_vm0, %v348_v47 }
  0x68   : > { %v821_v50 = vpop.permute.xlu2 %820 }
  0x69   : > { %v823_v51 = vperm.slane %v821_v50, 0 }
  0x6b   : > { %v4113_v53 = vsub.f32 %v4110_v49, %v823_v51  ;;  %3776 = vset.pattern.permute.xlu2 %v3875_v54 }
  0x6c   : > { %3775 = vset.pattern.permute.xlu1 %v3875_v54  ;;  %3781 = vset.pattern.permute.xlu0 %v3876_v56 }
  0x6d   : > { %7255 = vst [vmem:[#allocation2_spill] sm:$0xff] %v4113_v53  ;;  %1401 = vperm.xlu2 %3776, %v4029_v28   ;;  %1397 = vperm.xlu1 %3775, %v4039_v30  }
  0x6e   : > { %1769 = vperm.xlu0 %3781, %v4029_v28   ;;  %3653 = vmatmul.msk.f32.gmra.mxu0 %vm361_vm0, %v333_v55 }
  0x6f   : > { %3669 = vmatmul.msk.f32.gmra.mxu2 %vm361_vm0, %v349_v57  ;;  %3685 = vmatmul.msk.f32.gmra.mxu1 %vm361_vm0, %v333_v55 }
  0x70   : > { %3701 = vmatmul.msk.f32.gmra.mxu3 %vm361_vm0, %v349_v57  ;;  %v827_v60 = vpop.permute.xlu2 %826  ;;  %v336_v57 = vld [vmem:[%s3962_s10 + $0x70] sm:$0xff] }
  0x71   : > { %v829_v61 = vperm.slane %v827_v60, 0 }
  0x73   : > { %v4132_v2 = vsub.f32 %v4110_v49, %v829_v61 }
  0x75   : > { %7256 = vst [vmem:[#allocation3_spill] sm:$0xff] %v4132_v2  ;;  %1409 = vperm.xlu2 %3776, %v4057_v34   ;;  %1405 = vperm.xlu1 %3775, %v4052_v33  }
  0x76   : > { %3785 = vset.pattern.permute.xlu0 %v7086_v6  ;;  %3654 = vmatmul.msk.f32.gmra.mxu0 %vm361_vm0, %v334_v3 }
  0x77   : > { %1823 = vperm.xlu0 %3785, %v4052_v33   ;;  %3670 = vmatmul.msk.f32.gmra.mxu2 %vm361_vm0, %v350_v4 }
  0x78   : > { %3686 = vmatmul.msk.f32.gmra.mxu1 %vm361_vm0, %v334_v3  ;;  %3702 = vmatmul.msk.f32.gmra.mxu3 %vm361_vm0, %v350_v4  ;;  %v845_v9 = vpop.permute.xlu2 %844 }
  0x79   : > { %v847_v10 = vperm.slane %v845_v9, 0 }
  0x7b   : > { %v898_v14 = vsub.f32 %v4110_v49, %v847_v10 }
  0x7d   : > { %3779 = vset.pattern.permute.xlu2 %v3874_v48  ;;  %3778 = vset.pattern.permute.xlu1 %v3874_v48  ;;  %v914_v20 = vadd.f32 -2.0, %v898_v14  ;;  %v1436_v21 = vadd.f32 -1.0, %v898_v14  ;;  %v1970_v22 = vand.u32 2147483647, %v898_v14  ;;  %v2472_v23 = vadd.f32 1.0, %v898_v14 }
  0x7e   : > { %1723 = vperm.xlu2 %3779, %v4052_v33   ;;  %1719 = vperm.xlu1 %3778, %v4029_v28   ;;  %v2990_v27 = vadd.f32 2.0, %v898_v14 }
  0x7f   : > { %3788 = vset.pattern.permute.xlu0 %v7084_v31  ;;  %3655 = vmatmul.msk.f32.gmra.mxu0 %vm361_vm0, %v335_v18  ;;  %v930_v32 = vand.u32 2147483647, %v914_v20  ;;  %v1452_v35 = vand.u32 2147483647, %v1436_v21  ;;  %v1986_v36 = vsub.f32 1.0, %v1970_v22 }
  0x80   : > { %3671 = vmatmul.msk.f32.gmra.mxu2 %vm361_vm0, %v351_v19  ;;  %3687 = vmatmul.msk.f32.gmra.mxu1 %vm361_vm0, %v335_v18  ;;  %v863_v37 = vpop.permute.xlu2 %862  ;;  %v2488_v39 = vand.u32 2147483647, %v2472_v23  ;;  %v3006_v40 = vand.u32 2147483647, %v2990_v27 }
  0x81   : > { %v809_v38 = vpop.permute.xlu1 %808  ;;  %3703 = vmatmul.msk.f32.gmra.mxu3 %vm361_vm0, %v351_v19  ;;  %1877 = vperm.xlu0 %3788, %v4057_v34   ;;  %v865_v41 = vperm.slane %v863_v37, 0  ;;  %v797_v43 = vpop.permute.xlu0 %796  ;;  %v946_v44 = vsub.f32 1.0, %v930_v32  ;;  %v1468_v45 = vsub.f32 1.0, %v1452_v35  ;;  %v2002_v47 = vmax.f32 %v1986_v36, 0.0 }
  0x82   : > { %v811_v42 = vperm.slane %v809_v38, 0  ;;  %v799_v46 = vperm.slane %v797_v43, 0  ;;  %v2504_v48 = vsub.f32 1.0, %v2488_v39  ;;  %v3022_v50 = vsub.f32 1.0, %v3006_v40 }
  0x83   : > { %v4188_v51 = vsub.f32 %v4110_v49, %v865_v41  ;;  %v962_v54 = vmax.f32 %v946_v44, 0.0  ;;  %v1484_v55 = vmax.f32 %v1468_v45, 0.0  ;;  %v4200_v4 = vperm.slane %v2002_v47, 0 }
  0x84   : > { %v4191_v52 = vsub.f32 %v4110_v49, %v811_v42  ;;  %v890_v58 = vsub.f32 %v4110_v49, %v799_v46  ;;  %v2520_v60 = vmax.f32 %v2504_v48, 0.0  ;;  %v3038_v61 = vmax.f32 %v3022_v50, 0.0 }
  0x85   : > { %v4196_v63 = vperm.slane %v962_v54, 0  ;;  %v4198_v3 = vperm.slane %v1484_v55, 0  ;;  %v4202_v9 = vperm.slane %v962_v54, 1  ;;  %v4212_v23 = vperm.slane %v1484_v55, 1 }
  0x86   : > { %3780 = vset.pattern.permute.xlu2 %v3876_v56  ;;  %1727 = vperm.xlu1 %3778, %v4057_v34   ;;  %v906_v10 = vadd.f32 -2.0, %v890_v58  ;;  %v1428_v14 = vadd.f32 -1.0, %v890_v58  ;;  %v1962_v18 = vand.u32 2147483647, %v890_v58  ;;  %v2464_v19 = vadd.f32 1.0, %v890_v58 }
  0x87   : > { %1765 = vperm.xlu2 %3780, %v4039_v30   ;;  %3656 = vmatmul.msk.f32.gmra.mxu0 %vm361_vm0, %v336_v57  ;;  %v2982_v20 = vadd.f32 2.0, %v890_v58  ;;  %v4208_v21 = vperm.slane %v2520_v60, 0  ;;  %v4210_v22 = vperm.slane %v3038_v61, 0  ;;  %v4216_v37 = vperm.slane %v2002_v47, 1 }
  0x88   : > { %3688 = vmatmul.msk.f32.gmra.mxu1 %vm361_vm0, %v336_v57  ;;  %v881_v27 = vpop.permute.xlu2 %880  ;;  %3672 = vmatmul.msk.f32.gmra.mxu2 %vm361_vm0, %v352_v62  ;;  %v922_v32 = vand.u32 2147483647, %v906_v10  ;;  %v1444_v35 = vand.u32 2147483647, %v1428_v14  ;;  %v1978_v36 = vsub.f32 1.0, %v1962_v18  ;;  %v7082_v38 = vmov 2  }
  0x89   : > { %3791 = vset.pattern.permute.xlu0 %v7082_v38  ;;  %v883_v39 = vperm.slane %v881_v27, 0  ;;  %v815_v40 = vpop.permute.xlu1 %814  ;;  %3704 = vmatmul.msk.f32.gmra.mxu3 %vm361_vm0, %v352_v62  ;;  %v2480_v41 = vand.u32 2147483647, %v2464_v19  ;;  %v2998_v42 = vand.u32 2147483647, %v2982_v20  ;;  %v803_v43 = vpop.permute.xlu0 %802  ;;  %v4220_v44 = vperm.slane %v2520_v60, 1 }
  0x8a   : > { %2233 = vperm.xlu0 %3791, %v4039_v30   ;;  %v817_v45 = vperm.slane %v815_v40, 0  ;;  %v938_v46 = vsub.f32 1.0, %v922_v32  ;;  %v1460_v48 = vsub.f32 1.0, %v1444_v35  ;;  %v1994_v47 = vmax.f32 %v1978_v36, 0.0  ;;  %v337_v14 = vld [vmem:[%s3962_s10 + $0x78] sm:$0xff] }
  0x8b   : > { %v4224_v50 = vsub.f32 %v4110_v49, %v883_v39  ;;  %v2496_v54 = vsub.f32 1.0, %v2480_v41  ;;  %v3014_v55 = vsub.f32 1.0, %v2998_v42  ;;  %v805_v57 = vperm.slane %v803_v43, 0  ;;  %v353_v40 = vld [vmem:[%s3962_s10 + $0xf8] sm:$0xff] }
  0x8c   : > { %v4227_v58 = vsub.f32 %v4110_v49, %v817_v45  ;;  %v954_v62 = vmax.f32 %v938_v46, 0.0  ;;  %v1476_v10 = vmax.f32 %v1460_v48, 0.0  ;;  %v4229_v60 = vperm.slane %v3038_v61, 1 }
  0x8d   : > { %7266 = vst [vmem:[#allocation13_spill] sm:$0xff] %v4224_v50  ;;  %v4232_v18 = vperm.slane %v1994_v47, 0  ;;  %v2512_v19 = vmax.f32 %v2496_v54, 0.0  ;;  %v3030_v20 = vmax.f32 %v3014_v55, 0.0  ;;  %v891_v27 = vsub.f32 %v4110_v49, %v805_v57 }
  0x8e   : > { %3782 = vset.pattern.permute.xlu1 %v3876_v56  ;;  %v4236_v32 = vperm.slane %v954_v62, 0  ;;  %v4238_v35 = vperm.slane %v1476_v10, 0  ;;  %v4240_v36 = vperm.slane %v954_v62, 1  ;;  %v4242_v39 = vperm.slane %v1994_v47, 1 }
  0x8f   : > { %1777 = vperm.xlu2 %3780, %v4057_v34   ;;  %1773 = vperm.xlu1 %3782, %v4052_v33   ;;  %v4247_v61 = vperm.slane %v2512_v19, 0  ;;  %v4249_v41 = vperm.slane %v3030_v20, 0  ;;  %v4251_v42 = vperm.slane %v1476_v10, 1  ;;  %v4253_v56 = vperm.slane %v2512_v19, 1 }
  0x90   : > { %3657 = vmatmul.msk.f32.gmra.mxu0 %vm361_vm0, %v337_v14  ;;  %3689 = vmatmul.msk.f32.gmra.mxu1 %vm361_vm0, %v337_v14  ;;  %v4257_v43 = vperm.slane %v3030_v20, 1  ;;  %v907_v45 = vadd.f32 -2.0, %v891_v27  ;;  %v1429_v46 = vadd.f32 -1.0, %v891_v27  ;;  %v1963_v54 = vand.u32 2147483647, %v891_v27 }
  0x91   : > { %v839_v48 = vpop.permute.xlu1 %838  ;;  %v475_v47 = vpop.f32.mrf.mxu0  ;;  %3673 = vmatmul.msk.f32.gmra.mxu2 %vm361_vm0, %v353_v40  ;;  %3705 = vmatmul.msk.f32.gmra.mxu3 %vm361_vm0, %v353_v40  ;;  %v2465_v55 = vadd.f32 1.0, %v891_v27  ;;  %v4261_v57 = vadd.f32 2.0, %v891_v27  ;;  %v7080_v62 = vmov 7   ;;  %v4300_v29 = vadd.f32 -2.0, %v4191_v52 }
  0x92   : > { %3795 = vset.pattern.permute.xlu0 %v7080_v62  ;;  %v841_v10 = vperm.slane %v839_v48, 0  ;;  %v4265_v14 = vmul.f32 %v4236_v32, %v475_v47  ;;  %v4268_v19 = vmul.f32 %v4238_v35, %v475_v47  ;;  %v4271_v20 = vmul.f32 %v4232_v18, %v475_v47  ;;  %v588_v24 = vpop.f32.mrf.mxu1  ;;  %v833_v17 = vpop.permute.xlu0 %832 }
  0x93   : > { %2287 = vperm.xlu0 %3795, %v4029_v28   ;;  %v4275_v40 = vmul.f32 %v4247_v61, %v475_v47  ;;  %v4278_v27 = vmul.f32 %v4249_v41, %v475_v47  ;;  %v4281_v48 = vmul.f32 %v4240_v36, %v588_v24  ;;  %v4284_v25 = vmul.f32 %v4251_v42, %v588_v24 }
  0x94   : > { %v4287_v1 = vsub.f32 %v4110_v49, %v841_v10  ;;  %v4290_v7 = vmul.f32 %v4242_v39, %v588_v24  ;;  %v4293_v62 = vmul.f32 %v4253_v56, %v588_v24  ;;  %v4296_v38 = vmul.f32 %v4257_v43, %v588_v24 }
  0x95   : > { %v835_v47 = vperm.slane %v833_v17, 0  ;;  %v923_v31 = vand.u32 2147483647, %v907_v45  ;;  %v1445_v6 = vand.u32 2147483647, %v1429_v46  ;;  %v1979_v12 = vsub.f32 1.0, %v1963_v54 }
  0x96   : > { %7267 = vst [vmem:[#allocation14_spill] sm:$0xff] %v4287_v1  ;;  %v2481_v50 = vand.u32 2147483647, %v2465_v55  ;;  %v2999_v2 = vand.u32 2147483647, %v4261_v57  ;;  %v7268_v10 = vmov 11  }
  0x97   : > { %3784 = vset.pattern.permute.xlu2 %v7268_v10  ;;  %3783 = vset.pattern.permute.xlu1 %v7268_v10  ;;  %v523_v1 = vpop.f32.mrf.mxu2  ;;  %v4305_v11 = vsub.f32 %v4110_v49, %v835_v47  ;;  %v939_v24 = vsub.f32 1.0, %v923_v31  ;;  %v4307_v8 = vsub.f32 1.0, %v1445_v6  ;;  %v1995_v17 = vmax.f32 %v1979_v12, 0.0 }
  0x98   : > { %1819 = vperm.xlu2 %3784, %v4029_v28   ;;  %1815 = vperm.xlu1 %3783, %v4039_v30   ;;  %v4312_v45 = vmul.f32 %v4196_v63, %v523_v1  ;;  %v4315_v46 = vmul.f32 %v4198_v3, %v523_v1  ;;  %v4318_v54 = vmul.f32 %v4200_v4, %v523_v1  ;;  %v636_v55 = vpop.f32.mrf.mxu3  ;;  %v4320_v57 = vsub.f32 1.0, %v2481_v50 }
  0x99   : > { %7269 = vst [vmem:[#allocation15_spill] sm:$0xff] %v4305_v11  ;;  %v4323_v6 = vmul.f32 %v4208_v21, %v523_v1  ;;  %v4326_v12 = vmul.f32 %v4210_v22, %v523_v1  ;;  %v4329_v31 = vmul.f32 %v4202_v9, %v636_v55  ;;  %v4332_v47 = vmul.f32 %v4212_v23, %v636_v55  ;;  %v857_v10 = vpop.permute.xlu1 %856 }
  0x9a   : > { %7270 = vst [vmem:[#allocation16_spill] sm:$0xff] %v4312_v45  ;;  %v4335_v45 = vmul.f32 %v4216_v37, %v636_v55  ;;  %v4338_v50 = vmul.f32 %v4220_v44, %v636_v55  ;;  %v591_v1 = vpop.f32.mrf.mxu1  ;;  %v4386_v26 = vperm.slane %v1995_v17, 1 }
  0x9b   : > { %7271 = vst [vmem:[#allocation17_spill] sm:$0xff] %v4315_v46  ;;  %v478_v46 = vpop.f32.mrf.mxu0 }
  0x9c   : > { %7272 = vst [vmem:[#allocation18_spill] sm:$0xff] %v4318_v54  ;;  %v4341_v54 = vmul.f32 %v4229_v60, %v636_v55  ;;  %v4351_v11 = vmul.f32 %v4232_v18, %v478_v46  ;;  %v4370_v18 = vmul.f32 %v4242_v39, %v591_v1 }
  0x9d   : > { %7273 = vst [vmem:[#allocation19_spill] sm:$0xff] %v4323_v6  ;;  %v859_v6 = vperm.slane %v857_v10, 0  ;;  %v4361_v10 = vmul.f32 %v4249_v41, %v478_v46  ;;  %v1477_v41 = vmax.f32 %v4307_v8, 0.0 }
  0x9e   : > { %7274 = vst [vmem:[#allocation20_spill] sm:$0xff] %v4326_v12  ;;  %v7096_v12 = vmov 12  }
  0x9f   : > { %7275 = vst [vmem:[#allocation21_spill] sm:$0xff] %v4329_v31  ;;  %3799 = vset.pattern.permute.xlu0 %v7096_v12  ;;  %v4345_v31 = vmul.f32 %v4236_v32, %v478_v46  ;;  %v4357_v55 = vsub.f32 %v4110_v49, %v859_v6  ;;  %v4364_v32 = vmul.f32 %v4240_v36, %v591_v1  ;;  %v955_v12 = vmax.f32 %v939_v24, 0.0 }
  0xa0   : > { %7276 = vst [vmem:[#allocation22_spill] sm:$0xff] %v4332_v47  ;;  %v4348_v47 = vmul.f32 %v4238_v35, %v478_v46  ;;  %2341 = vperm.xlu0 %3799, %v4052_v33   ;;  %v4367_v35 = vmul.f32 %v4251_v42, %v591_v1  ;;  %v4376_v6 = vmul.f32 %v4257_v43, %v591_v1  ;;  %v2513_v36 = vmax.f32 %v4320_v57, 0.0  ;;  %v526_v42 = vpop.f32.mrf.mxu2  ;;  %v639_v24 = vpop.f32.mrf.mxu3 }
  0xa1   : > { %7277 = vst [vmem:[#allocation23_spill] sm:$0xff] %v4335_v45  ;;  %v4354_v45 = vmul.f32 %v4247_v61, %v478_v46  ;;  %v4373_v61 = vmul.f32 %v4253_v56, %v591_v1  ;;  %v4379_v46 = vperm.slane %v1995_v17, 0  ;;  %v4382_v5 = vperm.slane %v955_v12, 0  ;;  %3786 = vset.pattern.permute.xlu2 %v7280_v16  ;;  %1827 = vperm.xlu1 %3783, %v4057_v34  }
  0xa2   : > { %7278 = vst [vmem:[#allocation24_spill] sm:$0xff] %v4338_v50  ;;  %v3015_v50 = vsub.f32 1.0, %v2999_v2  ;;  %v4384_v39 = vperm.slane %v955_v12, 1  ;;  %v4391_v43 = vmul.f32 %v4196_v63, %v526_v42  ;;  %v4394_v8 = vmul.f32 %v4198_v3, %v526_v42  ;;  %1865 = vperm.xlu2 %3786, %v4039_v30   ;;  %v875_v12 = vpop.permute.xlu1 %874 }
  0xa3   : > { %7279 = vst [vmem:[#allocation25_spill] sm:$0xff] %v4341_v54  ;;  %v851_v54 = vpop.permute.xlu0 %850  ;;  %v4397_v2 = vmul.f32 %v4200_v4, %v526_v42  ;;  %v4399_v57 = vperm.slane %v1477_v41, 0  ;;  %v4403_v17 = vmul.f32 %v4208_v21, %v526_v42  ;;  %v4409_v63 = vmul.f32 %v4202_v9, %v639_v24  ;;  %v481_v4 = vpop.f32.mrf.mxu0 }
  0xa4   : > { %v853_v56 = vperm.slane %v851_v54, 0  ;;  %7281 = vst [vmem:[#allocation26_spill] sm:$0xff] %v4391_v43  ;;  %v4406_v54 = vmul.f32 %v4210_v22, %v526_v42  ;;  %v4412_v3 = vmul.f32 %v4212_v23, %v639_v24  ;;  %v4415_v1 = vmul.f32 %v4216_v37, %v639_v24 }
  0xa5   : > { %7282 = vst [vmem:[#allocation27_spill] sm:$0xff] %v4394_v8  ;;  %v4418_v8 = vmul.f32 %v4220_v44, %v639_v24  ;;  %v4421_v21 = vmul.f32 %v4229_v60, %v639_v24  ;;  %v1054_v22 = vmul.f32 %v4382_v5, %v481_v4  ;;  %v1576_v9 = vmul.f32 %v4399_v57, %v481_v4 }
  0xa6   : > { %7283 = vst [vmem:[#allocation28_spill] sm:$0xff] %v4397_v2  ;;  %v2094_v42 = vmul.f32 %v4379_v46, %v481_v4  ;;  %v4426_v23 = vperm.slane %v2513_v36, 0  ;;  %v7102_v37 = vmov 17   ;;  %v3031_v44 = vmax.f32 %v3015_v50, 0.0 }
  0xa7   : > { %7284 = vst [vmem:[#allocation29_spill] sm:$0xff] %v4403_v17  ;;  %v877_v17 = vperm.slane %v875_v12, 0  ;;  %v4433_v24 = vperm.slane %v1477_v41, 1  ;;  %v4437_v12 = vadd.f32 %v1054_v22, %v4265_v14  ;;  %v4456_v22 = vperm.slane %v2513_v36, 1 }
  0xa8   : > { %7285 = vst [vmem:[#allocation30_spill] sm:$0xff] %v4406_v54  ;;  %3802 = vset.pattern.permute.xlu0 %v7102_v37 }
  0xa9   : > { %7286 = vst [vmem:[#allocation31_spill] sm:$0xff] %v4409_v63  ;;  %v4429_v54 = vsub.f32 %v4110_v49, %v877_v17  ;;  %2395 = vperm.xlu0 %3802, %v4057_v34   ;;  %v2612_v17 = vmul.f32 %v4426_v23, %v481_v4  ;;  %3787 = vset.pattern.permute.xlu1 %v7280_v16 }
  0xaa   : > { %7287 = vst [vmem:[#allocation32_spill] sm:$0xff] %v4412_v3  ;;  %v594_v3 = vpop.f32.mrf.mxu1  ;;  %1873 = vperm.xlu2 %3786, %v4052_v33   ;;  %1869 = vperm.xlu1 %3787, %v4029_v28  }
  0xab   : > { %7288 = vst [vmem:[#allocation33_spill] sm:$0xff] %v4415_v1  ;;  %v1055_v60 = vmul.f32 %v4384_v39, %v594_v3  ;;  %v4446_v1 = vperm.slane %v3031_v44, 0  ;;  %v1577_v41 = vmul.f32 %v4433_v24, %v594_v3  ;;  %v2095_v37 = vmul.f32 %v4386_v26, %v594_v3  ;;  %v484_v63 = vpop.f32.mrf.mxu0 }
  0xac   : > { %7289 = vst [vmem:[#allocation34_spill] sm:$0xff] %v4418_v8  ;;  %v4443_v8 = vadd.f32 %v2094_v42, %v4271_v20  ;;  %v4454_v14 = vadd.f32 %v2612_v17, %v4275_v40  ;;  %v899_v20 = vsub.f32 %v4110_v49, %v853_v56  ;;  %v2613_v36 = vmul.f32 %v4456_v22, %v594_v3 }
  0xad   : > { %7290 = vst [vmem:[#allocation35_spill] sm:$0xff] %v4421_v21  ;;  %v4440_v21 = vadd.f32 %v1576_v9, %v4268_v19  ;;  %v4449_v50 = vadd.f32 %v1055_v60, %v4281_v48  ;;  %v4458_v19 = vperm.slane %v3031_v44, 1  ;;  %v4461_v9 = vpop.permute.xlu0 %868  ;;  %v3130_v42 = vmul.f32 %v4446_v1, %v481_v4 }
  0xae   : > { %7291 = vst [vmem:[#allocation36_spill] sm:$0xff] %v4429_v54  ;;  %v4465_v48 = vadd.f32 %v1577_v41, %v4284_v25  ;;  %v4468_v60 = vadd.f32 %v2095_v37, %v4290_v7  ;;  %v915_v56 = vadd.f32 -2.0, %v899_v20  ;;  %v1437_v4 = vadd.f32 -1.0, %v899_v20 }
  0xaf   : > { %v3131_v44 = vmul.f32 %v4458_v19, %v594_v3  ;;  %v4477_v25 = vadd.f32 %v3130_v42, %v4278_v27  ;;  %v1971_v17 = vand.u32 2147483647, %v899_v20  ;;  %v2473_v7 = vadd.f32 1.0, %v899_v20 }
  0xb0   : > { %v2991_v37 = vadd.f32 2.0, %v899_v20  ;;  %v4480_v16 = vadd.f32 %v2613_v36, %v4293_v62  ;;  %v931_v40 = vand.u32 2147483647, %v915_v56  ;;  %v1453_v3 = vand.u32 2147483647, %v1437_v4  ;;  %v529_v36 = vpop.f32.mrf.mxu2 }
  0xb1   : > { %v4483_v41 = vadd.f32 %v3131_v44, %v4296_v38  ;;  %v1987_v43 = vsub.f32 1.0, %v1971_v17  ;;  %v2489_v2 = vand.u32 2147483647, %v2473_v7  ;;  %v1056_v53 = vmul.f32 %v4382_v5, %v484_v63 }
  0xb2   : > { %v3007_v54 = vand.u32 2147483647, %v2991_v37  ;;  %v947_v15 = vsub.f32 1.0, %v931_v40  ;;  %v1469_v27 = vsub.f32 1.0, %v1453_v3  ;;  %v7106_v42 = vmov 3   ;;  %v642_v40 = vpop.f32.mrf.mxu3 }
  0xb3   : > { %3805 = vset.pattern.permute.xlu0 %v7106_v42  ;;  %v1578_v20 = vmul.f32 %v4399_v57, %v484_v63  ;;  %v2096_v62 = vmul.f32 %v4379_v46, %v484_v63  ;;  %v2003_v38 = vmax.f32 %v1987_v43, 0.0  ;;  %v2505_v44 = vsub.f32 1.0, %v2489_v2 }
  0xb4   : > { %v3023_v56 = vsub.f32 1.0, %v3007_v54  ;;  %v4490_v4 = vadd.f32 %v1056_v53, %v4345_v31  ;;  %2751 = vperm.xlu0 %3805, %v4039_v30   ;;  %v963_v17 = vmax.f32 %v947_v15, 0.0  ;;  %v1485_v5 = vmax.f32 %v1469_v27, 0.0 }
  0xb5   : > { %v4494_v7 = vadd.f32 %v1578_v20, %v4348_v47  ;;  %v4497_v37 = vadd.f32 %v2096_v62, %v4351_v11  ;;  %v2044_v57 = vperm.slane %v2003_v38, 0  ;;  %v2521_v46 = vmax.f32 %v2505_v44, 0.0 }
  0xb6   : > { %v3039_v3 = vmax.f32 %v3023_v56, 0.0  ;;  %v2045_v43 = vperm.slane %v2003_v38, 1  ;;  %v1004_v2 = vperm.slane %v963_v17, 0  ;;  %v1526_v54 = vperm.slane %v1485_v5, 0 }
  0xb7   : > { %v1005_v42 = vperm.slane %v963_v17, 1  ;;  %v1527_v53 = vperm.slane %v1485_v5, 1  ;;  %v3884_v31 = vmov 21   ;;  %v4499_v15 = vmul.f32 %v2044_v57, %v529_v36 }
  0xb8   : > { %3790 = vset.pattern.permute.xlu2 %v3884_v31  ;;  %3789 = vset.pattern.permute.xlu1 %v3884_v31  ;;  %v2562_v27 = vperm.slane %v2521_v46, 0  ;;  %v3080_v13 = vperm.slane %v3039_v3, 0  ;;  %v4501_v47 = vmul.f32 %v2045_v43, %v642_v40  ;;  %v4505_v11 = vmul.f32 %v1004_v2, %v529_v36  ;;  %v597_v31 = vpop.f32.mrf.mxu1 }
  0xb9   : > { %7292 = vst [vmem:[#allocation37_spill] sm:$0xff] %v4499_v15  ;;  %1919 = vperm.xlu2 %3790, %v4029_v28   ;;  %1915 = vperm.xlu1 %3789, %v4039_v30   ;;  %v4507_v20 = vmul.f32 %v1526_v54, %v529_v36  ;;  %v4509_v62 = vmul.f32 %v1005_v42, %v642_v40  ;;  %v2563_v17 = vperm.slane %v2521_v46, 1  ;;  %v3081_v5 = vperm.slane %v3039_v3, 1 }
  0xba   : > { %7293 = vst [vmem:[#allocation38_spill] sm:$0xff] %v4501_v47  ;;  %v4511_v38 = vmul.f32 %v1527_v53, %v642_v40  ;;  %v4513_v44 = vmul.f32 %v2562_v27, %v529_v36  ;;  %v4515_v56 = vmul.f32 %v3080_v13, %v529_v36  ;;  %v2614_v47 = vmul.f32 %v4426_v23, %v484_v63 }
  0xbb   : > { %7294 = vst [vmem:[#allocation39_spill] sm:$0xff] %v4505_v11  ;;  %v3132_v15 = vmul.f32 %v4446_v1, %v484_v63  ;;  %v1057_v30 = vmul.f32 %v4384_v39, %v597_v31  ;;  %v1579_v11 = vmul.f32 %v4433_v24, %v597_v31  ;;  %v2615_v36 = vmul.f32 %v4456_v22, %v597_v31 }
  0xbc   : > { %7295 = vst [vmem:[#allocation40_spill] sm:$0xff] %v4507_v20  ;;  %v4521_v20 = vmul.f32 %v2563_v17, %v642_v40  ;;  %v4528_v46 = vadd.f32 %v2614_v47, %v4354_v45  ;;  %v7302_v45 = vperm.slane %v4461_v9, 0  ;;  %v887_v47 = vpop.permute.xlu0 %886 }
  0xbd   : > { %7296 = vst [vmem:[#allocation41_spill] sm:$0xff] %v4509_v62  ;;  %v4523_v62 = vmul.f32 %v3081_v5, %v642_v40  ;;  %v4531_v3 = vadd.f32 %v3132_v15, %v4361_v10  ;;  %v4534_v63 = vadd.f32 %v1057_v30, %v4364_v32  ;;  %v4537_v39 = vadd.f32 %v1579_v11, %v4367_v35  ;;  %v532_v10 = vpop.f32.mrf.mxu2  ;;  %v487_v30 = vpop.f32.mrf.mxu0 }
  0xbe   : > { %7297 = vst [vmem:[#allocation42_spill] sm:$0xff] %v4511_v38  ;;  %v2097_v38 = vmul.f32 %v4386_v26, %v597_v31  ;;  %v4543_v23 = vadd.f32 %v2615_v36, %v4373_v61  ;;  %v3133_v26 = vmul.f32 %v4458_v19, %v597_v31  ;;  %v4549_v24 = vsub.f32 %v4110_v49, %v7302_v45 }
  0xbf   : > { %7298 = vst [vmem:[#allocation43_spill] sm:$0xff] %v4513_v44  ;;  %v4551_v22 = vmul.f32 %v1004_v2, %v532_v10  ;;  %v4553_v32 = vmul.f32 %v1526_v54, %v532_v10  ;;  %v4555_v35 = vmul.f32 %v2044_v57, %v532_v10  ;;  %v4557_v40 = vmul.f32 %v2562_v27, %v532_v10 }
  0xc0   : > { %7299 = vst [vmem:[#allocation44_spill] sm:$0xff] %v4515_v56  ;;  %v4540_v1 = vadd.f32 %v2097_v38, %v4370_v18  ;;  %v645_v18 = vpop.f32.mrf.mxu3  ;;  %v4560_v61 = vadd.f32 %v3133_v26, %v4376_v6  ;;  %v4562_v15 = vmul.f32 %v3080_v13, %v532_v10  ;;  %v924_v27 = vand.u32 2147483647, %v4300_v29 }
  0xc1   : > { %7300 = vst [vmem:[#allocation45_spill] sm:$0xff] %v4521_v20  ;;  %v4564_v19 = vmul.f32 %v1005_v42, %v645_v18  ;;  %v4566_v9 = vmul.f32 %v1527_v53, %v645_v18  ;;  %1927 = vperm.xlu2 %3790, %v4057_v34   ;;  %v4569_v2 = vmul.f32 %v2045_v43, %v645_v18  ;;  %v1430_v6 = vadd.f32 -1.0, %v4191_v52 }
  0xc2   : > { %7301 = vst [vmem:[#allocation46_spill] sm:$0xff] %v4523_v62  ;;  %v4571_v54 = vmul.f32 %v2563_v17, %v645_v18  ;;  %v4573_v57 = vmul.f32 %v3081_v5, %v645_v18  ;;  %1923 = vperm.xlu1 %3789, %v4052_v33   ;;  %v1964_v13 = vand.u32 2147483647, %v4191_v52  ;;  %v2466_v42 = vadd.f32 1.0, %v4191_v52 }
  0xc3   : > { %7303 = vst [vmem:[#allocation47_spill] sm:$0xff] %v4551_v22  ;;  %v2984_v53 = vadd.f32 2.0, %v4191_v52  ;;  %v940_v34 = vsub.f32 1.0, %v924_v27  ;;  %v889_v43 = vperm.slane %v887_v47, 0  ;;  %v916_v11 = vadd.f32 -2.0, %v4357_v55 }
  0xc4   : > { %7304 = vst [vmem:[#allocation48_spill] sm:$0xff] %v4553_v32  ;;  %v1446_v38 = vand.u32 2147483647, %v1430_v6  ;;  %v1980_v17 = vsub.f32 1.0, %v1964_v13  ;;  %v2482_v5 = vand.u32 2147483647, %v2466_v42  ;;  %v600_v6 = vpop.f32.mrf.mxu1 }
  0xc5   : > { %7305 = vst [vmem:[#allocation49_spill] sm:$0xff] %v4555_v35  ;;  %v7108_v31 = vmov 8   ;;  %v1438_v29 = vadd.f32 -1.0, %v4357_v55  ;;  %v956_v36 = vmax.f32 %v940_v34, 0.0  ;;  %v3000_v26 = vand.u32 2147483647, %v2984_v53 }
  0xc6   : > { %7306 = vst [vmem:[#allocation50_spill] sm:$0xff] %v4557_v40  ;;  %3809 = vset.pattern.permute.xlu0 %v7108_v31  ;;  %v4586_v52 = vsub.f32 %v4110_v49, %v889_v43  ;;  %v932_v45 = vand.u32 2147483647, %v916_v11  ;;  %v1462_v10 = vsub.f32 1.0, %v1446_v38  ;;  %v1996_v18 = vmax.f32 %v1980_v17, 0.0 }
  0xc7   : > { %7307 = vst [vmem:[#allocation51_spill] sm:$0xff] %v4562_v15  ;;  %2805 = vperm.xlu0 %3809, %v4029_v28   ;;  %v2498_v27 = vsub.f32 1.0, %v2482_v5  ;;  %v1454_v13 = vand.u32 2147483647, %v1438_v29  ;;  %v990_v42 = vperm.slane %v956_v36, 0  ;;  %v3016_v47 = vsub.f32 1.0, %v3000_v26 }
  0xc8   : > { %7308 = vst [vmem:[#allocation52_spill] sm:$0xff] %v4564_v19  ;;  %v948_v31 = vsub.f32 1.0, %v932_v45  ;;  %v1478_v62 = vmax.f32 %v1462_v10, 0.0  ;;  %v4592_v34 = vperm.slane %v1996_v18, 1  ;;  %v7314_v20 = vmov 2  }
  0xc9   : > { %7309 = vst [vmem:[#allocation53_spill] sm:$0xff] %v4566_v9  ;;  %v2514_v53 = vmax.f32 %v2498_v27, 0.0  ;;  %3793 = vset.pattern.permute.xlu2 %v7314_v20  ;;  %v1058_v49 = vmul.f32 %v990_v42, %v487_v30  ;;  %v3032_v43 = vmax.f32 %v3016_v47, 0.0 }
  0xca   : > { %7310 = vst [vmem:[#allocation54_spill] sm:$0xff] %v4569_v2  ;;  %v964_v38 = vmax.f32 %v948_v31, 0.0  ;;  %3792 = vset.pattern.permute.xlu1 %v7314_v20  ;;  %2241 = vperm.xlu2 %3793, %v4052_v33   ;;  %v1512_v17 = vperm.slane %v1478_v62, 0  ;;  %v2099_v31 = vmul.f32 %v4592_v34, %v600_v6 }
  0xcb   : > { %7311 = vst [vmem:[#allocation55_spill] sm:$0xff] %v4571_v54  ;;  %v4590_v54 = vperm.slane %v1996_v18, 0  ;;  %v2548_v29 = vperm.slane %v2514_v53, 0  ;;  %2237 = vperm.xlu1 %3792, %v4029_v28   ;;  %v4603_v26 = vadd.f32 %v4437_v12, %v1058_v49  ;;  %v3066_v45 = vperm.slane %v3032_v43, 0  ;;  %v535_v49 = vpop.f32.mrf.mxu2 }
  0xcc   : > { %7312 = vst [vmem:[#allocation56_spill] sm:$0xff] %v4573_v57  ;;  %v4588_v57 = vperm.slane %v956_v36, 1  ;;  %v4599_v36 = vperm.slane %v1478_v62, 1  ;;  %v1580_v20 = vmul.f32 %v1512_v17, %v487_v30  ;;  %v4614_v47 = vadd.f32 %v4468_v60, %v2099_v31  ;;  %v490_v31 = vpop.f32.mrf.mxu0 }
  0xcd   : > { %7313 = vst [vmem:[#allocation57_spill] sm:$0xff] %v4586_v52  ;;  %v2098_v5 = vmul.f32 %v4590_v54, %v487_v30  ;;  %v2616_v18 = vmul.f32 %v2548_v29, %v487_v30  ;;  %v3134_v62 = vmul.f32 %v3066_v45, %v487_v30  ;;  %v4616_v28 = vperm.slane %v2514_v53, 1 }
  0xce   : > { %v1059_v11 = vmul.f32 %v4588_v57, %v600_v6  ;;  %v1581_v27 = vmul.f32 %v4599_v36, %v600_v6  ;;  %v4618_v12 = vperm.slane %v3032_v43, 1  ;;  %v1470_v43 = vsub.f32 1.0, %v1454_v13 }
  0xcf   : > { %v4610_v33 = vadd.f32 %v4443_v8, %v2098_v5  ;;  %v4629_v5 = vperm.slane %v964_v38, 0  ;;  %v4632_v30 = vadd.f32 %v4477_v25, %v3134_v62  ;;  %v2617_v60 = vmul.f32 %v4616_v28, %v600_v6 }
  0xd0   : > { %v4606_v10 = vadd.f32 %v4449_v50, %v1059_v11  ;;  %v4621_v50 = vadd.f32 %v4440_v21, %v1580_v20  ;;  %v4624_v11 = vadd.f32 %v4454_v14, %v2616_v18  ;;  %v4627_v8 = vadd.f32 %v4465_v48, %v1581_v27  ;;  %v648_v18 = vpop.f32.mrf.mxu3 }
  0xd1   : > { %v3135_v53 = vmul.f32 %v4618_v12, %v600_v6  ;;  %v4637_v21 = vmul.f32 %v4629_v5, %v535_v49  ;;  %v1972_v14 = vand.u32 2147483647, %v4357_v55  ;;  %v2474_v20 = vadd.f32 1.0, %v4357_v55 }
  0xd2   : > { %v2992_v48 = vadd.f32 2.0, %v4357_v55  ;;  %v4643_v27 = vadd.f32 %v4480_v16, %v2617_v60  ;;  %v1486_v62 = vmax.f32 %v1470_v43, 0.0  ;;  %v4648_v6 = vperm.slane %v964_v38, 1  ;;  %v4654_v55 = vld [vmem:[%s7075_s3 + $0x18] sm:$0x1]  ;;  %v4660_v16 = vld [vmem:[%s7075_s3] sm:$0xff] }
  0xd3   : > { %7315 = vst [vmem:[#allocation58_spill] sm:$0xff] %v4637_v21  ;;  %v4646_v25 = vadd.f32 %v4483_v41, %v3135_v53  ;;  %v7316_v13 = vmov 7   ;;  %v1988_v52 = vsub.f32 1.0, %v1972_v14  ;;  %v2490_v2 = vand.u32 2147483647, %v2474_v20  ;;  %2245 = vperm.xlu1 %3792, %v4654_v55  }
  0xd4   : > { %3794 = vset.pattern.permute.xlu2 %v7316_v13  ;;  %v3008_v9 = vand.u32 2147483647, %v2992_v48  ;;  %v1060_v15 = vmul.f32 %v990_v42, %v490_v31  ;;  %7317 = vst [vmem:[#allocation59_spill] sm:$0xff] %v4660_v16  ;;  %v1528_v41 = vperm.slane %v1486_v62, 0  ;;  %v4664_v38 = vmul.f32 %v4648_v6, %v648_v18  ;;  %v603_v48 = vpop.f32.mrf.mxu1 }
  0xd5   : > { %2283 = vperm.xlu2 %3794, %v4660_v16   ;;  %v1529_v60 = vperm.slane %v1486_v62, 1  ;;  %v1582_v42 = vmul.f32 %v1512_v17, %v490_v31  ;;  %v2004_v53 = vmax.f32 %v1988_v52, 0.0  ;;  %v2506_v43 = vsub.f32 1.0, %v2490_v2 }
  0xd6   : > { %7318 = vst [vmem:[#allocation60_spill] sm:$0xff] %v4664_v38  ;;  %v3024_v14 = vsub.f32 1.0, %v3008_v9  ;;  %v4667_v20 = vadd.f32 %v4490_v4, %v1060_v15  ;;  %v4669_v56 = vmul.f32 %v1528_v41, %v535_v49  ;;  %v2100_v44 = vmul.f32 %v4590_v54, %v490_v31 }
  0xd7   : > { %v4671_v19 = vmul.f32 %v1529_v60, %v648_v18  ;;  %v4674_v40 = vadd.f32 %v4494_v7, %v1582_v42  ;;  %v2046_v21 = vperm.slane %v2004_v53, 0  ;;  %v2522_v38 = vmax.f32 %v2506_v43, 0.0 }
  0xd8   : > { %7319 = vst [vmem:[#allocation61_spill] sm:$0xff] %v4669_v56  ;;  %v3040_v62 = vmax.f32 %v3024_v14, 0.0  ;;  %v2047_v17 = vperm.slane %v2004_v53, 1  ;;  %v4678_v2 = vadd.f32 %v4497_v37, %v2100_v44  ;;  %v2618_v9 = vmul.f32 %v2548_v29, %v490_v31  ;;  %v538_v37 = vpop.f32.mrf.mxu2  ;;  %v651_v43 = vpop.f32.mrf.mxu3 }
  0xd9   : > { %7320 = vst [vmem:[#allocation62_spill] sm:$0xff] %v4671_v19  ;;  %v3136_v4 = vmul.f32 %v3066_v45, %v490_v31  ;;  %v1061_v15 = vmul.f32 %v4588_v57, %v603_v48  ;;  %v4681_v52 = vmul.f32 %v2046_v21, %v535_v49  ;;  %v2564_v56 = vperm.slane %v2522_v38, 0 }
  0xda   : > { %v3082_v19 = vperm.slane %v3040_v62, 0  ;;  %v4683_v32 = vmul.f32 %v2047_v17, %v648_v18  ;;  %v2565_v7 = vperm.slane %v2522_v38, 1  ;;  %v3083_v42 = vperm.slane %v3040_v62, 1 }
  0xdb   : > { %7321 = vst [vmem:[#allocation63_spill] sm:$0xff] %v4681_v52  ;;  %v4686_v54 = vadd.f32 %v4528_v46, %v2618_v9  ;;  %v4689_v53 = vadd.f32 %v4531_v3, %v3136_v4  ;;  %v4691_v44 = vmul.f32 %v2564_v56, %v535_v49  ;;  %v4696_v57 = vadd.f32 %v4534_v63, %v1061_v15 }
  0xdc   : > { %7322 = vst [vmem:[#allocation64_spill] sm:$0xff] %v4683_v32  ;;  %v4693_v29 = vmul.f32 %v3082_v19, %v535_v49  ;;  %v1583_v45 = vmul.f32 %v4599_v36, %v603_v48  ;;  %3796 = vset.pattern.permute.xlu1 %v7316_v13  ;;  %v4700_v31 = vmul.f32 %v2565_v7, %v648_v18  ;;  %v1431_v9 = vadd.f32 -1.0, %v4227_v58 }
  0xdd   : > { %7323 = vst [vmem:[#allocation65_spill] sm:$0xff] %v4691_v44  ;;  %v4702_v38 = vmul.f32 %v3083_v42, %v648_v18  ;;  %v2101_v46 = vmul.f32 %v4592_v34, %v603_v48  ;;  %v2619_v3 = vmul.f32 %v4616_v28, %v603_v48  ;;  %2295 = vperm.xlu2 %3794, %v4654_v55   ;;  %v4717_v18 = vld [vmem:[%s7075_s3 + $0x10] sm:$0xff]  ;;  %v2985_v4 = vadd.f32 2.0, %v4227_v58 }
  0xde   : > { %7324 = vst [vmem:[#allocation66_spill] sm:$0xff] %v4693_v29  ;;  %v4708_v49 = vadd.f32 %v4537_v39, %v1583_v45  ;;  %v3137_v63 = vmul.f32 %v4618_v12, %v603_v48  ;;  %v4712_v36 = vmul.f32 %v4629_v5, %v538_v37  ;;  %2291 = vperm.xlu1 %3796, %v4717_v18   ;;  %v7111_v39 = vmov 13  }
  0xdf   : > { %7325 = vst [vmem:[#allocation67_spill] sm:$0xff] %v4700_v31  ;;  %v4721_v34 = vadd.f32 %v4540_v1, %v2101_v46  ;;  %v4724_v28 = vadd.f32 %v4543_v23, %v2619_v3  ;;  %3813 = vset.pattern.permute.xlu0 %v7111_v39  ;;  %v4727_v12 = vmul.f32 %v1528_v41, %v538_v37  ;;  %v1447_v15 = vand.u32 2147483647, %v1431_v9  ;;  %v4771_v9 = vld [vmem:[%s7075_s3 + $0x8] sm:$0xff] }
  0xe0   : > { %7326 = vst [vmem:[#allocation68_spill] sm:$0xff] %v4702_v38  ;;  %v4729_v5 = vmul.f32 %v2046_v21, %v538_v37  ;;  %v4732_v13 = vadd.f32 %v4560_v61, %v3137_v63  ;;  %2859 = vperm.xlu0 %3813, %v4717_v18   ;;  %v4735_v14 = vmul.f32 %v2564_v56, %v538_v37  ;;  %v909_v61 = vadd.f32 -2.0, %v4227_v58 }
  0xe1   : > { %7327 = vst [vmem:[#allocation69_spill] sm:$0xff] %v4712_v36  ;;  %v4737_v48 = vmul.f32 %v3082_v19, %v538_v37  ;;  %v4740_v1 = vmul.f32 %v4648_v6, %v651_v43  ;;  %v4742_v23 = vmul.f32 %v1529_v60, %v651_v43  ;;  %v4744_v62 = vmul.f32 %v2047_v17, %v651_v43 }
  0xe2   : > { %7328 = vst [vmem:[#allocation70_spill] sm:$0xff] %v4717_v18  ;;  %v4746_v41 = vmul.f32 %v2565_v7, %v651_v43  ;;  %v4748_v21 = vmul.f32 %v3083_v42, %v651_v43  ;;  %v1965_v56 = vand.u32 2147483647, %v4227_v58  ;;  %v2467_v19 = vadd.f32 1.0, %v4227_v58 }
  0xe3   : > { %7329 = vst [vmem:[#allocation71_spill] sm:$0xff] %v4727_v12  ;;  %v917_v6 = vadd.f32 -2.0, %v4188_v51  ;;  %v1439_v60 = vadd.f32 -1.0, %v4188_v51  ;;  %v925_v17 = vand.u32 2147483647, %v909_v61  ;;  %v4758_v42 = vadd.f32 1.0, %v4188_v51 }
  0xe4   : > { %7330 = vst [vmem:[#allocation72_spill] sm:$0xff] %v4729_v5  ;;  %v1981_v7 = vsub.f32 1.0, %v1965_v56  ;;  %v7338_v37 = vcvt.s32.f32 %v4128_v0  ;;  %v7339_v45 = vperm.slane %v4122_v59, 1  ;;  %v2483_v3 = vand.u32 2147483647, %v2467_v19  ;;  %v493_v59 = vpop.f32.mrf.mxu0 }
  0xe5   : > { %7331 = vst [vmem:[#allocation73_spill] sm:$0xff] %v4735_v14  ;;  %v3001_v43 = vand.u32 2147483647, %v2985_v4  ;;  %v933_v63 = vand.u32 2147483647, %v917_v6  ;;  %v7341_v58 = vmov 12  }
  0xe6   : > { %7332 = vst [vmem:[#allocation74_spill] sm:$0xff] %v4737_v48  ;;  %v4764_v46 = vsub.f32 %v7339_v45, %v7338_v37  ;;  %3798 = vset.pattern.permute.xlu2 %v7341_v58  ;;  %v941_v39 = vsub.f32 1.0, %v925_v17  ;;  %v1997_v38 = vmax.f32 %v1981_v7, 0.0  ;;  %v1455_v61 = vand.u32 2147483647, %v1439_v60  ;;  %3797 = vset.pattern.permute.xlu1 %v7341_v58 }
  0xe7   : > { %7333 = vst [vmem:[#allocation75_spill] sm:$0xff] %v4740_v1  ;;  %2337 = vperm.xlu2 %3798, %v4771_v9   ;;  %v2499_v0 = vsub.f32 1.0, %v2483_v3  ;;  %v3017_v56 = vsub.f32 1.0, %v3001_v43  ;;  %v949_v19 = vsub.f32 1.0, %v933_v63  ;;  %v1973_v4 = vand.u32 2147483647, %v4188_v51  ;;  %2333 = vperm.xlu1 %3797, %v4660_v16  }
  0xe8   : > { %7334 = vst [vmem:[#allocation76_spill] sm:$0xff] %v4742_v23  ;;  %v957_v6 = vmax.f32 %v941_v39, 0.0  ;;  %v4776_v60 = vperm.slane %v1997_v38, 0  ;;  %v4778_v7 = vperm.slane %v1997_v38, 1  ;;  %v7114_v37 = vmov 18  }
  0xe9   : > { %7335 = vst [vmem:[#allocation77_spill] sm:$0xff] %v4744_v62  ;;  %3816 = vset.pattern.permute.xlu0 %v7114_v37  ;;  %v2515_v45 = vmax.f32 %v2499_v0, 0.0  ;;  %v3033_v58 = vmax.f32 %v3017_v56, 0.0  ;;  %v965_v3 = vmax.f32 %v949_v19, 0.0  ;;  %v1471_v43 = vsub.f32 1.0, %v1455_v61 }
  0xea   : > { %7336 = vst [vmem:[#allocation78_spill] sm:$0xff] %v4746_v41  ;;  %2913 = vperm.xlu0 %3816, %v4654_v55   ;;  %v992_v63 = vperm.slane %v957_v6, 0  ;;  %v2102_v41 = vmul.f32 %v4776_v60, %v493_v59  ;;  %v4783_v39 = vperm.slane %v957_v6, 1  ;;  %v7342_v29 = vmov 17  }
  0xeb   : > { %7337 = vst [vmem:[#allocation79_spill] sm:$0xff] %v4748_v21  ;;  %v1463_v21 = vsub.f32 1.0, %v1447_v15  ;;  %v606_v15 = vpop.f32.mrf.mxu1  ;;  %v4787_v31 = vperm.slane %v3033_v58, 0 }
  0xec   : > { %7340 = vst [vmem:[#allocation80_spill] sm:$0xff] %v4764_v46  ;;  %v2103_v37 = vmul.f32 %v4778_v7, %v606_v15  ;;  %v1062_v0 = vmul.f32 %v992_v63, %v493_v59  ;;  %v4793_v62 = vadd.f32 %v4610_v33, %v2102_v41  ;;  %v1063_v61 = vmul.f32 %v4783_v39, %v606_v15  ;;  %v496_v14 = vpop.f32.mrf.mxu0 }
  0xed   : > { %v1479_v17 = vmax.f32 %v1463_v21, 0.0  ;;  %v4785_v21 = vperm.slane %v2515_v45, 0  ;;  %v3138_v6 = vmul.f32 %v4787_v31, %v493_v59  ;;  %v4811_v41 = vperm.slane %v2515_v45, 1 }
  0xee   : > { %v4800_v32 = vadd.f32 %v4614_v47, %v2103_v37  ;;  %v4809_v33 = vadd.f32 %v4606_v10, %v1063_v61  ;;  %v541_v37 = vpop.f32.mrf.mxu2  ;;  %v1487_v45 = vmax.f32 %v1471_v43, 0.0  ;;  %v2993_v61 = vadd.f32 2.0, %v4188_v51 }
  0xef   : > { %v1514_v46 = vperm.slane %v1479_v17, 0  ;;  %v4789_v38 = vperm.slane %v1479_v17, 1  ;;  %v2620_v19 = vmul.f32 %v4785_v21, %v493_v59  ;;  %v4803_v17 = vadd.f32 %v4603_v26, %v1062_v0  ;;  %3800 = vset.pattern.permute.xlu2 %v7342_v29  ;;  %2345 = vperm.xlu1 %3797, %v4654_v55  }
  0xf0   : > { %v4818_v1 = vadd.f32 %v4632_v30, %v3138_v6  ;;  %v3069_v26 = vperm.slane %v3033_v58, 1  ;;  %2383 = vperm.xlu2 %3800, %v4660_v16   ;;  %v2621_v10 = vmul.f32 %v4811_v41, %v606_v15  ;;  %v1989_v0 = vsub.f32 1.0, %v1973_v4 }
  0xf1   : > { %v1584_v56 = vmul.f32 %v1514_v46, %v493_v59  ;;  %v1585_v23 = vmul.f32 %v4789_v38, %v606_v15  ;;  %v4815_v59 = vadd.f32 %v4624_v11, %v2620_v19  ;;  %v654_v11 = vpop.f32.mrf.mxu3  ;;  %v2491_v30 = vand.u32 2147483647, %v4758_v42 }
  0xf2   : > { %v1530_v19 = vperm.slane %v1487_v45, 0  ;;  %v2005_v6 = vmax.f32 %v1989_v0, 0.0  ;;  %v1531_v44 = vperm.slane %v1487_v45, 1  ;;  %v1064_v36 = vmul.f32 %v992_v63, %v496_v14 }
  0xf3   : > { %v4806_v48 = vadd.f32 %v4621_v50, %v1584_v56  ;;  %v4821_v47 = vadd.f32 %v4627_v8, %v1585_v23  ;;  %v4826_v50 = vperm.slane %v965_v3, 0  ;;  %v3139_v56 = vmul.f32 %v3069_v26, %v606_v15  ;;  %v609_v45 = vpop.f32.mrf.mxu1 }
  0xf4   : > { %v4830_v8 = vperm.slane %v965_v3, 1  ;;  %v4833_v23 = vadd.f32 %v4643_v27, %v2621_v10  ;;  %v2507_v4 = vsub.f32 1.0, %v2491_v30  ;;  %v3009_v15 = vand.u32 2147483647, %v2993_v61 }
  0xf5   : > { %v4836_v58 = vmul.f32 %v4826_v50, %v541_v37  ;;  %v4839_v43 = vadd.f32 %v4646_v25, %v3139_v56  ;;  %v4844_v51 = vmul.f32 %v1530_v19, %v541_v37  ;;  %v2048_v3 = vperm.slane %v2005_v6, 0 }
  0xf6   : > { %v4842_v42 = vmul.f32 %v4830_v8, %v654_v11  ;;  %v2049_v27 = vperm.slane %v2005_v6, 1  ;;  %v2523_v10 = vmax.f32 %v2507_v4, 0.0  ;;  %v3025_v12 = vsub.f32 1.0, %v3009_v15 }
  0xf7   : > { %7343 = vst [vmem:[#allocation81_spill] sm:$0xff] %v4836_v58  ;;  %v1586_v58 = vmul.f32 %v1514_v46, %v496_v14  ;;  %v4846_v5 = vmul.f32 %v2048_v3, %v541_v37  ;;  %v4848_v0 = vmul.f32 %v1531_v44, %v654_v11  ;;  %v2104_v56 = vmul.f32 %v4776_v60, %v496_v14 }
  0xf8   : > { %7344 = vst [vmem:[#allocation82_spill] sm:$0xff] %v4842_v42  ;;  %v4850_v25 = vmul.f32 %v2049_v27, %v654_v11  ;;  %v2566_v30 = vperm.slane %v2523_v10, 0  ;;  %v3041_v61 = vmax.f32 %v3025_v12, 0.0  ;;  %v2567_v42 = vperm.slane %v2523_v10, 1  ;;  %3801 = vset.pattern.permute.xlu1 %v7342_v29  ;;  %2391 = vperm.xlu2 %3800, %v4717_v18  }
  0xf9   : > { %7345 = vst [vmem:[#allocation83_spill] sm:$0xff] %v4844_v51  ;;  %v4854_v51 = vadd.f32 %v4667_v20, %v1064_v36  ;;  %v4859_v46 = vadd.f32 %v4674_v40, %v1586_v58  ;;  %v4862_v63 = vadd.f32 %v4678_v2, %v2104_v56  ;;  %v2622_v6 = vmul.f32 %v4785_v21, %v496_v14  ;;  %v4879_v58 = vpop.f32.mrf.mxu2 }
  0xfa   : > { %7346 = vst [vmem:[#allocation84_spill] sm:$0xff] %v4846_v5  ;;  %v3140_v60 = vmul.f32 %v4787_v31, %v496_v14  ;;  %2387 = vperm.xlu1 %3801, %v4771_v9   ;;  %v4867_v12 = vmul.f32 %v2566_v30, %v541_v37  ;;  %v3084_v20 = vperm.slane %v3041_v61, 0  ;;  %v4869_v36 = vmul.f32 %v2567_v42, %v654_v11 }
  0xfb   : > { %7347 = vst [vmem:[#allocation85_spill] sm:$0xff] %v4848_v0  ;;  %v3085_v29 = vperm.slane %v3041_v61, 1  ;;  %v4872_v4 = vadd.f32 %v4686_v54, %v2622_v6  ;;  %v1065_v2 = vmul.f32 %v4783_v39, %v609_v45  ;;  %v1587_v21 = vmul.f32 %v4789_v38, %v609_v45  ;;  %v4893_v39 = vpop.f32.mrf.mxu3  ;;  %v7353_v38 = vld [vmem:[#allocation8_spill] sm:$0xff] }
  0xfc   : > { %7348 = vst [vmem:[#allocation86_spill] sm:$0xff] %v4850_v25  ;;  %v4875_v40 = vadd.f32 %v4689_v53, %v3140_v60  ;;  %v4881_v31 = vmul.f32 %v3084_v20, %v541_v37  ;;  %v2105_v15 = vmul.f32 %v4778_v7, %v609_v45  ;;  %v2623_v10 = vmul.f32 %v4811_v41, %v609_v45  ;;  %v7363_v60 = vld [vmem:[#allocation2_spill] sm:$0xff] }
  0xfd   : > { %7349 = vst [vmem:[#allocation87_spill] sm:$0xff] %v4867_v12  ;;  %v4883_v14 = vmul.f32 %v3085_v29, %v654_v11  ;;  %v4888_v54 = vadd.f32 %v4696_v57, %v1065_v2  ;;  %v4891_v53 = vadd.f32 %v4708_v49, %v1587_v21  ;;  %v3141_v56 = vmul.f32 %v3069_v26, %v609_v45  ;;  %v7358_v26 = vld [vmem:[#allocation9_spill] sm:$0xff]  ;;  %v7364_v21 = vld [vmem:[#allocation10_spill] sm:$0xff] }
  0xfe   : > { %7350 = vst [vmem:[#allocation88_spill] sm:$0xff] %v4869_v36  ;;  %v703_v61 = vand.u32 2147483647, %v7353_v38  ;;  %v4897_v37 = vadd.f32 %v4721_v34, %v2105_v15  ;;  %v4900_v11 = vadd.f32 %v4724_v28, %v2623_v10  ;;  %v7116_v7 = vmov 4   ;;  %v7365_v10 = vld [vmem:[#allocation11_spill] sm:$0xff]  ;;  %v7366_v38 = vld [vmem:[#allocation4_spill] sm:$0xff] }
  0xff   : > { %7351 = vst [vmem:[#allocation89_spill] sm:$0xff] %v4881_v31  ;;  %3819 = vset.pattern.permute.xlu0 %v7116_v7  ;;  %v4904_v57 = vmul.f32 %v1530_v19, %v4879_v58  ;;  %v4907_v49 = vadd.f32 %v4732_v13, %v3141_v56  ;;  %v4911_v41 = vmul.f32 %v2048_v3, %v4879_v58  ;;  %v718_v45 = vand.u32 2147483647, %v7358_v26  ;;  %v7372_v15 = vld [vmem:[#allocation6_spill] sm:$0xff] }
 0x100   : > { %7352 = vst [vmem:[#allocation90_spill] sm:$0xff] %v4883_v14  ;;  %3269 = vperm.xlu0 %3819, %v4660_v16   ;;  %v4914_v34 = vmul.f32 %v2566_v30, %v4879_v58  ;;  %v4917_v28 = vmul.f32 %v3084_v20, %v4879_v58  ;;  %v4921_v6 = vmul.f32 %v1531_v44, %v4893_v39  ;;  %v910_v30 = vadd.f32 -2.0, %v7363_v60  ;;  %v7369_v14 = vld [vmem:[#allocation5_spill] sm:$0xff] }
 0x101   : > { %7354 = vst [vmem:[#allocation8_spill] sm:$0xff] %v4904_v57  ;;  %v4924_v19 = vmul.f32 %v2049_v27, %v4893_v39  ;;  %v4927_v13 = vmul.f32 %v2567_v42, %v4893_v39  ;;  %v4930_v3 = vmul.f32 %v3085_v29, %v4893_v39  ;;  %v1432_v2 = vadd.f32 -1.0, %v7363_v60 }
 0x102   : > { %7355 = vst [vmem:[#allocation91_spill] sm:$0xff] %v4911_v41  ;;  %v1966_v20 = vand.u32 2147483647, %v7363_v60  ;;  %v2468_v56 = vadd.f32 1.0, %v7363_v60  ;;  %v2986_v27 = vadd.f32 2.0, %v7363_v60  ;;  %v4951_v12 = vsub.f32 1.0, %v703_v61 }
 0x103   : > { %7356 = vst [vmem:[#allocation92_spill] sm:$0xff] %v4914_v34  ;;  %v7367_v42 = vand.u32 2147483647, %v7366_v38  ;;  %v926_v29 = vand.u32 2147483647, %v910_v30  ;;  %v499_v30 = vpop.f32.mrf.mxu0 }
 0x104   : > { %7357 = vst [vmem:[#allocation93_spill] sm:$0xff] %v4917_v28  ;;  %v1448_v7 = vand.u32 2147483647, %v1432_v2  ;;  %v3002_v25 = vand.u32 2147483647, %v2986_v27  ;;  %v7118_v27 = vmov 9  }
 0x105   : > { %7359 = vst [vmem:[#allocation9_spill] sm:$0xff] %v4921_v6  ;;  %v4941_v26 = vsub.f32 1.0, %v7367_v42  ;;  %v7373_v28 = vand.u32 2147483647, %v7372_v15  ;;  %v942_v31 = vsub.f32 1.0, %v926_v29  ;;  %v4953_v42 = vsub.f32 1.0, %v718_v45 }
 0x106   : > { %7360 = vst [vmem:[#allocation94_spill] sm:$0xff] %v4924_v19  ;;  %v2484_v19 = vand.u32 2147483647, %v2468_v56  ;;  %v1464_v34 = vsub.f32 1.0, %v1448_v7  ;;  %v612_v56 = vpop.f32.mrf.mxu1  ;;  %v1974_v61 = vand.u32 2147483647, %v4549_v24 }
 0x107   : > { %7361 = vst [vmem:[#allocation95_spill] sm:$0xff] %v4927_v13  ;;  %v7370_v13 = vand.u32 2147483647, %v7369_v14  ;;  %v4949_v44 = vsub.f32 1.0, %v7373_v28  ;;  %v958_v41 = vmax.f32 %v942_v31, 0.0  ;;  %v918_v28 = vadd.f32 -2.0, %v4549_v24 }
 0x108   : > { %7362 = vst [vmem:[#allocation96_spill] sm:$0xff] %v4930_v3  ;;  %v1982_v3 = vsub.f32 1.0, %v1966_v20  ;;  %v2500_v2 = vsub.f32 1.0, %v2484_v19  ;;  %v3018_v20 = vsub.f32 1.0, %v3002_v25  ;;  %v1480_v5 = vmax.f32 %v1464_v34, 0.0  ;;  %3823 = vset.pattern.permute.xlu0 %v7118_v27 }
 0x109   : > { %7368 = vst [vmem:[#allocation2_spill] sm:$0xff] %v4941_v26  ;;  %v4945_v36 = vsub.f32 1.0, %v7370_v13  ;;  %3323 = vperm.xlu0 %3823, %v4771_v9   ;;  %v994_v45 = vperm.slane %v958_v41, 0  ;;  %v995_v34 = vperm.slane %v958_v41, 1 }
 0x10a   : > { %7374 = vst [vmem:[#allocation11_spill] sm:$0xff] %v4949_v44  ;;  %v1998_v60 = vmax.f32 %v1982_v3, 0.0  ;;  %v2516_v15 = vmax.f32 %v2500_v2, 0.0  ;;  %v3034_v7 = vmax.f32 %v3018_v20, 0.0  ;;  %v1516_v25 = vperm.slane %v1480_v5, 0 }
 0x10b   : > { %7371 = vst [vmem:[#allocation10_spill] sm:$0xff] %v4945_v36  ;;  %v4964_v36 = vperm.slane %v1480_v5, 1  ;;  %v1067_v20 = vmul.f32 %v995_v34, %v612_v56 }
 0x10c   : > { %7375 = vst [vmem:[#allocation4_spill] sm:$0xff] %v4951_v12  ;;  %v4955_v13 = vperm.slane %v1998_v60, 0  ;;  %v4959_v3 = vperm.slane %v1998_v60, 1  ;;  %v2552_v19 = vperm.slane %v2516_v15, 0  ;;  %v3070_v29 = vperm.slane %v3034_v7, 0 }
 0x10d   : > { %7376 = vst [vmem:[#allocation5_spill] sm:$0xff] %v4953_v42  ;;  %v1066_v12 = vmul.f32 %v994_v45, %v499_v30  ;;  %v1588_v2 = vmul.f32 %v1516_v25, %v499_v30  ;;  %v1589_v44 = vmul.f32 %v4964_v36, %v612_v56  ;;  %v4981_v0 = vadd.f32 %v4809_v33, %v1067_v20 }
 0x10e   : > { %v2106_v31 = vmul.f32 %v4955_v13, %v499_v30  ;;  %v2107_v27 = vmul.f32 %v4959_v3, %v612_v56  ;;  %v2624_v26 = vmul.f32 %v2552_v19, %v499_v30  ;;  %v3142_v42 = vmul.f32 %v3070_v29, %v499_v30 }
 0x10f   : > { %v4975_v41 = vadd.f32 %v4803_v17, %v1066_v12  ;;  %v4978_v5 = vadd.f32 %v4806_v48, %v1588_v2  ;;  %v2553_v57 = vperm.slane %v2516_v15, 1  ;;  %v4993_v17 = vadd.f32 2.0, %v7366_v38 }
 0x110   : > { %v4968_v60 = vadd.f32 %v4793_v62, %v2106_v31  ;;  %v4972_v6 = vadd.f32 %v4800_v32, %v2107_v27  ;;  %v4984_v62 = vadd.f32 %v4815_v59, %v2624_v26  ;;  %v4987_v30 = vadd.f32 %v4818_v1, %v3142_v42  ;;  %v7377_v27 = vld [vmem:[#allocation12_spill] sm:$0xff] }
 0x111   : > { %v4990_v31 = vadd.f32 %v4821_v47, %v1589_v44  ;;  %v3071_v32 = vperm.slane %v3034_v7, 1  ;;  %v2625_v12 = vmul.f32 %v2553_v57, %v612_v56  ;;  %v4996_v48 = vadd.f32 -1.0, %v4549_v24  ;;  %v502_v7 = vpop.f32.mrf.mxu0 }
 0x112   : > { %v1990_v33 = vsub.f32 1.0, %v1974_v61  ;;  %v751_v15 = vand.u32 2147483647, %v7377_v27  ;;  %v2476_v59 = vadd.f32 1.0, %v4549_v24  ;;  %v2994_v1 = vadd.f32 2.0, %v4549_v24 }
 0x113   : > { %v3143_v2 = vmul.f32 %v3071_v32, %v612_v56  ;;  %v7378_v26 = vand.u32 2147483647, %v7364_v21  ;;  %v5006_v44 = vadd.f32 %v4833_v23, %v2625_v12  ;;  %v934_v38 = vand.u32 2147483647, %v918_v28  ;;  %v5014_v56 = vpop.f32.mrf.mxu2 }
 0x114   : > { %v2006_v42 = vmax.f32 %v1990_v33, 0.0  ;;  %v5009_v20 = vadd.f32 2.0, %v7369_v14  ;;  %v2492_v27 = vand.u32 2147483647, %v2476_v59  ;;  %v3010_v24 = vand.u32 2147483647, %v2994_v1  ;;  %v5022_v33 = vpop.f32.mrf.mxu3 }
 0x115   : > { %v5003_v47 = vsub.f32 1.0, %v7378_v26  ;;  %v5012_v61 = vadd.f32 %v4839_v43, %v3143_v2  ;;  %v766_v21 = vand.u32 2147483647, %v4993_v17  ;;  %v1456_v26 = vand.u32 2147483647, %v4996_v48  ;;  %v615_v43 = vpop.f32.mrf.mxu1 }
 0x116   : > { %7380 = vst [vmem:[#allocation12_spill] sm:$0xff] %v5009_v20  ;;  %v5020_v23 = vperm.slane %v2006_v42, 1  ;;  %v2508_v28 = vsub.f32 1.0, %v2492_v27  ;;  %v3026_v12 = vsub.f32 1.0, %v3010_v24  ;;  %v1068_v14 = vmul.f32 %v994_v45, %v502_v7 }
 0x117   : > { %7379 = vst [vmem:[#allocation6_spill] sm:$0xff] %v5003_v47  ;;  %v5018_v47 = vperm.slane %v2006_v42, 0  ;;  %v1590_v52 = vmul.f32 %v1516_v25, %v502_v7  ;;  %v5024_v2 = vsub.f32 1.0, %v934_v38  ;;  %v2108_v48 = vmul.f32 %v4955_v13, %v502_v7 }
 0x118   : > { %v5032_v17 = vmul.f32 %v5020_v23, %v5022_v33  ;;  %v2524_v1 = vmax.f32 %v2508_v28, 0.0  ;;  %v3042_v42 = vmax.f32 %v3026_v12, 0.0  ;;  %v5036_v27 = vadd.f32 %v4854_v51, %v1068_v14 }
 0x119   : > { %v5028_v59 = vmul.f32 %v5018_v47, %v5014_v56  ;;  %v5039_v45 = vadd.f32 %v4859_v46, %v1590_v52  ;;  %v5042_v25 = vadd.f32 %v4862_v63, %v2108_v48  ;;  %v2626_v38 = vmul.f32 %v2552_v19, %v502_v7 }
 0x11a   : > { %7382 = vst [vmem:[#allocation98_spill] sm:$0xff] %v5032_v17  ;;  %v3144_v24 = vmul.f32 %v3070_v29, %v502_v7  ;;  %v2568_v22 = vperm.slane %v2524_v1, 0  ;;  %v3086_v35 = vperm.slane %v3042_v42, 0  ;;  %v2569_v16 = vperm.slane %v2524_v1, 1 }
 0x11b   : > { %7381 = vst [vmem:[#allocation97_spill] sm:$0xff] %v5028_v59  ;;  %v1069_v59 = vmul.f32 %v995_v34, %v615_v43  ;;  %v3087_v17 = vperm.slane %v3042_v42, 1  ;;  %v5045_v13 = vadd.f32 %v4872_v4, %v2626_v38  ;;  %v1591_v52 = vmul.f32 %v4964_v36, %v615_v43 }
 0x11c   : > { %v5048_v28 = vadd.f32 %v4875_v40, %v3144_v24  ;;  %v5055_v46 = vmul.f32 %v2568_v22, %v5014_v56  ;;  %v5058_v63 = vmul.f32 %v3086_v35, %v5014_v56  ;;  %v5061_v34 = vmul.f32 %v2569_v16, %v5022_v33 }
 0x11d   : > { %v5051_v51 = vadd.f32 %v4888_v54, %v1069_v59  ;;  %v5064_v4 = vmul.f32 %v3087_v17, %v5022_v33  ;;  %v5067_v40 = vadd.f32 %v4891_v53, %v1591_v52  ;;  %v2109_v54 = vmul.f32 %v4959_v3, %v615_v43  ;;  %v5077_v59 = vpop.f32.mrf.mxu2 }
 0x11e   : > { %7383 = vst [vmem:[#allocation99_spill] sm:$0xff] %v5055_v46  ;;  %v2627_v19 = vmul.f32 %v2553_v57, %v615_v43  ;;  %v3145_v29 = vmul.f32 %v3071_v32, %v615_v43  ;;  %v7387_v36 = vand.u32 2147483647, %v7365_v10  ;;  %v5074_v12 = vsub.f32 1.0, %v751_v15 }
 0x11f   : > { %7384 = vst [vmem:[#allocation100_spill] sm:$0xff] %v5058_v63  ;;  %v5080_v48 = vadd.f32 %v4897_v37, %v2109_v54  ;;  %v7121_v57 = vmov 14   ;;  %v5090_v10 = vmul.f32 %v2568_v22, %v5077_v59  ;;  %v5092_v32 = vsub.f32 1.0, %v766_v21  ;;  %v7395_v22 = vld [vmem:[#allocation3_spill] sm:$0xff]  ;;  %v7397_v54 = vld [vmem:[#allocation36_spill] sm:$0xff] }
 0x120   : > { %7385 = vst [vmem:[#allocation101_spill] sm:$0xff] %v5061_v34  ;;  %v5072_v7 = vsub.f32 1.0, %v7387_v36  ;;  %v5083_v53 = vadd.f32 %v4900_v11, %v2627_v19  ;;  %v5086_v3 = vadd.f32 %v4907_v49, %v3145_v29  ;;  %3827 = vset.pattern.permute.xlu0 %v7121_v57  ;;  %v7123_v15 = vmax.f32 %v5024_v2, 0.0  ;;  %v5100_v11 = vpop.f32.mrf.mxu3  ;;  %v505_v34 = vpop.f32.mrf.mxu0 }
 0x121   : > { %7386 = vst [vmem:[#allocation102_spill] sm:$0xff] %v5064_v4  ;;  %v5095_v43 = vsub.f32 1.0, %v1456_v26  ;;  %v5098_v37 = vmul.f32 %v3086_v35, %v5077_v59  ;;  %3377 = vperm.xlu0 %3827, %v4717_v18   ;;  %v5104_v49 = vmul.f32 %v2569_v16, %v5100_v11  ;;  %v5107_v1 = vmul.f32 %v3087_v17, %v5100_v11 }
 0x122   : > { %7388 = vst [vmem:[#allocation103_spill] sm:$0xff] %v5072_v7  ;;  %v911_v21 = vadd.f32 -2.0, %v7395_v22  ;;  %v1433_v42 = vadd.f32 -1.0, %v7395_v22  ;;  %v5113_v26 = vmul.f32 %v4826_v50, %v4879_v58  ;;  %v1967_v35 = vand.u32 2147483647, %v7395_v22 }
 0x123   : > { %7389 = vst [vmem:[#allocation104_spill] sm:$0xff] %v5074_v12  ;;  %v2469_v38 = vadd.f32 1.0, %v7395_v22  ;;  %v2987_v24 = vadd.f32 2.0, %v7395_v22  ;;  %v919_v19 = vadd.f32 -2.0, %v7397_v54  ;;  %v5120_v17 = vadd.f32 -1.0, %v7397_v54 }
 0x124   : > { %7390 = vst [vmem:[#allocation105_spill] sm:$0xff] %v5090_v10  ;;  %v927_v52 = vand.u32 2147483647, %v911_v21  ;;  %v1449_v16 = vand.u32 2147483647, %v1433_v42  ;;  %v5124_v29 = vperm.slane %v7123_v15, 0  ;;  %v618_v10 = vpop.f32.mrf.mxu1 }
 0x125   : > { %7391 = vst [vmem:[#allocation106_spill] sm:$0xff] %v5092_v32  ;;  %v1983_v36 = vsub.f32 1.0, %v1967_v35  ;;  %v2485_v50 = vand.u32 2147483647, %v2469_v38  ;;  %v3003_v58 = vand.u32 2147483647, %v2987_v24 }
 0x126   : > { %7392 = vst [vmem:[#allocation107_spill] sm:$0xff] %v5098_v37  ;;  %v1488_v57 = vmax.f32 %v5095_v43, 0.0  ;;  %v943_v14 = vsub.f32 1.0, %v927_v52  ;;  %v2477_v22 = vadd.f32 1.0, %v7397_v54  ;;  %v935_v15 = vand.u32 2147483647, %v919_v19 }
 0x127   : > { %7393 = vst [vmem:[#allocation108_spill] sm:$0xff] %v5104_v49  ;;  %v1999_v21 = vmax.f32 %v1983_v36, 0.0  ;;  %v2501_v42 = vsub.f32 1.0, %v2485_v50  ;;  %v3019_v4 = vsub.f32 1.0, %v3003_v58  ;;  %v2995_v49 = vadd.f32 2.0, %v7397_v54 }
 0x128   : > { %7394 = vst [vmem:[#allocation109_spill] sm:$0xff] %v5107_v1  ;;  %v1465_v1 = vsub.f32 1.0, %v1449_v16  ;;  %v959_v37 = vmax.f32 %v943_v14, 0.0  ;;  %v1457_v35 = vand.u32 2147483647, %v5120_v17 }
 0x129   : > { %7396 = vst [vmem:[#allocation3_spill] sm:$0xff] %v5113_v26  ;;  %v5130_v38 = vperm.slane %v1999_v21, 0  ;;  %v2517_v24 = vmax.f32 %v2501_v42, 0.0  ;;  %v3035_v43 = vmax.f32 %v3019_v4, 0.0  ;;  %v5132_v52 = vperm.slane %v1999_v21, 1 }
 0x12a   : > { %v1481_v63 = vmax.f32 %v1465_v1, 0.0  ;;  %v996_v16 = vperm.slane %v959_v37, 0  ;;  %v5136_v36 = vperm.slane %v959_v37, 1 }
 0x12b   : > { %v2110_v14 = vmul.f32 %v5130_v38, %v505_v34  ;;  %v5141_v1 = vperm.slane %v2517_v24, 0  ;;  %v5143_v19 = vperm.slane %v3035_v43, 0  ;;  %v2111_v17 = vmul.f32 %v5132_v52, %v618_v10 }
 0x12c   : > { %v5134_v46 = vperm.slane %v1481_v63, 0  ;;  %v5138_v50 = vperm.slane %v1481_v63, 1  ;;  %v1070_v58 = vmul.f32 %v996_v16, %v505_v34  ;;  %v1071_v21 = vmul.f32 %v5136_v36, %v618_v10 }
 0x12d   : > { %v5150_v37 = vadd.f32 %v4968_v60, %v2110_v14  ;;  %v2628_v63 = vmul.f32 %v5141_v1, %v505_v34  ;;  %v3146_v12 = vmul.f32 %v5143_v19, %v505_v34  ;;  %v5155_v32 = vadd.f32 %v4972_v6, %v2111_v17 }
 0x12e   : > { %v1592_v4 = vmul.f32 %v5134_v46, %v505_v34  ;;  %v1593_v42 = vmul.f32 %v5138_v50, %v618_v10  ;;  %v5158_v7 = vadd.f32 %v4975_v41, %v1070_v58  ;;  %v5164_v20 = vadd.f32 %v4981_v0, %v1071_v21  ;;  %v5177_v21 = vpop.f32.mrf.mxu2 }
 0x12f   : > { %v5170_v60 = vadd.f32 %v4984_v62, %v2628_v63  ;;  %v5173_v34 = vadd.f32 %v4987_v30, %v3146_v12  ;;  %v2555_v6 = vperm.slane %v2517_v24, 1  ;;  %v3073_v14 = vperm.slane %v3035_v43, 1 }
 0x130   : > { %v5161_v26 = vadd.f32 %v4978_v5, %v1592_v4  ;;  %v5167_v18 = vadd.f32 %v4990_v31, %v1593_v42  ;;  %v1532_v17 = vperm.slane %v1488_v57, 0  ;;  %v7399_v41 = vmax.f32 %v5024_v2, 0.0 }
 0x131   : > { %v1533_v5 = vperm.slane %v1488_v57, 1  ;;  %v2493_v4 = vand.u32 2147483647, %v2477_v22  ;;  %v3147_v0 = vmul.f32 %v3073_v14, %v618_v10  ;;  %v3011_v31 = vand.u32 2147483647, %v2995_v49  ;;  %v5193_v22 = vpop.f32.mrf.mxu3 }
 0x132   : > { %7398 = vst [vmem:[#allocation36_spill] sm:$0xff] %v5161_v26  ;;  %v1011_v58 = vperm.slane %v7399_v41, 1  ;;  %v2629_v26 = vmul.f32 %v2555_v6, %v618_v10  ;;  %v5181_v62 = vmul.f32 %v4830_v8, %v4893_v39  ;;  %v951_v42 = vsub.f32 1.0, %v935_v15  ;;  %v508_v8 = vpop.f32.mrf.mxu0 }
 0x133   : > { %v1975_v30 = vand.u32 2147483647, %v7397_v54  ;;  %v2509_v12 = vsub.f32 1.0, %v2493_v4  ;;  %v7126_v24 = vmov 19   ;;  %v5189_v57 = vadd.f32 %v5012_v61, %v3147_v0 }
 0x134   : > { %7400 = vst [vmem:[#allocation110_spill] sm:$0xff] %v5181_v62  ;;  %3830 = vset.pattern.permute.xlu0 %v7126_v24  ;;  %v5186_v2 = vadd.f32 %v5006_v44, %v2629_v26  ;;  %v5191_v10 = vsub.f32 1.0, %v1457_v35  ;;  %v3027_v49 = vsub.f32 1.0, %v3011_v31  ;;  %v5198_v39 = vmul.f32 %v5124_v29, %v5014_v56 }
 0x135   : > { %3431 = vperm.xlu0 %3830, %v4654_v55   ;;  %v5201_v15 = vmul.f32 %v1532_v17, %v5014_v56  ;;  %v5204_v44 = vmul.f32 %v1011_v58, %v5022_v33  ;;  %v2525_v61 = vmax.f32 %v2509_v12, 0.0  ;;  %v5207_v26 = vmul.f32 %v1533_v5, %v5022_v33  ;;  %v621_v12 = vpop.f32.mrf.mxu1 }
 0x136   : > { %v5211_v54 = vmul.f32 %v5124_v29, %v5077_v59  ;;  %v5214_v55 = vmul.f32 %v1532_v17, %v5077_v59  ;;  %v3043_v35 = vmax.f32 %v3027_v49, 0.0  ;;  %v967_v43 = vmax.f32 %v951_v42, 0.0 }
 0x137   : > { %7401 = vst [vmem:[#allocation111_spill] sm:$0xff] %v5204_v44  ;;  %v5216_v63 = vperm.slane %v2525_v61, 0  ;;  %v5218_v56 = vperm.slane %v2525_v61, 1  ;;  %v1072_v41 = vmul.f32 %v996_v16, %v508_v8  ;;  %v5221_v0 = vsub.f32 1.0, %v1975_v30 }
 0x138   : > { %7402 = vst [vmem:[#allocation112_spill] sm:$0xff] %v5207_v26  ;;  %v3088_v33 = vperm.slane %v3043_v35, 0  ;;  %v3089_v31 = vperm.slane %v3043_v35, 1  ;;  %v1594_v16 = vmul.f32 %v5134_v46, %v508_v8  ;;  %v2112_v61 = vmul.f32 %v5130_v38, %v508_v8 }
 0x139   : > { %v5225_v29 = vmul.f32 %v5216_v63, %v5177_v21  ;;  %v5229_v17 = vmul.f32 %v5218_v56, %v5193_v22  ;;  %v5232_v42 = vadd.f32 %v5036_v27, %v1072_v41  ;;  %v2630_v35 = vmul.f32 %v5141_v1, %v508_v8 }
 0x13a   : > { %v5236_v49 = vmul.f32 %v3088_v33, %v5177_v21  ;;  %v5239_v30 = vmul.f32 %v3089_v31, %v5193_v22  ;;  %v5244_v24 = vadd.f32 %v5039_v45, %v1594_v16  ;;  %v3148_v4 = vmul.f32 %v5143_v19, %v508_v8  ;;  %v5280_v19 = vpop.f32.mrf.mxu3 }
 0x13b   : > { %7403 = vst [vmem:[#allocation113_spill] sm:$0xff] %v5225_v29  ;;  %v1073_v27 = vmul.f32 %v5136_v36, %v621_v12  ;;  %v1595_v41 = vmul.f32 %v5138_v50, %v621_v12  ;;  %v5250_v46 = vadd.f32 %v5042_v25, %v2112_v61  ;;  %v2631_v38 = vmul.f32 %v2555_v6, %v621_v12 }
 0x13c   : > { %7404 = vst [vmem:[#allocation114_spill] sm:$0xff] %v5229_v17  ;;  %v5253_v17 = vadd.f32 %v5045_v13, %v2630_v35  ;;  %v5259_v45 = vadd.f32 %v5048_v28, %v3148_v4  ;;  %v3149_v50 = vmul.f32 %v3073_v14, %v621_v12  ;;  %v5269_v25 = vmul.f32 %v5018_v47, %v5077_v59 }
 0x13d   : > { %7405 = vst [vmem:[#allocation115_spill] sm:$0xff] %v5236_v49  ;;  %v5256_v49 = vpop.f32.mrf.mxu2  ;;  %v5262_v1 = vadd.f32 %v5051_v51, %v1073_v27  ;;  %v5265_v36 = vadd.f32 %v5067_v40, %v1595_v41  ;;  %v5272_v13 = vmul.f32 %v1011_v58, %v5100_v11  ;;  %v5278_v28 = vadd.f32 %v5083_v53, %v2631_v38  ;;  %v511_v41 = vpop.f32.mrf.mxu0 }
 0x13e   : > { %7406 = vst [vmem:[#allocation116_spill] sm:$0xff] %v5239_v30  ;;  %v2113_v30 = vmul.f32 %v5132_v52, %v621_v12  ;;  %v5283_v51 = vmul.f32 %v1533_v5, %v5100_v11  ;;  %v5287_v40 = vmul.f32 %v5020_v23, %v5100_v11  ;;  %v5290_v47 = vadd.f32 %v5086_v3, %v3149_v50  ;;  %v7418_v23 = vld [vmem:[#allocation15_spill] sm:$0xff]  ;;  %v7419_v12 = vld [vmem:[#allocation13_spill] sm:$0xff] }
 0x13f   : > { %7407 = vst [vmem:[#allocation117_spill] sm:$0xff] %v5265_v36  ;;  %v5293_v59 = vmul.f32 %v3088_v33, %v5256_v49  ;;  %v7416_v53 = vmax.f32 %v5191_v10, 0.0  ;;  %v5302_v58 = vperm.slane %v967_v43, 1  ;;  %v5305_v5 = vmul.f32 %v3089_v31, %v5280_v19 }
 0x140   : > { %7408 = vst [vmem:[#allocation118_spill] sm:$0xff] %v5269_v25  ;;  %v5275_v52 = vadd.f32 %v5080_v48, %v2113_v30  ;;  %v5295_v48 = vperm.slane %v967_v43, 0  ;;  %v912_v11 = vadd.f32 -2.0, %v7418_v23  ;;  %v1434_v3 = vadd.f32 -1.0, %v7418_v23 }
 0x141   : > { %7409 = vst [vmem:[#allocation119_spill] sm:$0xff] %v5272_v13  ;;  %v5299_v6 = vperm.slane %v7416_v53, 0  ;;  %v1968_v8 = vand.u32 2147483647, %v7418_v23  ;;  %v2470_v4 = vadd.f32 1.0, %v7418_v23  ;;  %v2988_v33 = vadd.f32 2.0, %v7418_v23 }
 0x142   : > { %7410 = vst [vmem:[#allocation120_spill] sm:$0xff] %v5275_v52  ;;  %v920_v16 = vadd.f32 -2.0, %v7419_v12  ;;  %v928_v30 = vand.u32 2147483647, %v912_v11  ;;  %v1450_v61 = vand.u32 2147483647, %v1434_v3  ;;  %v5316_v27 = vmul.f32 %v5295_v48, %v5177_v21  ;;  %v5320_v11 = vpop.permute.xlu2 %1199 }
 0x143   : > { %7411 = vst [vmem:[#allocation121_spill] sm:$0xff] %v5278_v28  ;;  %v1984_v35 = vsub.f32 1.0, %v1968_v8  ;;  %v3892_v43 = vmov 22   ;;  %v1442_v31 = vadd.f32 -1.0, %v7419_v12  ;;  %v2486_v38 = vand.u32 2147483647, %v2470_v4 }
 0x144   : > { %7412 = vst [vmem:[#allocation122_spill] sm:$0xff] %v5283_v51  ;;  %3804 = vset.pattern.permute.xlu2 %v3892_v43  ;;  %3803 = vset.pattern.permute.xlu1 %v3892_v43  ;;  %v3004_v50 = vand.u32 2147483647, %v2988_v33  ;;  %v7420_v53 = vld [vmem:[#allocation59_spill] sm:$0xff]  ;;  %v936_v23 = vand.u32 2147483647, %v920_v16  ;;  %v5324_v3 = vmul.f32 %v5299_v6, %v5177_v21  ;;  %v624_v16 = vpop.f32.mrf.mxu1 }
 0x145   : > { %7413 = vst [vmem:[#allocation123_spill] sm:$0xff] %v5287_v40  ;;  %2437 = vperm.xlu2 %3804, %v4771_v9   ;;  %2433 = vperm.xlu1 %3803, %v7420_v53   ;;  %v944_v8 = vsub.f32 1.0, %v928_v30  ;;  %v1466_v43 = vsub.f32 1.0, %v1450_v61  ;;  %v2000_v14 = vmax.f32 %v1984_v35, 0.0  ;;  %v2502_v4 = vsub.f32 1.0, %v2486_v38  ;;  %v7425_v52 = vld [vmem:[#allocation36_spill] sm:$0xff] }
 0x146   : > { %7414 = vst [vmem:[#allocation124_spill] sm:$0xff] %v5290_v47  ;;  %v3020_v33 = vsub.f32 1.0, %v3004_v50  ;;  %v952_v47 = vsub.f32 1.0, %v936_v23  ;;  %v1976_v30 = vand.u32 2147483647, %v7419_v12 }
 0x147   : > { %7415 = vst [vmem:[#allocation125_spill] sm:$0xff] %v5293_v59  ;;  %v1458_v59 = vand.u32 2147483647, %v1442_v31  ;;  %v960_v29 = vmax.f32 %v944_v8, 0.0  ;;  %v1482_v25 = vmax.f32 %v1466_v43, 0.0  ;;  %v5330_v53 = vperm.slane %v2000_v14, 0 }
 0x148   : > { %7417 = vst [vmem:[#allocation126_spill] sm:$0xff] %v5305_v5  ;;  %v7422_v5 = vmax.f32 %v5221_v0, 0.0  ;;  %v2518_v51 = vmax.f32 %v2502_v4, 0.0  ;;  %v3036_v26 = vmax.f32 %v3020_v33, 0.0  ;;  %v5364_v28 = vld [vmem:[%s7075_s3 + $0x18] sm:$0x1] }
 0x149   : > { %7421 = vst [vmem:[#allocation15_spill] sm:$0xff] %v5320_v11  ;;  %v5332_v11 = vperm.slane %v2000_v14, 1  ;;  %v5335_v61 = vperm.slane %v960_v29, 0  ;;  %v5337_v35 = vperm.slane %v1482_v25, 0  ;;  %v5340_v38 = vperm.slane %v960_v29, 1 }
 0x14a   : > { %v5328_v40 = vperm.slane %v7422_v5, 0  ;;  %v2114_v5 = vmul.f32 %v5330_v53, %v511_v41  ;;  %v5342_v31 = vperm.slane %v2518_v51, 0  ;;  %v5344_v50 = vperm.slane %v3036_v26, 0 }
 0x14b   : > { %v5346_v8 = vperm.slane %v1482_v25, 1  ;;  %v2115_v14 = vmul.f32 %v5332_v11, %v624_v16  ;;  %v1074_v23 = vmul.f32 %v5335_v61, %v511_v41  ;;  %v1596_v43 = vmul.f32 %v5337_v35, %v511_v41 }
 0x14c   : > { %v5352_v4 = vadd.f32 %v5150_v37, %v2114_v5  ;;  %v1075_v33 = vmul.f32 %v5340_v38, %v624_v16  ;;  %v2632_v29 = vmul.f32 %v5342_v31, %v511_v41  ;;  %v3150_v13 = vmul.f32 %v5344_v50, %v511_v41  ;;  %v5367_v37 = vpop.permute.xlu2 %1247 }
 0x14d   : > { %v1597_v44 = vmul.f32 %v5346_v8, %v624_v16  ;;  %v5359_v25 = vadd.f32 %v5155_v32, %v2115_v14  ;;  %2445 = vperm.xlu2 %3804, %v5364_v28   ;;  %7424 = vst [vmem:[#allocation59_spill] sm:$0xff] %v5367_v37  ;;  %v5370_v5 = vadd.f32 %v5158_v7, %v1074_v23  ;;  %v5378_v32 = vperm.slane %v2518_v51, 1  ;;  %v7426_v14 = vld [vmem:[#allocation70_spill] sm:$0xff] }
 0x14e   : > { %v5373_v62 = vadd.f32 %v7425_v52, %v1596_v43  ;;  %v5376_v41 = vadd.f32 %v5164_v20, %v1075_v33  ;;  %2441 = vperm.xlu1 %3803, %v7426_v14   ;;  %v5385_v36 = vadd.f32 %v5173_v34, %v3150_v13  ;;  %v5390_v7 = vperm.slane %v3036_v26, 1  ;;  %v514_v52 = vpop.f32.mrf.mxu0 }
 0x14f   : > { %7423 = vst [vmem:[#allocation13_spill] sm:$0xff] %v5359_v25  ;;  %v5382_v25 = vadd.f32 %v5170_v60, %v2632_v29  ;;  %v5388_v37 = vadd.f32 %v5167_v18, %v1597_v44  ;;  %v5394_v20 = vmul.f32 %v5302_v58, %v5193_v22  ;;  %v2633_v51 = vmul.f32 %v5378_v32, %v624_v16 }
 0x150   : > { %v1474_v23 = vsub.f32 1.0, %v1458_v59  ;;  %v1992_v43 = vsub.f32 1.0, %v1976_v30  ;;  %v7427_v60 = vmax.f32 %v5191_v10, 0.0  ;;  %v3151_v34 = vmul.f32 %v5390_v7, %v624_v16 }
 0x151   : > { %v2478_v13 = vadd.f32 1.0, %v7419_v12  ;;  %v2996_v18 = vadd.f32 2.0, %v7419_v12  ;;  %v5404_v44 = vmul.f32 %v5328_v40, %v5177_v21  ;;  %v7429_v26 = vmax.f32 %v5221_v0, 0.0 }
 0x152   : > { %v1535_v33 = vperm.slane %v7427_v60, 1  ;;  %v5409_v14 = vadd.f32 %v5186_v2, %v2633_v51  ;;  %v968_v59 = vmax.f32 %v952_v47, 0.0  ;;  %v5415_v16 = vadd.f32 %v5189_v57, %v3151_v34  ;;  %v5432_v57 = vpop.f32.mrf.mxu2  ;;  %v5438_v34 = vpop.f32.mrf.mxu3 }
 0x153   : > { %7428 = vst [vmem:[#allocation36_spill] sm:$0xff] %v5404_v44  ;;  %v2053_v29 = vperm.slane %v7429_v26, 1  ;;  %v2494_v30 = vand.u32 2147483647, %v2478_v13  ;;  %v3012_v60 = vand.u32 2147483647, %v2996_v18  ;;  %v5422_v21 = vmul.f32 %v5295_v48, %v5256_v49 }
 0x154   : > { %v5412_v10 = vmul.f32 %v1535_v33, %v5193_v22  ;;  %7431 = vst [vmem:[#allocation127_spill] sm:$0xff] %v5415_v16  ;;  %v1490_v0 = vmax.f32 %v1474_v23, 0.0  ;;  %v2008_v26 = vmax.f32 %v1992_v43, 0.0  ;;  %v5426_v2 = vmul.f32 %v5299_v6, %v5256_v49  ;;  %v7440_v13 = vld [vmem:[#allocation12_spill] sm:$0xff]  ;;  %v7465_v16 = vld [vmem:[#allocation18_spill] sm:$0xff] }
 0x155   : > { %v5418_v12 = vmul.f32 %v2053_v29, %v5193_v22  ;;  %v5430_v47 = vmul.f32 %v5328_v40, %v5256_v49  ;;  %7434 = vst [vmem:[#allocation130_spill] sm:$0xff] %v5432_v57  ;;  %v5434_v51 = vsub.f32 1.0, %v2494_v30  ;;  %v5436_v22 = vsub.f32 1.0, %v3012_v60 }
 0x156   : > { %7430 = vst [vmem:[#allocation70_spill] sm:$0xff] %v5412_v10  ;;  %v7438_v48 = vmov 3   ;;  %v5443_v23 = vmul.f32 %v5216_v63, %v5256_v49  ;;  %v5447_v6 = vmul.f32 %v5302_v58, %v5280_v19  ;;  %v1014_v40 = vperm.slane %v968_v59, 0  ;;  %v5469_v49 = vld [vmem:[%s7075_s3 + $0x10] sm:$0xff]  ;;  %v5473_v58 = vpop.permute.xlu2 %1259 }
 0x157   : > { %7432 = vst [vmem:[#allocation128_spill] sm:$0xff] %v5418_v12  ;;  %3807 = vset.pattern.permute.xlu2 %v7438_v48  ;;  %v5449_v43 = vperm.slane %v968_v59, 1  ;;  %3806 = vset.pattern.permute.xlu1 %v7438_v48  ;;  %v7441_v18 = vand.u32 2147483647, %v7440_v13  ;;  %v5457_v60 = vmul.f32 %v1535_v33, %v5280_v19  ;;  %v5460_v12 = vmul.f32 %v2053_v29, %v5280_v19 }
 0x158   : > { %7433 = vst [vmem:[#allocation129_spill] sm:$0xff] %v5430_v47  ;;  %v5464_v63 = vmul.f32 %v5218_v56, %v5280_v19  ;;  %2759 = vperm.xlu2 %3807, %v5469_v49   ;;  %2755 = vperm.xlu1 %3806, %v4771_v9   ;;  %v5476_v33 = vmul.f32 %v1014_v40, %v5432_v57  ;;  %v1536_v29 = vperm.slane %v1490_v0, 0  ;;  %v5478_v59 = vperm.slane %v2008_v26, 0  ;;  %v627_v9 = vpop.f32.mrf.mxu1 }
 0x159   : > { %7435 = vst [vmem:[#allocation131_spill] sm:$0xff] %v5434_v51  ;;  %v5454_v30 = vsub.f32 1.0, %v7441_v18  ;;  %v5482_v56 = vmul.f32 %v5449_v43, %v5438_v34  ;;  %v1537_v13 = vperm.slane %v1490_v0, 1  ;;  %v5486_v18 = vperm.slane %v2008_v26, 1 }
 0x15a   : > { %7436 = vst [vmem:[#allocation132_spill] sm:$0xff] %v5436_v22  ;;  %v1598_v47 = vmul.f32 %v5337_v35, %v514_v52  ;;  %v2116_v26 = vmul.f32 %v5330_v53, %v514_v52  ;;  %v2634_v48 = vmul.f32 %v5342_v31, %v514_v52  ;;  %v3152_v44 = vmul.f32 %v5344_v50, %v514_v52  ;;  %v7457_v31 = vld [vmem:[#allocation14_spill] sm:$0xff] }
 0x15b   : > { %7437 = vst [vmem:[#allocation133_spill] sm:$0xff] %v5438_v34  ;;  %v5500_v19 = vmul.f32 %v1537_v13, %v5438_v34  ;;  %v5504_v0 = vmul.f32 %v5486_v18, %v5438_v34  ;;  %v7453_v35 = vmax.f32 %v5434_v51, 0.0  ;;  %v5525_v53 = vmul.f32 %v5378_v32, %v627_v9  ;;  %v5532_v34 = vpop.f32.mrf.mxu2 }
 0x15c   : > { %7439 = vst [vmem:[#allocation134_spill] sm:$0xff] %v5443_v23  ;;  %v1076_v23 = vmul.f32 %v5335_v61, %v514_v52  ;;  %v5514_v61 = vmul.f32 %v5332_v11, %v627_v9  ;;  %v913_v50 = vadd.f32 -2.0, %v7457_v31  ;;  %v1671_v11 = vadd.f32 %v5244_v24, %v1598_v47 }
 0x15d   : > { %7442 = vst [vmem:[#allocation12_spill] sm:$0xff] %v5454_v30  ;;  %v1969_v52 = vand.u32 2147483647, %v7457_v31  ;;  %v2707_v32 = vadd.f32 %v5253_v17, %v2634_v48  ;;  %v2989_v24 = vadd.f32 2.0, %v7457_v31  ;;  %v5543_v47 = vadd.f32 %v5259_v45, %v3152_v44 }
 0x15e   : > { %7443 = vst [vmem:[#allocation135_spill] sm:$0xff] %v5457_v60  ;;  %v5552_v17 = vmul.f32 %v5390_v7, %v627_v9  ;;  %v5560_v45 = vmul.f32 %v1014_v40, %v5532_v34  ;;  %v5565_v30 = vmul.f32 %v1536_v29, %v5532_v34 }
 0x15f   : > { %7444 = vst [vmem:[#allocation136_spill] sm:$0xff] %v5460_v12  ;;  %v5495_v12 = vmul.f32 %v5478_v59, %v5432_v57 }
 0x160   : > { %7445 = vst [vmem:[#allocation137_spill] sm:$0xff] %v5464_v63  ;;  %v5488_v63 = vpop.f32.mrf.mxu0  ;;  %2763 = vperm.xlu1 %3806, %v5364_v28  }
 0x161   : > { %7446 = vst [vmem:[#allocation138_spill] sm:$0xff] %v5469_v49 }
 0x162   : > { %7447 = vst [vmem:[#allocation139_spill] sm:$0xff] %v5473_v58  ;;  %v5491_v58 = vmul.f32 %v1536_v29, %v5432_v57  ;;  %v5518_v57 = vperm.slane %v7453_v35, 0  ;;  %v929_v35 = vand.u32 2147483647, %v913_v50 }
 0x163   : > { %7448 = vst [vmem:[#allocation140_spill] sm:$0xff] %v5478_v59  ;;  %v1077_v59 = vmul.f32 %v5340_v38, %v627_v9  ;;  %v1149_v38 = vadd.f32 %v5232_v42, %v1076_v23  ;;  %v5539_v42 = vpop.f32.mrf.mxu3 }
 0x164   : > { %7449 = vst [vmem:[#allocation141_spill] sm:$0xff] %v5486_v18  ;;  %v945_v48 = vsub.f32 1.0, %v929_v35  ;;  %v5569_v7 = vmul.f32 %v5449_v43, %v5539_v42  ;;  %v5578_v40 = vmul.f32 %v1537_v13, %v5539_v42 }
 0x165   : > { %7450 = vst [vmem:[#allocation142_spill] sm:$0xff] %v5495_v12  ;;  %v5511_v12 = vmul.f32 %v5346_v8, %v627_v9  ;;  %v1435_v8 = vadd.f32 -1.0, %v7457_v31  ;;  %v5555_v50 = vadd.f32 %v5262_v1, %v1077_v59  ;;  %v5571_v9 = vpop.f32.mrf.mxu1 }
 0x166   : > { %7451 = vst [vmem:[#allocation143_spill] sm:$0xff] %v5500_v19  ;;  %v961_v59 = vmax.f32 %v945_v48, 0.0 }
 0x167   : > { %7452 = vst [vmem:[#allocation144_spill] sm:$0xff] %v5504_v0  ;;  %v7455_v0 = vmax.f32 %v5436_v22, 0.0  ;;  %v1451_v23 = vand.u32 2147483647, %v1435_v8  ;;  %v1985_v22 = vsub.f32 1.0, %v1969_v52  ;;  %v5557_v8 = vpop.permute.xlu2 %1301 }
 0x168   : > { %7454 = vst [vmem:[#allocation145_spill] sm:$0xff] %v5518_v57  ;;  %v2189_v57 = vadd.f32 %v5250_v46, %v2116_v26  ;;  %v5548_v46 = vld [vmem:[%s7075_s3] sm:$0xff]  ;;  %v3005_v52 = vand.u32 2147483647, %v2989_v24  ;;  %v5573_v1 = vpop.f32.mrf.mxu0  ;;  %v1000_v29 = vperm.slane %v961_v59, 0  ;;  %v1001_v43 = vperm.slane %v961_v59, 1 }
 0x169   : > { %v5522_v18 = vperm.slane %v7455_v0, 0  ;;  %7458 = vst [vmem:[#allocation14_spill] sm:$0xff] %v5532_v34  ;;  %v2471_v0 = vadd.f32 1.0, %v7457_v31  ;;  %v5562_v44 = vsub.f32 1.0, %v1451_v23  ;;  %v2001_v31 = vmax.f32 %v1985_v22, 0.0 }
 0x16a   : > { %7460 = vst [vmem:[#allocation147_spill] sm:$0xff] %v5539_v42  ;;  %v5581_v23 = vsub.f32 1.0, %v3005_v52  ;;  %v1078_v42 = vmul.f32 %v1000_v29, %v5488_v63  ;;  %v1080_v52 = vmul.f32 %v1000_v29, %v5573_v1  ;;  %v1079_v59 = vmul.f32 %v1001_v43, %v5571_v9 }
 0x16b   : > { %7456 = vst [vmem:[#allocation146_spill] sm:$0xff] %v5522_v18  ;;  %v7459_v18 = vmov 8   ;;  %v2487_v26 = vand.u32 2147483647, %v2471_v0  ;;  %v7145_v22 = vmax.f32 %v5562_v44, 0.0  ;;  %v2040_v0 = vperm.slane %v2001_v31, 0 }
 0x16c   : > { %3808 = vset.pattern.permute.xlu2 %v7459_v18  ;;  %7461 = vst [vmem:[#allocation148_spill] sm:$0xff] %v5552_v17  ;;  %3810 = vset.pattern.permute.xlu1 %v7459_v18  ;;  %v1120_v13 = vadd.f32 %v5370_v5, %v1078_v42  ;;  %v1150_v60 = vadd.f32 %v1149_v38, %v1080_v52 }
 0x16d   : > { %2801 = vperm.xlu2 %3808, %v5548_v46   ;;  %7462 = vst [vmem:[#allocation149_spill] sm:$0xff] %v5557_v8  ;;  %v5575_v35 = vsub.f32 1.0, %v2487_v26  ;;  %v5584_v8 = vperm.slane %v2001_v31, 1  ;;  %v1522_v34 = vperm.slane %v7145_v22, 0  ;;  %v2118_v48 = vmul.f32 %v2040_v0, %v5488_v63  ;;  %2809 = vperm.xlu1 %3810, %v5469_v49  }
 0x16e   : > { %7463 = vst [vmem:[#allocation150_spill] sm:$0xff] %v5569_v7  ;;  %v2120_v26 = vmul.f32 %v2040_v0, %v5573_v1  ;;  %v7472_v7 = vld [vmem:[#allocation27_spill] sm:$0xff] }
 0x16f   : > { %7464 = vst [vmem:[#allocation151_spill] sm:$0xff] %v5578_v40  ;;  %v7146_v24 = vmax.f32 %v5575_v35, 0.0  ;;  %v1600_v31 = vmul.f32 %v1522_v34, %v5488_v63  ;;  %v1602_v22 = vmul.f32 %v1522_v34, %v5573_v1  ;;  %v2160_v19 = vadd.f32 %v5352_v4, %v2118_v48  ;;  %v7466_v34 = vld [vmem:[#allocation28_spill] sm:$0xff]  ;;  %v5608_v4 = vpop.permute.xlu1 %1194  ;;  %v5613_v52 = vpop.permute.xlu2 %1347 }
 0x170   : > { %v2190_v0 = vadd.f32 %v2189_v57, %v2120_v26  ;;  %7467 = vst [vmem:[#allocation18_spill] sm:$0xff] %v5608_v4  ;;  %v7468_v57 = vld [vmem:[#allocation16_spill] sm:$0xff]  ;;  %v7469_v26 = vld [vmem:[#allocation26_spill] sm:$0xff] }
 0x171   : > { %v2558_v40 = vperm.slane %v7146_v24, 0  ;;  %v1642_v18 = vadd.f32 %v5373_v62, %v1600_v31  ;;  %v1672_v10 = vadd.f32 %v1671_v11, %v1602_v22  ;;  %v2161_v51 = vadd.f32 %v2160_v19, %v7465_v16  ;;  %7470 = vst [vmem:[#allocation28_spill] sm:$0xff] %v5613_v52  ;;  %v7473_v11 = vld [vmem:[#allocation37_spill] sm:$0xff]  ;;  %v7475_v31 = vld [vmem:[#allocation39_spill] sm:$0xff] }
 0x172   : > { %v2191_v17 = vadd.f32 %v2190_v0, %v7466_v34  ;;  %v1121_v48 = vadd.f32 %v1120_v13, %v7468_v57  ;;  %v1151_v5 = vadd.f32 %v1150_v60, %v7469_v26  ;;  %v7474_v16 = vld [vmem:[#allocation49_spill] sm:$0xff]  ;;  %v7476_v34 = vld [vmem:[#allocation47_spill] sm:$0xff] }
 0x173   : > { %v2636_v29 = vmul.f32 %v2558_v40, %v5488_v63  ;;  %v2638_v24 = vmul.f32 %v2558_v40, %v5573_v1  ;;  %v7471_v40 = vld [vmem:[#allocation17_spill] sm:$0xff]  ;;  %v1673_v62 = vadd.f32 %v1672_v10, %v7472_v7  ;;  %v2162_v22 = vadd.f32 %v2161_v51, %v7473_v11  ;;  %v7477_v13 = vld [vmem:[#allocation19_spill] sm:$0xff]  ;;  %v7482_v51 = vld [vmem:[#allocation72_spill] sm:$0xff] }
 0x174   : > { %v1643_v49 = vadd.f32 %v1642_v18, %v7471_v40  ;;  %v2192_v19 = vadd.f32 %v2191_v17, %v7474_v16  ;;  %v1122_v0 = vadd.f32 %v1121_v48, %v7475_v31  ;;  %v1152_v4 = vadd.f32 %v1151_v5, %v7476_v34  ;;  %v7478_v60 = vld [vmem:[#allocation29_spill] sm:$0xff]  ;;  %v7481_v40 = vld [vmem:[#allocation63_spill] sm:$0xff]  ;;  %v7483_v17 = vld [vmem:[#allocation58_spill] sm:$0xff] }
 0x175   : > { %2813 = vperm.xlu2 %3808, %v5364_v28   ;;  %v2678_v38 = vadd.f32 %v5382_v25, %v2636_v29  ;;  %v2708_v42 = vadd.f32 %v2707_v32, %v2638_v24  ;;  %v5623_v25 = vpop.f32.mrf.mxu1  ;;  %v7479_v32 = vld [vmem:[#allocation40_spill] sm:$0xff]  ;;  %v5628_v10 = vadd.f32 %v2162_v22, %v7481_v40  ;;  %v7484_v11 = vld [vmem:[#allocation69_spill] sm:$0xff]  ;;  %v7485_v16 = vld [vmem:[#allocation43_spill] sm:$0xff] }
 0x176   : > { %v1644_v24 = vadd.f32 %v1643_v49, %v7479_v32  ;;  %v7480_v29 = vld [vmem:[#allocation48_spill] sm:$0xff]  ;;  %v5631_v7 = vadd.f32 %v2192_v19, %v7482_v51  ;;  %v1123_v48 = vadd.f32 %v1122_v0, %v7483_v17  ;;  %v1153_v5 = vadd.f32 %v1152_v4, %v7484_v11  ;;  %v7486_v31 = vld [vmem:[#allocation50_spill] sm:$0xff]  ;;  %v7487_v34 = vld [vmem:[#allocation61_spill] sm:$0xff] }
 0x177   : > { %v2679_v57 = vadd.f32 %v2678_v38, %v7477_v13  ;;  %v2709_v26 = vadd.f32 %v2708_v42, %v7478_v60  ;;  %v1674_v18 = vadd.f32 %v1673_v62, %v7480_v29  ;;  %v7488_v60 = vld [vmem:[#allocation71_spill] sm:$0xff]  ;;  %v7489_v62 = vmax.f32 %v5581_v23, 0.0  ;;  %v7491_v19 = vld [vmem:[#allocation81_spill] sm:$0xff]  ;;  %v7496_v11 = vld [vmem:[#allocation8_spill] sm:$0xff] }
 0x178   : > { %v1645_v13 = vadd.f32 %v1644_v24, %v7487_v34  ;;  %v1081_v22 = vmul.f32 %v1001_v43, %v5623_v25  ;;  %v7490_v29 = vmov 13   ;;  %v1124_v40 = vadd.f32 %v1123_v48, %v7491_v19  ;;  %v7492_v0 = vld [vmem:[#allocation3_spill] sm:$0xff]  ;;  %v7493_v4 = vld [vmem:[#allocation65_spill] sm:$0xff] }
 0x179   : > { %v2680_v38 = vadd.f32 %v2679_v57, %v7485_v16  ;;  %v2710_v42 = vadd.f32 %v2709_v26, %v7486_v31  ;;  %v1675_v49 = vadd.f32 %v1674_v18, %v7488_v60  ;;  %v3076_v32 = vperm.slane %v7489_v62, 0  ;;  %v7494_v57 = vld [vmem:[#allocation73_spill] sm:$0xff]  ;;  %3811 = vset.pattern.permute.xlu1 %v7490_v29  ;;  %v7495_v24 = vld [vmem:[#allocation83_spill] sm:$0xff] }
 0x17a   : > { %v1154_v51 = vadd.f32 %v1153_v5, %v7492_v0  ;;  %v1646_v18 = vadd.f32 %v1645_v13, %v7495_v24  ;;  %v5659_v48 = vld [vmem:[%s7075_s3 + $0x8] sm:$0xff]  ;;  %v1125_v5 = vadd.f32 %v1124_v40, %v5198_v39  ;;  %v1165_v34 = vadd.f32 %v5555_v50, %v1081_v22  ;;  %2851 = vperm.xlu1 %3811, %v5548_v46   ;;  %v7498_v62 = vld [vmem:[#allocation21_spill] sm:$0xff]  ;;  %v7501_v22 = vld [vmem:[#allocation20_spill] sm:$0xff] }
 0x17b   : > { %v5646_v17 = vadd.f32 %v2680_v38, %v7493_v4  ;;  %v5649_v26 = vadd.f32 %v2710_v42, %v7494_v57  ;;  %v1676_v16 = vadd.f32 %v1675_v49, %v7496_v11  ;;  %v3154_v43 = vmul.f32 %v3076_v32, %v5488_v63  ;;  %v5671_v49 = vpop.permute.xlu1 %1209  ;;  %v7504_v0 = vld [vmem:[#allocation52_spill] sm:$0xff]  ;;  %v7506_v24 = vld [vmem:[#allocation51_spill] sm:$0xff] }
 0x17c   : > { %v3156_v31 = vmul.f32 %v3076_v32, %v5573_v1  ;;  %v1155_v38 = vadd.f32 %v1154_v51, %v5211_v54  ;;  %v1135_v42 = vadd.f32 %v5376_v41, %v1079_v59  ;;  %v1647_v63 = vadd.f32 %v1646_v18, %v5201_v15  ;;  %7497 = vst [vmem:[#allocation16_spill] sm:$0xff] %v5671_v49  ;;  %v7499_v59 = vld [vmem:[#allocation31_spill] sm:$0xff]  ;;  %v5677_v32 = vpop.permute.xlu2 %1355  ;;  %v7507_v11 = vld [vmem:[#allocation60_spill] sm:$0xff] }
 0x17d   : > { %3812 = vset.pattern.permute.xlu2 %v7490_v29  ;;  %v1677_v1 = vadd.f32 %v1676_v16, %v5214_v55  ;;  %v3196_v13 = vadd.f32 %v5385_v36, %v3154_v43  ;;  %v1126_v39 = vadd.f32 %v1125_v5, %v5316_v27  ;;  %v1166_v50 = vadd.f32 %v1165_v34, %v7499_v59  ;;  %v7502_v29 = vld [vmem:[#allocation30_spill] sm:$0xff]  ;;  %v7508_v16 = vld [vmem:[#allocation75_spill] sm:$0xff]  ;;  %v7510_v5 = vld [vmem:[#allocation117_spill] sm:$0xff] }
 0x17e   : > { %2855 = vperm.xlu2 %3812, %v5659_v48   ;;  %v3226_v60 = vadd.f32 %v5543_v47, %v3156_v31  ;;  %v1156_v54 = vadd.f32 %v1155_v38, %v5422_v21  ;;  %v1136_v41 = vadd.f32 %v1135_v42, %v7498_v62  ;;  %7500 = vst [vmem:[#allocation26_spill] sm:$0xff] %v5677_v32  ;;  %v7503_v21 = vld [vmem:[#allocation41_spill] sm:$0xff]  ;;  %v7511_v42 = vld [vmem:[#allocation66_spill] sm:$0xff]  ;;  %v7601_v32 = vld [vmem:[#allocation132_spill] sm:$0xff] }
 0x17f   : > { %v1648_v15 = vadd.f32 %v1647_v63, %v5324_v3  ;;  %v1678_v55 = vadd.f32 %v1677_v1, %v5426_v2  ;;  %v3197_v36 = vadd.f32 %v3196_v13, %v7501_v22  ;;  %v5684_v19 = vadd.f32 %v1126_v39, %v5476_v33  ;;  %v7505_v2 = vld [vmem:[#allocation44_spill] sm:$0xff]  ;;  %v7512_v34 = vld [vmem:[#allocation74_spill] sm:$0xff]  ;;  %v7519_v22 = vld [vmem:[#allocation121_spill] sm:$0xff] }
 0x180   : > { %v3227_v47 = vadd.f32 %v3226_v60, %v7502_v29  ;;  %v5687_v27 = vadd.f32 %v1156_v54, %v5560_v45  ;;  %v1137_v40 = vadd.f32 %v1136_v41, %v7503_v21  ;;  %v1167_v51 = vadd.f32 %v1166_v50, %v7504_v0  ;;  %v7514_v60 = vld [vmem:[#allocation82_spill] sm:$0xff]  ;;  %v7516_v41 = vld [vmem:[#allocation13_spill] sm:$0xff]  ;;  %v7517_v50 = vld [vmem:[#allocation120_spill] sm:$0xff] }
 0x181   : > { %v5692_v4 = vadd.f32 %v1648_v15, %v5491_v58  ;;  %v5695_v3 = vadd.f32 %v1678_v55, %v5565_v30  ;;  %v3198_v57 = vadd.f32 %v3197_v36, %v7505_v2  ;;  %v7509_v45 = vmax.f32 %v5562_v44, 0.0  ;;  %v7515_v39 = vld [vmem:[#allocation110_spill] sm:$0xff]  ;;  %v7520_v29 = vld [vmem:[#allocation111_spill] sm:$0xff] }
 0x182   : > { %v3228_v18 = vadd.f32 %v3227_v47, %v7506_v24  ;;  %v1138_v33 = vadd.f32 %v1137_v40, %v7507_v11  ;;  %v1168_v43 = vadd.f32 %v1167_v51, %v7508_v16  ;;  %v1686_v38 = vadd.f32 %v7510_v5, %v5511_v12  ;;  %2863 = vperm.xlu1 %3811, %v5364_v28   ;;  %v7521_v21 = vld [vmem:[#allocation119_spill] sm:$0xff] }
 0x183   : > { %v1523_v31 = vperm.slane %v7509_v45, 1  ;;  %v5706_v58 = vadd.f32 %v3198_v57, %v7511_v42  ;;  %v2119_v63 = vmul.f32 %v5584_v8, %v5571_v9  ;;  %v2121_v1 = vmul.f32 %v5584_v8, %v5623_v25  ;;  %v7522_v51 = vld [vmem:[#allocation23_spill] sm:$0xff]  ;;  %v5735_v24 = vpop.permute.xlu1 %1255 }
 0x184   : > { %v5709_v30 = vadd.f32 %v3228_v18, %v7512_v34  ;;  %v7513_v13 = vmov 18   ;;  %v1139_v44 = vadd.f32 %v1138_v33, %v7514_v60  ;;  %v1169_v54 = vadd.f32 %v1168_v43, %v7515_v39  ;;  %7523 = vst [vmem:[#allocation17_spill] sm:$0xff] %v5735_v24  ;;  %v7524_v18 = vld [vmem:[#allocation22_spill] sm:$0xff]  ;;  %v7525_v33 = vld [vmem:[#allocation32_spill] sm:$0xff]  ;;  %v5741_v43 = vpop.permute.xlu2 %1401  ;;  %v7531_v60 = vld [vmem:[#allocation53_spill] sm:$0xff] }
 0x185   : > { %v1601_v12 = vmul.f32 %v1523_v31, %v5571_v9  ;;  %v1603_v62 = vmul.f32 %v1523_v31, %v5623_v25  ;;  %v2175_v59 = vadd.f32 %v7516_v41, %v2119_v63  ;;  %v2204_v15 = vadd.f32 %v7517_v50, %v5514_v61  ;;  %7526 = vst [vmem:[#allocation27_spill] sm:$0xff] %v5741_v43  ;;  %v7528_v31 = vld [vmem:[#allocation33_spill] sm:$0xff]  ;;  %v7529_v63 = vld [vmem:[#allocation150_spill] sm:$0xff]  ;;  %v7532_v39 = vld [vmem:[#allocation64_spill] sm:$0xff] }
 0x186   : > { %3814 = vset.pattern.permute.xlu2 %v7513_v13  ;;  %v7518_v55 = vmax.f32 %v5575_v35, 0.0  ;;  %v2722_v36 = vadd.f32 %v7519_v22, %v5525_v53  ;;  %v1140_v47 = vadd.f32 %v1139_v44, %v7520_v29  ;;  %v1170_v40 = vadd.f32 %v1169_v54, %v7521_v21  ;;  %v7534_v41 = vld [vmem:[#allocation24_spill] sm:$0xff]  ;;  %v7535_v50 = vld [vmem:[#allocation34_spill] sm:$0xff] }
 0x187   : > { %2901 = vperm.xlu2 %3814, %v5548_v46   ;;  %v1657_v0 = vadd.f32 %v5388_v37, %v1601_v12  ;;  %v1687_v28 = vadd.f32 %v1686_v38, %v1603_v62  ;;  %v2176_v2 = vadd.f32 %v2175_v59, %v7522_v51  ;;  %v2205_v57 = vadd.f32 %v2204_v15, %v2121_v1  ;;  %v7527_v37 = vld [vmem:[#allocation38_spill] sm:$0xff]  ;;  %v7539_v29 = vld [vmem:[#allocation148_spill] sm:$0xff]  ;;  %v7543_v51 = vld [vmem:[#allocation77_spill] sm:$0xff] }
 0x188   : > { %v2559_v8 = vperm.slane %v7518_v55, 1  ;;  %v1141_v53 = vadd.f32 %v1140_v47, %v5394_v20  ;;  %v1171_v46 = vadd.f32 %v1170_v40, %v5447_v6  ;;  %v7530_v6 = vld [vmem:[#allocation42_spill] sm:$0xff]  ;;  %v7538_v22 = vmax.f32 %v5581_v23, 0.0  ;;  %v7540_v47 = vld [vmem:[#allocation124_spill] sm:$0xff]  ;;  %v7541_v40 = vld [vmem:[#allocation131_spill] sm:$0xff] }
 0x189   : > { %v1658_v11 = vadd.f32 %v1657_v0, %v7524_v18  ;;  %v1688_v16 = vadd.f32 %v1687_v28, %v7525_v33  ;;  %v2177_v45 = vadd.f32 %v2176_v2, %v7527_v37  ;;  %v2206_v5 = vadd.f32 %v2205_v57, %v7528_v31  ;;  %v7533_v12 = vld [vmem:[#allocation54_spill] sm:$0xff]  ;;  %v7544_v57 = vld [vmem:[#allocation45_spill] sm:$0xff]  ;;  %v7549_v37 = vld [vmem:[#allocation67_spill] sm:$0xff] }
 0x18a   : > { %v2637_v61 = vmul.f32 %v2559_v8, %v5571_v9  ;;  %v2639_v35 = vmul.f32 %v2559_v8, %v5623_v25  ;;  %v5747_v34 = vadd.f32 %v1141_v53, %v5482_v56  ;;  %v5750_v20 = vadd.f32 %v1171_v46, %v7529_v63  ;;  %v7536_v15 = vld [vmem:[#allocation62_spill] sm:$0xff]  ;;  %v7537_v56 = vld [vmem:[#allocation76_spill] sm:$0xff]  ;;  %3815 = vset.pattern.permute.xlu1 %v7513_v13  ;;  %v7547_v23 = vld [vmem:[#allocation85_spill] sm:$0xff] }
 0x18b   : > { %v1659_v1 = vadd.f32 %v1658_v11, %v7530_v6  ;;  %v1689_v44 = vadd.f32 %v1688_v16, %v7531_v60  ;;  %v5755_v54 = vadd.f32 %v2177_v45, %v7532_v39  ;;  %v2207_v62 = vadd.f32 %v2206_v5, %v7533_v12  ;;  %v7546_v46 = vld [vmem:[#allocation138_spill] sm:$0xff]  ;;  %2905 = vperm.xlu1 %3815, %v5659_v48   ;;  %v7548_v11 = vld [vmem:[#allocation9_spill] sm:$0xff]  ;;  %v7557_v48 = vld [vmem:[#allocation112_spill] sm:$0xff] }
 0x18c   : > { %v2693_v38 = vadd.f32 %v5409_v14, %v2637_v61  ;;  %v2723_v42 = vadd.f32 %v2722_v36, %v2639_v35  ;;  %v3077_v36 = vperm.slane %v7538_v22, 1  ;;  %v3240_v21 = vadd.f32 %v7540_v47, %v7539_v29  ;;  %v7545_v35 = vld [vmem:[#allocation55_spill] sm:$0xff]  ;;  %v7551_v31 = vld [vmem:[#allocation78_spill] sm:$0xff]  ;;  %v7555_v63 = vld [vmem:[#allocation5_spill] sm:$0xff] }
 0x18d   : > { %v1660_v55 = vadd.f32 %v1659_v1, %v7536_v15  ;;  %v1690_v8 = vadd.f32 %v1689_v44, %v7537_v56  ;;  %v7542_v0 = vmax.f32 %v7541_v40, 0.0  ;;  %v5772_v2 = vadd.f32 %v2207_v62, %v7543_v51  ;;  %v7558_v60 = vld [vmem:[#allocation122_spill] sm:$0xff]  ;;  %v7559_v39 = vld [vmem:[#allocation127_spill] sm:$0xff]  ;;  %v5807_v56 = vpop.permute.xlu1 %1297  ;;  %v7568_v47 = vld [vmem:[#allocation25_spill] sm:$0xff]  ;;  %v5813_v51 = vpop.permute.xlu2 %1409 }
 0x18e   : > { %v2694_v59 = vadd.f32 %v2693_v38, %v7534_v41  ;;  %v2724_v14 = vadd.f32 %v2723_v42, %v7535_v50  ;;  %v3155_v13 = vmul.f32 %v3077_v36, %v5571_v9  ;;  %v3157_v16 = vmul.f32 %v3077_v36, %v5623_v25  ;;  %v7553_v38 = vld [vmem:[#allocation11_spill] sm:$0xff]  ;;  %v5797_v25 = vpop.f32.mrf.mxu2  ;;  %v7560_v62 = vld [vmem:[#allocation2_spill] sm:$0xff]  ;;  %7565 = vst [vmem:[#allocation40_spill] sm:$0xff] %v5807_v56 }
 0x18f   : > { %v5769_v28 = vperm.slane %v7542_v0, 1  ;;  %2909 = vperm.xlu2 %3814, %v7546_v46   ;;  %v1661_v18 = vadd.f32 %v1660_v55, %v7547_v23  ;;  %v1691_v33 = vadd.f32 %v1690_v8, %v7548_v11  ;;  %v5789_v42 = vmax.f32 %v7553_v38, 0.0  ;;  %v7566_v8 = vld [vmem:[#allocation70_spill] sm:$0xff]  ;;  %v7567_v36 = vld [vmem:[#allocation135_spill] sm:$0xff]  ;;  %7570 = vst [vmem:[#allocation48_spill] sm:$0xff] %v5813_v51  ;;  %v7573_v46 = vld [vmem:[#allocation4_spill] sm:$0xff] }
 0x190   : > { %v2695_v61 = vadd.f32 %v2694_v59, %v7544_v57  ;;  %v2725_v53 = vadd.f32 %v2724_v14, %v7545_v35  ;;  %v5792_v6 = vmax.f32 %v7555_v63, 0.0  ;;  %v3211_v9 = vadd.f32 %v7559_v39, %v3155_v13  ;;  %v7562_v59 = vld [vmem:[#allocation103_spill] sm:$0xff]  ;;  %v7564_v14 = vld [vmem:[#allocation57_spill] sm:$0xff]  ;;  %v7571_v57 = vld [vmem:[#allocation106_spill] sm:$0xff] }
 0x191   : > { %7554 = vst [vmem:[#allocation39_spill] sm:$0xff] %v5789_v42  ;;  %v1662_v1 = vadd.f32 %v1661_v18, %v7557_v48  ;;  %v1692_v44 = vadd.f32 %v1691_v33, %v7558_v60  ;;  %v3241_v12 = vadd.f32 %v3240_v21, %v3157_v16  ;;  %v5800_v41 = vmax.f32 %v7560_v62, 0.0  ;;  %v7569_v40 = vld [vmem:[#allocation35_spill] sm:$0xff]  ;;  %v7577_v16 = vld [vmem:[#allocation46_spill] sm:$0xff] }
 0x192   : > { %v5783_v45 = vadd.f32 %v2695_v61, %v7549_v37  ;;  %v5786_v5 = vadd.f32 %v2725_v53, %v7551_v31  ;;  %7556 = vst [vmem:[#allocation47_spill] sm:$0xff] %v5792_v6  ;;  %v5803_v50 = vmax.f32 %v7562_v59, 0.0  ;;  %v921_v15 = vadd.f32 -2.0, %v7564_v14  ;;  %v7575_v18 = vld [vmem:[#allocation143_spill] sm:$0xff]  ;;  %v7578_v31 = vld [vmem:[#allocation56_spill] sm:$0xff] }
 0x193   : > { %7561 = vst [vmem:[#allocation19_spill] sm:$0xff] %v5800_v41  ;;  %v1443_v55 = vadd.f32 -1.0, %v7564_v14  ;;  %v1663_v22 = vadd.f32 %v1662_v1, %v7566_v8  ;;  %v1693_v29 = vadd.f32 %v1692_v44, %v7567_v36  ;;  %v3212_v21 = vadd.f32 %v3211_v9, %v7568_v47  ;;  %v7576_v33 = vld [vmem:[#allocation151_spill] sm:$0xff]  ;;  %v7579_v1 = vld [vmem:[#allocation6_spill] sm:$0xff]  ;;  %v7583_v9 = vld [vmem:[#allocation68_spill] sm:$0xff] }
 0x194   : > { %7550 = vst [vmem:[#allocation37_spill] sm:$0xff] %v5783_v45  ;;  %v3242_v0 = vadd.f32 %v3241_v12, %v7569_v40  ;;  %v5816_v61 = vmax.f32 %v7571_v57, 0.0  ;;  %v937_v35 = vand.u32 2147483647, %v921_v15  ;;  %v5819_v23 = vmax.f32 %v7573_v46, 0.0  ;;  %v7581_v44 = vld [vmem:[#allocation10_spill] sm:$0xff]  ;;  %v5845_v40 = vpop.f32.mrf.mxu3 }
 0x195   : > { %7552 = vst [vmem:[#allocation49_spill] sm:$0xff] %v5786_v5  ;;  %v1459_v53 = vand.u32 2147483647, %v1443_v55  ;;  %v1664_v11 = vadd.f32 %v1663_v22, %v7575_v18  ;;  %v5823_v13 = vadd.f32 %v1693_v29, %v7576_v33  ;;  %v3213_v37 = vadd.f32 %v3212_v21, %v7577_v16  ;;  %v7585_v62 = vld [vmem:[#allocation79_spill] sm:$0xff]  ;;  %v7587_v15 = vld [vmem:[#allocation104_spill] sm:$0xff] }
 0x196   : > { %7563 = vst [vmem:[#allocation29_spill] sm:$0xff] %v5803_v50  ;;  %v3243_v38 = vadd.f32 %v3242_v0, %v7578_v31  ;;  %v953_v63 = vsub.f32 1.0, %v937_v35  ;;  %v5828_v60 = vmax.f32 %v7579_v1, 0.0  ;;  %v5831_v39 = vmax.f32 %v7581_v44, 0.0  ;;  %v7589_v8 = vld [vmem:[#allocation7_spill] sm:$0xff]  ;;  %v7591_v0 = vld [vmem:[#allocation12_spill] sm:$0xff] }
 0x197   : > { %7572 = vst [vmem:[#allocation63_spill] sm:$0xff] %v5816_v61  ;;  %v1475_v48 = vsub.f32 1.0, %v1459_v53  ;;  %v5834_v12 = vadd.f32 %v3213_v37, %v7583_v9  ;;  %v5840_v55 = vmax.f32 %v7587_v15, 0.0  ;;  %v700_v22 = vadd.f32 -2.0, %v7589_v8  ;;  %v5862_v15 = vpop.f32.mrf.mxu2  ;;  %v7613_v45 = vld [vmem:[#allocation140_spill] sm:$0xff] }
 0x198   : > { %7574 = vst [vmem:[#allocation72_spill] sm:$0xff] %v5819_v23  ;;  %v5837_v59 = vadd.f32 %v3243_v38, %v7585_v62  ;;  %v969_v36 = vmax.f32 %v953_v63, 0.0  ;;  %v716_v47 = vadd.f32 -1.0, %v7589_v8  ;;  %v736_v21 = vand.u32 2147483647, %v7589_v8 }
 0x199   : > { %7580 = vst [vmem:[#allocation58_spill] sm:$0xff] %v5828_v60  ;;  %v1491_v29 = vmax.f32 %v1475_v48, 0.0  ;;  %v5848_v57 = vmax.f32 %v7591_v0, 0.0  ;;  %v704_v35 = vand.u32 2147483647, %v700_v22  ;;  %v748_v53 = vadd.f32 1.0, %v7589_v8 }
 0x19a   : > { %7582 = vst [vmem:[#allocation69_spill] sm:$0xff] %v5831_v39  ;;  %v764_v46 = vadd.f32 2.0, %v7589_v8  ;;  %v1016_v18 = vperm.slane %v969_v36, 0  ;;  %v5852_v16 = vperm.slane %v969_v36, 1  ;;  %v720_v38 = vand.u32 2147483647, %v716_v47  ;;  %v5864_v8 = vpop.permute.xlu1 %1309 }
 0x19b   : > { %7584 = vst [vmem:[#allocation43_spill] sm:$0xff] %v5834_v12  ;;  %v1538_v33 = vperm.slane %v1491_v29, 0  ;;  %v5854_v37 = vperm.slane %v1491_v29, 1  ;;  %v708_v31 = vsub.f32 1.0, %v704_v35  ;;  %v740_v63 = vsub.f32 1.0, %v736_v21  ;;  %v5870_v21 = vpop.permute.xlu2 %1723  ;;  %v7611_v12 = vld [vmem:[#allocation145_spill] sm:$0xff] }
 0x19c   : > { %7586 = vst [vmem:[#allocation50_spill] sm:$0xff] %v5837_v59  ;;  %v752_v48 = vand.u32 2147483647, %v748_v53  ;;  %v1110_v1 = vmul.f32 %v1016_v18, %v5797_v25  ;;  %v1111_v9 = vmul.f32 %v5852_v16, %v5845_v40  ;;  %v724_v36 = vsub.f32 1.0, %v720_v38 }
 0x19d   : > { %7588 = vst [vmem:[#allocation61_spill] sm:$0xff] %v5840_v55  ;;  %v1632_v44 = vmul.f32 %v1538_v33, %v5797_v25  ;;  %v1633_v62 = vmul.f32 %v5854_v37, %v5845_v40  ;;  %v5866_v22 = vmax.f32 %v708_v31, 0.0  ;;  %v5868_v29 = vmax.f32 %v740_v63, 0.0 }
 0x19e   : > { %7590 = vst [vmem:[#allocation71_spill] sm:$0xff] %v5845_v40  ;;  %v756_v47 = vsub.f32 1.0, %v752_v48  ;;  %v1128_v0 = vadd.f32 %v5684_v19, %v1110_v1  ;;  %v1143_v53 = vadd.f32 %v5747_v34, %v1111_v9  ;;  %v5879_v49 = vmax.f32 %v724_v36, 0.0 }
 0x19f   : > { %7592 = vst [vmem:[#allocation81_spill] sm:$0xff] %v5848_v57  ;;  %v5874_v35 = vadd.f32 %v5692_v4, %v1632_v44  ;;  %v5877_v51 = vadd.f32 %v1664_v11, %v1633_v62  ;;  %v768_v31 = vand.u32 2147483647, %v764_v46  ;;  %v1112_v38 = vmul.f32 %v1016_v18, %v5862_v15 }
 0x1a0   : > { %7593 = vst [vmem:[#allocation3_spill] sm:$0xff] %v5864_v8  ;;  %v5881_v8 = vmax.f32 %v756_v47, 0.0  ;;  %v1174_v63 = vmul.f32 %v1128_v0, %v5789_v42  ;;  %v1228_v48 = vmul.f32 %v1128_v0, %v5792_v6  ;;  %v1278_v19 = vmul.f32 %v1128_v0, %v5800_v41 }
 0x1a1   : > { %7594 = vst [vmem:[#allocation65_spill] sm:$0xff] %v5866_v22  ;;  %v1328_v4 = vmul.f32 %v1128_v0, %v5803_v50  ;;  %v1378_v1 = vmul.f32 %v1128_v0, %v5816_v61  ;;  %v1696_v34 = vmul.f32 %v5874_v35, %v5789_v42  ;;  %v1746_v11 = vmul.f32 %v5874_v35, %v5792_v6  ;;  %v7604_v61 = vld [vmem:[#allocation91_spill] sm:$0xff] }
 0x1a2   : > { %7595 = vst [vmem:[#allocation73_spill] sm:$0xff] %v5868_v29  ;;  %v1796_v46 = vmul.f32 %v5874_v35, %v5800_v41  ;;  %v5897_v18 = vmul.f32 %v5874_v35, %v5803_v50  ;;  %v5900_v44 = vmul.f32 %v1143_v53, %v5819_v23  ;;  %v5903_v9 = vmul.f32 %v1143_v53, %v5828_v60 }
 0x1a3   : > { %7596 = vst [vmem:[#allocation83_spill] sm:$0xff] %v5870_v21  ;;  %v5906_v62 = vmul.f32 %v1143_v53, %v5831_v39  ;;  %v5909_v36 = vmul.f32 %v1143_v53, %v5840_v55  ;;  %v5912_v47 = vmul.f32 %v1143_v53, %v5848_v57  ;;  %v5916_v0 = vmul.f32 %v5877_v51, %v5819_v23 }
 0x1a4   : > { %7597 = vst [vmem:[#allocation8_spill] sm:$0xff] %v5874_v35  ;;  %v5920_v50 = vmul.f32 %v5877_v51, %v5828_v60  ;;  %v5924_v43 = vmul.f32 %v5877_v51, %v5831_v39  ;;  %v5928_v41 = vmul.f32 %v5877_v51, %v5840_v55  ;;  %v772_v21 = vsub.f32 1.0, %v768_v31  ;;  %v7603_v35 = vld [vmem:[#allocation84_spill] sm:$0xff] }
 0x1a5   : > { %7598 = vst [vmem:[#allocation21_spill] sm:$0xff] %v5877_v51  ;;  %v1158_v53 = vadd.f32 %v5687_v27, %v1112_v38  ;;  %v7602_v24 = vmax.f32 %v7601_v32, 0.0  ;;  %v1634_v57 = vmul.f32 %v1538_v33, %v5862_v15  ;;  %v2164_v60 = vadd.f32 %v5628_v10, %v7603_v35  ;;  %v5945_v38 = vpop.permute.xlu1 %1351  ;;  %v7608_v33 = vld [vmem:[#allocation97_spill] sm:$0xff] }
 0x1a6   : > { %7599 = vst [vmem:[#allocation31_spill] sm:$0xff] %v5879_v49  ;;  %v5938_v52 = vadd.f32 %v5631_v7, %v7604_v61  ;;  %v5940_v39 = vmax.f32 %v772_v21, 0.0  ;;  %v1977_v10 = vand.u32 2147483647, %v7564_v14  ;;  %v5953_v61 = vpop.permute.xlu2 %1765 }
 0x1a7   : > { %7600 = vst [vmem:[#allocation20_spill] sm:$0xff] %v5881_v8  ;;  %v3091_v6 = vperm.slane %v7602_v24, 1  ;;  %v1176_v55 = vmul.f32 %v1158_v53, %v5866_v22  ;;  %v1230_v31 = vmul.f32 %v1158_v53, %v5879_v49  ;;  %v1280_v27 = vmul.f32 %v1158_v53, %v5868_v29 }
 0x1a8   : > { %7605 = vst [vmem:[#allocation30_spill] sm:$0xff] %v5940_v39  ;;  %v1330_v32 = vmul.f32 %v1158_v53, %v5881_v8  ;;  %v5949_v24 = vadd.f32 %v5695_v3, %v1634_v57  ;;  %v2165_v7 = vadd.f32 %v2164_v60, %v7608_v33  ;;  %v1380_v56 = vmul.f32 %v1158_v53, %v5940_v39 }
 0x1a9   : > { %7606 = vst [vmem:[#allocation41_spill] sm:$0xff] %v5945_v38  ;;  %v1178_v21 = vadd.f32 %v1176_v55, %v1174_v63  ;;  %v1232_v35 = vadd.f32 %v1230_v31, %v1228_v48  ;;  %v1282_v51 = vadd.f32 %v1280_v27, %v1278_v19 }
 0x1aa   : > { %7607 = vst [vmem:[#allocation52_spill] sm:$0xff] %v5949_v24  ;;  %v1332_v23 = vadd.f32 %v1330_v32, %v1328_v4  ;;  %v1698_v38 = vmul.f32 %v5949_v24, %v5866_v22  ;;  %v1748_v42 = vmul.f32 %v5949_v24, %v5879_v49  ;;  %v1798_v3 = vmul.f32 %v5949_v24, %v5868_v29  ;;  %v7610_v49 = vld [vmem:[#allocation130_spill] sm:$0xff] }
 0x1ab   : > { %7609 = vst [vmem:[#allocation44_spill] sm:$0xff] %v5953_v61  ;;  %v1179_v57 = vrot.slane %v1178_v21, 4  ;;  %v1233_v59 = vrot.slane %v1232_v35, 4  ;;  %v1283_v60 = vrot.slane %v1282_v51, 4  ;;  %v1382_v33 = vadd.f32 %v1380_v56, %v1378_v1  ;;  %v7612_v29 = vld [vmem:[#allocation14_spill] sm:$0xff] }
 0x1ac   : > { %v1333_v61 = vrot.slane %v1332_v23, 4  ;;  %v1700_v55 = vadd.f32 %v1698_v38, %v1696_v34  ;;  %v1750_v63 = vadd.f32 %v1748_v42, %v1746_v11  ;;  %v1800_v48 = vadd.f32 %v1798_v3, %v1796_v46  ;;  %v7614_v42 = vld [vmem:[#allocation146_spill] sm:$0xff] }
 0x1ad   : > { %v1180_v19 = vadd.f32 %v1179_v57, %v1178_v21  ;;  %v1234_v53 = vadd.f32 %v1233_v59, %v1232_v35  ;;  %v1284_v4 = vadd.f32 %v1283_v60, %v1282_v51  ;;  %v1383_v31 = vrot.slane %v1382_v33, 4 }
 0x1ae   : > { %v1334_v27 = vadd.f32 %v1333_v61, %v1332_v23  ;;  %v1701_v32 = vrot.slane %v1700_v55, 4  ;;  %v1751_v39 = vrot.slane %v1750_v63, 4  ;;  %v1801_v22 = vrot.slane %v1800_v48, 4  ;;  %v7615_v23 = vld [vmem:[#allocation133_spill] sm:$0xff]  ;;  %v5993_v60 = vpop.permute.xlu2 %1777 }
 0x1af   : > { %v5964_v5 = vmul.f32 %v7611_v12, %v7610_v49  ;;  %v2148_v40 = vmul.f32 %v7613_v45, %v7612_v29  ;;  %v1181_v56 = vrot.slane %v1180_v19, 2  ;;  %v1235_v1 = vrot.slane %v1234_v53, 2  ;;  %v5982_v45 = vpop.permute.xlu1 %1397  ;;  %7617 = vst [vmem:[#allocation60_spill] sm:$0xff] %v5993_v60 }
 0x1b0   : > { %v5970_v34 = vmul.f32 %v7614_v42, %v7610_v49  ;;  %v1285_v59 = vrot.slane %v1284_v4, 2  ;;  %v1335_v51 = vrot.slane %v1334_v27, 2  ;;  %v1384_v11 = vadd.f32 %v1383_v31, %v1382_v33  ;;  %7616 = vst [vmem:[#allocation51_spill] sm:$0xff] %v5982_v45  ;;  %v7625_v31 = vld [vmem:[#allocation92_spill] sm:$0xff] }
 0x1b1   : > { %v5974_v46 = vmul.f32 %v5769_v28, %v7615_v23  ;;  %v5976_v38 = vadd.f32 %v1701_v32, %v1700_v55  ;;  %v5978_v61 = vadd.f32 %v1751_v39, %v1750_v63  ;;  %v5980_v21 = vadd.f32 %v1801_v22, %v1800_v48  ;;  %v7618_v22 = vld [vmem:[#allocation147_spill] sm:$0xff]  ;;  %v7619_v55 = vld [vmem:[#allocation141_spill] sm:$0xff] }
 0x1b2   : > { %v5985_v35 = vmul.f32 %v3091_v6, %v7615_v23  ;;  %v5987_v49 = vadd.f32 %v1181_v56, %v1180_v19  ;;  %v5989_v3 = vadd.f32 %v1235_v1, %v1234_v53  ;;  %v5991_v57 = vsub.f32 1.0, %v1977_v10 }
 0x1b3   : > { %v2666_v33 = vmul.f32 %v7611_v12, %v7612_v29  ;;  %v5999_v39 = vmul.f32 %v7614_v42, %v7612_v29  ;;  %v6003_v63 = vmul.f32 %v7619_v55, %v7618_v22  ;;  %v6007_v48 = vmul.f32 %v5769_v28, %v7618_v22  ;;  %v7623_v55 = vld [vmem:[#allocation87_spill] sm:$0xff]  ;;  %v7624_v28 = vld [vmem:[#allocation142_spill] sm:$0xff] }
 0x1b4   : > { %v6010_v10 = vmul.f32 %v3091_v6, %v7618_v22  ;;  %v6012_v19 = vadd.f32 %v1285_v59, %v1284_v4  ;;  %v6014_v53 = vadd.f32 %v1335_v51, %v1334_v27  ;;  %v1385_v12 = vrot.slane %v1384_v11, 2  ;;  %v7620_v4 = vld [vmem:[#allocation36_spill] sm:$0xff]  ;;  %v6025_v27 = vpop.permute.xlu0 %1204  ;;  %v7622_v51 = vld [vmem:[#allocation118_spill] sm:$0xff] }
 0x1b5   : > { %v1848_v56 = vmul.f32 %v5949_v24, %v5881_v8  ;;  %v7197_v6 = vmax.f32 %v5991_v57, 0.0  ;;  %v2166_v42 = vadd.f32 %v2165_v7, %v7620_v4  ;;  %7621 = vst [vmem:[#allocation75_spill] sm:$0xff] %v6025_v27  ;;  %v2195_v23 = vadd.f32 %v5938_v52, %v7622_v51  ;;  %v7627_v51 = vld [vmem:[#allocation99_spill] sm:$0xff] }
 0x1b6   : > { %v2479_v22 = vadd.f32 1.0, %v7564_v14  ;;  %v2682_v32 = vadd.f32 %v5646_v17, %v7623_v55  ;;  %v2712_v7 = vadd.f32 %v5649_v26, %v7625_v31  ;;  %v2997_v4 = vadd.f32 2.0, %v7564_v14  ;;  %v7628_v55 = vld [vmem:[#allocation105_spill] sm:$0xff] }
 0x1b7   : > { %v6028_v59 = vadd.f32 %v1848_v56, %v5897_v18  ;;  %v2056_v1 = vperm.slane %v7197_v6, 0  ;;  %v2167_v29 = vadd.f32 %v2166_v42, %v7624_v28  ;;  %v7626_v56 = vld [vmem:[#allocation129_spill] sm:$0xff]  ;;  %v6047_v28 = vadd.f32 %v1385_v12, %v1384_v11  ;;  %v6052_v18 = vpop.permute.xlu1 %1405 }
 0x1b8   : > { %v2196_v60 = vadd.f32 %v2195_v23, %v7626_v56  ;;  %v2495_v52 = vand.u32 2147483647, %v2479_v22  ;;  %v2683_v8 = vadd.f32 %v2682_v32, %v7627_v51  ;;  %v2713_v6 = vadd.f32 %v2712_v7, %v7628_v55  ;;  %v7629_v14 = vld [vmem:[#allocation113_spill] sm:$0xff]  ;;  %7630 = vst [vmem:[#allocation117_spill] sm:$0xff] %v6052_v18  ;;  %v7631_v22 = vld [vmem:[#allocation134_spill] sm:$0xff]  ;;  %v6061_v7 = vpop.permute.xlu2 %1819 }
 0x1b9   : > { %v2150_v27 = vmul.f32 %v2056_v1, %v5797_v25  ;;  %v2152_v17 = vmul.f32 %v2056_v1, %v5862_v15  ;;  %v3013_v24 = vand.u32 2147483647, %v2997_v4  ;;  %v7632_v51 = vld [vmem:[#allocation89_spill] sm:$0xff]  ;;  %7633 = vst [vmem:[#allocation66_spill] sm:$0xff] %v6061_v7 }
 0x1ba   : > { %v2197_v42 = vadd.f32 %v2196_v60, %v2148_v40  ;;  %v6049_v26 = vsub.f32 1.0, %v2495_v52  ;;  %v2684_v31 = vadd.f32 %v2683_v8, %v7629_v14  ;;  %v2714_v32 = vadd.f32 %v2713_v6, %v7631_v22  ;;  %v7637_v52 = vld [vmem:[#allocation80_spill] sm:$0xff]  ;;  %v7641_v7 = vld [vmem:[#allocation125_spill] sm:$0xff] }
 0x1bb   : > { %v6054_v23 = vadd.f32 %v2167_v29, %v2150_v27  ;;  %v6057_v56 = vsub.f32 1.0, %v3013_v24  ;;  %v3200_v1 = vadd.f32 %v5706_v58, %v7632_v51  ;;  %v7635_v27 = vld [vmem:[#allocation100_spill] sm:$0xff]  ;;  %v7636_v24 = vld [vmem:[#allocation93_spill] sm:$0xff]  ;;  %v701_v55 = vadd.f32 -2.0, %v7637_v52 }
 0x1bc   : > { %v6064_v40 = vadd.f32 %v2197_v42, %v2152_v17  ;;  %v7199_v60 = vmax.f32 %v6049_v26, 0.0  ;;  %v2685_v8 = vadd.f32 %v2684_v31, %v5964_v5  ;;  %v2715_v12 = vadd.f32 %v2714_v32, %v2666_v33  ;;  %v7638_v33 = vld [vmem:[#allocation115_spill] sm:$0xff]  ;;  %v6082_v51 = vpop.permute.xlu0 %1251 }
 0x1bd   : > { %v7200_v29 = vmax.f32 %v6057_v56, 0.0  ;;  %v3201_v6 = vadd.f32 %v3200_v1, %v7635_v27  ;;  %v3230_v4 = vadd.f32 %v5709_v30, %v7636_v24  ;;  %v717_v17 = vadd.f32 -1.0, %v7637_v52  ;;  %v7639_v31 = vld [vmem:[#allocation107_spill] sm:$0xff]  ;;  %7640 = vst [vmem:[#allocation82_spill] sm:$0xff] %v6082_v51 }
 0x1be   : > { %7634 = vst [vmem:[#allocation74_spill] sm:$0xff] %v6064_v40  ;;  %v2574_v58 = vperm.slane %v7199_v60, 0  ;;  %v737_v42 = vand.u32 2147483647, %v7637_v52  ;;  %v749_v32 = vadd.f32 1.0, %v7637_v52 }
 0x1bf   : > { %v3092_v5 = vperm.slane %v7200_v29, 0  ;;  %v3202_v14 = vadd.f32 %v3201_v6, %v7638_v33  ;;  %v3231_v22 = vadd.f32 %v3230_v4, %v7639_v31  ;;  %v705_v27 = vand.u32 2147483647, %v701_v55  ;;  %v6090_v33 = vpop.f32.mrf.mxu3 }
 0x1c0   : > { %v2668_v30 = vmul.f32 %v2574_v58, %v5797_v25  ;;  %v2670_v1 = vmul.f32 %v2574_v58, %v5862_v15  ;;  %v721_v24 = vand.u32 2147483647, %v717_v17  ;;  %v741_v55 = vsub.f32 1.0, %v737_v42 }
 0x1c1   : > { %v3186_v11 = vmul.f32 %v3092_v5, %v5797_v25  ;;  %v3188_v60 = vmul.f32 %v3092_v5, %v5862_v15  ;;  %v3203_v29 = vadd.f32 %v3202_v14, %v5970_v34  ;;  %v3232_v6 = vadd.f32 %v3231_v22, %v7641_v7  ;;  %v7651_v14 = vld [vmem:[#allocation86_spill] sm:$0xff] }
 0x1c2   : > { %v6092_v4 = vadd.f32 %v2685_v8, %v2668_v30  ;;  %v6094_v31 = vadd.f32 %v2715_v12, %v2670_v1  ;;  %v709_v51 = vsub.f32 1.0, %v705_v27  ;;  %v725_v18 = vsub.f32 1.0, %v721_v24  ;;  %v6106_v8 = vpop.permute.xlu1 %1719  ;;  %v7654_v30 = vld [vmem:[#allocation94_spill] sm:$0xff] }
 0x1c3   : > { %v6096_v45 = vadd.f32 %v3203_v29, %v3186_v11  ;;  %v3233_v58 = vadd.f32 %v3232_v6, %v5999_v39  ;;  %v753_v25 = vand.u32 2147483647, %v749_v32  ;;  %v765_v34 = vadd.f32 2.0, %v7637_v52  ;;  %7647 = vst [vmem:[#allocation119_spill] sm:$0xff] %v6106_v8  ;;  %v6114_v29 = vpop.permute.xlu2 %1865  ;;  %v7679_v8 = vld [vmem:[#allocation144_spill] sm:$0xff] }
 0x1c4   : > { %7642 = vst [vmem:[#allocation110_spill] sm:$0xff] %v6092_v4  ;;  %v6099_v17 = vmax.f32 %v709_v51, 0.0  ;;  %v6101_v15 = vmax.f32 %v725_v18, 0.0  ;;  %v1113_v7 = vmul.f32 %v5852_v16, %v6090_v33  ;;  %v6110_v5 = vmax.f32 %v741_v55, 0.0 }
 0x1c5   : > { %7643 = vst [vmem:[#allocation13_spill] sm:$0xff] %v6094_v31  ;;  %v6108_v12 = vadd.f32 %v3233_v58, %v3188_v60  ;;  %v757_v11 = vsub.f32 1.0, %v753_v25  ;;  %v1635_v39 = vmul.f32 %v5854_v37, %v6090_v33  ;;  %v7650_v18 = vrot.slane %v5976_v38, 2 }
 0x1c6   : > { %7644 = vst [vmem:[#allocation120_spill] sm:$0xff] %v6096_v45  ;;  %v769_v52 = vand.u32 2147483647, %v765_v34  ;;  %v1173_v16 = vadd.f32 %v5750_v20, %v1113_v7  ;;  %v6124_v60 = vadd.f32 %v5755_v54, %v7651_v14  ;;  %v7652_v22 = vrot.slane %v5978_v61, 2 }
 0x1c7   : > { %7645 = vst [vmem:[#allocation121_spill] sm:$0xff] %v6099_v17  ;;  %v6119_v42 = vadd.f32 %v7650_v18, %v5976_v38  ;;  %v6131_v37 = vmax.f32 %v757_v11, 0.0  ;;  %v6134_v51 = vadd.f32 %v5823_v13, %v1635_v39  ;;  %v6138_v38 = vadd.f32 %v5772_v2, %v7654_v30  ;;  %v6150_v2 = vpop.permute.xlu0 %1305 }
 0x1c8   : > { %7646 = vst [vmem:[#allocation111_spill] sm:$0xff] %v6101_v15  ;;  %v6129_v32 = vadd.f32 %v7652_v22, %v5978_v61  ;;  %v773_v1 = vsub.f32 1.0, %v769_v52  ;;  %v1177_v20 = vmul.f32 %v1173_v16, %v6099_v17  ;;  %v1231_v54 = vmul.f32 %v1173_v16, %v6101_v15 }
 0x1c9   : > { %7648 = vst [vmem:[#allocation23_spill] sm:$0xff] %v6108_v12  ;;  %v1281_v27 = vmul.f32 %v1173_v16, %v6110_v5  ;;  %v1331_v24 = vmul.f32 %v1173_v16, %v6131_v37  ;;  %v1699_v61 = vmul.f32 %v6134_v51, %v6099_v17  ;;  %v1749_v13 = vmul.f32 %v6134_v51, %v6101_v15 }
 0x1ca   : > { %7649 = vst [vmem:[#allocation22_spill] sm:$0xff] %v6110_v5  ;;  %v1799_v6 = vmul.f32 %v6134_v51, %v6110_v5  ;;  %v6152_v58 = vmax.f32 %v773_v1, 0.0  ;;  %v1185_v55 = vadd.f32 %v1177_v20, %v5900_v44  ;;  %v1239_v25 = vadd.f32 %v1231_v54, %v5903_v9 }
 0x1cb   : > { %7653 = vst [vmem:[#allocation32_spill] sm:$0xff] %v6131_v37  ;;  %v1289_v34 = vadd.f32 %v1281_v27, %v5906_v62  ;;  %v1339_v7 = vadd.f32 %v1331_v24, %v5909_v36  ;;  %v1707_v11 = vadd.f32 %v1699_v61, %v5916_v0  ;;  %v1757_v39 = vadd.f32 %v1749_v13, %v5920_v50  ;;  %v6163_v27 = vpop.permute.xlu1 %1727 }
 0x1cc   : > { %7655 = vst [vmem:[#allocation38_spill] sm:$0xff] %v6152_v58  ;;  %v1807_v18 = vadd.f32 %v1799_v6, %v5924_v43  ;;  %v1186_v52 = vrot.slane %v1185_v55, 4  ;;  %v1240_v14 = vrot.slane %v1239_v25, 4  ;;  %v1381_v30 = vmul.f32 %v1173_v16, %v6152_v58  ;;  %v6180_v6 = vpop.permute.xlu2 %1873 }
 0x1cd   : > { %v1290_v22 = vrot.slane %v1289_v34, 4  ;;  %v1340_v1 = vrot.slane %v1339_v7, 4  ;;  %v1708_v12 = vrot.slane %v1707_v11, 4  ;;  %v1758_v44 = vrot.slane %v1757_v39, 4  ;;  %7656 = vst [vmem:[#allocation33_spill] sm:$0xff] %v6163_v27  ;;  %v7675_v27 = vld [vmem:[#allocation90_spill] sm:$0xff] }
 0x1ce   : > { %v1808_v20 = vrot.slane %v1807_v18, 4  ;;  %v1187_v9 = vadd.f32 %v1186_v52, %v1185_v55  ;;  %v1241_v54 = vadd.f32 %v1240_v14, %v1239_v25  ;;  %v1389_v36 = vadd.f32 %v1381_v30, %v5912_v47 }
 0x1cf   : > { %v1291_v62 = vadd.f32 %v1290_v22, %v1289_v34  ;;  %v7657_v50 = vrot.slane %v5987_v49, 1  ;;  %v7658_v0 = vrot.slane %v5989_v3, 1  ;;  %v7659_v24 = vrot.slane %v5980_v21, 2  ;;  %v6195_v45 = vpop.permute.xlu0 %1359 }
 0x1d0   : > { %v1341_v13 = vadd.f32 %v1340_v1, %v1339_v7  ;;  %v1188_v47 = vrot.slane %v1187_v9, 2  ;;  %v1242_v55 = vrot.slane %v1241_v54, 2  ;;  %v1390_v34 = vrot.slane %v1389_v36, 4  ;;  %7660 = vst [vmem:[#allocation150_spill] sm:$0xff] %v6195_v45  ;;  %v7665_v7 = vld [vmem:[#allocation71_spill] sm:$0xff]  ;;  %v7677_v45 = vld [vmem:[#allocation96_spill] sm:$0xff] }
 0x1d1   : > { %v6168_v43 = vadd.f32 %v7657_v50, %v5987_v49  ;;  %v6173_v16 = vadd.f32 %v7658_v0, %v5989_v3  ;;  %v6178_v61 = vadd.f32 %v7659_v24, %v5980_v21  ;;  %v1292_v25 = vrot.slane %v1291_v62, 2  ;;  %v7664_v0 = vld [vmem:[#allocation123_spill] sm:$0xff] }
 0x1d2   : > { %v1342_v52 = vrot.slane %v1341_v13, 2  ;;  %v6182_v49 = vadd.f32 %v1708_v12, %v1707_v11  ;;  %v6184_v14 = vadd.f32 %v1758_v44, %v1757_v39  ;;  %v6186_v22 = vadd.f32 %v1808_v20, %v1807_v18 }
 0x1d3   : > { %v1189_v3 = vadd.f32 %v1188_v47, %v1187_v9  ;;  %v1243_v30 = vadd.f32 %v1242_v55, %v1241_v54  ;;  %v6188_v50 = vadd.f32 %v1292_v25, %v1291_v62  ;;  %v1391_v21 = vadd.f32 %v1390_v34, %v1389_v36  ;;  %v7666_v55 = vld [vmem:[#allocation88_spill] sm:$0xff]  ;;  %v7667_v47 = vld [vmem:[#allocation37_spill] sm:$0xff] }
 0x1d4   : > { %v6193_v24 = vadd.f32 %v1342_v52, %v1341_v13  ;;  %v7661_v18 = vmax.f32 %v5991_v57, 0.0  ;;  %v1849_v54 = vmul.f32 %v6134_v51, %v6131_v37  ;;  %v7662_v62 = vmax.f32 %v6049_v26, 0.0  ;;  %v7663_v52 = vld [vmem:[#allocation98_spill] sm:$0xff]  ;;  %v7669_v13 = vld [vmem:[#allocation136_spill] sm:$0xff]  ;;  %v7671_v9 = vld [vmem:[#allocation49_spill] sm:$0xff] }
 0x1d5   : > { %v1190_v12 = vrot.slane %v1189_v3, 1  ;;  %v1244_v11 = vrot.slane %v1243_v30, 1  ;;  %v1392_v39 = vrot.slane %v1391_v21, 2  ;;  %v2210_v26 = vadd.f32 %v6138_v38, %v7664_v0  ;;  %v7678_v37 = vld [vmem:[#allocation50_spill] sm:$0xff] }
 0x1d6   : > { %v2057_v44 = vperm.slane %v7661_v18, 1  ;;  %v2575_v36 = vperm.slane %v7662_v62, 1  ;;  %v6212_v34 = vadd.f32 %v1849_v54, %v5928_v41  ;;  %v2180_v18 = vadd.f32 %v6124_v60, %v7663_v52  ;;  %v7670_v52 = vld [vmem:[#allocation95_spill] sm:$0xff] }
 0x1d7   : > { %v6209_v57 = vadd.f32 %v1190_v12, %v1189_v3  ;;  %v6218_v62 = vadd.f32 %v1244_v11, %v1243_v30  ;;  %v6220_v1 = vadd.f32 %v1392_v39, %v1391_v21  ;;  %v2697_v25 = vadd.f32 %v7667_v47, %v7666_v55  ;;  %v6225_v3 = vpop.permute.xlu1 %1773  ;;  %v7668_v12 = vld [vmem:[#allocation128_spill] sm:$0xff]  ;;  %v6232_v30 = vpop.permute.xlu2 %1919  ;;  %v7673_v21 = vld [vmem:[#allocation101_spill] sm:$0xff]  ;;  %v7676_v47 = vld [vmem:[#allocation43_spill] sm:$0xff] }
 0x1d8   : > { %v2151_v20 = vmul.f32 %v2057_v44, %v7665_v7  ;;  %v2153_v41 = vmul.f32 %v2057_v44, %v6090_v33  ;;  %v2181_v54 = vadd.f32 %v2180_v18, %v7668_v12  ;;  %v2211_v60 = vadd.f32 %v2210_v26, %v7669_v13  ;;  %7672 = vst [vmem:[#allocation42_spill] sm:$0xff] %v6232_v30 }
 0x1d9   : > { %v2727_v38 = vadd.f32 %v7671_v9, %v7670_v52  ;;  %v2698_v0 = vadd.f32 %v2697_v25, %v7673_v21  ;;  %v7674_v11 = vmax.f32 %v6057_v56, 0.0  ;;  %v3215_v55 = vadd.f32 %v7676_v47, %v7675_v27  ;;  %v7680_v9 = vld [vmem:[#allocation108_spill] sm:$0xff]  ;;  %v7681_v25 = vld [vmem:[#allocation114_spill] sm:$0xff] }
 0x1da   : > { %v3245_v44 = vadd.f32 %v7678_v37, %v7677_v45  ;;  %v2182_v18 = vadd.f32 %v2181_v54, %v7679_v8  ;;  %v2212_v13 = vadd.f32 %v2211_v60, %v6003_v63  ;;  %v2669_v26 = vmul.f32 %v2575_v36, %v7665_v7  ;;  %v7684_v45 = vld [vmem:[#allocation137_spill] sm:$0xff]  ;;  %v6255_v37 = vpop.permute.xlu0 %1715  ;;  %v7685_v60 = vld [vmem:[#allocation116_spill] sm:$0xff] }
 0x1db   : > { %v3093_v39 = vperm.slane %v7674_v11, 1  ;;  %v2728_v12 = vadd.f32 %v2727_v38, %v7680_v9  ;;  %v2671_v52 = vmul.f32 %v2575_v36, %v6090_v33  ;;  %v2699_v21 = vadd.f32 %v2698_v0, %v7681_v25  ;;  %v7682_v11 = vld [vmem:[#allocation102_spill] sm:$0xff]  ;;  %v7686_v38 = vld [vmem:[#allocation109_spill] sm:$0xff]  ;;  %v7687_v9 = vld [vmem:[#allocation39_spill] sm:$0xff] }
 0x1dc   : > { %v3216_v30 = vadd.f32 %v3215_v55, %v7682_v11  ;;  %v6249_v27 = vadd.f32 %v2182_v18, %v2151_v20  ;;  %v6251_v47 = vadd.f32 %v2212_v13, %v2153_v41  ;;  %v3246_v0 = vadd.f32 %v3245_v44, %v7686_v38  ;;  %v7688_v55 = vld [vmem:[#allocation72_spill] sm:$0xff]  ;;  %v7689_v18 = vld [vmem:[#allocation65_spill] sm:$0xff] }
 0x1dd   : > { %v3187_v56 = vmul.f32 %v3093_v39, %v7665_v7  ;;  %v2729_v8 = vadd.f32 %v2728_v12, %v7684_v45  ;;  %v3189_v63 = vmul.f32 %v3093_v39, %v6090_v33  ;;  %v2700_v54 = vadd.f32 %v2699_v21, %v5974_v46 }
 0x1de   : > { %7683 = vst [vmem:[#allocation53_spill] sm:$0xff] %v6251_v47  ;;  %v3217_v36 = vadd.f32 %v3216_v30, %v7685_v60  ;;  %v2214_v7 = vmul.f32 %v6054_v23, %v7687_v9  ;;  %v2215_v41 = vmul.f32 %v6249_v27, %v7688_v55  ;;  %v2216_v13 = vmul.f32 %v6064_v40, %v7689_v18  ;;  %v7691_v30 = vld [vmem:[#allocation126_spill] sm:$0xff] }
 0x1df   : > { %v2730_v20 = vadd.f32 %v2729_v8, %v6007_v48  ;;  %v2217_v33 = vmul.f32 %v6251_v47, %v6099_v17  ;;  %v6269_v39 = vadd.f32 %v2700_v54, %v2669_v26  ;;  %v3247_v44 = vadd.f32 %v3246_v0, %v7691_v30  ;;  %v6286_v60 = vpop.permute.xlu1 %1815 }
 0x1e0   : > { %v3218_v46 = vadd.f32 %v3217_v36, %v5985_v35  ;;  %v2732_v12 = vmul.f32 %v6092_v4, %v7687_v9  ;;  %v2218_v48 = vadd.f32 %v2216_v13, %v2214_v7  ;;  %v2734_v11 = vmul.f32 %v6094_v31, %v7689_v18  ;;  %v7694_v35 = vld [vmem:[#allocation18_spill] sm:$0xff]  ;;  %v6292_v7 = vpop.permute.xlu2 %1927 }
 0x1e1   : > { %7690 = vst [vmem:[#allocation64_spill] sm:$0xff] %v6269_v39  ;;  %v6275_v25 = vadd.f32 %v2730_v20, %v2671_v52  ;;  %v2225_v21 = vadd.f32 %v2217_v33, %v2215_v41  ;;  %v3248_v8 = vadd.f32 %v3247_v44, %v6010_v10  ;;  %v2733_v26 = vmul.f32 %v6269_v39, %v7688_v55  ;;  %v7698_v20 = vld [vmem:[#allocation59_spill] sm:$0xff] }
 0x1e2   : > { %v6279_v45 = vadd.f32 %v3218_v46, %v3187_v56  ;;  %v1212_v54 = vmul.f32 %v7694_v35, %v6168_v43  ;;  %v2219_v36 = vrot.slane %v2218_v48, 4  ;;  %v6290_v0 = vadd.f32 %v2734_v11, %v2732_v12  ;;  %7696 = vst [vmem:[#allocation62_spill] sm:$0xff] %v6292_v7 }
 0x1e3   : > { %7692 = vst [vmem:[#allocation54_spill] sm:$0xff] %v6275_v25  ;;  %v2226_v52 = vrot.slane %v2225_v21, 4  ;;  %v2735_v38 = vmul.f32 %v6275_v25, %v6099_v17  ;;  %v6294_v56 = vadd.f32 %v3248_v8, %v3189_v63  ;;  %v1213_v10 = vmul.f32 %v7694_v35, %v6209_v57 }
 0x1e4   : > { %7693 = vst [vmem:[#allocation24_spill] sm:$0xff] %v6279_v45  ;;  %v1262_v41 = vmul.f32 %v7698_v20, %v6173_v16  ;;  %v1263_v13 = vmul.f32 %v7698_v20, %v6218_v62  ;;  %v7699_v33 = vrot.slane %v6182_v49, 2  ;;  %v2220_v30 = vadd.f32 %v2219_v36, %v2218_v48 }
 0x1e5   : > { %7695 = vst [vmem:[#allocation34_spill] sm:$0xff] %v6290_v0  ;;  %v2227_v44 = vadd.f32 %v2226_v52, %v2225_v21  ;;  %v6305_v12 = vadd.f32 %v2735_v38, %v2733_v26  ;;  %v7701_v8 = vrot.slane %v6012_v19, 1  ;;  %v1394_v20 = vrot.slane %v6220_v1, 1  ;;  %v6319_v26 = vpop.permute.xlu0 %1769 }
 0x1e6   : > { %7697 = vst [vmem:[#allocation76_spill] sm:$0xff] %v6294_v56  ;;  %v1711_v46 = vadd.f32 %v7699_v33, %v6182_v49  ;;  %v1270_v11 = vadd.f32 %v1262_v41, %v1212_v54  ;;  %v1271_v63 = vadd.f32 %v1263_v13, %v1213_v10  ;;  %v7702_v56 = vrot.slane %v6188_v50, 1  ;;  %v7703_v54 = vld [vmem:[#allocation40_spill] sm:$0xff] }
 0x1e7   : > { %7700 = vst [vmem:[#allocation148_spill] sm:$0xff] %v6305_v12  ;;  %v6310_v35 = vadd.f32 %v7701_v8, %v6012_v19  ;;  %v1858_v49 = vrot.slane %v6212_v34, 4  ;;  %v2221_v48 = vrot.slane %v2220_v30, 2  ;;  %v2228_v21 = vrot.slane %v2227_v44, 2 }
 0x1e8   : > { %v6315_v17 = vadd.f32 %v7702_v56, %v6188_v50  ;;  %v7704_v52 = vrot.slane %v6014_v53, 1  ;;  %v7705_v50 = vrot.slane %v6193_v24, 1  ;;  %v1712_v10 = vrot.slane %v1711_v46, 1 }
 0x1e9   : > { %v1312_v36 = vmul.f32 %v7703_v54, %v6310_v35  ;;  %v7706_v41 = vrot.slane %v6184_v14, 2  ;;  %v2222_v33 = vadd.f32 %v2221_v48, %v2220_v30  ;;  %v2229_v8 = vadd.f32 %v2228_v21, %v2227_v44 }
 0x1ea   : > { %v1313_v19 = vmul.f32 %v7703_v54, %v6315_v17  ;;  %v6328_v38 = vadd.f32 %v7704_v52, %v6014_v53  ;;  %v6333_v56 = vadd.f32 %v7705_v50, %v6193_v24  ;;  %v7707_v54 = vld [vmem:[#allocation28_spill] sm:$0xff]  ;;  %v7708_v52 = vrot.slane %v6028_v59, 4 }
 0x1eb   : > { %v1761_v13 = vadd.f32 %v7706_v41, %v6184_v14  ;;  %v1320_v18 = vadd.f32 %v1312_v36, %v1270_v11  ;;  %v1859_v50 = vadd.f32 %v1858_v49, %v6212_v34  ;;  %v2223_v9 = vrot.slane %v2222_v33, 1 }
 0x1ec   : > { %v1321_v45 = vadd.f32 %v1313_v19, %v1271_v63  ;;  %v1362_v55 = vmul.f32 %v7707_v54, %v6328_v38  ;;  %v1363_v53 = vmul.f32 %v7707_v54, %v6333_v56  ;;  %v1852_v24 = vadd.f32 %v7708_v52, %v6028_v59  ;;  %v6354_v63 = vpop.permute.xlu1 %1827 }
 0x1ed   : > { %v2230_v7 = vrot.slane %v2229_v8, 1  ;;  %v7709_v30 = vrot.slane %v6047_v28, 1  ;;  %v6352_v11 = vadd.f32 %v1394_v20, %v6220_v1  ;;  %7710 = vst [vmem:[#allocation124_spill] sm:$0xff] %v6354_v63  ;;  %v1762_v48 = vrot.slane %v1761_v13, 1 }
 0x1ee   : > { %v1370_v12 = vadd.f32 %v1362_v55, %v1320_v18  ;;  %v1371_v14 = vadd.f32 %v1363_v53, %v1321_v45  ;;  %v7711_v59 = vrot.slane %v6186_v22, 2  ;;  %v6359_v34 = vadd.f32 %v2223_v9, %v2222_v33  ;;  %v2242_v55 = vpop.permute.xlu2 %2241  ;;  %v7712_v18 = vld [vmem:[#allocation51_spill] sm:$0xff]  ;;  %v6391_v53 = vpop.permute.xlu0 %1823 }
 0x1ef   : > { %v6349_v44 = vadd.f32 %v7709_v30, %v6047_v28  ;;  %v6361_v49 = vadd.f32 %v2230_v7, %v2229_v8  ;;  %v1413_v28 = vmul.f32 %v7712_v18, %v6352_v11  ;;  %v7713_v1 = vrot.slane %v6119_v42, 1 }
 0x1f0   : > { %v1811_v21 = vadd.f32 %v7711_v59, %v6186_v22  ;;  %v6372_v36 = vadd.f32 %v1712_v10, %v1711_v46  ;;  %v1853_v19 = vrot.slane %v1852_v24, 2  ;;  %v1860_v22 = vrot.slane %v1859_v50, 2  ;;  %v7717_v59 = vld [vmem:[#allocation44_spill] sm:$0xff] }
 0x1f1   : > { %v1412_v45 = vmul.f32 %v7712_v18, %v6349_v44  ;;  %v6370_v20 = vadd.f32 %v7713_v1, %v6119_v42  ;;  %v6375_v9 = vmul.f32 %v2242_v55, %v6359_v34  ;;  %v6378_v7 = vmul.f32 %v2242_v55, %v6361_v49 }
 0x1f2   : > { %v1421_v33 = vadd.f32 %v1413_v28, %v1371_v14  ;;  %v1731_v54 = vmul.f32 %v6255_v37, %v6372_v36  ;;  %v7716_v42 = vrot.slane %v6129_v32, 1  ;;  %v6389_v10 = vadd.f32 %v1762_v48, %v1761_v13  ;;  %v7718_v48 = vld [vmem:[#allocation63_spill] sm:$0xff]  ;;  %v7719_v28 = vld [vmem:[#allocation8_spill] sm:$0xff] }
 0x1f3   : > { %7714 = vst [vmem:[#allocation131_spill] sm:$0xff] %v6375_v9  ;;  %v1420_v41 = vadd.f32 %v1412_v45, %v1370_v12  ;;  %v1730_v8 = vmul.f32 %v6255_v37, %v6370_v20  ;;  %v1805_v12 = vrot.slane %v6178_v61, 1  ;;  %v1812_v14 = vrot.slane %v1811_v21, 1 }
 0x1f4   : > { %7715 = vst [vmem:[#allocation77_spill] sm:$0xff] %v6378_v7  ;;  %v6387_v46 = vadd.f32 %v7716_v42, %v6129_v32  ;;  %v1739_v30 = vadd.f32 %v1731_v54, %v1421_v33  ;;  %v1781_v37 = vmul.f32 %v7717_v59, %v6389_v10  ;;  %v1854_v18 = vadd.f32 %v1853_v19, %v1852_v24  ;;  %v7720_v54 = vld [vmem:[#allocation81_spill] sm:$0xff]  ;;  %v7722_v19 = vld [vmem:[#allocation30_spill] sm:$0xff] }
 0x1f5   : > { %v1738_v52 = vadd.f32 %v1730_v8, %v1420_v41  ;;  %v6399_v45 = vadd.f32 %v1805_v12, %v6178_v61  ;;  %v6401_v32 = vadd.f32 %v1812_v14, %v1811_v21  ;;  %v1861_v13 = vadd.f32 %v1860_v22, %v1859_v50  ;;  %v7721_v42 = vld [vmem:[#allocation21_spill] sm:$0xff]  ;;  %v7723_v21 = vld [vmem:[#allocation52_spill] sm:$0xff]  ;;  %v6413_v50 = vpop.permute.xlu1 %1869 }
 0x1f6   : > { %v1780_v55 = vmul.f32 %v7717_v59, %v6387_v46  ;;  %v1896_v1 = vmul.f32 %v7719_v28, %v7718_v48  ;;  %v1789_v33 = vadd.f32 %v1781_v37, %v1739_v30  ;;  %v1855_v8 = vrot.slane %v1854_v18, 1  ;;  %v7724_v28 = vld [vmem:[#allocation47_spill] sm:$0xff] }
 0x1f7   : > { %v1897_v7 = vmul.f32 %v7721_v42, %v7720_v54  ;;  %v1830_v9 = vmul.f32 %v6286_v60, %v6399_v45  ;;  %v1831_v24 = vmul.f32 %v6286_v60, %v6401_v32  ;;  %v1862_v61 = vrot.slane %v1861_v13, 1 }
 0x1f8   : > { %v1788_v41 = vadd.f32 %v1780_v55, %v1738_v52  ;;  %v1898_v12 = vmul.f32 %v7723_v21, %v7722_v19  ;;  %v6415_v22 = vadd.f32 %v1855_v8, %v1854_v18  ;;  %v1899_v52 = vmul.f32 %v6134_v51, %v6152_v58  ;;  %v7725_v21 = vld [vmem:[#allocation58_spill] sm:$0xff]  ;;  %v7726_v51 = vld [vmem:[#allocation31_spill] sm:$0xff] }
 0x1f9   : > { %v1839_v14 = vadd.f32 %v1831_v24, %v1789_v33  ;;  %v6419_v59 = vadd.f32 %v1862_v61, %v1861_v13  ;;  %v2264_v42 = vmul.f32 %v6054_v23, %v7724_v28  ;;  %v2265_v19 = vmul.f32 %v6249_v27, %v7725_v21  ;;  %v6437_v24 = vpop.permute.xlu0 %1877 }
 0x1fa   : > { %v1838_v30 = vadd.f32 %v1830_v9, %v1788_v41  ;;  %v1900_v55 = vadd.f32 %v1898_v12, %v1896_v1  ;;  %v1880_v37 = vmul.f32 %v6114_v29, %v6415_v22  ;;  %v1907_v60 = vadd.f32 %v1899_v52, %v1897_v7  ;;  %7727 = vst [vmem:[#allocation45_spill] sm:$0xff] %v6437_v24 }
 0x1fb   : > { %v1881_v18 = vmul.f32 %v6114_v29, %v6419_v59  ;;  %v2266_v9 = vmul.f32 %v6064_v40, %v7726_v51  ;;  %v2267_v13 = vmul.f32 %v6251_v47, %v6101_v15  ;;  %v2782_v7 = vmul.f32 %v6092_v4, %v7724_v28 }
 0x1fc   : > { %v1901_v8 = vrot.slane %v1900_v55, 4  ;;  %v1888_v1 = vadd.f32 %v1880_v37, %v1838_v30  ;;  %v1908_v41 = vrot.slane %v1907_v60, 4  ;;  %v2783_v33 = vmul.f32 %v6269_v39, %v7725_v21  ;;  %v7728_v37 = vld [vmem:[#allocation75_spill] sm:$0xff] }
 0x1fd   : > { %v1889_v61 = vadd.f32 %v1881_v18, %v1839_v14  ;;  %v2268_v29 = vadd.f32 %v2266_v9, %v2264_v42  ;;  %v2275_v52 = vadd.f32 %v2267_v13, %v2265_v19  ;;  %v2784_v54 = vmul.f32 %v6094_v31, %v7726_v51  ;;  %v2284_v51 = vpop.permute.xlu2 %2283 }
 0x1fe   : > { %v1902_v12 = vadd.f32 %v1901_v8, %v1900_v55  ;;  %v1909_v58 = vadd.f32 %v1908_v41, %v1907_v60  ;;  %v2785_v30 = vmul.f32 %v6275_v25, %v6101_v15  ;;  %v1216_v48 = vmul.f32 %v7728_v37, %v6168_v43  ;;  %v7731_v60 = vld [vmem:[#allocation17_spill] sm:$0xff]  ;;  %v1916_v41 = vpop.permute.xlu1 %1915 }
 0x1ff   : > { %v2269_v63 = vrot.slane %v2268_v29, 4  ;;  %v2276_v0 = vrot.slane %v2275_v52, 4  ;;  %v1217_v21 = vmul.f32 %v7728_v37, %v6209_v57  ;;  %v6447_v55 = vadd.f32 %v2784_v54, %v2782_v7 }
 0x200   : > { %v1903_v28 = vrot.slane %v1902_v12, 2  ;;  %v1910_v14 = vrot.slane %v1909_v58, 2  ;;  %v6449_v19 = vadd.f32 %v2785_v30, %v2783_v33  ;;  %v1266_v42 = vmul.f32 %v7731_v60, %v6173_v16 }
 0x201   : > { %7729 = vst [vmem:[#allocation55_spill] sm:$0xff] %v6447_v55  ;;  %v2270_v8 = vadd.f32 %v2269_v63, %v2268_v29  ;;  %v2277_v9 = vadd.f32 %v2276_v0, %v2275_v52  ;;  %v1267_v13 = vmul.f32 %v7731_v60, %v6218_v62  ;;  %v1316_v33 = vmul.f32 %v6150_v2, %v6310_v35  ;;  %v2234_v29 = vpop.permute.xlu0 %2233 }
 0x202   : > { %7730 = vst [vmem:[#allocation138_spill] sm:$0xff] %v6449_v19  ;;  %v1904_v18 = vadd.f32 %v1903_v28, %v1902_v12  ;;  %v1911_v15 = vadd.f32 %v1910_v14, %v1909_v58  ;;  %v1274_v24 = vadd.f32 %v1266_v42, %v1216_v48  ;;  %v1317_v0 = vmul.f32 %v6150_v2, %v6315_v17 }
 0x203   : > { %v2271_v37 = vrot.slane %v2270_v8, 2  ;;  %v2278_v40 = vrot.slane %v2277_v9, 2  ;;  %v1275_v54 = vadd.f32 %v1267_v13, %v1217_v21  ;;  %v2248_v42 = vmul.f32 %v2234_v29, %v6359_v34 }
 0x204   : > { %v1905_v47 = vrot.slane %v1904_v18, 1  ;;  %v1912_v7 = vrot.slane %v1911_v15, 1  ;;  %v1324_v58 = vadd.f32 %v1316_v33, %v1274_v24 }
 0x205   : > { %v2272_v28 = vadd.f32 %v2271_v37, %v2270_v8  ;;  %v2279_v63 = vadd.f32 %v2278_v40, %v2277_v9  ;;  %v1325_v21 = vadd.f32 %v1317_v0, %v1275_v54  ;;  %v2249_v9 = vmul.f32 %v2234_v29, %v6361_v49  ;;  %v7738_v29 = vld [vmem:[#allocation83_spill] sm:$0xff] }
 0x206   : > { %v6457_v30 = vadd.f32 %v1905_v47, %v1904_v18  ;;  %v6461_v12 = vadd.f32 %v1912_v7, %v1911_v15  ;;  %v7732_v47 = vld [vmem:[#allocation26_spill] sm:$0xff]  ;;  %v1924_v0 = vpop.permute.xlu1 %1923 }
 0x207   : > { %v2273_v52 = vrot.slane %v2272_v28, 1  ;;  %v2280_v14 = vrot.slane %v2279_v63, 1  ;;  %v1366_v18 = vmul.f32 %v7732_v47, %v6328_v38  ;;  %v1367_v15 = vmul.f32 %v7732_v47, %v6333_v56 }
 0x208   : > { %v1930_v48 = vmul.f32 %v1916_v41, %v6457_v30  ;;  %v1931_v60 = vmul.f32 %v1916_v41, %v6461_v12  ;;  %v1834_v47 = vmul.f32 %v6391_v53, %v6399_v45 }
 0x209   : > { %v6468_v8 = vadd.f32 %v2273_v52, %v2272_v28  ;;  %v6470_v2 = vadd.f32 %v2280_v14, %v2279_v63  ;;  %v1374_v13 = vadd.f32 %v1366_v18, %v1324_v58  ;;  %v1375_v7 = vadd.f32 %v1367_v15, %v1325_v21  ;;  %v2296_v63 = vpop.permute.xlu2 %2295 }
 0x20a   : > { %v1938_v40 = vadd.f32 %v1930_v48, %v1888_v1  ;;  %v1939_v24 = vadd.f32 %v1931_v60, %v1889_v61  ;;  %v7735_v1 = vld [vmem:[#allocation117_spill] sm:$0xff]  ;;  %v1734_v14 = vmul.f32 %v7738_v29, %v6370_v20  ;;  %v1784_v60 = vmul.f32 %v6225_v3, %v6387_v46 }
 0x20b   : > { %7733 = vst [vmem:[#allocation85_spill] sm:$0xff] %v6468_v8  ;;  %v2298_v41 = vmul.f32 %v2284_v51, %v6468_v8  ;;  %v2299_v54 = vmul.f32 %v2284_v51, %v6470_v2  ;;  %v1416_v28 = vmul.f32 %v7735_v1, %v6349_v44  ;;  %v1417_v61 = vmul.f32 %v7735_v1, %v6352_v11 }
 0x20c   : > { %7734 = vst [vmem:[#allocation9_spill] sm:$0xff] %v6470_v2  ;;  %v2256_v37 = vadd.f32 %v2248_v42, %v1938_v40  ;;  %v2257_v33 = vadd.f32 %v2249_v9, %v1939_v24  ;;  %v1735_v51 = vmul.f32 %v7738_v29, %v6372_v36  ;;  %v1785_v42 = vmul.f32 %v6225_v3, %v6389_v10 }
 0x20d   : > { %v1424_v58 = vadd.f32 %v1416_v28, %v1374_v13  ;;  %v1425_v21 = vadd.f32 %v1417_v61, %v1375_v7  ;;  %v1835_v40 = vmul.f32 %v6391_v53, %v6401_v32  ;;  %v1884_v15 = vmul.f32 %v6180_v6, %v6415_v22  ;;  %v7741_v7 = vld [vmem:[#allocation19_spill] sm:$0xff] }
 0x20e   : > { %v6479_v48 = vadd.f32 %v2298_v41, %v2256_v37  ;;  %v6483_v52 = vadd.f32 %v2299_v54, %v2257_v33  ;;  %v1885_v24 = vmul.f32 %v6180_v6, %v6419_v59  ;;  %v1934_v13 = vmul.f32 %v1924_v0, %v6457_v30  ;;  %v7742_v33 = vld [vmem:[#allocation69_spill] sm:$0xff] }
 0x20f   : > { %v1742_v18 = vadd.f32 %v1734_v14, %v1424_v58  ;;  %v1743_v9 = vadd.f32 %v1735_v51, %v1425_v21  ;;  %v1935_v37 = vmul.f32 %v1924_v0, %v6461_v12  ;;  %v6504_v3 = vmul.f32 %v2296_v63, %v6468_v8  ;;  %v7743_v6 = vld [vmem:[#allocation73_spill] sm:$0xff]  ;;  %v7744_v58 = vld [vmem:[#allocation15_spill] sm:$0xff]  ;;  %v7745_v51 = vld [vmem:[#allocation82_spill] sm:$0xff] }
 0x210   : > { %7736 = vst [vmem:[#allocation67_spill] sm:$0xff] %v6479_v48  ;;  %v6507_v54 = vmul.f32 %v2296_v63, %v6470_v2  ;;  %v2832_v53 = vmul.f32 %v6092_v4, %v7741_v7  ;;  %v2833_v1 = vmul.f32 %v6269_v39, %v7742_v33  ;;  %v2834_v61 = vmul.f32 %v6094_v31, %v7743_v6  ;;  %v2238_v48 = vpop.permute.xlu1 %2237 }
 0x211   : > { %7737 = vst [vmem:[#allocation78_spill] sm:$0xff] %v6483_v52  ;;  %v1792_v41 = vadd.f32 %v1784_v60, %v1742_v18  ;;  %v1793_v28 = vadd.f32 %v1785_v42, %v1743_v9  ;;  %v2835_v0 = vmul.f32 %v6275_v25, %v6110_v5  ;;  %v1214_v29 = vmul.f32 %v7744_v58, %v6168_v43  ;;  %v6533_v19 = vpop.permute.xlu2 %2337 }
 0x212   : > { %7739 = vst [vmem:[#allocation11_spill] sm:$0xff] %v6504_v3  ;;  %v1215_v63 = vmul.f32 %v7744_v58, %v6209_v57  ;;  %v1264_v21 = vmul.f32 %v7745_v51, %v6173_v16  ;;  %v1265_v60 = vmul.f32 %v7745_v51, %v6218_v62  ;;  %v6525_v18 = vadd.f32 %v2834_v61, %v2832_v53  ;;  %v7749_v51 = vld [vmem:[#allocation41_spill] sm:$0xff] }
 0x213   : > { %7740 = vst [vmem:[#allocation5_spill] sm:$0xff] %v6507_v54  ;;  %v1842_v14 = vadd.f32 %v1834_v47, %v1792_v41  ;;  %v1843_v42 = vadd.f32 %v1835_v40, %v1793_v28  ;;  %v6527_v9 = vadd.f32 %v2835_v0, %v2833_v1  ;;  %v7748_v54 = vld [vmem:[#allocation149_spill] sm:$0xff]  ;;  %v1364_v40 = vmul.f32 %v7749_v51, %v6328_v38 }
 0x214   : > { %7746 = vst [vmem:[#allocation112_spill] sm:$0xff] %v6525_v18  ;;  %v1314_v3 = vmul.f32 %v7748_v54, %v6310_v35  ;;  %v1272_v47 = vadd.f32 %v1264_v21, %v1214_v29  ;;  %v1273_v41 = vadd.f32 %v1265_v60, %v1215_v63  ;;  %v1315_v58 = vmul.f32 %v7748_v54, %v6315_v17  ;;  %v7759_v18 = vld [vmem:[#allocation20_spill] sm:$0xff] }
 0x215   : > { %7747 = vst [vmem:[#allocation122_spill] sm:$0xff] %v6527_v9  ;;  %v1892_v52 = vadd.f32 %v1884_v15, %v1842_v14  ;;  %v1893_v55 = vadd.f32 %v1885_v24, %v1843_v42  ;;  %v1365_v61 = vmul.f32 %v7749_v51, %v6333_v56  ;;  %v7750_v14 = vld [vmem:[#allocation27_spill] sm:$0xff] }
 0x216   : > { %v1322_v1 = vadd.f32 %v1314_v3, %v1272_v47  ;;  %v1323_v28 = vadd.f32 %v1315_v58, %v1273_v41  ;;  %v1414_v54 = vmul.f32 %v7750_v14, %v6349_v44  ;;  %v1415_v24 = vmul.f32 %v7750_v14, %v6352_v11  ;;  %v2288_v47 = vpop.permute.xlu0 %2287  ;;  %v7752_v41 = vld [vmem:[#allocation66_spill] sm:$0xff] }
 0x217   : > { %v6537_v53 = vadd.f32 %v1934_v13, %v1892_v52  ;;  %v6541_v15 = vadd.f32 %v1935_v37, %v1893_v55  ;;  %v7751_v52 = vld [vmem:[#allocation119_spill] sm:$0xff]  ;;  %v1782_v55 = vmul.f32 %v6319_v26, %v6387_v46  ;;  %v1783_v37 = vmul.f32 %v6319_v26, %v6389_v10 }
 0x218   : > { %v1372_v0 = vadd.f32 %v1364_v40, %v1322_v1  ;;  %v1373_v29 = vadd.f32 %v1365_v61, %v1323_v28  ;;  %v1732_v13 = vmul.f32 %v7751_v52, %v6370_v20  ;;  %v1733_v3 = vmul.f32 %v7751_v52, %v6372_v36 }
 0x219   : > { %v1832_v58 = vmul.f32 %v7752_v41, %v6399_v45  ;;  %v1833_v51 = vmul.f32 %v7752_v41, %v6401_v32  ;;  %v2250_v40 = vmul.f32 %v2238_v48, %v6359_v34  ;;  %v1882_v61 = vmul.f32 %v6413_v50, %v6415_v22  ;;  %v6565_v14 = vpop.permute.xlu2 %2383  ;;  %v7757_v41 = vld [vmem:[#allocation29_spill] sm:$0xff] }
 0x21a   : > { %v1422_v63 = vadd.f32 %v1414_v54, %v1372_v0  ;;  %v1423_v21 = vadd.f32 %v1415_v24, %v1373_v29  ;;  %v2251_v0 = vmul.f32 %v2238_v48, %v6361_v49  ;;  %v6563_v29 = vpop.permute.xlu1 %2245  ;;  %7753 = vst [vmem:[#allocation127_spill] sm:$0xff] %v6565_v14  ;;  %v1883_v26 = vmul.f32 %v6413_v50, %v6419_v59  ;;  %v7754_v54 = vld [vmem:[#allocation42_spill] sm:$0xff]  ;;  %v7760_v14 = vld [vmem:[#allocation32_spill] sm:$0xff] }
 0x21b   : > { %v1932_v24 = vmul.f32 %v7754_v54, %v6457_v30  ;;  %v2315_v48 = vmul.f32 %v6249_v27, %v7742_v33  ;;  %v2300_v50 = vmul.f32 %v2288_v47, %v6468_v8  ;;  %v2882_v9 = vmul.f32 %v6092_v4, %v7757_v41 }
 0x21c   : > { %v1740_v60 = vadd.f32 %v1732_v13, %v1422_v63  ;;  %v1741_v42 = vadd.f32 %v1733_v3, %v1423_v21  ;;  %v2301_v63 = vmul.f32 %v2288_v47, %v6470_v2  ;;  %v2314_v21 = vmul.f32 %v6054_v23, %v7741_v7  ;;  %v7755_v3 = vld [vmem:[#allocation74_spill] sm:$0xff] }
 0x21e   : > { %v1790_v1 = vadd.f32 %v1782_v55, %v1740_v60  ;;  %v1791_v28 = vadd.f32 %v1783_v37, %v1741_v42  ;;  %v2316_v60 = vmul.f32 %v7755_v3, %v7743_v6  ;;  %v1933_v42 = vmul.f32 %v7754_v54, %v6461_v12  ;;  %v7756_v55 = vld [vmem:[#allocation53_spill] sm:$0xff] }
 0x21f   : > { %v2317_v37 = vmul.f32 %v7756_v55, %v6110_v5  ;;  %v2884_v6 = vmul.f32 %v6094_v31, %v7759_v18  ;;  %v2885_v54 = vmul.f32 %v6275_v25, %v7760_v14  ;;  %v3893_v5 = vmov 23  }
 0x220   : > { %v1840_v52 = vadd.f32 %v1832_v58, %v1790_v1  ;;  %v1841_v13 = vadd.f32 %v1833_v51, %v1791_v28  ;;  %v2318_v51 = vadd.f32 %v2316_v60, %v2314_v21  ;;  %v7758_v1 = vld [vmem:[#allocation61_spill] sm:$0xff]  ;;  %3818 = vset.pattern.permute.xlu2 %v3893_v5  ;;  %3817 = vset.pattern.permute.xlu1 %v3893_v5 }
 0x221   : > { %v2883_v28 = vmul.f32 %v6269_v39, %v7758_v1  ;;  %v2325_v33 = vadd.f32 %v2317_v37, %v2315_v48  ;;  %v6600_v48 = vld [vmem:[%s7075_s3 + $0x8] sm:$0xff]  ;;  %v6617_v39 = vpop.permute.xlu2 %2391 }
 0x222   : > { %v1890_v7 = vadd.f32 %v1882_v61, %v1840_v52  ;;  %v1891_v58 = vadd.f32 %v1883_v26, %v1841_v13  ;;  %v2319_v8 = vrot.slane %v2318_v51, 4  ;;  %v7761_v61 = vld [vmem:[#allocation16_spill] sm:$0xff]  ;;  %v6593_v52 = vadd.f32 %v2884_v6, %v2882_v9  ;;  %2955 = vperm.xlu2 %3818, %v6600_v48   ;;  %v6615_v31 = vpop.permute.xlu1 %2291 }
 0x223   : > { %v1218_v26 = vmul.f32 %v7761_v61, %v6168_v43  ;;  %v2326_v21 = vrot.slane %v2325_v33, 4  ;;  %v6595_v13 = vadd.f32 %v2885_v54, %v2883_v28  ;;  %v1219_v5 = vmul.f32 %v7761_v61, %v6209_v57 }
 0x224   : > { %v1940_v47 = vadd.f32 %v1932_v24, %v1890_v7  ;;  %v1941_v2 = vadd.f32 %v1933_v42, %v1891_v58  ;;  %v6606_v7 = vld [vmem:[%s7075_s3] sm:$0xff]  ;;  %v2320_v9 = vadd.f32 %v2319_v8, %v2318_v51  ;;  %v7762_v24 = vld [vmem:[#allocation139_spill] sm:$0xff] }
 0x225   : > { %2951 = vperm.xlu1 %3817, %v6606_v7   ;;  %v1268_v60 = vmul.f32 %v7762_v24, %v6173_v16  ;;  %v2327_v42 = vadd.f32 %v2326_v21, %v2325_v33  ;;  %v1269_v37 = vmul.f32 %v7762_v24, %v6218_v62  ;;  %v7763_v8 = vld [vmem:[#allocation3_spill] sm:$0xff]  ;;  %v7764_v62 = vld [vmem:[#allocation150_spill] sm:$0xff] }
 0x226   : > { %v2258_v43 = vadd.f32 %v2250_v40, %v1940_v47  ;;  %v2259_v6 = vadd.f32 %v2251_v0, %v1941_v2  ;;  %v2321_v54 = vrot.slane %v2320_v9, 2  ;;  %v1318_v2 = vmul.f32 %v7763_v8, %v6310_v35  ;;  %v6632_v35 = vld [vmem:[%s7075_s3 + $0x18] sm:$0x1] }
 0x227   : > { %v1276_v25 = vadd.f32 %v1268_v60, %v1218_v26  ;;  %v2328_v4 = vrot.slane %v2327_v42, 2  ;;  %v1277_v57 = vadd.f32 %v1269_v37, %v1219_v5  ;;  %v1319_v16 = vmul.f32 %v7763_v8, %v6315_v17  ;;  %v7765_v26 = vld [vmem:[#allocation48_spill] sm:$0xff]  ;;  %v7767_v5 = vld [vmem:[#allocation33_spill] sm:$0xff] }
 0x228   : > { %v2308_v58 = vadd.f32 %v2300_v50, %v2258_v43  ;;  %v2309_v28 = vadd.f32 %v2301_v63, %v2259_v6  ;;  %v2322_v40 = vadd.f32 %v2321_v54, %v2320_v9  ;;  %v1368_v0 = vmul.f32 %v7764_v62, %v6328_v38 }
 0x229   : > { %v2329_v33 = vadd.f32 %v2328_v4, %v2327_v42  ;;  %v1326_v50 = vadd.f32 %v1318_v2, %v1276_v25  ;;  %v1327_v51 = vadd.f32 %v1319_v16, %v1277_v57  ;;  %v1369_v47 = vmul.f32 %v7764_v62, %v6333_v56  ;;  %v6638_v4 = vld [vmem:[%s7075_s3 + $0x10] sm:$0xff]  ;;  %v7768_v42 = vld [vmem:[#allocation34_spill] sm:$0xff] }
 0x22a   : > { %v2323_v63 = vrot.slane %v2322_v40, 1  ;;  %v1418_v21 = vmul.f32 %v7765_v26, %v6349_v44  ;;  %2963 = vperm.xlu2 %3818, %v6632_v35   ;;  %7766 = vst [vmem:[#allocation2_spill] sm:$0xff] %v6638_v4  ;;  %v1419_v56 = vmul.f32 %v7765_v26, %v6352_v11  ;;  %v1736_v43 = vmul.f32 %v7767_v5, %v6370_v20  ;;  %v7769_v11 = vld [vmem:[#allocation60_spill] sm:$0xff]  ;;  %v6662_v16 = vpop.permute.xlu1 %2333 }
 0x22b   : > { %v2330_v61 = vrot.slane %v2329_v33, 1  ;;  %v1376_v25 = vadd.f32 %v1368_v0, %v1326_v50  ;;  %v1377_v38 = vadd.f32 %v1369_v47, %v1327_v51  ;;  %v1737_v60 = vmul.f32 %v7767_v5, %v6372_v36  ;;  %v7770_v36 = vld [vmem:[#allocation148_spill] sm:$0xff]  ;;  %v7772_v51 = vld [vmem:[#allocation45_spill] sm:$0xff] }
 0x22c   : > { %v6641_v17 = vadd.f32 %v2323_v63, %v2322_v40  ;;  %v2737_v37 = vrot.slane %v7768_v42, 4  ;;  %v1786_v57 = vmul.f32 %v7769_v11, %v6387_v46  ;;  %v1787_v2 = vmul.f32 %v7769_v11, %v6389_v10  ;;  %v7778_v5 = vld [vmem:[#allocation24_spill] sm:$0xff]  ;;  %v7781_v11 = vld [vmem:[#allocation121_spill] sm:$0xff] }
 0x22d   : > { %2959 = vperm.xlu1 %3817, %v6638_v4   ;;  %v6645_v44 = vadd.f32 %v2330_v61, %v2329_v33  ;;  %v1426_v9 = vadd.f32 %v1418_v21, %v1376_v25  ;;  %v1427_v24 = vadd.f32 %v1419_v56, %v1377_v38  ;;  %v6664_v33 = vpop.permute.xlu2 %2437  ;;  %v2744_v62 = vrot.slane %v7770_v36, 4  ;;  %v7773_v61 = vld [vmem:[#allocation62_spill] sm:$0xff]  ;;  %v7777_v56 = vld [vmem:[#allocation72_spill] sm:$0xff] }
 0x22e   : > { %v2350_v6 = vmul.f32 %v6533_v19, %v6641_v17  ;;  %v1886_v47 = vmul.f32 %v7772_v51, %v6415_v22  ;;  %v1887_v10 = vmul.f32 %v7772_v51, %v6419_v59  ;;  %v1936_v26 = vmul.f32 %v7773_v61, %v6457_v30 }
 0x22f   : > { %v2351_v54 = vmul.f32 %v6533_v19, %v6645_v44  ;;  %v1744_v8 = vadd.f32 %v1736_v43, %v1426_v9  ;;  %v1745_v20 = vadd.f32 %v1737_v60, %v1427_v24  ;;  %v7771_v19 = vld [vmem:[#allocation124_spill] sm:$0xff]  ;;  %v7774_v21 = vmov 4   ;;  %v7779_v24 = vld [vmem:[#allocation65_spill] sm:$0xff]  ;;  %v7780_v60 = vld [vmem:[#allocation23_spill] sm:$0xff] }
 0x230   : > { %v6658_v40 = vadd.f32 %v2350_v6, %v2308_v58  ;;  %v1836_v63 = vmul.f32 %v7771_v19, %v6399_v45  ;;  %v1837_v46 = vmul.f32 %v7771_v19, %v6401_v32  ;;  %v2254_v45 = vmul.f32 %v6563_v29, %v6359_v34  ;;  %v7783_v19 = vld [vmem:[#allocation131_spill] sm:$0xff] }
 0x231   : > { %v6667_v0 = vadd.f32 %v2351_v54, %v2309_v28  ;;  %v1794_v58 = vadd.f32 %v1786_v57, %v1744_v8  ;;  %v1795_v50 = vadd.f32 %v1787_v2, %v1745_v20  ;;  %v1937_v28 = vmul.f32 %v7773_v61, %v6461_v12  ;;  %v7775_v12 = vld [vmem:[#allocation39_spill] sm:$0xff]  ;;  %v7782_v57 = vld [vmem:[#allocation76_spill] sm:$0xff] }
 0x232   : > { %v2255_v32 = vmul.f32 %v6563_v29, %v6361_v49  ;;  %3821 = vset.pattern.permute.xlu2 %v7774_v21  ;;  %v2364_v22 = vmul.f32 %v6054_v23, %v7757_v41  ;;  %v2365_v59 = vmul.f32 %v6249_v27, %v7758_v1  ;;  %v2366_v30 = vmul.f32 %v7755_v3, %v7759_v18  ;;  %v7776_v49 = vld [vmem:[#allocation120_spill] sm:$0xff] }
 0x233   : > { %v1844_v25 = vadd.f32 %v1836_v63, %v1794_v58  ;;  %v1845_v38 = vadd.f32 %v1837_v46, %v1795_v50  ;;  %v2367_v34 = vmul.f32 %v7756_v55, %v7760_v14  ;;  %v3250_v29 = vmul.f32 %v7776_v49, %v7775_v12  ;;  %3277 = vperm.xlu2 %3821, %v6638_v4   ;;  %v7784_v46 = vld [vmem:[#allocation77_spill] sm:$0xff] }
 0x234   : > { %v3251_v43 = vmul.f32 %v7778_v5, %v7777_v56  ;;  %v3252_v54 = vmul.f32 %v7780_v60, %v7779_v24  ;;  %v3253_v8 = vmul.f32 %v7782_v57, %v7781_v11  ;;  %v2368_v20 = vadd.f32 %v2366_v30, %v2364_v22  ;;  %v7788_v12 = vld [vmem:[#allocation9_spill] sm:$0xff]  ;;  %v6721_v30 = vpop.permute.xlu1 %2345  ;;  %v7789_v24 = vld [vmem:[#allocation47_spill] sm:$0xff]  ;;  %v7790_v11 = vld [vmem:[#allocation58_spill] sm:$0xff] }
 0x235   : > { %3820 = vset.pattern.permute.xlu1 %v7774_v21  ;;  %v1894_v6 = vadd.f32 %v1886_v47, %v1844_v25  ;;  %v1895_v9 = vadd.f32 %v1887_v10, %v1845_v38  ;;  %v2375_v2 = vadd.f32 %v2367_v34, %v2365_v59  ;;  %v2260_v63 = vadd.f32 %v7783_v19, %v6537_v53  ;;  %v7787_v25 = vld [vmem:[#allocation85_spill] sm:$0xff] }
 0x236   : > { %3273 = vperm.xlu1 %3820, %v6600_v48   ;;  %v2261_v58 = vadd.f32 %v7784_v46, %v6541_v15  ;;  %v6709_v47 = vadd.f32 %v3252_v54, %v3250_v29  ;;  %v6711_v10 = vadd.f32 %v3253_v8, %v3251_v43  ;;  %v2369_v61 = vrot.slane %v2368_v20, 4  ;;  %v6723_v15 = vpop.permute.xlu2 %2445 }
 0x237   : > { %v1944_v50 = vadd.f32 %v1936_v26, %v1894_v6  ;;  %v1945_v51 = vadd.f32 %v1937_v28, %v1895_v9  ;;  %v2376_v21 = vrot.slane %v2375_v2, 4  ;;  %v2302_v38 = vmul.f32 %v6615_v31, %v7787_v25  ;;  %v2342_v26 = vpop.permute.xlu0 %2341 }
 0x238   : > { %7785 = vst [vmem:[#allocation103_spill] sm:$0xff] %v6709_v47  ;;  %v2303_v22 = vmul.f32 %v6615_v31, %v7788_v12  ;;  %v2370_v28 = vadd.f32 %v2369_v61, %v2368_v20  ;;  %v2738_v43 = vadd.f32 %v2737_v37, %v7768_v42  ;;  %v2745_v6 = vadd.f32 %v2744_v62, %v7770_v36  ;;  %v7811_v47 = vld [vmem:[#allocation11_spill] sm:$0xff] }
 0x239   : > { %7786 = vst [vmem:[#allocation57_spill] sm:$0xff] %v6711_v10  ;;  %v6717_v59 = vadd.f32 %v2254_v45, %v1944_v50  ;;  %v6719_v53 = vadd.f32 %v2255_v32, %v1945_v51  ;;  %v2377_v34 = vadd.f32 %v2376_v21, %v2375_v2  ;;  %v2310_v29 = vadd.f32 %v2302_v38, %v2260_v63  ;;  %v7792_v2 = vld [vmem:[#allocation55_spill] sm:$0xff]  ;;  %v7793_v63 = vld [vmem:[#allocation138_spill] sm:$0xff] }
 0x23a   : > { %v2311_v56 = vadd.f32 %v2303_v22, %v2261_v58  ;;  %v2352_v9 = vmul.f32 %v2342_v26, %v6641_v17  ;;  %v2353_v31 = vmul.f32 %v2342_v26, %v6645_v44  ;;  %v2371_v45 = vrot.slane %v2370_v28, 2  ;;  %v7794_v58 = vld [vmem:[#allocation31_spill] sm:$0xff] }
 0x23b   : > { %v2378_v32 = vrot.slane %v2377_v34, 2  ;;  %v3300_v54 = vmul.f32 %v7776_v49, %v7789_v24  ;;  %v3301_v8 = vmul.f32 %v7778_v5, %v7790_v11  ;;  %v7791_v20 = vmov 9   ;;  %v7795_v51 = vld [vmem:[#allocation111_spill] sm:$0xff] }
 0x23c   : > { %3822 = vset.pattern.permute.xlu2 %v7791_v20  ;;  %v2787_v19 = vrot.slane %v7792_v2, 4  ;;  %v2794_v42 = vrot.slane %v7793_v63, 4  ;;  %v2360_v37 = vadd.f32 %v2352_v9, %v2310_v29  ;;  %v2361_v36 = vadd.f32 %v2353_v31, %v2311_v56  ;;  %v7798_v9 = vld [vmem:[#allocation67_spill] sm:$0xff] }
 0x23d   : > { %3319 = vperm.xlu2 %3822, %v6606_v7   ;;  %v2372_v62 = vadd.f32 %v2371_v45, %v2370_v28  ;;  %v2379_v46 = vadd.f32 %v2378_v32, %v2377_v34  ;;  %v3302_v50 = vmul.f32 %v7780_v60, %v7794_v58  ;;  %v3303_v61 = vmul.f32 %v7782_v57, %v7795_v51  ;;  %v7799_v45 = vld [vmem:[#allocation78_spill] sm:$0xff]  ;;  %v7801_v58 = vld [vmem:[#allocation81_spill] sm:$0xff] }
 0x23e   : > { %3281 = vperm.xlu1 %3820, %v6632_v35   ;;  %v2739_v21 = vrot.slane %v2738_v43, 2  ;;  %v2746_v25 = vrot.slane %v2745_v6, 2  ;;  %v2348_v38 = vmul.f32 %v6662_v16, %v6641_v17  ;;  %v2349_v12 = vmul.f32 %v6662_v16, %v6645_v44  ;;  %v7800_v16 = vld [vmem:[#allocation63_spill] sm:$0xff] }
 0x23f   : > { %v2373_v22 = vrot.slane %v2372_v62, 1  ;;  %v2380_v26 = vrot.slane %v2379_v46, 1  ;;  %v6746_v29 = vadd.f32 %v3302_v50, %v3300_v54  ;;  %v6748_v28 = vadd.f32 %v3303_v61, %v3301_v8  ;;  %v6766_v50 = vpop.permute.xlu1 %2387 }
 0x240   : > { %v2788_v34 = vadd.f32 %v2787_v19, %v7792_v2  ;;  %v2795_v56 = vadd.f32 %v2794_v42, %v7793_v63  ;;  %v6753_v31 = vadd.f32 %v2348_v38, %v7798_v9  ;;  %v6756_v32 = vadd.f32 %v2349_v12, %v7799_v45  ;;  %v6768_v2 = vpop.permute.xlu2 %2759  ;;  %v7802_v19 = vld [vmem:[#allocation127_spill] sm:$0xff]  ;;  %v7804_v9 = vld [vmem:[#allocation38_spill] sm:$0xff] }
 0x241   : > { %7796 = vst [vmem:[#allocation70_spill] sm:$0xff] %v6746_v29  ;;  %v6758_v24 = vadd.f32 %v2373_v22, %v2372_v62  ;;  %v6760_v11 = vadd.f32 %v2380_v26, %v2379_v46  ;;  %v2414_v54 = vmul.f32 %v6054_v23, %v7800_v16  ;;  %v2415_v8 = vmul.f32 %v6249_v27, %v7801_v58  ;;  %v7803_v22 = vld [vmem:[#allocation30_spill] sm:$0xff]  ;;  %v2396_v58 = vpop.permute.xlu0 %2395 }
 0x242   : > { %7797 = vst [vmem:[#allocation135_spill] sm:$0xff] %v6748_v28  ;;  %v2740_v46 = vadd.f32 %v2739_v21, %v2738_v43  ;;  %v2747_v27 = vadd.f32 %v2746_v25, %v2745_v6  ;;  %v2789_v51 = vrot.slane %v2788_v34, 2  ;;  %v2796_v61 = vrot.slane %v2795_v56, 2  ;;  %v7806_v43 = vld [vmem:[#allocation122_spill] sm:$0xff]  ;;  %v7807_v21 = vld [vmem:[#allocation19_spill] sm:$0xff] }
 0x243   : > { %v6772_v63 = vmul.f32 %v7802_v19, %v6758_v24  ;;  %v6776_v42 = vmul.f32 %v7802_v19, %v6760_v11  ;;  %v2402_v62 = vmul.f32 %v6617_v39, %v6758_v24  ;;  %v2403_v23 = vmul.f32 %v6617_v39, %v6760_v11  ;;  %v7805_v19 = vld [vmem:[#allocation112_spill] sm:$0xff] }
 0x244   : > { %v2416_v26 = vmul.f32 %v7755_v3, %v7803_v22  ;;  %v2417_v45 = vmul.f32 %v7756_v55, %v7804_v9  ;;  %v2837_v39 = vrot.slane %v7805_v19, 4  ;;  %v2844_v6 = vrot.slane %v7806_v43, 4  ;;  %v7809_v3 = vld [vmem:[#allocation73_spill] sm:$0xff]  ;;  %v7810_v55 = vld [vmem:[#allocation22_spill] sm:$0xff] }
 0x245   : > { %v6783_v38 = vadd.f32 %v2402_v62, %v2360_v37  ;;  %v6785_v12 = vadd.f32 %v2403_v23, %v2361_v36  ;;  %3331 = vperm.xlu2 %3822, %v6632_v35   ;;  %v3350_v25 = vmul.f32 %v7776_v49, %v7807_v21  ;;  %v3352_v23 = vmul.f32 %v7780_v60, %v7809_v3  ;;  %v7812_v21 = vld [vmem:[#allocation5_spill] sm:$0xff] }
 0x246   : > { %3824 = vset.pattern.permute.xlu1 %v7791_v20  ;;  %v7808_v20 = vld [vmem:[#allocation69_spill] sm:$0xff]  ;;  %v2418_v36 = vadd.f32 %v2416_v26, %v2414_v54  ;;  %v2425_v62 = vadd.f32 %v2417_v45, %v2415_v8  ;;  %v3353_v28 = vmul.f32 %v7782_v57, %v7810_v55  ;;  %v2741_v29 = vrot.slane %v2740_v46, 1 }
 0x247   : > { %v3351_v37 = vmul.f32 %v7778_v5, %v7808_v20  ;;  %3327 = vperm.xlu1 %3824, %v6638_v4   ;;  %v2748_v10 = vrot.slane %v2747_v27, 1  ;;  %v2312_v9 = vadd.f32 %v7811_v47, %v6717_v59  ;;  %v2313_v22 = vadd.f32 %v7812_v21, %v6719_v53  ;;  %v6815_v55 = vpop.permute.xlu1 %2433 }
 0x248   : > { %v2419_v20 = vrot.slane %v2418_v36, 4  ;;  %v2426_v16 = vrot.slane %v2425_v62, 4  ;;  %v6807_v4 = vadd.f32 %v3352_v23, %v3350_v25  ;;  %v2790_v8 = vadd.f32 %v2789_v51, %v2788_v34  ;;  %v6817_v47 = vpop.permute.xlu2 %2801 }
 0x249   : > { %v6809_v54 = vadd.f32 %v3353_v28, %v3351_v37  ;;  %v2797_v26 = vadd.f32 %v2796_v61, %v2795_v56  ;;  %v2354_v45 = vmul.f32 %v6721_v30, %v6641_v17  ;;  %v2355_v3 = vmul.f32 %v6721_v30, %v6645_v44 }
 0x24a   : > { %v2838_v59 = vadd.f32 %v2837_v39, %v7805_v19  ;;  %v2845_v53 = vadd.f32 %v2844_v6, %v7806_v43  ;;  %v2420_v25 = vadd.f32 %v2419_v20, %v2418_v36  ;;  %v2427_v23 = vadd.f32 %v2426_v16, %v2425_v62 }
 0x24b   : > { %v6821_v28 = vadd.f32 %v2741_v29, %v2740_v46  ;;  %v6823_v34 = vadd.f32 %v2748_v10, %v2747_v27  ;;  %v2362_v56 = vadd.f32 %v2354_v45, %v2312_v9  ;;  %v2363_v51 = vadd.f32 %v2355_v3, %v2313_v22 }
 0x24c   : > { %v2887_v17 = vrot.slane %v6593_v52, 4  ;;  %v2894_v44 = vrot.slane %v6595_v13, 4  ;;  %v2421_v30 = vrot.slane %v2420_v25, 2  ;;  %v2428_v61 = vrot.slane %v2427_v23, 2 }
 0x24d   : > { %v7813_v37 = vmov 14   ;;  %v2791_v21 = vrot.slane %v2790_v8, 1  ;;  %v2798_v19 = vrot.slane %v2797_v26, 1  ;;  %v2404_v39 = vmul.f32 %v2396_v58, %v6758_v24 }
 0x24e   : > { %3826 = vset.pattern.permute.xlu2 %v7813_v37  ;;  %v2405_v16 = vmul.f32 %v2396_v58, %v6760_v11  ;;  %v2839_v10 = vrot.slane %v2838_v59, 2  ;;  %v2846_v29 = vrot.slane %v2845_v53, 2  ;;  %v2422_v46 = vadd.f32 %v2421_v30, %v2420_v25 }
 0x24f   : > { %3825 = vset.pattern.permute.xlu1 %v7813_v37  ;;  %v2429_v27 = vadd.f32 %v2428_v61, %v2427_v23  ;;  %3373 = vperm.xlu2 %3826, %v6600_v48   ;;  %v2412_v22 = vadd.f32 %v2404_v39, %v2362_v56  ;;  %v3400_v43 = vmul.f32 %v7776_v49, %v7757_v41  ;;  %v2442_v23 = vpop.permute.xlu1 %2441 }
 0x250   : > { %3369 = vperm.xlu1 %3825, %v6606_v7   ;;  %v2413_v9 = vadd.f32 %v2405_v16, %v2363_v51  ;;  %v3401_v6 = vmul.f32 %v7778_v5, %v7758_v1  ;;  %v2888_v58 = vadd.f32 %v2887_v17, %v6593_v52  ;;  %v2895_v36 = vadd.f32 %v2894_v44, %v6595_v13  ;;  %v2814_v1 = vpop.permute.xlu2 %2813  ;;  %v2752_v17 = vpop.permute.xlu0 %2751 }
 0x251   : > { %v2423_v62 = vrot.slane %v2422_v46, 1  ;;  %v2430_v20 = vrot.slane %v2429_v27, 1  ;;  %v3402_v45 = vmul.f32 %v7780_v60, %v7759_v18  ;;  %v3403_v3 = vmul.f32 %v7782_v57, %v7760_v14 }
 0x252   : > { %v2400_v25 = vmul.f32 %v6766_v50, %v6758_v24  ;;  %v2401_v41 = vmul.f32 %v6766_v50, %v6760_v11  ;;  %v2840_v56 = vadd.f32 %v2839_v10, %v2838_v59  ;;  %v2847_v52 = vadd.f32 %v2846_v29, %v2845_v53 }
 0x253   : > { %v2424_v51 = vadd.f32 %v2423_v62, %v2422_v46  ;;  %v2431_v13 = vadd.f32 %v2430_v20, %v2429_v27  ;;  %v6847_v44 = vadd.f32 %v3402_v45, %v3400_v43  ;;  %v6849_v30 = vadd.f32 %v3403_v3, %v3401_v6 }
 0x254   : > { %v2408_v18 = vadd.f32 %v2400_v25, %v6658_v40  ;;  %v2409_v14 = vadd.f32 %v2401_v41, %v6667_v0  ;;  %v2766_v24 = vmul.f32 %v2752_v17, %v6821_v28  ;;  %v2767_v61 = vmul.f32 %v2752_v17, %v6823_v34 }
 0x255   : > { %v2450_v11 = vmul.f32 %v6664_v33, %v2424_v51  ;;  %v2451_v50 = vmul.f32 %v6664_v33, %v2431_v13  ;;  %v2889_v59 = vrot.slane %v2888_v58, 2  ;;  %v2896_v53 = vrot.slane %v2895_v36, 2 }
 0x256   : > { %v2454_v37 = vmul.f32 %v6723_v15, %v2424_v51  ;;  %v2455_v39 = vmul.f32 %v6723_v15, %v2431_v13  ;;  %v6859_v16 = vadd.f32 %v2791_v21, %v2790_v8  ;;  %v6861_v10 = vadd.f32 %v2798_v19, %v2797_v26 }
 0x257   : > { %v2770_v40 = vmul.f32 %v6768_v2, %v6821_v28  ;;  %v2771_v0 = vmul.f32 %v6768_v2, %v6823_v34  ;;  %v7814_v29 = vmov 19   ;;  %v2841_v46 = vrot.slane %v2840_v56, 1  ;;  %v2756_v6 = vpop.permute.xlu1 %2755 }
 0x258   : > { %3828 = vset.pattern.permute.xlu2 %v7814_v29  ;;  %v2848_v33 = vrot.slane %v2847_v52, 1  ;;  %v6868_v27 = vadd.f32 %v2454_v37, %v2412_v22  ;;  %v6870_v43 = vadd.f32 %v2455_v39, %v2413_v9  ;;  %3381 = vperm.xlu1 %3825, %v6632_v35   ;;  %v2406_v15 = vadd.f32 %v6772_v63, %v6753_v31  ;;  %v2856_v62 = vpop.permute.xlu2 %2855 }
 0x259   : > { %v2407_v8 = vadd.f32 %v6776_v42, %v6756_v32  ;;  %v2448_v26 = vmul.f32 %v6815_v55, %v2424_v51  ;;  %v2449_v2 = vmul.f32 %v6815_v55, %v2431_v13  ;;  %3419 = vperm.xlu2 %3828, %v6606_v7   ;;  %v2890_v21 = vadd.f32 %v2889_v59, %v2888_v58 }
 0x25a   : > { %v2897_v19 = vadd.f32 %v2896_v53, %v2895_v36  ;;  %v2816_v22 = vmul.f32 %v6817_v47, %v6859_v16  ;;  %v2817_v9 = vmul.f32 %v6817_v47, %v6861_v10  ;;  %v2452_v20 = vmul.f32 %v2442_v23, %v2424_v51  ;;  %v2806_v51 = vpop.permute.xlu0 %2805 }
 0x25b   : > { %v2456_v31 = vadd.f32 %v2448_v26, %v2406_v15  ;;  %v2457_v63 = vadd.f32 %v2449_v2, %v2407_v8  ;;  %v2453_v32 = vmul.f32 %v2442_v23, %v2431_v13  ;;  %v6884_v42 = vadd.f32 %v2841_v46, %v2840_v56  ;;  %v7816_v15 = vld [vmem:[#allocation63_spill] sm:$0xff] }
 0x25c   : > { %v6886_v45 = vadd.f32 %v2848_v33, %v2847_v52  ;;  %v2822_v55 = vmul.f32 %v2814_v1, %v6859_v16  ;;  %v2823_v58 = vmul.f32 %v2814_v1, %v6861_v10  ;;  %v2460_v25 = vadd.f32 %v2452_v20, %v6783_v38 }
 0x25d   : > { %v2774_v36 = vadd.f32 %v2766_v24, %v2456_v31  ;;  %v2775_v3 = vadd.f32 %v2767_v61, %v2457_v63  ;;  %v2461_v47 = vadd.f32 %v2453_v32, %v6785_v12  ;;  %v2891_v41 = vrot.slane %v2890_v21, 1  ;;  %v7820_v63 = vld [vmem:[#allocation30_spill] sm:$0xff] }
 0x25e   : > { %v2898_v17 = vrot.slane %v2897_v19, 1  ;;  %v2458_v59 = vadd.f32 %v2450_v11, %v2408_v18  ;;  %v2459_v53 = vadd.f32 %v2451_v50, %v2409_v14  ;;  %v2768_v52 = vmul.f32 %v2756_v6, %v6821_v28  ;;  %v7815_v18 = vld [vmem:[#allocation2_spill] sm:$0xff] }
 0x25f   : > { %v6892_v23 = vadd.f32 %v2816_v22, %v2774_v36  ;;  %v6894_v56 = vadd.f32 %v2817_v9, %v2775_v3  ;;  %v2769_v13 = vmul.f32 %v2756_v6, %v6823_v34  ;;  %v2818_v1 = vmul.f32 %v2806_v51, %v6859_v16  ;;  %v2764_v39 = vpop.permute.xlu1 %2763 }
 0x260   : > { %v2819_v24 = vmul.f32 %v2806_v51, %v6861_v10  ;;  %3829 = vset.pattern.permute.xlu1 %v7814_v29  ;;  %v2868_v38 = vmul.f32 %v2856_v62, %v6884_v42  ;;  %v2869_v12 = vmul.f32 %v2856_v62, %v6886_v45  ;;  %v2776_v14 = vadd.f32 %v2768_v52, %v2458_v59  ;;  %v2902_v46 = vpop.permute.xlu2 %2901  ;;  %v7817_v29 = vld [vmem:[#allocation110_spill] sm:$0xff]  ;;  %v7819_v62 = vld [vmem:[#allocation64_spill] sm:$0xff] }
 0x261   : > { %3427 = vperm.xlu2 %3828, %v7815_v18   ;;  %3423 = vperm.xlu1 %3829, %v6600_v48   ;;  %v2777_v61 = vadd.f32 %v2769_v13, %v2459_v53  ;;  %v2778_v11 = vadd.f32 %v2770_v40, %v2460_v25  ;;  %v6905_v50 = vadd.f32 %v2891_v41, %v2890_v21  ;;  %v3894_v26 = vmov 24   ;;  %v7822_v25 = vld [vmem:[#allocation38_spill] sm:$0xff] }
 0x262   : > { %v6907_v37 = vadd.f32 %v2898_v17, %v2897_v19  ;;  %v2779_v33 = vadd.f32 %v2771_v0, %v2461_v47  ;;  %v2932_v8 = vmul.f32 %v7817_v29, %v7816_v15  ;;  %3833 = vset.pattern.permute.xlu0 %v3894_v26  ;;  %v2826_v2 = vadd.f32 %v2818_v1, %v2776_v14  ;;  %v7818_v19 = vld [vmem:[#allocation81_spill] sm:$0xff]  ;;  %v2860_v1 = vpop.permute.xlu0 %2859 }
 0x263   : > { %v2827_v22 = vadd.f32 %v2819_v24, %v2777_v61  ;;  %v2772_v9 = vmul.f32 %v2764_v39, %v6821_v28  ;;  %v2773_v6 = vmul.f32 %v2764_v39, %v6823_v34  ;;  %v2916_v40 = vmul.f32 %v2902_v46, %v6905_v50  ;;  %v7821_v0 = vld [vmem:[#allocation13_spill] sm:$0xff]  ;;  %v7823_v34 = vld [vmem:[#allocation54_spill] sm:$0xff] }
 0x264   : > { %v2917_v21 = vmul.f32 %v2902_v46, %v6907_v37  ;;  %v2933_v31 = vmul.f32 %v7819_v62, %v7818_v19  ;;  %v2934_v20 = vmul.f32 %v7821_v0, %v7820_v63  ;;  %v6919_v32 = vadd.f32 %v2868_v38, %v2826_v2 }
 0x265   : > { %v6921_v36 = vadd.f32 %v2869_v12, %v2827_v22  ;;  %v2780_v3 = vadd.f32 %v2772_v9, %v6868_v27  ;;  %v2781_v28 = vadd.f32 %v2773_v6, %v6870_v43  ;;  %v2935_v47 = vmul.f32 %v7823_v34, %v7822_v25 }
 0x266   : > { %v2936_v41 = vadd.f32 %v2934_v20, %v2932_v8  ;;  %v3450_v17 = vmul.f32 %v7776_v49, %v7816_v15  ;;  %v3451_v59 = vmul.f32 %v7778_v5, %v7818_v19  ;;  %v3452_v52 = vmul.f32 %v7780_v60, %v7820_v63 }
 0x267   : > { %v2830_v53 = vadd.f32 %v2822_v55, %v2780_v3  ;;  %v2831_v51 = vadd.f32 %v2823_v58, %v2781_v28  ;;  %v3453_v27 = vmul.f32 %v7782_v57, %v7822_v25  ;;  %v2943_v43 = vadd.f32 %v2935_v47, %v2933_v31  ;;  %v2810_v49 = vpop.permute.xlu1 %2809 }
 0x268   : > { %v2937_v13 = vrot.slane %v2936_v41, 4  ;;  %v6935_v24 = vadd.f32 %v3452_v52, %v3450_v17  ;;  %v2910_v5 = vpop.permute.xlu2 %2909  ;;  %v2820_v58 = vmul.f32 %v2810_v49, %v6859_v16  ;;  %v2821_v57 = vmul.f32 %v2810_v49, %v6861_v10 }
 0x269   : > { %3832 = vset.pattern.permute.xlu2 %v3894_v26  ;;  %3831 = vset.pattern.permute.xlu1 %v3894_v26  ;;  %v6937_v38 = vadd.f32 %v3453_v27, %v3451_v59  ;;  %v2944_v60 = vrot.slane %v2943_v43, 4  ;;  %v2920_v12 = vmul.f32 %v2910_v5, %v6905_v50  ;;  %v2921_v14 = vmul.f32 %v2910_v5, %v6907_v37 }
 0x26a   : > { %3473 = vperm.xlu2 %3832, %v6600_v48   ;;  %3469 = vperm.xlu1 %3831, %v6606_v7   ;;  %v2938_v55 = vadd.f32 %v2937_v13, %v2936_v41  ;;  %v2870_v39 = vmul.f32 %v2860_v1, %v6884_v42  ;;  %v2871_v46 = vmul.f32 %v2860_v1, %v6886_v45  ;;  %v2914_v28 = vpop.permute.xlu0 %2913 }
 0x26b   : > { %v2945_v61 = vadd.f32 %v2944_v60, %v2943_v43  ;;  %v2828_v48 = vadd.f32 %v2820_v58, %v2778_v11  ;;  %v2829_v15 = vadd.f32 %v2821_v57, %v2779_v33  ;;  %v2922_v52 = vmul.f32 %v2914_v28, %v6905_v50  ;;  %v7827_v60 = vld [vmem:[#allocation135_spill] sm:$0xff] }
 0x26c   : > { %v2939_v7 = vrot.slane %v2938_v55, 2  ;;  %v2923_v27 = vmul.f32 %v2914_v28, %v6907_v37  ;;  %v3312_v58 = vrot.slane %v7827_v60, 4 }
 0x26d   : > { %v2946_v29 = vrot.slane %v2945_v61, 2  ;;  %v2878_v8 = vadd.f32 %v2870_v39, %v2828_v48  ;;  %v2879_v26 = vadd.f32 %v2871_v46, %v2829_v15 }
 0x26e   : > { %v2940_v22 = vadd.f32 %v2939_v7, %v2938_v55  ;;  %v7826_v55 = vld [vmem:[#allocation70_spill] sm:$0xff] }
 0x26f   : > { %v6947_v2 = vadd.f32 %v2920_v12, %v2878_v8  ;;  %v6949_v16 = vadd.f32 %v2921_v14, %v2879_v26  ;;  %v2852_v10 = vpop.permute.xlu1 %2851  ;;  %v2947_v9 = vadd.f32 %v2946_v29, %v2945_v61  ;;  %v3313_v29 = vadd.f32 %v3312_v58, %v7827_v60 }
 0x270   : > { %v2866_v6 = vmul.f32 %v2852_v10, %v6884_v42  ;;  %v2867_v11 = vmul.f32 %v2852_v10, %v6886_v45  ;;  %v2941_v62 = vrot.slane %v2940_v22, 1 }
 0x271   : > { %v2948_v31 = vrot.slane %v2947_v9, 1 }
 0x272   : > { %3481 = vperm.xlu2 %3832, %v6632_v35   ;;  %3477 = vperm.xlu1 %3831, %v7815_v18   ;;  %v2874_v33 = vadd.f32 %v2866_v6, %v6892_v23  ;;  %v2875_v19 = vadd.f32 %v2867_v11, %v6894_v56  ;;  %v7824_v35 = vld [vmem:[#allocation103_spill] sm:$0xff]  ;;  %v7825_v18 = vld [vmem:[#allocation57_spill] sm:$0xff]  ;;  %v6963_v25 = vadd.f32 %v2941_v62, %v2940_v22  ;;  %v3314_v6 = vrot.slane %v3313_v29, 2 }
 0x273   : > { %v3255_v20 = vrot.slane %v7824_v35, 4  ;;  %v3262_v3 = vrot.slane %v7825_v18, 4  ;;  %v6965_v34 = vadd.f32 %v2948_v31, %v2947_v9 }
 0x274   : > { %v6957_v63 = vadd.f32 %v2916_v40, %v2874_v33  ;;  %v6959_v0 = vadd.f32 %v2917_v21, %v2875_v19  ;;  %v3315_v19 = vadd.f32 %v3314_v6, %v3313_v29 }
 0x275   : > { %v3256_v40 = vadd.f32 %v3255_v20, %v7824_v35  ;;  %v3263_v21 = vadd.f32 %v3262_v3, %v7825_v18  ;;  %v3270_v35 = vpop.permute.xlu0 %3269 }
 0x276   : > { %v3316_v18 = vrot.slane %v3315_v19, 1 }
 0x277   : > { %v2864_v47 = vpop.permute.xlu1 %2863  ;;  %v3257_v5 = vrot.slane %v3256_v40, 2 }
 0x278   : > { %v2872_v23 = vmul.f32 %v2864_v47, %v6884_v42  ;;  %v2873_v56 = vmul.f32 %v2864_v47, %v6886_v45  ;;  %v3264_v42 = vrot.slane %v3263_v21, 2  ;;  %v3305_v45 = vrot.slane %v7826_v55, 4 }
 0x279   : > { %v3258_v39 = vadd.f32 %v3257_v5, %v3256_v40  ;;  %v3362_v40 = vrot.slane %v6809_v54, 4 }
 0x27a   : > { %v2880_v13 = vadd.f32 %v2872_v23, %v2830_v53  ;;  %v2881_v43 = vadd.f32 %v2873_v56, %v2831_v51  ;;  %v3265_v46 = vadd.f32 %v3264_v42, %v3263_v21  ;;  %v3306_v7 = vadd.f32 %v3305_v45, %v7826_v55 }
 0x27b   : > { %v3259_v10 = vrot.slane %v3258_v39, 1  ;;  %v3355_v56 = vrot.slane %v6807_v4, 4  ;;  %v3363_v42 = vadd.f32 %v3362_v40, %v6809_v54 }
 0x27c   : > { %v2956_v41 = vpop.permute.xlu2 %2955  ;;  %v2930_v1 = vadd.f32 %v2922_v52, %v2880_v13  ;;  %v2931_v49 = vadd.f32 %v2923_v27, %v2881_v43  ;;  %v3266_v22 = vrot.slane %v3265_v46, 1  ;;  %v3307_v9 = vrot.slane %v3306_v7, 2 }
 0x27d   : > { %v2968_v17 = vmul.f32 %v2956_v41, %v6963_v25  ;;  %v2969_v59 = vmul.f32 %v2956_v41, %v6965_v34  ;;  %v6989_v11 = vadd.f32 %v3259_v10, %v3258_v39  ;;  %v3356_v5 = vadd.f32 %v3355_v56, %v6807_v4 }
 0x27e   : > { %v6991_v33 = vadd.f32 %v3266_v22, %v3265_v46 }
 0x27f   : > { %v2906_v57 = vpop.permute.xlu1 %2905  ;;  %v3284_v41 = vmul.f32 %v3270_v35, %v6989_v11  ;;  %v3357_v58 = vrot.slane %v3356_v5, 2 }
 0x280   : > { %v2918_v14 = vmul.f32 %v2906_v57, %v6905_v50  ;;  %v2919_v61 = vmul.f32 %v2906_v57, %v6907_v37  ;;  %v3285_v23 = vmul.f32 %v3270_v35, %v6991_v33  ;;  %v3364_v57 = vrot.slane %v3363_v42, 2 }
 0x281   : > { %v3358_v46 = vadd.f32 %v3357_v58, %v3356_v5 }
 0x282   : > { %v2926_v51 = vadd.f32 %v2918_v14, %v6919_v32  ;;  %v2927_v15 = vadd.f32 %v2919_v61, %v6921_v36  ;;  %v3308_v36 = vadd.f32 %v3307_v9, %v3306_v7  ;;  %v3365_v54 = vadd.f32 %v3364_v57, %v3363_v42 }
 0x284   : > { %v2964_v12 = vpop.permute.xlu2 %2963  ;;  %v2976_v50 = vadd.f32 %v2968_v17, %v2926_v51  ;;  %v2977_v37 = vadd.f32 %v2969_v59, %v2927_v15  ;;  %v3309_v20 = vrot.slane %v3308_v36, 1  ;;  %v7003_v17 = vadd.f32 %v3316_v18, %v3315_v19 }
 0x285   : > { %v2972_v48 = vmul.f32 %v2964_v12, %v6963_v25  ;;  %v2973_v53 = vmul.f32 %v2964_v12, %v6965_v34  ;;  %v3366_v51 = vrot.slane %v3365_v54, 1  ;;  %v3405_v15 = vrot.slane %v6847_v44, 4 }
 0x286   : > { %v7001_v21 = vadd.f32 %v3309_v20, %v3308_v36 }
 0x287   : > { %v6985_v8 = vadd.f32 %v2972_v48, %v2930_v1  ;;  %v6987_v26 = vadd.f32 %v2973_v53, %v2931_v49  ;;  %v3324_v48 = vpop.permute.xlu0 %3323  ;;  %v3359_v53 = vrot.slane %v3358_v46, 1  ;;  %v7027_v22 = vadd.f32 %v3366_v51, %v3365_v54 }
 0x288   : > { %v3406_v36 = vadd.f32 %v3405_v15, %v6847_v44 }
 0x289   : > { %v7025_v10 = vadd.f32 %v3359_v53, %v3358_v46 }
 0x28d   : > { %v3278_v32 = vpop.permute.xlu2 %3277 }
 0x28e   : > { %v3288_v62 = vmul.f32 %v3278_v32, %v6989_v11  ;;  %v3289_v31 = vmul.f32 %v3278_v32, %v6991_v33 }
 0x297   : > { %v2952_v3 = vpop.permute.xlu1 %2951  ;;  %v3320_v27 = vpop.permute.xlu2 %3319 }
 0x298   : > { %v2966_v28 = vmul.f32 %v2952_v3, %v6963_v25  ;;  %v2967_v47 = vmul.f32 %v2952_v3, %v6965_v34  ;;  %v3334_v1 = vmul.f32 %v3320_v27, %v7001_v21  ;;  %v3335_v49 = vmul.f32 %v3320_v27, %v7003_v17 }
 0x29a   : > { %v2974_v59 = vadd.f32 %v2966_v28, %v6957_v63  ;;  %v2975_v52 = vadd.f32 %v2967_v47, %v6959_v0  ;;  %v3407_v47 = vrot.slane %v3406_v36, 2 }
 0x29c   : > { %v3292_v13 = vadd.f32 %v3284_v41, %v2974_v59  ;;  %v3293_v43 = vadd.f32 %v3285_v23, %v2975_v52  ;;  %v3408_v40 = vadd.f32 %v3407_v47, %v3406_v36 }
 0x29e   : > { %v7011_v55 = vadd.f32 %v3334_v1, %v3292_v13  ;;  %v7013_v45 = vadd.f32 %v3335_v49, %v3293_v43  ;;  %v3378_v43 = vpop.permute.xlu0 %3377  ;;  %v3409_v1 = vrot.slane %v3408_v40, 1 }
 0x29f   : > { %v2960_v60 = vpop.permute.xlu1 %2959  ;;  %v3332_v61 = vpop.permute.xlu2 %3331 }
 0x2a0   : > { %v2970_v63 = vmul.f32 %v2960_v60, %v6963_v25  ;;  %v2971_v0 = vmul.f32 %v2960_v60, %v6965_v34  ;;  %v3412_v25 = vrot.slane %v6849_v30, 4  ;;  %v3340_v44 = vmul.f32 %v3332_v61, %v7001_v21 }
 0x2a2   : > { %v2978_v12 = vadd.f32 %v2970_v63, %v6947_v2  ;;  %v2979_v14 = vadd.f32 %v2971_v0, %v6949_v16  ;;  %v3336_v2 = vmul.f32 %v3324_v48, %v7001_v21  ;;  %v3337_v16 = vmul.f32 %v3324_v48, %v7003_v17 }
 0x2a3   : > { %v3413_v19 = vadd.f32 %v3412_v25, %v6849_v30  ;;  %v3341_v30 = vmul.f32 %v3332_v61, %v7003_v17  ;;  %v3410_v63 = vadd.f32 %v3409_v1, %v3408_v40 }
 0x2a4   : > { %v3296_v39 = vadd.f32 %v3288_v62, %v2978_v12  ;;  %v3297_v4 = vadd.f32 %v3289_v31, %v2979_v14 }
 0x2a5   : > { %v3414_v41 = vrot.slane %v3413_v19, 2 }
 0x2a7   : > { %v3415_v59 = vadd.f32 %v3414_v41, %v3413_v19 }
 0x2a8   : > { %v3274_v7 = vpop.permute.xlu1 %3273 }
 0x2a9   : > { %v3286_v34 = vmul.f32 %v3274_v7, %v6989_v11  ;;  %v3287_v29 = vmul.f32 %v3274_v7, %v6991_v33  ;;  %v3374_v32 = vpop.permute.xlu2 %3373  ;;  %v3416_v49 = vrot.slane %v3415_v59, 1 }
 0x2aa   : > { %v3386_v35 = vmul.f32 %v3374_v32, %v7025_v10  ;;  %v3387_v20 = vmul.f32 %v3374_v32, %v7027_v22  ;;  %v3432_v32 = vpop.permute.xlu0 %3431 }
 0x2ab   : > { %v3294_v9 = vadd.f32 %v3286_v34, %v2976_v50  ;;  %v3295_v6 = vadd.f32 %v3287_v29, %v2977_v37  ;;  %v3417_v0 = vadd.f32 %v3416_v49, %v3415_v59 }
 0x2ad   : > { %v3344_v62 = vadd.f32 %v3336_v2, %v3294_v9  ;;  %v3345_v31 = vadd.f32 %v3337_v16, %v3295_v6 }
 0x2af   : > { %v7033_v18 = vadd.f32 %v3386_v35, %v3344_v62  ;;  %v7035_v3 = vadd.f32 %v3387_v20, %v3345_v31  ;;  %v3440_v20 = vmul.f32 %v3432_v32, %v3410_v63 }
 0x2b0   : > { %v3282_v28 = vpop.permute.xlu1 %3281 }
 0x2b1   : > { %v3290_v50 = vmul.f32 %v3282_v28, %v6989_v11  ;;  %v3291_v37 = vmul.f32 %v3282_v28, %v6991_v33  ;;  %v3455_v11 = vrot.slane %v6935_v24, 4  ;;  %v3462_v33 = vrot.slane %v6937_v38, 4 }
 0x2b2   : > { %v3441_v28 = vmul.f32 %v3432_v32, %v3417_v0 }
 0x2b3   : > { %v3298_v23 = vadd.f32 %v3290_v50, %v6985_v8  ;;  %v3299_v56 = vadd.f32 %v3291_v37, %v6987_v26  ;;  %v3420_v52 = vpop.permute.xlu2 %3419  ;;  %v3388_v8 = vmul.f32 %v3378_v43, %v7025_v10  ;;  %v3389_v26 = vmul.f32 %v3378_v43, %v7027_v22 }
 0x2b4   : > { %v3456_v14 = vadd.f32 %v3455_v11, %v6935_v24  ;;  %v3463_v61 = vadd.f32 %v3462_v33, %v6937_v38 }
 0x2b5   : > { %v3348_v27 = vadd.f32 %v3340_v44, %v3298_v23  ;;  %v3349_v13 = vadd.f32 %v3341_v30, %v3299_v56 }
 0x2b6   : > { %v3457_v15 = vrot.slane %v3456_v14, 2  ;;  %v3464_v25 = vrot.slane %v3463_v61, 2 }
 0x2b8   : > { %v3458_v2 = vadd.f32 %v3457_v15, %v3456_v14  ;;  %v3465_v16 = vadd.f32 %v3464_v25, %v3463_v61 }
 0x2b9   : > { %v3328_v5 = vpop.permute.xlu1 %3327 }
 0x2ba   : > { %v3338_v42 = vmul.f32 %v3328_v5, %v7001_v21  ;;  %v3339_v60 = vmul.f32 %v3328_v5, %v7003_v17  ;;  %v3459_v36 = vrot.slane %v3458_v2, 1  ;;  %v3466_v19 = vrot.slane %v3465_v16, 1 }
 0x2bb   : > { %v3428_v12 = vpop.permute.xlu2 %3427 }
 0x2bc   : > { %v3346_v58 = vadd.f32 %v3338_v42, %v3296_v39  ;;  %v3347_v57 = vadd.f32 %v3339_v60, %v3297_v4  ;;  %v3438_v48 = vmul.f32 %v3428_v12, %v3410_v63  ;;  %v3439_v53 = vmul.f32 %v3428_v12, %v3417_v0 }
 0x2bd   : > { %v3434_v39 = vmul.f32 %v3420_v52, %v3410_v63  ;;  %v3435_v4 = vmul.f32 %v3420_v52, %v3417_v0  ;;  %v3467_v41 = vadd.f32 %v3466_v19, %v3465_v16 }
 0x2be   : > { %v3396_v46 = vadd.f32 %v3388_v8, %v3346_v58  ;;  %v3397_v54 = vadd.f32 %v3389_v26, %v3347_v57 }
 0x2c0   : > { %v3446_v21 = vadd.f32 %v3438_v48, %v3396_v46  ;;  %v3447_v51 = vadd.f32 %v3439_v53, %v3397_v54 }
 0x2c2   : > { %v3370_v17 = vpop.permute.xlu1 %3369 }
 0x2c3   : > { %v3384_v7 = vmul.f32 %v3370_v17, %v7025_v10  ;;  %v3385_v34 = vmul.f32 %v3370_v17, %v7027_v22 }
 0x2c4   : > { %v3474_v38 = vpop.permute.xlu2 %3473 }
 0x2c5   : > { %v3392_v29 = vadd.f32 %v3384_v7, %v7011_v55  ;;  %v3393_v24 = vadd.f32 %v3385_v34, %v7013_v45  ;;  %v3460_v55 = vadd.f32 %v3459_v36, %v3458_v2  ;;  %v3487_v43 = vmul.f32 %v3474_v38, %v3467_v41 }
 0x2c7   : > { %v3442_v9 = vadd.f32 %v3434_v39, %v3392_v29  ;;  %v3443_v6 = vadd.f32 %v3435_v4, %v3393_v24  ;;  %v3486_v52 = vmul.f32 %v3474_v38, %v3460_v55 }
 0x2ca   : > { %v3382_v62 = vpop.permute.xlu1 %3381 }
 0x2cb   : > { %v3390_v31 = vmul.f32 %v3382_v62, %v7025_v10  ;;  %v3391_v35 = vmul.f32 %v3382_v62, %v7027_v22 }
 0x2cc   : > { %v3482_v47 = vpop.permute.xlu2 %3481 }
 0x2cd   : > { %v3398_v45 = vadd.f32 %v3390_v31, %v3348_v27  ;;  %v3399_v50 = vadd.f32 %v3391_v35, %v3349_v13  ;;  %v3490_v30 = vmul.f32 %v3482_v47, %v3460_v55  ;;  %v3491_v23 = vmul.f32 %v3482_v47, %v3467_v41 }
 0x2cf   : > { %v3448_v37 = vadd.f32 %v3440_v20, %v3398_v45  ;;  %v3449_v44 = vadd.f32 %v3441_v28, %v3399_v50 }
 0x2d1   : > { %v3498_v56 = vadd.f32 %v3490_v30, %v3448_v37  ;;  %v3499_v10 = vadd.f32 %v3491_v23, %v3449_v44 }
 0x2d3   : > { %3506 = vst [vmem:[%s318_s14 + $0x30] sm:$0x1] %v3498_v56  ;;  %v3424_v22 = vpop.permute.xlu1 %3423 }
 0x2d4   : > { %3507 = vst [vmem:[%s318_s14 + $0x38] sm:$0x1] %v3499_v10  ;;  %v3436_v40 = vmul.f32 %v3424_v22, %v3410_v63  ;;  %v3437_v59 = vmul.f32 %v3424_v22, %v3417_v0 }
 0x2d6   : > { %v3444_v27 = vadd.f32 %v3436_v40, %v7033_v18  ;;  %v3445_v13 = vadd.f32 %v3437_v59, %v7035_v3 }
 0x2d8   : > { %v3494_v1 = vadd.f32 %v3486_v52, %v3444_v27  ;;  %v3495_v49 = vadd.f32 %v3487_v43, %v3445_v13 }
 0x2da   : > { %3502 = vst [vmem:[%s318_s14 + $0x10] sm:$0xff] %v3494_v1 }
 0x2db   : > { %3503 = vst [vmem:[%s318_s14 + $0x18] sm:$0xff] %v3495_v49 }
 0x2dc   : > { %v3470_v5 = vpop.permute.xlu1 %3469 }
 0x2dd   : > { %v3484_v11 = vmul.f32 %v3470_v5, %v3460_v55  ;;  %v3485_v33 = vmul.f32 %v3470_v5, %v3467_v41 }
 0x2df   : > { %v3492_v42 = vadd.f32 %v3484_v11, %v3442_v9  ;;  %v3493_v60 = vadd.f32 %v3485_v33, %v3443_v6 }
 0x2e1   : > { %3500 = vst [vmem:[%s318_s14] sm:$0xff] %v3492_v42 }
 0x2e2   : > { %3501 = vst [vmem:[%s318_s14 + $0x8] sm:$0xff] %v3493_v60 }
 0x2e4   : > { %v3478_v8 = vpop.permute.xlu1 %3477 }
 0x2e5   : > { %v3488_v26 = vmul.f32 %v3478_v8, %v3460_v55  ;;  %v3489_v63 = vmul.f32 %v3478_v8, %v3467_v41 }
 0x2e7   : > { %v3496_v0 = vadd.f32 %v3488_v26, %v3446_v21  ;;  %v3497_v58 = vadd.f32 %v3489_v63, %v3447_v51 }
 0x2e9   : > { %3504 = vst [vmem:[%s318_s14 + $0x20] sm:$0xff] %v3496_v0 }
 0x2ea   : > { %3505 = vst [vmem:[%s318_s14 + $0x28] sm:$0xff] %v3497_v58 }
 0x2eb PF: > { %s15_s20 = sadd.s32 1, %s3868_s20   ;;  %s7828_s18 = smov %s3864_s19 }
 0x2ec   : > { %p12_p5 = scmp.ge.s32.totalorder %s15_s20, 4   ;;  %s7829_s19 = smov %s7831_s21 }
 0x2ee   :  { %14 = sbr.rel (!%p12_p5) target bundleno = 2 (0x2), region = 77 }

// kernel: tpu_custom_call.1
= control target key start
LH: loop header
LB: loop body
LE: loop exit
PB: predicated region body
PF: predicated region fallthrough
CT: control target
= control target key end

     0   :  { %s3922_s18 = smov 0   ;;  %s3924_s19 = smov 0   ;;  %s7069_s0 = inlined_call_operand.vmem [shape: f32[2,8,256], index: 0, kind: input, shape index: {}]   ;;  %s7070_s1 = inlined_call_operand.vmem [shape: f32[2,256,8], index: 1, kind: input, shape index: {}]   ;;  %s7071_s2 = inlined_call_operand.vmem [shape: f32[2,2,256], index: 2, kind: input, shape index: {}]   ;;  %s7072_s3 = inlined_call_operand.vmem [shape: f32[25,25], index: 3, kind: input, shape index: {}]   ;;  %s7073_s4 = inlined_call_operand.vmem [shape: f32[16,1,1], index: 4, kind: input, shape index: {}]   ;;  %s7074_s5 = inlined_call_operand.vmem [shape: f32[2,25,256], index: 5, kind: output, shape index: {}]  }
   0x1   :  { %s3926_s20 = smov 0  }
   0x2 LB: > { %s27_s21 = sadd.s32 1, %s3861_s19  ;;  %p3629_p0 = scmp.ge.s32.totalorder %s3865_s20, 1  ;;  %s3865_s20 = sphi %s3926_s20, %s15_s20   ;;  %s3861_s19 = sphi %s3924_s19, %s7826_s19   ;;  %s3857_s18 = sphi %s3922_s18, %s7825_s18  }
   0x3   : > { %p29_p1 = scmp.ge.s32.totalorder %s27_s21, 2  ;;  %p235_p2 = scmp.lt.s32.totalorder %s3865_s20, 3 }
   0x5   : > { %s7828_s21 = smov (%p29_p1, %s27_s21), 0  ;;  %p236_p3 = pnand %p3629_p0, %p235_p2 }
   0x7   : > { %239 = sbr.rel (%p236_p3) target bundleno = 747 (0x2eb), region = 40 }
   0xc   : > { %v782_v0 = vld [vmem:[%s7073_s4 + $0x4] sm:$0x1]  ;;  %v780_v1 = vld [vmem:[%s7073_s4 + $0x2] sm:$0x1]  ;;  %p286_p4 = scmp.lt.s32.totalorder %s3857_s18, 1  ;;  %v3867_v2 = vmov 0   ;;  %v684_v52 = vlaneseq }
   0xd   : > { %3762 = vset.pattern.permute.xlu2 %v3867_v2  ;;  %3761 = vset.pattern.permute.xlu1 %v3867_v2  ;;  %v778_v3 = vld [vmem:[%s7073_s4] sm:$0x1]  ;;  %vm361_vm0 = vcmask 64512   ;;  %v783_v8 = vld [vmem:[%s7073_s4 + $0x5] sm:$0x1]  ;;  %v4026_v28 = vld [vmem:[%s7072_s3 + $0x8] sm:$0xff] }
   0xe   : > { %3760 = vset.pattern.permute.xlu0 %v3867_v2  ;;  %820 = vperm.xlu2 %3762, %v782_v0   ;;  %s7830_s18 = smov (!%p286_p4, %s3857_s18), 1  ;;  %v781_v9 = vld [vmem:[%s7073_s4 + $0x3] sm:$0x1]  ;;  %v779_v10 = vld [vmem:[%s7073_s4 + $0x1] sm:$0x1]  ;;  %v4049_v33 = vld [vmem:[%s7072_s3 + $0x10] sm:$0xff] }
   0xf   : > { %808 = vperm.xlu1 %3761, %v780_v1   ;;  %796 = vperm.xlu0 %3760, %v778_v3   ;;  %s3705_s28 = sshll.u32 %s7830_s18, 4  ;;  %s3706_s29 = sshll.u32 %s7830_s18, 8  ;;  %v786_v13 = vld [vmem:[%s7073_s4 + $0x8] sm:$0x1]  ;;  %v785_v14 = vld [vmem:[%s7073_s4 + $0x7] sm:$0x1] }
  0x10   : > { %s293_s7 = scalar_lea.vmem %s7069_s0, %s3705_s28  ;;  %s3959_s10 = scalar_lea.vmem %s7070_s1, %s3706_s29  ;;  %v784_v15 = vld [vmem:[%s7073_s4 + $0x6] sm:$0x1]  ;;  %v789_v18 = vld [vmem:[%s7073_s4 + $0xb] sm:$0x1]  ;;  %v788_v19 = vld [vmem:[%s7073_s4 + $0xa] sm:$0x1] }
  0x11   : > { %v320_v4 = vld [vmem:[%s293_s7] sm:$0xff]  ;;  %v321_v5 = vld [vmem:[%s293_s7 + $0x8] sm:$0xff]  ;;  %v324_v16 = vld [vmem:[%s3959_s10 + $0x10] sm:$0xff]  ;;  %v3868_v35 = vmov 5   ;;  %v3869_v40 = vmov 10   ;;  %v3870_v43 = vmov 15  }
  0x12   : > { %v322_v6 = vld [vmem:[%s3959_s10] sm:$0xff]  ;;  %473 = vmatpush.msra.mxu0 %v320_v4  ;;  %3709 = vmatpush.msra.mxu2 %v320_v4  ;;  %v323_v11 = vld [vmem:[%s3959_s10 + $0x8] sm:$0xff]  ;;  %v340_v17 = vld [vmem:[%s3959_s10 + $0x90] sm:$0xff]  ;;  %s3707_s29 = sshll.u32 %s7830_s18, 2  ;;  %v3871_v48 = vmov 1   ;;  %v3872_v54 = vmov 20  }
  0x13   : > { %v338_v7 = vld [vmem:[%s3959_s10 + $0x80] sm:$0xff]  ;;  %586 = vmatpush.msra.mxu1 %v321_v5  ;;  %3710 = vmatpush.msra.mxu3 %v321_v5  ;;  %v339_v12 = vld [vmem:[%s3959_s10 + $0x88] sm:$0xff]  ;;  %v325_v21 = vld [vmem:[%s3959_s10 + $0x18] sm:$0xff]  ;;  %s308_s7 = scalar_lea.vmem %s7071_s2, %s3707_s29  ;;  %v3873_v56 = vmov 6   ;;  %v685_v58 = vshrl.u32 %v684_v52, 7  ;;  %s3708_s11 = sshll.u32 %s7830_s18, 6 }
  0x14   : > { %3639 = vmatmul.msk.f32.vlgmr.msra.gmra.mxu0 %vm361_vm0, %v322_v6  ;;  %3655 = vmatmul.msk.f32.vlgmr.msra.gmra.mxu2 %vm361_vm0, %v338_v7  ;;  %v787_v20 = vld [vmem:[%s7073_s4 + $0x9] sm:$0x1]  ;;  %v341_v22 = vld [vmem:[%s3959_s10 + $0x98] sm:$0xff]  ;;  %v792_v23 = vld [vmem:[%s7073_s4 + $0xe] sm:$0x1]  ;;  %s318_s14 = scalar_lea.vmem %s7074_s5, %s3708_s11 }
  0x15   : > { %3671 = vmatmul.msk.f32.vlgmr.msra.gmra.mxu1 %vm361_vm0, %v322_v6  ;;  %3687 = vmatmul.msk.f32.vlgmr.msra.gmra.mxu3 %vm361_vm0, %v338_v7  ;;  %v791_v24 = vld [vmem:[%s7073_s4 + $0xd] sm:$0x1]  ;;  %v790_v25 = vld [vmem:[%s7073_s4 + $0xc] sm:$0x1]  ;;  %v326_v26 = vld [vmem:[%s3959_s10 + $0x20] sm:$0xff]  ;;  %v687_v62 = vcvt.s32.f32 %v685_v58  ;;  %v4125_v0 = vadd.s32 8, %v685_v58 }
  0x16   : > { %826 = vperm.xlu2 %3762, %v783_v8   ;;  %v342_v27 = vld [vmem:[%s3959_s10 + $0xa0] sm:$0xff]  ;;  %v793_v29 = vld [vmem:[%s7073_s4 + $0xf] sm:$0x1]  ;;  %v4054_v34 = vld [vmem:[%s7072_s3 + $0x18] sm:$0x1]  ;;  %v7083_v6 = vmov 11  }
  0x17   : > { %814 = vperm.xlu1 %3761, %v781_v9   ;;  %802 = vperm.xlu0 %3760, %v779_v10   ;;  %v4036_v30 = vld [vmem:[%s7072_s3] sm:$0xff]  ;;  %v327_v31 = vld [vmem:[%s3959_s10 + $0x28] sm:$0xff]  ;;  %v328_v36 = vld [vmem:[%s3959_s10 + $0x30] sm:$0xff]  ;;  %v7076_v7 = vcvt.s32.f32 %v4125_v0 }
  0x18   : > { %v343_v32 = vld [vmem:[%s3959_s10 + $0xa8] sm:$0xff]  ;;  %v344_v37 = vld [vmem:[%s3959_s10 + $0xb0] sm:$0xff]  ;;  %v329_v38 = vld [vmem:[%s3959_s10 + $0x38] sm:$0xff] }
  0x19   : > { %v345_v39 = vld [vmem:[%s3959_s10 + $0xb8] sm:$0xff]  ;;  %v330_v41 = vld [vmem:[%s3959_s10 + $0x40] sm:$0xff]  ;;  %v331_v44 = vld [vmem:[%s3959_s10 + $0x48] sm:$0xff] }
  0x1a   : > { %v346_v42 = vld [vmem:[%s3959_s10 + $0xc0] sm:$0xff]  ;;  %v347_v45 = vld [vmem:[%s3959_s10 + $0xc8] sm:$0xff]  ;;  %v332_v46 = vld [vmem:[%s3959_s10 + $0x50] sm:$0xff] }
  0x1b   : > { %v348_v47 = vld [vmem:[%s3959_s10 + $0xd0] sm:$0xff]  ;;  %v4107_v49 = vld [vmem:[%s308_s7 + $0x1] ss:$2 sm:$0x3]  ;;  %v333_v55 = vld [vmem:[%s3959_s10 + $0x58] sm:$0xff] }
  0x1c   : > { %3640 = vmatmul.msk.f32.gmra.mxu0 %vm361_vm0, %v323_v11  ;;  %3656 = vmatmul.msk.f32.gmra.mxu2 %vm361_vm0, %v339_v12  ;;  %v349_v57 = vld [vmem:[%s3959_s10 + $0xd8] sm:$0xff]  ;;  %v4119_v59 = vld [vmem:[%s308_s7] ss:$2 sm:$0x3] }
  0x1d   : > { %3672 = vmatmul.msk.f32.gmra.mxu1 %vm361_vm0, %v323_v11  ;;  %3688 = vmatmul.msk.f32.gmra.mxu3 %vm361_vm0, %v339_v12  ;;  %v690_v63 = vperm.slane %v4119_v59, 0  ;;  %v7075_v1 = vperm.slane %v4119_v59, 1  ;;  %v334_v3 = vld [vmem:[%s3959_s10 + $0x60] sm:$0xff] }
  0x1e   : > { %844 = vperm.xlu2 %3762, %v786_v13   ;;  %v350_v4 = vld [vmem:[%s3959_s10 + $0xe0] sm:$0xff] }
  0x1f   : > { %838 = vperm.xlu1 %3761, %v785_v14   ;;  %832 = vperm.xlu0 %3760, %v784_v15   ;;  %v4135_v5 = vsub.f32 %v690_v63, %v687_v62  ;;  %v4142_v8 = vsub.f32 %v7075_v1, %v687_v62  ;;  %v4153_v12 = vsub.f32 %v690_v63, %v7076_v7  ;;  %v352_v62 = vld [vmem:[%s3959_s10 + $0xf0] sm:$0xff] }
  0x21   : > { %7254 = vst [vmem:[#allocation4_spill] sm:$0xff] %v4135_v5  ;;  %v4149_v11 = vadd.f32 -2.0, %v4135_v5  ;;  %v4156_v13 = vadd.f32 -2.0, %v4142_v8  ;;  %v4160_v15 = vadd.f32 -1.0, %v4135_v5 }
  0x22   : > { %7255 = vst [vmem:[#allocation5_spill] sm:$0xff] %v4142_v8 }
  0x23   : > { %7256 = vst [vmem:[#allocation6_spill] sm:$0xff] %v4149_v11 }
  0x24   : > { %3641 = vmatmul.msk.f32.gmra.mxu0 %vm361_vm0, %v324_v16  ;;  %3657 = vmatmul.msk.f32.gmra.mxu2 %vm361_vm0, %v340_v17  ;;  %7257 = vst [vmem:[#allocation7_spill] sm:$0xff] %v4153_v12 }
  0x25   : > { %3673 = vmatmul.msk.f32.gmra.mxu1 %vm361_vm0, %v324_v16  ;;  %3689 = vmatmul.msk.f32.gmra.mxu3 %vm361_vm0, %v340_v17  ;;  %7258 = vst [vmem:[#allocation8_spill] sm:$0xff] %v4156_v13  ;;  %v4163_v16 = vadd.f32 -1.0, %v4142_v8 }
  0x26   : > { %862 = vperm.xlu2 %3762, %v789_v18   ;;  %7259 = vst [vmem:[#allocation9_spill] sm:$0xff] %v4160_v15  ;;  %v335_v18 = vld [vmem:[%s3959_s10 + $0x68] sm:$0xff] }
  0x27   : > { %856 = vperm.xlu1 %3761, %v788_v19   ;;  %850 = vperm.xlu0 %3760, %v787_v20   ;;  %7260 = vst [vmem:[#allocation10_spill] sm:$0xff] %v4163_v16  ;;  %v351_v19 = vld [vmem:[%s3959_s10 + $0xe8] sm:$0xff]  ;;  %v7277_v16 = vmov 16  }
  0x2c   : > { %3642 = vmatmul.msk.f32.gmra.mxu0 %vm361_vm0, %v325_v21  ;;  %3658 = vmatmul.msk.f32.gmra.mxu2 %vm361_vm0, %v341_v22 }
  0x2d   : > { %3674 = vmatmul.msk.f32.gmra.mxu1 %vm361_vm0, %v325_v21  ;;  %3690 = vmatmul.msk.f32.gmra.mxu3 %vm361_vm0, %v341_v22 }
  0x2e   : > { %880 = vperm.xlu2 %3762, %v792_v23  }
  0x2f   : > { %874 = vperm.xlu1 %3761, %v791_v24   ;;  %868 = vperm.xlu0 %3760, %v790_v25  }
  0x34   : > { %3643 = vmatmul.msk.f32.gmra.mxu0 %vm361_vm0, %v326_v26  ;;  %3659 = vmatmul.msk.f32.gmra.mxu2 %vm361_vm0, %v342_v27 }
  0x35   : > { %3675 = vmatmul.msk.f32.gmra.mxu1 %vm361_vm0, %v326_v26  ;;  %3691 = vmatmul.msk.f32.gmra.mxu3 %vm361_vm0, %v342_v27  ;;  %v4171_v26 = vadd.f32 1.0, %v4135_v5 }
  0x36   : > { %1199 = vperm.xlu2 %3762, %v4026_v28  }
  0x37   : > { %886 = vperm.xlu0 %3760, %v793_v29   ;;  %1194 = vperm.xlu1 %3761, %v4036_v30   ;;  %7261 = vst [vmem:[#allocation11_spill] sm:$0xff] %v4171_v26  ;;  %v4176_v29 = vadd.f32 1.0, %v4142_v8 }
  0x39   : > { %7262 = vst [vmem:[#allocation12_spill] sm:$0xff] %v4176_v29 }
  0x3c   : > { %3644 = vmatmul.msk.f32.gmra.mxu0 %vm361_vm0, %v327_v31  ;;  %3660 = vmatmul.msk.f32.gmra.mxu2 %vm361_vm0, %v343_v32 }
  0x3d   : > { %3676 = vmatmul.msk.f32.gmra.mxu1 %vm361_vm0, %v327_v31  ;;  %3692 = vmatmul.msk.f32.gmra.mxu3 %vm361_vm0, %v343_v32  ;;  %v7081_v31 = vmov 16  }
  0x3e   : > { %3763 = vset.pattern.permute.xlu2 %v3868_v35 }
  0x3f   : > { %1204 = vperm.xlu0 %3760, %v4049_v33   ;;  %1209 = vperm.xlu1 %3761, %v4054_v34  }
  0x40   : > { %1247 = vperm.xlu2 %3763, %v4036_v30  }
  0x44   : > { %3645 = vmatmul.msk.f32.gmra.mxu0 %vm361_vm0, %v328_v36  ;;  %3661 = vmatmul.msk.f32.gmra.mxu2 %vm361_vm0, %v344_v37 }
  0x45   : > { %3677 = vmatmul.msk.f32.gmra.mxu1 %vm361_vm0, %v328_v36  ;;  %3693 = vmatmul.msk.f32.gmra.mxu3 %vm361_vm0, %v344_v37 }
  0x47   : > { %3764 = vset.pattern.permute.xlu0 %v3868_v35  ;;  %3765 = vset.pattern.permute.xlu1 %v3868_v35 }
  0x48   : > { %1251 = vperm.xlu0 %3764, %v4026_v28   ;;  %1259 = vperm.xlu2 %3763, %v4054_v34  }
  0x49   : > { %1255 = vperm.xlu1 %3765, %v4049_v33  }
  0x4c   : > { %3646 = vmatmul.msk.f32.gmra.mxu0 %vm361_vm0, %v329_v38  ;;  %3662 = vmatmul.msk.f32.gmra.mxu2 %vm361_vm0, %v345_v39 }
  0x4d   : > { %3678 = vmatmul.msk.f32.gmra.mxu1 %vm361_vm0, %v329_v38  ;;  %3694 = vmatmul.msk.f32.gmra.mxu3 %vm361_vm0, %v345_v39 }
  0x50   : > { %3768 = vset.pattern.permute.xlu0 %v3869_v40  ;;  %3767 = vset.pattern.permute.xlu2 %v3869_v40 }
  0x51   : > { %3766 = vset.pattern.permute.xlu1 %v3869_v40  ;;  %1305 = vperm.xlu0 %3768, %v4049_v33  }
  0x52   : > { %1301 = vperm.xlu2 %3767, %v4026_v28   ;;  %1297 = vperm.xlu1 %3766, %v4036_v30  }
  0x54   : > { %3647 = vmatmul.msk.f32.gmra.mxu0 %vm361_vm0, %v330_v41  ;;  %3663 = vmatmul.msk.f32.gmra.mxu2 %vm361_vm0, %v346_v42 }
  0x55   : > { %3679 = vmatmul.msk.f32.gmra.mxu1 %vm361_vm0, %v330_v41  ;;  %3695 = vmatmul.msk.f32.gmra.mxu3 %vm361_vm0, %v346_v42 }
  0x59   : > { %3771 = vset.pattern.permute.xlu0 %v3870_v43 }
  0x5a   : > { %3769 = vset.pattern.permute.xlu2 %v3870_v43  ;;  %1309 = vperm.xlu1 %3766, %v4054_v34  }
  0x5b   : > { %1359 = vperm.xlu0 %3771, %v4054_v34   ;;  %1347 = vperm.xlu2 %3769, %v4036_v30  }
  0x5c   : > { %3648 = vmatmul.msk.f32.gmra.mxu0 %vm361_vm0, %v331_v44  ;;  %3664 = vmatmul.msk.f32.gmra.mxu2 %vm361_vm0, %v347_v45 }
  0x5d   : > { %3680 = vmatmul.msk.f32.gmra.mxu1 %vm361_vm0, %v331_v44  ;;  %3696 = vmatmul.msk.f32.gmra.mxu3 %vm361_vm0, %v347_v45 }
  0x62   : > { %3770 = vset.pattern.permute.xlu1 %v3870_v43 }
  0x63   : > { %3774 = vset.pattern.permute.xlu0 %v3871_v48  ;;  %1355 = vperm.xlu2 %3769, %v4049_v33  }
  0x64   : > { %1351 = vperm.xlu1 %3770, %v4026_v28   ;;  %1715 = vperm.xlu0 %3774, %v4036_v30  }
  0x65   : > { %3649 = vmatmul.msk.f32.gmra.mxu0 %vm361_vm0, %v332_v46  ;;  %3665 = vmatmul.msk.f32.gmra.mxu2 %vm361_vm0, %v348_v47 }
  0x66   : > { %3681 = vmatmul.msk.f32.gmra.mxu1 %vm361_vm0, %v332_v46  ;;  %3697 = vmatmul.msk.f32.gmra.mxu3 %vm361_vm0, %v348_v47 }
  0x68   : > { %v821_v50 = vpop.permute.xlu2 %820 }
  0x69   : > { %v823_v51 = vperm.slane %v821_v50, 0 }
  0x6b   : > { %v4110_v53 = vsub.f32 %v4107_v49, %v823_v51  ;;  %3773 = vset.pattern.permute.xlu2 %v3872_v54 }
  0x6c   : > { %3772 = vset.pattern.permute.xlu1 %v3872_v54  ;;  %3778 = vset.pattern.permute.xlu0 %v3873_v56 }
  0x6d   : > { %7252 = vst [vmem:[#allocation2_spill] sm:$0xff] %v4110_v53  ;;  %1401 = vperm.xlu2 %3773, %v4026_v28   ;;  %1397 = vperm.xlu1 %3772, %v4036_v30  }
  0x6e   : > { %1769 = vperm.xlu0 %3778, %v4026_v28   ;;  %3650 = vmatmul.msk.f32.gmra.mxu0 %vm361_vm0, %v333_v55 }
  0x6f   : > { %3666 = vmatmul.msk.f32.gmra.mxu2 %vm361_vm0, %v349_v57  ;;  %3682 = vmatmul.msk.f32.gmra.mxu1 %vm361_vm0, %v333_v55 }
  0x70   : > { %3698 = vmatmul.msk.f32.gmra.mxu3 %vm361_vm0, %v349_v57  ;;  %v827_v60 = vpop.permute.xlu2 %826  ;;  %v336_v57 = vld [vmem:[%s3959_s10 + $0x70] sm:$0xff] }
  0x71   : > { %v829_v61 = vperm.slane %v827_v60, 0 }
  0x73   : > { %v4129_v2 = vsub.f32 %v4107_v49, %v829_v61 }
  0x75   : > { %7253 = vst [vmem:[#allocation3_spill] sm:$0xff] %v4129_v2  ;;  %1409 = vperm.xlu2 %3773, %v4054_v34   ;;  %1405 = vperm.xlu1 %3772, %v4049_v33  }
  0x76   : > { %3782 = vset.pattern.permute.xlu0 %v7083_v6  ;;  %3651 = vmatmul.msk.f32.gmra.mxu0 %vm361_vm0, %v334_v3 }
  0x77   : > { %1823 = vperm.xlu0 %3782, %v4049_v33   ;;  %3667 = vmatmul.msk.f32.gmra.mxu2 %vm361_vm0, %v350_v4 }
  0x78   : > { %3683 = vmatmul.msk.f32.gmra.mxu1 %vm361_vm0, %v334_v3  ;;  %3699 = vmatmul.msk.f32.gmra.mxu3 %vm361_vm0, %v350_v4  ;;  %v845_v9 = vpop.permute.xlu2 %844 }
  0x79   : > { %v847_v10 = vperm.slane %v845_v9, 0 }
  0x7b   : > { %v898_v14 = vsub.f32 %v4107_v49, %v847_v10 }
  0x7d   : > { %3776 = vset.pattern.permute.xlu2 %v3871_v48  ;;  %3775 = vset.pattern.permute.xlu1 %v3871_v48  ;;  %v914_v20 = vadd.f32 -2.0, %v898_v14  ;;  %v1436_v21 = vadd.f32 -1.0, %v898_v14  ;;  %v1970_v22 = vand.u32 2147483647, %v898_v14  ;;  %v2472_v23 = vadd.f32 1.0, %v898_v14 }
  0x7e   : > { %1723 = vperm.xlu2 %3776, %v4049_v33   ;;  %1719 = vperm.xlu1 %3775, %v4026_v28   ;;  %v2990_v27 = vadd.f32 2.0, %v898_v14 }
  0x7f   : > { %3785 = vset.pattern.permute.xlu0 %v7081_v31  ;;  %3652 = vmatmul.msk.f32.gmra.mxu0 %vm361_vm0, %v335_v18  ;;  %v930_v32 = vand.u32 2147483647, %v914_v20  ;;  %v1452_v35 = vand.u32 2147483647, %v1436_v21  ;;  %v1986_v36 = vsub.f32 1.0, %v1970_v22 }
  0x80   : > { %3668 = vmatmul.msk.f32.gmra.mxu2 %vm361_vm0, %v351_v19  ;;  %3684 = vmatmul.msk.f32.gmra.mxu1 %vm361_vm0, %v335_v18  ;;  %v863_v37 = vpop.permute.xlu2 %862  ;;  %v2488_v39 = vand.u32 2147483647, %v2472_v23  ;;  %v3006_v40 = vand.u32 2147483647, %v2990_v27 }
  0x81   : > { %v809_v38 = vpop.permute.xlu1 %808  ;;  %3700 = vmatmul.msk.f32.gmra.mxu3 %vm361_vm0, %v351_v19  ;;  %1877 = vperm.xlu0 %3785, %v4054_v34   ;;  %v865_v41 = vperm.slane %v863_v37, 0  ;;  %v797_v43 = vpop.permute.xlu0 %796  ;;  %v946_v44 = vsub.f32 1.0, %v930_v32  ;;  %v1468_v45 = vsub.f32 1.0, %v1452_v35  ;;  %v2002_v47 = vmax.f32 %v1986_v36, 0.0 }
  0x82   : > { %v811_v42 = vperm.slane %v809_v38, 0  ;;  %v799_v46 = vperm.slane %v797_v43, 0  ;;  %v2504_v48 = vsub.f32 1.0, %v2488_v39  ;;  %v3022_v50 = vsub.f32 1.0, %v3006_v40 }
  0x83   : > { %v4185_v51 = vsub.f32 %v4107_v49, %v865_v41  ;;  %v962_v54 = vmax.f32 %v946_v44, 0.0  ;;  %v1484_v55 = vmax.f32 %v1468_v45, 0.0  ;;  %v4197_v4 = vperm.slane %v2002_v47, 0 }
  0x84   : > { %v4188_v52 = vsub.f32 %v4107_v49, %v811_v42  ;;  %v890_v58 = vsub.f32 %v4107_v49, %v799_v46  ;;  %v2520_v60 = vmax.f32 %v2504_v48, 0.0  ;;  %v3038_v61 = vmax.f32 %v3022_v50, 0.0 }
  0x85   : > { %v4193_v63 = vperm.slane %v962_v54, 0  ;;  %v4195_v3 = vperm.slane %v1484_v55, 0  ;;  %v4199_v9 = vperm.slane %v962_v54, 1  ;;  %v4209_v23 = vperm.slane %v1484_v55, 1 }
  0x86   : > { %3777 = vset.pattern.permute.xlu2 %v3873_v56  ;;  %1727 = vperm.xlu1 %3775, %v4054_v34   ;;  %v906_v10 = vadd.f32 -2.0, %v890_v58  ;;  %v1428_v14 = vadd.f32 -1.0, %v890_v58  ;;  %v1962_v18 = vand.u32 2147483647, %v890_v58  ;;  %v2464_v19 = vadd.f32 1.0, %v890_v58 }
  0x87   : > { %1765 = vperm.xlu2 %3777, %v4036_v30   ;;  %3653 = vmatmul.msk.f32.gmra.mxu0 %vm361_vm0, %v336_v57  ;;  %v2982_v20 = vadd.f32 2.0, %v890_v58  ;;  %v4205_v21 = vperm.slane %v2520_v60, 0  ;;  %v4207_v22 = vperm.slane %v3038_v61, 0  ;;  %v4213_v37 = vperm.slane %v2002_v47, 1 }
  0x88   : > { %3685 = vmatmul.msk.f32.gmra.mxu1 %vm361_vm0, %v336_v57  ;;  %v881_v27 = vpop.permute.xlu2 %880  ;;  %3669 = vmatmul.msk.f32.gmra.mxu2 %vm361_vm0, %v352_v62  ;;  %v922_v32 = vand.u32 2147483647, %v906_v10  ;;  %v1444_v35 = vand.u32 2147483647, %v1428_v14  ;;  %v1978_v36 = vsub.f32 1.0, %v1962_v18  ;;  %v7079_v38 = vmov 2  }
  0x89   : > { %3788 = vset.pattern.permute.xlu0 %v7079_v38  ;;  %v883_v39 = vperm.slane %v881_v27, 0  ;;  %v815_v40 = vpop.permute.xlu1 %814  ;;  %3701 = vmatmul.msk.f32.gmra.mxu3 %vm361_vm0, %v352_v62  ;;  %v2480_v41 = vand.u32 2147483647, %v2464_v19  ;;  %v2998_v42 = vand.u32 2147483647, %v2982_v20  ;;  %v803_v43 = vpop.permute.xlu0 %802  ;;  %v4217_v44 = vperm.slane %v2520_v60, 1 }
  0x8a   : > { %2233 = vperm.xlu0 %3788, %v4036_v30   ;;  %v817_v45 = vperm.slane %v815_v40, 0  ;;  %v938_v46 = vsub.f32 1.0, %v922_v32  ;;  %v1460_v48 = vsub.f32 1.0, %v1444_v35  ;;  %v1994_v47 = vmax.f32 %v1978_v36, 0.0  ;;  %v337_v14 = vld [vmem:[%s3959_s10 + $0x78] sm:$0xff] }
  0x8b   : > { %v4221_v50 = vsub.f32 %v4107_v49, %v883_v39  ;;  %v2496_v54 = vsub.f32 1.0, %v2480_v41  ;;  %v3014_v55 = vsub.f32 1.0, %v2998_v42  ;;  %v805_v57 = vperm.slane %v803_v43, 0  ;;  %v353_v40 = vld [vmem:[%s3959_s10 + $0xf8] sm:$0xff] }
  0x8c   : > { %v4224_v58 = vsub.f32 %v4107_v49, %v817_v45  ;;  %v954_v62 = vmax.f32 %v938_v46, 0.0  ;;  %v1476_v10 = vmax.f32 %v1460_v48, 0.0  ;;  %v4226_v60 = vperm.slane %v3038_v61, 1 }
  0x8d   : > { %7263 = vst [vmem:[#allocation13_spill] sm:$0xff] %v4221_v50  ;;  %v4229_v18 = vperm.slane %v1994_v47, 0  ;;  %v2512_v19 = vmax.f32 %v2496_v54, 0.0  ;;  %v3030_v20 = vmax.f32 %v3014_v55, 0.0  ;;  %v891_v27 = vsub.f32 %v4107_v49, %v805_v57 }
  0x8e   : > { %3779 = vset.pattern.permute.xlu1 %v3873_v56  ;;  %v4233_v32 = vperm.slane %v954_v62, 0  ;;  %v4235_v35 = vperm.slane %v1476_v10, 0  ;;  %v4237_v36 = vperm.slane %v954_v62, 1  ;;  %v4239_v39 = vperm.slane %v1994_v47, 1 }
  0x8f   : > { %1777 = vperm.xlu2 %3777, %v4054_v34   ;;  %1773 = vperm.xlu1 %3779, %v4049_v33   ;;  %v4244_v61 = vperm.slane %v2512_v19, 0  ;;  %v4246_v41 = vperm.slane %v3030_v20, 0  ;;  %v4248_v42 = vperm.slane %v1476_v10, 1  ;;  %v4250_v56 = vperm.slane %v2512_v19, 1 }
  0x90   : > { %3654 = vmatmul.msk.f32.gmra.mxu0 %vm361_vm0, %v337_v14  ;;  %3686 = vmatmul.msk.f32.gmra.mxu1 %vm361_vm0, %v337_v14  ;;  %v4254_v43 = vperm.slane %v3030_v20, 1  ;;  %v907_v45 = vadd.f32 -2.0, %v891_v27  ;;  %v1429_v46 = vadd.f32 -1.0, %v891_v27  ;;  %v1963_v54 = vand.u32 2147483647, %v891_v27 }
  0x91   : > { %v839_v48 = vpop.permute.xlu1 %838  ;;  %v475_v47 = vpop.f32.mrf.mxu0  ;;  %3670 = vmatmul.msk.f32.gmra.mxu2 %vm361_vm0, %v353_v40  ;;  %3702 = vmatmul.msk.f32.gmra.mxu3 %vm361_vm0, %v353_v40  ;;  %v2465_v55 = vadd.f32 1.0, %v891_v27  ;;  %v4258_v57 = vadd.f32 2.0, %v891_v27  ;;  %v7077_v62 = vmov 7   ;;  %v4297_v29 = vadd.f32 -2.0, %v4188_v52 }
  0x92   : > { %3792 = vset.pattern.permute.xlu0 %v7077_v62  ;;  %v841_v10 = vperm.slane %v839_v48, 0  ;;  %v4262_v14 = vmul.f32 %v4233_v32, %v475_v47  ;;  %v4265_v19 = vmul.f32 %v4235_v35, %v475_v47  ;;  %v4268_v20 = vmul.f32 %v4229_v18, %v475_v47  ;;  %v588_v24 = vpop.f32.mrf.mxu1  ;;  %v833_v17 = vpop.permute.xlu0 %832 }
  0x93   : > { %2287 = vperm.xlu0 %3792, %v4026_v28   ;;  %v4272_v40 = vmul.f32 %v4244_v61, %v475_v47  ;;  %v4275_v27 = vmul.f32 %v4246_v41, %v475_v47  ;;  %v4278_v48 = vmul.f32 %v4237_v36, %v588_v24  ;;  %v4281_v25 = vmul.f32 %v4248_v42, %v588_v24 }
  0x94   : > { %v4284_v1 = vsub.f32 %v4107_v49, %v841_v10  ;;  %v4287_v7 = vmul.f32 %v4239_v39, %v588_v24  ;;  %v4290_v62 = vmul.f32 %v4250_v56, %v588_v24  ;;  %v4293_v38 = vmul.f32 %v4254_v43, %v588_v24 }
  0x95   : > { %v835_v47 = vperm.slane %v833_v17, 0  ;;  %v923_v31 = vand.u32 2147483647, %v907_v45  ;;  %v1445_v6 = vand.u32 2147483647, %v1429_v46  ;;  %v1979_v12 = vsub.f32 1.0, %v1963_v54 }
  0x96   : > { %7264 = vst [vmem:[#allocation14_spill] sm:$0xff] %v4284_v1  ;;  %v2481_v50 = vand.u32 2147483647, %v2465_v55  ;;  %v2999_v2 = vand.u32 2147483647, %v4258_v57  ;;  %v7265_v10 = vmov 11  }
  0x97   : > { %3781 = vset.pattern.permute.xlu2 %v7265_v10  ;;  %3780 = vset.pattern.permute.xlu1 %v7265_v10  ;;  %v523_v1 = vpop.f32.mrf.mxu2  ;;  %v4302_v11 = vsub.f32 %v4107_v49, %v835_v47  ;;  %v939_v24 = vsub.f32 1.0, %v923_v31  ;;  %v4304_v8 = vsub.f32 1.0, %v1445_v6  ;;  %v1995_v17 = vmax.f32 %v1979_v12, 0.0 }
  0x98   : > { %1819 = vperm.xlu2 %3781, %v4026_v28   ;;  %1815 = vperm.xlu1 %3780, %v4036_v30   ;;  %v4309_v45 = vmul.f32 %v4193_v63, %v523_v1  ;;  %v4312_v46 = vmul.f32 %v4195_v3, %v523_v1  ;;  %v4315_v54 = vmul.f32 %v4197_v4, %v523_v1  ;;  %v636_v55 = vpop.f32.mrf.mxu3  ;;  %v4317_v57 = vsub.f32 1.0, %v2481_v50 }
  0x99   : > { %7266 = vst [vmem:[#allocation15_spill] sm:$0xff] %v4302_v11  ;;  %v4320_v6 = vmul.f32 %v4205_v21, %v523_v1  ;;  %v4323_v12 = vmul.f32 %v4207_v22, %v523_v1  ;;  %v4326_v31 = vmul.f32 %v4199_v9, %v636_v55  ;;  %v4329_v47 = vmul.f32 %v4209_v23, %v636_v55  ;;  %v857_v10 = vpop.permute.xlu1 %856 }
  0x9a   : > { %7267 = vst [vmem:[#allocation16_spill] sm:$0xff] %v4309_v45  ;;  %v4332_v45 = vmul.f32 %v4213_v37, %v636_v55  ;;  %v4335_v50 = vmul.f32 %v4217_v44, %v636_v55  ;;  %v591_v1 = vpop.f32.mrf.mxu1  ;;  %v4383_v26 = vperm.slane %v1995_v17, 1 }
  0x9b   : > { %7268 = vst [vmem:[#allocation17_spill] sm:$0xff] %v4312_v46  ;;  %v478_v46 = vpop.f32.mrf.mxu0 }
  0x9c   : > { %7269 = vst [vmem:[#allocation18_spill] sm:$0xff] %v4315_v54  ;;  %v4338_v54 = vmul.f32 %v4226_v60, %v636_v55  ;;  %v4348_v11 = vmul.f32 %v4229_v18, %v478_v46  ;;  %v4367_v18 = vmul.f32 %v4239_v39, %v591_v1 }
  0x9d   : > { %7270 = vst [vmem:[#allocation19_spill] sm:$0xff] %v4320_v6  ;;  %v859_v6 = vperm.slane %v857_v10, 0  ;;  %v4358_v10 = vmul.f32 %v4246_v41, %v478_v46  ;;  %v1477_v41 = vmax.f32 %v4304_v8, 0.0 }
  0x9e   : > { %7271 = vst [vmem:[#allocation20_spill] sm:$0xff] %v4323_v12  ;;  %v7093_v12 = vmov 12  }
  0x9f   : > { %7272 = vst [vmem:[#allocation21_spill] sm:$0xff] %v4326_v31  ;;  %3796 = vset.pattern.permute.xlu0 %v7093_v12  ;;  %v4342_v31 = vmul.f32 %v4233_v32, %v478_v46  ;;  %v4354_v55 = vsub.f32 %v4107_v49, %v859_v6  ;;  %v4361_v32 = vmul.f32 %v4237_v36, %v591_v1  ;;  %v955_v12 = vmax.f32 %v939_v24, 0.0 }
  0xa0   : > { %7273 = vst [vmem:[#allocation22_spill] sm:$0xff] %v4329_v47  ;;  %v4345_v47 = vmul.f32 %v4235_v35, %v478_v46  ;;  %2341 = vperm.xlu0 %3796, %v4049_v33   ;;  %v4364_v35 = vmul.f32 %v4248_v42, %v591_v1  ;;  %v4373_v6 = vmul.f32 %v4254_v43, %v591_v1  ;;  %v2513_v36 = vmax.f32 %v4317_v57, 0.0  ;;  %v526_v42 = vpop.f32.mrf.mxu2  ;;  %v639_v24 = vpop.f32.mrf.mxu3 }
  0xa1   : > { %7274 = vst [vmem:[#allocation23_spill] sm:$0xff] %v4332_v45  ;;  %v4351_v45 = vmul.f32 %v4244_v61, %v478_v46  ;;  %v4370_v61 = vmul.f32 %v4250_v56, %v591_v1  ;;  %v4376_v46 = vperm.slane %v1995_v17, 0  ;;  %v4379_v5 = vperm.slane %v955_v12, 0  ;;  %3783 = vset.pattern.permute.xlu2 %v7277_v16  ;;  %1827 = vperm.xlu1 %3780, %v4054_v34  }
  0xa2   : > { %7275 = vst [vmem:[#allocation24_spill] sm:$0xff] %v4335_v50  ;;  %v3015_v50 = vsub.f32 1.0, %v2999_v2  ;;  %v4381_v39 = vperm.slane %v955_v12, 1  ;;  %v4388_v43 = vmul.f32 %v4193_v63, %v526_v42  ;;  %v4391_v8 = vmul.f32 %v4195_v3, %v526_v42  ;;  %1865 = vperm.xlu2 %3783, %v4036_v30   ;;  %v875_v12 = vpop.permute.xlu1 %874 }
  0xa3   : > { %7276 = vst [vmem:[#allocation25_spill] sm:$0xff] %v4338_v54  ;;  %v851_v54 = vpop.permute.xlu0 %850  ;;  %v4394_v2 = vmul.f32 %v4197_v4, %v526_v42  ;;  %v4396_v57 = vperm.slane %v1477_v41, 0  ;;  %v4400_v17 = vmul.f32 %v4205_v21, %v526_v42  ;;  %v4406_v63 = vmul.f32 %v4199_v9, %v639_v24  ;;  %v481_v4 = vpop.f32.mrf.mxu0 }
  0xa4   : > { %v853_v56 = vperm.slane %v851_v54, 0  ;;  %7278 = vst [vmem:[#allocation26_spill] sm:$0xff] %v4388_v43  ;;  %v4403_v54 = vmul.f32 %v4207_v22, %v526_v42  ;;  %v4409_v3 = vmul.f32 %v4209_v23, %v639_v24  ;;  %v4412_v1 = vmul.f32 %v4213_v37, %v639_v24 }
  0xa5   : > { %7279 = vst [vmem:[#allocation27_spill] sm:$0xff] %v4391_v8  ;;  %v4415_v8 = vmul.f32 %v4217_v44, %v639_v24  ;;  %v4418_v21 = vmul.f32 %v4226_v60, %v639_v24  ;;  %v1054_v22 = vmul.f32 %v4379_v5, %v481_v4  ;;  %v1576_v9 = vmul.f32 %v4396_v57, %v481_v4 }
  0xa6   : > { %7280 = vst [vmem:[#allocation28_spill] sm:$0xff] %v4394_v2  ;;  %v2094_v42 = vmul.f32 %v4376_v46, %v481_v4  ;;  %v4423_v23 = vperm.slane %v2513_v36, 0  ;;  %v7099_v37 = vmov 17   ;;  %v3031_v44 = vmax.f32 %v3015_v50, 0.0 }
  0xa7   : > { %7281 = vst [vmem:[#allocation29_spill] sm:$0xff] %v4400_v17  ;;  %v877_v17 = vperm.slane %v875_v12, 0  ;;  %v4430_v24 = vperm.slane %v1477_v41, 1  ;;  %v4434_v12 = vadd.f32 %v1054_v22, %v4262_v14  ;;  %v4453_v22 = vperm.slane %v2513_v36, 1 }
  0xa8   : > { %7282 = vst [vmem:[#allocation30_spill] sm:$0xff] %v4403_v54  ;;  %3799 = vset.pattern.permute.xlu0 %v7099_v37 }
  0xa9   : > { %7283 = vst [vmem:[#allocation31_spill] sm:$0xff] %v4406_v63  ;;  %v4426_v54 = vsub.f32 %v4107_v49, %v877_v17  ;;  %2395 = vperm.xlu0 %3799, %v4054_v34   ;;  %v2612_v17 = vmul.f32 %v4423_v23, %v481_v4  ;;  %3784 = vset.pattern.permute.xlu1 %v7277_v16 }
  0xaa   : > { %7284 = vst [vmem:[#allocation32_spill] sm:$0xff] %v4409_v3  ;;  %v594_v3 = vpop.f32.mrf.mxu1  ;;  %1873 = vperm.xlu2 %3783, %v4049_v33   ;;  %1869 = vperm.xlu1 %3784, %v4026_v28  }
  0xab   : > { %7285 = vst [vmem:[#allocation33_spill] sm:$0xff] %v4412_v1  ;;  %v1055_v60 = vmul.f32 %v4381_v39, %v594_v3  ;;  %v4443_v1 = vperm.slane %v3031_v44, 0  ;;  %v1577_v41 = vmul.f32 %v4430_v24, %v594_v3  ;;  %v2095_v37 = vmul.f32 %v4383_v26, %v594_v3  ;;  %v484_v63 = vpop.f32.mrf.mxu0 }
  0xac   : > { %7286 = vst [vmem:[#allocation34_spill] sm:$0xff] %v4415_v8  ;;  %v4440_v8 = vadd.f32 %v2094_v42, %v4268_v20  ;;  %v4451_v14 = vadd.f32 %v2612_v17, %v4272_v40  ;;  %v899_v20 = vsub.f32 %v4107_v49, %v853_v56  ;;  %v2613_v36 = vmul.f32 %v4453_v22, %v594_v3 }
  0xad   : > { %7287 = vst [vmem:[#allocation35_spill] sm:$0xff] %v4418_v21  ;;  %v4437_v21 = vadd.f32 %v1576_v9, %v4265_v19  ;;  %v4446_v50 = vadd.f32 %v1055_v60, %v4278_v48  ;;  %v4455_v19 = vperm.slane %v3031_v44, 1  ;;  %v4458_v9 = vpop.permute.xlu0 %868  ;;  %v3130_v42 = vmul.f32 %v4443_v1, %v481_v4 }
  0xae   : > { %7288 = vst [vmem:[#allocation36_spill] sm:$0xff] %v4426_v54  ;;  %v4462_v48 = vadd.f32 %v1577_v41, %v4281_v25  ;;  %v4465_v60 = vadd.f32 %v2095_v37, %v4287_v7  ;;  %v915_v56 = vadd.f32 -2.0, %v899_v20  ;;  %v1437_v4 = vadd.f32 -1.0, %v899_v20 }
  0xaf   : > { %v3131_v44 = vmul.f32 %v4455_v19, %v594_v3  ;;  %v4474_v25 = vadd.f32 %v3130_v42, %v4275_v27  ;;  %v1971_v17 = vand.u32 2147483647, %v899_v20  ;;  %v2473_v7 = vadd.f32 1.0, %v899_v20 }
  0xb0   : > { %v2991_v37 = vadd.f32 2.0, %v899_v20  ;;  %v4477_v16 = vadd.f32 %v2613_v36, %v4290_v62  ;;  %v931_v40 = vand.u32 2147483647, %v915_v56  ;;  %v1453_v3 = vand.u32 2147483647, %v1437_v4  ;;  %v529_v36 = vpop.f32.mrf.mxu2 }
  0xb1   : > { %v4480_v41 = vadd.f32 %v3131_v44, %v4293_v38  ;;  %v1987_v43 = vsub.f32 1.0, %v1971_v17  ;;  %v2489_v2 = vand.u32 2147483647, %v2473_v7  ;;  %v1056_v53 = vmul.f32 %v4379_v5, %v484_v63 }
  0xb2   : > { %v3007_v54 = vand.u32 2147483647, %v2991_v37  ;;  %v947_v15 = vsub.f32 1.0, %v931_v40  ;;  %v1469_v27 = vsub.f32 1.0, %v1453_v3  ;;  %v7103_v42 = vmov 3   ;;  %v642_v40 = vpop.f32.mrf.mxu3 }
  0xb3   : > { %3802 = vset.pattern.permute.xlu0 %v7103_v42  ;;  %v1578_v20 = vmul.f32 %v4396_v57, %v484_v63  ;;  %v2096_v62 = vmul.f32 %v4376_v46, %v484_v63  ;;  %v2003_v38 = vmax.f32 %v1987_v43, 0.0  ;;  %v2505_v44 = vsub.f32 1.0, %v2489_v2 }
  0xb4   : > { %v3023_v56 = vsub.f32 1.0, %v3007_v54  ;;  %v4487_v4 = vadd.f32 %v1056_v53, %v4342_v31  ;;  %2751 = vperm.xlu0 %3802, %v4036_v30   ;;  %v963_v17 = vmax.f32 %v947_v15, 0.0  ;;  %v1485_v5 = vmax.f32 %v1469_v27, 0.0 }
  0xb5   : > { %v4491_v7 = vadd.f32 %v1578_v20, %v4345_v47  ;;  %v4494_v37 = vadd.f32 %v2096_v62, %v4348_v11  ;;  %v2044_v57 = vperm.slane %v2003_v38, 0  ;;  %v2521_v46 = vmax.f32 %v2505_v44, 0.0 }
  0xb6   : > { %v3039_v3 = vmax.f32 %v3023_v56, 0.0  ;;  %v2045_v43 = vperm.slane %v2003_v38, 1  ;;  %v1004_v2 = vperm.slane %v963_v17, 0  ;;  %v1526_v54 = vperm.slane %v1485_v5, 0 }
  0xb7   : > { %v1005_v42 = vperm.slane %v963_v17, 1  ;;  %v1527_v53 = vperm.slane %v1485_v5, 1  ;;  %v3881_v31 = vmov 21   ;;  %v4496_v15 = vmul.f32 %v2044_v57, %v529_v36 }
  0xb8   : > { %3787 = vset.pattern.permute.xlu2 %v3881_v31  ;;  %3786 = vset.pattern.permute.xlu1 %v3881_v31  ;;  %v2562_v27 = vperm.slane %v2521_v46, 0  ;;  %v3080_v13 = vperm.slane %v3039_v3, 0  ;;  %v4498_v47 = vmul.f32 %v2045_v43, %v642_v40  ;;  %v4502_v11 = vmul.f32 %v1004_v2, %v529_v36  ;;  %v597_v31 = vpop.f32.mrf.mxu1 }
  0xb9   : > { %7289 = vst [vmem:[#allocation37_spill] sm:$0xff] %v4496_v15  ;;  %1919 = vperm.xlu2 %3787, %v4026_v28   ;;  %1915 = vperm.xlu1 %3786, %v4036_v30   ;;  %v4504_v20 = vmul.f32 %v1526_v54, %v529_v36  ;;  %v4506_v62 = vmul.f32 %v1005_v42, %v642_v40  ;;  %v2563_v17 = vperm.slane %v2521_v46, 1  ;;  %v3081_v5 = vperm.slane %v3039_v3, 1 }
  0xba   : > { %7290 = vst [vmem:[#allocation38_spill] sm:$0xff] %v4498_v47  ;;  %v4508_v38 = vmul.f32 %v1527_v53, %v642_v40  ;;  %v4510_v44 = vmul.f32 %v2562_v27, %v529_v36  ;;  %v4512_v56 = vmul.f32 %v3080_v13, %v529_v36  ;;  %v2614_v47 = vmul.f32 %v4423_v23, %v484_v63 }
  0xbb   : > { %7291 = vst [vmem:[#allocation39_spill] sm:$0xff] %v4502_v11  ;;  %v3132_v15 = vmul.f32 %v4443_v1, %v484_v63  ;;  %v1057_v30 = vmul.f32 %v4381_v39, %v597_v31  ;;  %v1579_v11 = vmul.f32 %v4430_v24, %v597_v31  ;;  %v2615_v36 = vmul.f32 %v4453_v22, %v597_v31 }
  0xbc   : > { %7292 = vst [vmem:[#allocation40_spill] sm:$0xff] %v4504_v20  ;;  %v4518_v20 = vmul.f32 %v2563_v17, %v642_v40  ;;  %v4525_v46 = vadd.f32 %v2614_v47, %v4351_v45  ;;  %v7299_v45 = vperm.slane %v4458_v9, 0  ;;  %v887_v47 = vpop.permute.xlu0 %886 }
  0xbd   : > { %7293 = vst [vmem:[#allocation41_spill] sm:$0xff] %v4506_v62  ;;  %v4520_v62 = vmul.f32 %v3081_v5, %v642_v40  ;;  %v4528_v3 = vadd.f32 %v3132_v15, %v4358_v10  ;;  %v4531_v63 = vadd.f32 %v1057_v30, %v4361_v32  ;;  %v4534_v39 = vadd.f32 %v1579_v11, %v4364_v35  ;;  %v532_v10 = vpop.f32.mrf.mxu2  ;;  %v487_v30 = vpop.f32.mrf.mxu0 }
  0xbe   : > { %7294 = vst [vmem:[#allocation42_spill] sm:$0xff] %v4508_v38  ;;  %v2097_v38 = vmul.f32 %v4383_v26, %v597_v31  ;;  %v4540_v23 = vadd.f32 %v2615_v36, %v4370_v61  ;;  %v3133_v26 = vmul.f32 %v4455_v19, %v597_v31  ;;  %v4546_v24 = vsub.f32 %v4107_v49, %v7299_v45 }
  0xbf   : > { %7295 = vst [vmem:[#allocation43_spill] sm:$0xff] %v4510_v44  ;;  %v4548_v22 = vmul.f32 %v1004_v2, %v532_v10  ;;  %v4550_v32 = vmul.f32 %v1526_v54, %v532_v10  ;;  %v4552_v35 = vmul.f32 %v2044_v57, %v532_v10  ;;  %v4554_v40 = vmul.f32 %v2562_v27, %v532_v10 }
  0xc0   : > { %7296 = vst [vmem:[#allocation44_spill] sm:$0xff] %v4512_v56  ;;  %v4537_v1 = vadd.f32 %v2097_v38, %v4367_v18  ;;  %v645_v18 = vpop.f32.mrf.mxu3  ;;  %v4557_v61 = vadd.f32 %v3133_v26, %v4373_v6  ;;  %v4559_v15 = vmul.f32 %v3080_v13, %v532_v10  ;;  %v924_v27 = vand.u32 2147483647, %v4297_v29 }
  0xc1   : > { %7297 = vst [vmem:[#allocation45_spill] sm:$0xff] %v4518_v20  ;;  %v4561_v19 = vmul.f32 %v1005_v42, %v645_v18  ;;  %v4563_v9 = vmul.f32 %v1527_v53, %v645_v18  ;;  %1927 = vperm.xlu2 %3787, %v4054_v34   ;;  %v4566_v2 = vmul.f32 %v2045_v43, %v645_v18  ;;  %v1430_v6 = vadd.f32 -1.0, %v4188_v52 }
  0xc2   : > { %7298 = vst [vmem:[#allocation46_spill] sm:$0xff] %v4520_v62  ;;  %v4568_v54 = vmul.f32 %v2563_v17, %v645_v18  ;;  %v4570_v57 = vmul.f32 %v3081_v5, %v645_v18  ;;  %1923 = vperm.xlu1 %3786, %v4049_v33   ;;  %v1964_v13 = vand.u32 2147483647, %v4188_v52  ;;  %v2466_v42 = vadd.f32 1.0, %v4188_v52 }
  0xc3   : > { %7300 = vst [vmem:[#allocation47_spill] sm:$0xff] %v4548_v22  ;;  %v2984_v53 = vadd.f32 2.0, %v4188_v52  ;;  %v940_v34 = vsub.f32 1.0, %v924_v27  ;;  %v889_v43 = vperm.slane %v887_v47, 0  ;;  %v916_v11 = vadd.f32 -2.0, %v4354_v55 }
  0xc4   : > { %7301 = vst [vmem:[#allocation48_spill] sm:$0xff] %v4550_v32  ;;  %v1446_v38 = vand.u32 2147483647, %v1430_v6  ;;  %v1980_v17 = vsub.f32 1.0, %v1964_v13  ;;  %v2482_v5 = vand.u32 2147483647, %v2466_v42  ;;  %v600_v6 = vpop.f32.mrf.mxu1 }
  0xc5   : > { %7302 = vst [vmem:[#allocation49_spill] sm:$0xff] %v4552_v35  ;;  %v7105_v31 = vmov 8   ;;  %v1438_v29 = vadd.f32 -1.0, %v4354_v55  ;;  %v956_v36 = vmax.f32 %v940_v34, 0.0  ;;  %v3000_v26 = vand.u32 2147483647, %v2984_v53 }
  0xc6   : > { %7303 = vst [vmem:[#allocation50_spill] sm:$0xff] %v4554_v40  ;;  %3806 = vset.pattern.permute.xlu0 %v7105_v31  ;;  %v4583_v52 = vsub.f32 %v4107_v49, %v889_v43  ;;  %v932_v45 = vand.u32 2147483647, %v916_v11  ;;  %v1462_v10 = vsub.f32 1.0, %v1446_v38  ;;  %v1996_v18 = vmax.f32 %v1980_v17, 0.0 }
  0xc7   : > { %7304 = vst [vmem:[#allocation51_spill] sm:$0xff] %v4559_v15  ;;  %2805 = vperm.xlu0 %3806, %v4026_v28   ;;  %v2498_v27 = vsub.f32 1.0, %v2482_v5  ;;  %v1454_v13 = vand.u32 2147483647, %v1438_v29  ;;  %v990_v42 = vperm.slane %v956_v36, 0  ;;  %v3016_v47 = vsub.f32 1.0, %v3000_v26 }
  0xc8   : > { %7305 = vst [vmem:[#allocation52_spill] sm:$0xff] %v4561_v19  ;;  %v948_v31 = vsub.f32 1.0, %v932_v45  ;;  %v1478_v62 = vmax.f32 %v1462_v10, 0.0  ;;  %v4589_v34 = vperm.slane %v1996_v18, 1  ;;  %v7311_v20 = vmov 2  }
  0xc9   : > { %7306 = vst [vmem:[#allocation53_spill] sm:$0xff] %v4563_v9  ;;  %v2514_v53 = vmax.f32 %v2498_v27, 0.0  ;;  %3790 = vset.pattern.permute.xlu2 %v7311_v20  ;;  %v1058_v49 = vmul.f32 %v990_v42, %v487_v30  ;;  %v3032_v43 = vmax.f32 %v3016_v47, 0.0 }
  0xca   : > { %7307 = vst [vmem:[#allocation54_spill] sm:$0xff] %v4566_v2  ;;  %v964_v38 = vmax.f32 %v948_v31, 0.0  ;;  %3789 = vset.pattern.permute.xlu1 %v7311_v20  ;;  %2241 = vperm.xlu2 %3790, %v4049_v33   ;;  %v1512_v17 = vperm.slane %v1478_v62, 0  ;;  %v2099_v31 = vmul.f32 %v4589_v34, %v600_v6 }
  0xcb   : > { %7308 = vst [vmem:[#allocation55_spill] sm:$0xff] %v4568_v54  ;;  %v4587_v54 = vperm.slane %v1996_v18, 0  ;;  %v2548_v29 = vperm.slane %v2514_v53, 0  ;;  %2237 = vperm.xlu1 %3789, %v4026_v28   ;;  %v4600_v26 = vadd.f32 %v4434_v12, %v1058_v49  ;;  %v3066_v45 = vperm.slane %v3032_v43, 0  ;;  %v535_v49 = vpop.f32.mrf.mxu2 }
  0xcc   : > { %7309 = vst [vmem:[#allocation56_spill] sm:$0xff] %v4570_v57  ;;  %v4585_v57 = vperm.slane %v956_v36, 1  ;;  %v4596_v36 = vperm.slane %v1478_v62, 1  ;;  %v1580_v20 = vmul.f32 %v1512_v17, %v487_v30  ;;  %v4611_v47 = vadd.f32 %v4465_v60, %v2099_v31  ;;  %v490_v31 = vpop.f32.mrf.mxu0 }
  0xcd   : > { %7310 = vst [vmem:[#allocation57_spill] sm:$0xff] %v4583_v52  ;;  %v2098_v5 = vmul.f32 %v4587_v54, %v487_v30  ;;  %v2616_v18 = vmul.f32 %v2548_v29, %v487_v30  ;;  %v3134_v62 = vmul.f32 %v3066_v45, %v487_v30  ;;  %v4613_v28 = vperm.slane %v2514_v53, 1 }
  0xce   : > { %v1059_v11 = vmul.f32 %v4585_v57, %v600_v6  ;;  %v1581_v27 = vmul.f32 %v4596_v36, %v600_v6  ;;  %v4615_v12 = vperm.slane %v3032_v43, 1  ;;  %v1470_v43 = vsub.f32 1.0, %v1454_v13 }
  0xcf   : > { %v4607_v33 = vadd.f32 %v4440_v8, %v2098_v5  ;;  %v4626_v5 = vperm.slane %v964_v38, 0  ;;  %v4629_v30 = vadd.f32 %v4474_v25, %v3134_v62  ;;  %v2617_v60 = vmul.f32 %v4613_v28, %v600_v6 }
  0xd0   : > { %v4603_v10 = vadd.f32 %v4446_v50, %v1059_v11  ;;  %v4618_v50 = vadd.f32 %v4437_v21, %v1580_v20  ;;  %v4621_v11 = vadd.f32 %v4451_v14, %v2616_v18  ;;  %v4624_v8 = vadd.f32 %v4462_v48, %v1581_v27  ;;  %v648_v18 = vpop.f32.mrf.mxu3 }
  0xd1   : > { %v3135_v53 = vmul.f32 %v4615_v12, %v600_v6  ;;  %v4634_v21 = vmul.f32 %v4626_v5, %v535_v49  ;;  %v1972_v14 = vand.u32 2147483647, %v4354_v55  ;;  %v2474_v20 = vadd.f32 1.0, %v4354_v55 }
  0xd2   : > { %v2992_v48 = vadd.f32 2.0, %v4354_v55  ;;  %v4640_v27 = vadd.f32 %v4477_v16, %v2617_v60  ;;  %v1486_v62 = vmax.f32 %v1470_v43, 0.0  ;;  %v4645_v6 = vperm.slane %v964_v38, 1  ;;  %v4651_v55 = vld [vmem:[%s7072_s3 + $0x18] sm:$0x1]  ;;  %v4657_v16 = vld [vmem:[%s7072_s3] sm:$0xff] }
  0xd3   : > { %7312 = vst [vmem:[#allocation58_spill] sm:$0xff] %v4634_v21  ;;  %v4643_v25 = vadd.f32 %v4480_v41, %v3135_v53  ;;  %v7313_v13 = vmov 7   ;;  %v1988_v52 = vsub.f32 1.0, %v1972_v14  ;;  %v2490_v2 = vand.u32 2147483647, %v2474_v20  ;;  %2245 = vperm.xlu1 %3789, %v4651_v55  }
  0xd4   : > { %3791 = vset.pattern.permute.xlu2 %v7313_v13  ;;  %v3008_v9 = vand.u32 2147483647, %v2992_v48  ;;  %v1060_v15 = vmul.f32 %v990_v42, %v490_v31  ;;  %7314 = vst [vmem:[#allocation59_spill] sm:$0xff] %v4657_v16  ;;  %v1528_v41 = vperm.slane %v1486_v62, 0  ;;  %v4661_v38 = vmul.f32 %v4645_v6, %v648_v18  ;;  %v603_v48 = vpop.f32.mrf.mxu1 }
  0xd5   : > { %2283 = vperm.xlu2 %3791, %v4657_v16   ;;  %v1529_v60 = vperm.slane %v1486_v62, 1  ;;  %v1582_v42 = vmul.f32 %v1512_v17, %v490_v31  ;;  %v2004_v53 = vmax.f32 %v1988_v52, 0.0  ;;  %v2506_v43 = vsub.f32 1.0, %v2490_v2 }
  0xd6   : > { %7315 = vst [vmem:[#allocation60_spill] sm:$0xff] %v4661_v38  ;;  %v3024_v14 = vsub.f32 1.0, %v3008_v9  ;;  %v4664_v20 = vadd.f32 %v4487_v4, %v1060_v15  ;;  %v4666_v56 = vmul.f32 %v1528_v41, %v535_v49  ;;  %v2100_v44 = vmul.f32 %v4587_v54, %v490_v31 }
  0xd7   : > { %v4668_v19 = vmul.f32 %v1529_v60, %v648_v18  ;;  %v4671_v40 = vadd.f32 %v4491_v7, %v1582_v42  ;;  %v2046_v21 = vperm.slane %v2004_v53, 0  ;;  %v2522_v38 = vmax.f32 %v2506_v43, 0.0 }
  0xd8   : > { %7316 = vst [vmem:[#allocation61_spill] sm:$0xff] %v4666_v56  ;;  %v3040_v62 = vmax.f32 %v3024_v14, 0.0  ;;  %v2047_v17 = vperm.slane %v2004_v53, 1  ;;  %v4675_v2 = vadd.f32 %v4494_v37, %v2100_v44  ;;  %v2618_v9 = vmul.f32 %v2548_v29, %v490_v31  ;;  %v538_v37 = vpop.f32.mrf.mxu2  ;;  %v651_v43 = vpop.f32.mrf.mxu3 }
  0xd9   : > { %7317 = vst [vmem:[#allocation62_spill] sm:$0xff] %v4668_v19  ;;  %v3136_v4 = vmul.f32 %v3066_v45, %v490_v31  ;;  %v1061_v15 = vmul.f32 %v4585_v57, %v603_v48  ;;  %v4678_v52 = vmul.f32 %v2046_v21, %v535_v49  ;;  %v2564_v56 = vperm.slane %v2522_v38, 0 }
  0xda   : > { %v3082_v19 = vperm.slane %v3040_v62, 0  ;;  %v4680_v32 = vmul.f32 %v2047_v17, %v648_v18  ;;  %v2565_v7 = vperm.slane %v2522_v38, 1  ;;  %v3083_v42 = vperm.slane %v3040_v62, 1 }
  0xdb   : > { %7318 = vst [vmem:[#allocation63_spill] sm:$0xff] %v4678_v52  ;;  %v4683_v54 = vadd.f32 %v4525_v46, %v2618_v9  ;;  %v4686_v53 = vadd.f32 %v4528_v3, %v3136_v4  ;;  %v4688_v44 = vmul.f32 %v2564_v56, %v535_v49  ;;  %v4693_v57 = vadd.f32 %v4531_v63, %v1061_v15 }
  0xdc   : > { %7319 = vst [vmem:[#allocation64_spill] sm:$0xff] %v4680_v32  ;;  %v4690_v29 = vmul.f32 %v3082_v19, %v535_v49  ;;  %v1583_v45 = vmul.f32 %v4596_v36, %v603_v48  ;;  %3793 = vset.pattern.permute.xlu1 %v7313_v13  ;;  %v4697_v31 = vmul.f32 %v2565_v7, %v648_v18  ;;  %v1431_v9 = vadd.f32 -1.0, %v4224_v58 }
  0xdd   : > { %7320 = vst [vmem:[#allocation65_spill] sm:$0xff] %v4688_v44  ;;  %v4699_v38 = vmul.f32 %v3083_v42, %v648_v18  ;;  %v2101_v46 = vmul.f32 %v4589_v34, %v603_v48  ;;  %v2619_v3 = vmul.f32 %v4613_v28, %v603_v48  ;;  %2295 = vperm.xlu2 %3791, %v4651_v55   ;;  %v4714_v18 = vld [vmem:[%s7072_s3 + $0x10] sm:$0xff]  ;;  %v2985_v4 = vadd.f32 2.0, %v4224_v58 }
  0xde   : > { %7321 = vst [vmem:[#allocation66_spill] sm:$0xff] %v4690_v29  ;;  %v4705_v49 = vadd.f32 %v4534_v39, %v1583_v45  ;;  %v3137_v63 = vmul.f32 %v4615_v12, %v603_v48  ;;  %v4709_v36 = vmul.f32 %v4626_v5, %v538_v37  ;;  %2291 = vperm.xlu1 %3793, %v4714_v18   ;;  %v7108_v39 = vmov 13  }
  0xdf   : > { %7322 = vst [vmem:[#allocation67_spill] sm:$0xff] %v4697_v31  ;;  %v4718_v34 = vadd.f32 %v4537_v1, %v2101_v46  ;;  %v4721_v28 = vadd.f32 %v4540_v23, %v2619_v3  ;;  %3810 = vset.pattern.permute.xlu0 %v7108_v39  ;;  %v4724_v12 = vmul.f32 %v1528_v41, %v538_v37  ;;  %v1447_v15 = vand.u32 2147483647, %v1431_v9  ;;  %v4768_v9 = vld [vmem:[%s7072_s3 + $0x8] sm:$0xff] }
  0xe0   : > { %7323 = vst [vmem:[#allocation68_spill] sm:$0xff] %v4699_v38  ;;  %v4726_v5 = vmul.f32 %v2046_v21, %v538_v37  ;;  %v4729_v13 = vadd.f32 %v4557_v61, %v3137_v63  ;;  %2859 = vperm.xlu0 %3810, %v4714_v18   ;;  %v4732_v14 = vmul.f32 %v2564_v56, %v538_v37  ;;  %v909_v61 = vadd.f32 -2.0, %v4224_v58 }
  0xe1   : > { %7324 = vst [vmem:[#allocation69_spill] sm:$0xff] %v4709_v36  ;;  %v4734_v48 = vmul.f32 %v3082_v19, %v538_v37  ;;  %v4737_v1 = vmul.f32 %v4645_v6, %v651_v43  ;;  %v4739_v23 = vmul.f32 %v1529_v60, %v651_v43  ;;  %v4741_v62 = vmul.f32 %v2047_v17, %v651_v43 }
  0xe2   : > { %7325 = vst [vmem:[#allocation70_spill] sm:$0xff] %v4714_v18  ;;  %v4743_v41 = vmul.f32 %v2565_v7, %v651_v43  ;;  %v4745_v21 = vmul.f32 %v3083_v42, %v651_v43  ;;  %v1965_v56 = vand.u32 2147483647, %v4224_v58  ;;  %v2467_v19 = vadd.f32 1.0, %v4224_v58 }
  0xe3   : > { %7326 = vst [vmem:[#allocation71_spill] sm:$0xff] %v4724_v12  ;;  %v917_v6 = vadd.f32 -2.0, %v4185_v51  ;;  %v1439_v60 = vadd.f32 -1.0, %v4185_v51  ;;  %v925_v17 = vand.u32 2147483647, %v909_v61  ;;  %v4755_v42 = vadd.f32 1.0, %v4185_v51 }
  0xe4   : > { %7327 = vst [vmem:[#allocation72_spill] sm:$0xff] %v4726_v5  ;;  %v1981_v7 = vsub.f32 1.0, %v1965_v56  ;;  %v7335_v37 = vcvt.s32.f32 %v4125_v0  ;;  %v7336_v45 = vperm.slane %v4119_v59, 1  ;;  %v2483_v3 = vand.u32 2147483647, %v2467_v19  ;;  %v493_v59 = vpop.f32.mrf.mxu0 }
  0xe5   : > { %7328 = vst [vmem:[#allocation73_spill] sm:$0xff] %v4732_v14  ;;  %v3001_v43 = vand.u32 2147483647, %v2985_v4  ;;  %v933_v63 = vand.u32 2147483647, %v917_v6  ;;  %v7338_v58 = vmov 12  }
  0xe6   : > { %7329 = vst [vmem:[#allocation74_spill] sm:$0xff] %v4734_v48  ;;  %v4761_v46 = vsub.f32 %v7336_v45, %v7335_v37  ;;  %3795 = vset.pattern.permute.xlu2 %v7338_v58  ;;  %v941_v39 = vsub.f32 1.0, %v925_v17  ;;  %v1997_v38 = vmax.f32 %v1981_v7, 0.0  ;;  %v1455_v61 = vand.u32 2147483647, %v1439_v60  ;;  %3794 = vset.pattern.permute.xlu1 %v7338_v58 }
  0xe7   : > { %7330 = vst [vmem:[#allocation75_spill] sm:$0xff] %v4737_v1  ;;  %2337 = vperm.xlu2 %3795, %v4768_v9   ;;  %v2499_v0 = vsub.f32 1.0, %v2483_v3  ;;  %v3017_v56 = vsub.f32 1.0, %v3001_v43  ;;  %v949_v19 = vsub.f32 1.0, %v933_v63  ;;  %v1973_v4 = vand.u32 2147483647, %v4185_v51  ;;  %2333 = vperm.xlu1 %3794, %v4657_v16  }
  0xe8   : > { %7331 = vst [vmem:[#allocation76_spill] sm:$0xff] %v4739_v23  ;;  %v957_v6 = vmax.f32 %v941_v39, 0.0  ;;  %v4773_v60 = vperm.slane %v1997_v38, 0  ;;  %v4775_v7 = vperm.slane %v1997_v38, 1  ;;  %v7111_v37 = vmov 18  }
  0xe9   : > { %7332 = vst [vmem:[#allocation77_spill] sm:$0xff] %v4741_v62  ;;  %3813 = vset.pattern.permute.xlu0 %v7111_v37  ;;  %v2515_v45 = vmax.f32 %v2499_v0, 0.0  ;;  %v3033_v58 = vmax.f32 %v3017_v56, 0.0  ;;  %v965_v3 = vmax.f32 %v949_v19, 0.0  ;;  %v1471_v43 = vsub.f32 1.0, %v1455_v61 }
  0xea   : > { %7333 = vst [vmem:[#allocation78_spill] sm:$0xff] %v4743_v41  ;;  %2913 = vperm.xlu0 %3813, %v4651_v55   ;;  %v992_v63 = vperm.slane %v957_v6, 0  ;;  %v2102_v41 = vmul.f32 %v4773_v60, %v493_v59  ;;  %v4780_v39 = vperm.slane %v957_v6, 1  ;;  %v7339_v29 = vmov 17  }
  0xeb   : > { %7334 = vst [vmem:[#allocation79_spill] sm:$0xff] %v4745_v21  ;;  %v1463_v21 = vsub.f32 1.0, %v1447_v15  ;;  %v606_v15 = vpop.f32.mrf.mxu1  ;;  %v4784_v31 = vperm.slane %v3033_v58, 0 }
  0xec   : > { %7337 = vst [vmem:[#allocation80_spill] sm:$0xff] %v4761_v46  ;;  %v2103_v37 = vmul.f32 %v4775_v7, %v606_v15  ;;  %v1062_v0 = vmul.f32 %v992_v63, %v493_v59  ;;  %v4790_v62 = vadd.f32 %v4607_v33, %v2102_v41  ;;  %v1063_v61 = vmul.f32 %v4780_v39, %v606_v15  ;;  %v496_v14 = vpop.f32.mrf.mxu0 }
  0xed   : > { %v1479_v17 = vmax.f32 %v1463_v21, 0.0  ;;  %v4782_v21 = vperm.slane %v2515_v45, 0  ;;  %v3138_v6 = vmul.f32 %v4784_v31, %v493_v59  ;;  %v4808_v41 = vperm.slane %v2515_v45, 1 }
  0xee   : > { %v4797_v32 = vadd.f32 %v4611_v47, %v2103_v37  ;;  %v4806_v33 = vadd.f32 %v4603_v10, %v1063_v61  ;;  %v541_v37 = vpop.f32.mrf.mxu2  ;;  %v1487_v45 = vmax.f32 %v1471_v43, 0.0  ;;  %v2993_v61 = vadd.f32 2.0, %v4185_v51 }
  0xef   : > { %v1514_v46 = vperm.slane %v1479_v17, 0  ;;  %v4786_v38 = vperm.slane %v1479_v17, 1  ;;  %v2620_v19 = vmul.f32 %v4782_v21, %v493_v59  ;;  %v4800_v17 = vadd.f32 %v4600_v26, %v1062_v0  ;;  %3797 = vset.pattern.permute.xlu2 %v7339_v29  ;;  %2345 = vperm.xlu1 %3794, %v4651_v55  }
  0xf0   : > { %v4815_v1 = vadd.f32 %v4629_v30, %v3138_v6  ;;  %v3069_v26 = vperm.slane %v3033_v58, 1  ;;  %2383 = vperm.xlu2 %3797, %v4657_v16   ;;  %v2621_v10 = vmul.f32 %v4808_v41, %v606_v15  ;;  %v1989_v0 = vsub.f32 1.0, %v1973_v4 }
  0xf1   : > { %v1584_v56 = vmul.f32 %v1514_v46, %v493_v59  ;;  %v1585_v23 = vmul.f32 %v4786_v38, %v606_v15  ;;  %v4812_v59 = vadd.f32 %v4621_v11, %v2620_v19  ;;  %v654_v11 = vpop.f32.mrf.mxu3  ;;  %v2491_v30 = vand.u32 2147483647, %v4755_v42 }
  0xf2   : > { %v1530_v19 = vperm.slane %v1487_v45, 0  ;;  %v2005_v6 = vmax.f32 %v1989_v0, 0.0  ;;  %v1531_v44 = vperm.slane %v1487_v45, 1  ;;  %v1064_v36 = vmul.f32 %v992_v63, %v496_v14 }
  0xf3   : > { %v4803_v48 = vadd.f32 %v4618_v50, %v1584_v56  ;;  %v4818_v47 = vadd.f32 %v4624_v8, %v1585_v23  ;;  %v4823_v50 = vperm.slane %v965_v3, 0  ;;  %v3139_v56 = vmul.f32 %v3069_v26, %v606_v15  ;;  %v609_v45 = vpop.f32.mrf.mxu1 }
  0xf4   : > { %v4827_v8 = vperm.slane %v965_v3, 1  ;;  %v4830_v23 = vadd.f32 %v4640_v27, %v2621_v10  ;;  %v2507_v4 = vsub.f32 1.0, %v2491_v30  ;;  %v3009_v15 = vand.u32 2147483647, %v2993_v61 }
  0xf5   : > { %v4833_v58 = vmul.f32 %v4823_v50, %v541_v37  ;;  %v4836_v43 = vadd.f32 %v4643_v25, %v3139_v56  ;;  %v4841_v51 = vmul.f32 %v1530_v19, %v541_v37  ;;  %v2048_v3 = vperm.slane %v2005_v6, 0 }
  0xf6   : > { %v4839_v42 = vmul.f32 %v4827_v8, %v654_v11  ;;  %v2049_v27 = vperm.slane %v2005_v6, 1  ;;  %v2523_v10 = vmax.f32 %v2507_v4, 0.0  ;;  %v3025_v12 = vsub.f32 1.0, %v3009_v15 }
  0xf7   : > { %7340 = vst [vmem:[#allocation81_spill] sm:$0xff] %v4833_v58  ;;  %v1586_v58 = vmul.f32 %v1514_v46, %v496_v14  ;;  %v4843_v5 = vmul.f32 %v2048_v3, %v541_v37  ;;  %v4845_v0 = vmul.f32 %v1531_v44, %v654_v11  ;;  %v2104_v56 = vmul.f32 %v4773_v60, %v496_v14 }
  0xf8   : > { %7341 = vst [vmem:[#allocation82_spill] sm:$0xff] %v4839_v42  ;;  %v4847_v25 = vmul.f32 %v2049_v27, %v654_v11  ;;  %v2566_v30 = vperm.slane %v2523_v10, 0  ;;  %v3041_v61 = vmax.f32 %v3025_v12, 0.0  ;;  %v2567_v42 = vperm.slane %v2523_v10, 1  ;;  %3798 = vset.pattern.permute.xlu1 %v7339_v29  ;;  %2391 = vperm.xlu2 %3797, %v4714_v18  }
  0xf9   : > { %7342 = vst [vmem:[#allocation83_spill] sm:$0xff] %v4841_v51  ;;  %v4851_v51 = vadd.f32 %v4664_v20, %v1064_v36  ;;  %v4856_v46 = vadd.f32 %v4671_v40, %v1586_v58  ;;  %v4859_v63 = vadd.f32 %v4675_v2, %v2104_v56  ;;  %v2622_v6 = vmul.f32 %v4782_v21, %v496_v14  ;;  %v4876_v58 = vpop.f32.mrf.mxu2 }
  0xfa   : > { %7343 = vst [vmem:[#allocation84_spill] sm:$0xff] %v4843_v5  ;;  %v3140_v60 = vmul.f32 %v4784_v31, %v496_v14  ;;  %2387 = vperm.xlu1 %3798, %v4768_v9   ;;  %v4864_v12 = vmul.f32 %v2566_v30, %v541_v37  ;;  %v3084_v20 = vperm.slane %v3041_v61, 0  ;;  %v4866_v36 = vmul.f32 %v2567_v42, %v654_v11 }
  0xfb   : > { %7344 = vst [vmem:[#allocation85_spill] sm:$0xff] %v4845_v0  ;;  %v3085_v29 = vperm.slane %v3041_v61, 1  ;;  %v4869_v4 = vadd.f32 %v4683_v54, %v2622_v6  ;;  %v1065_v2 = vmul.f32 %v4780_v39, %v609_v45  ;;  %v1587_v21 = vmul.f32 %v4786_v38, %v609_v45  ;;  %v4890_v39 = vpop.f32.mrf.mxu3  ;;  %v7350_v38 = vld [vmem:[#allocation8_spill] sm:$0xff] }
  0xfc   : > { %7345 = vst [vmem:[#allocation86_spill] sm:$0xff] %v4847_v25  ;;  %v4872_v40 = vadd.f32 %v4686_v53, %v3140_v60  ;;  %v4878_v31 = vmul.f32 %v3084_v20, %v541_v37  ;;  %v2105_v15 = vmul.f32 %v4775_v7, %v609_v45  ;;  %v2623_v10 = vmul.f32 %v4808_v41, %v609_v45  ;;  %v7360_v60 = vld [vmem:[#allocation2_spill] sm:$0xff] }
  0xfd   : > { %7346 = vst [vmem:[#allocation87_spill] sm:$0xff] %v4864_v12  ;;  %v4880_v14 = vmul.f32 %v3085_v29, %v654_v11  ;;  %v4885_v54 = vadd.f32 %v4693_v57, %v1065_v2  ;;  %v4888_v53 = vadd.f32 %v4705_v49, %v1587_v21  ;;  %v3141_v56 = vmul.f32 %v3069_v26, %v609_v45  ;;  %v7355_v26 = vld [vmem:[#allocation9_spill] sm:$0xff]  ;;  %v7361_v21 = vld [vmem:[#allocation10_spill] sm:$0xff] }
  0xfe   : > { %7347 = vst [vmem:[#allocation88_spill] sm:$0xff] %v4866_v36  ;;  %v703_v61 = vand.u32 2147483647, %v7350_v38  ;;  %v4894_v37 = vadd.f32 %v4718_v34, %v2105_v15  ;;  %v4897_v11 = vadd.f32 %v4721_v28, %v2623_v10  ;;  %v7113_v7 = vmov 4   ;;  %v7362_v10 = vld [vmem:[#allocation11_spill] sm:$0xff]  ;;  %v7363_v38 = vld [vmem:[#allocation4_spill] sm:$0xff] }
  0xff   : > { %7348 = vst [vmem:[#allocation89_spill] sm:$0xff] %v4878_v31  ;;  %3816 = vset.pattern.permute.xlu0 %v7113_v7  ;;  %v4901_v57 = vmul.f32 %v1530_v19, %v4876_v58  ;;  %v4904_v49 = vadd.f32 %v4729_v13, %v3141_v56  ;;  %v4908_v41 = vmul.f32 %v2048_v3, %v4876_v58  ;;  %v718_v45 = vand.u32 2147483647, %v7355_v26  ;;  %v7369_v15 = vld [vmem:[#allocation6_spill] sm:$0xff] }
 0x100   : > { %7349 = vst [vmem:[#allocation90_spill] sm:$0xff] %v4880_v14  ;;  %3269 = vperm.xlu0 %3816, %v4657_v16   ;;  %v4911_v34 = vmul.f32 %v2566_v30, %v4876_v58  ;;  %v4914_v28 = vmul.f32 %v3084_v20, %v4876_v58  ;;  %v4918_v6 = vmul.f32 %v1531_v44, %v4890_v39  ;;  %v910_v30 = vadd.f32 -2.0, %v7360_v60  ;;  %v7366_v14 = vld [vmem:[#allocation5_spill] sm:$0xff] }
 0x101   : > { %7351 = vst [vmem:[#allocation8_spill] sm:$0xff] %v4901_v57  ;;  %v4921_v19 = vmul.f32 %v2049_v27, %v4890_v39  ;;  %v4924_v13 = vmul.f32 %v2567_v42, %v4890_v39  ;;  %v4927_v3 = vmul.f32 %v3085_v29, %v4890_v39  ;;  %v1432_v2 = vadd.f32 -1.0, %v7360_v60 }
 0x102   : > { %7352 = vst [vmem:[#allocation91_spill] sm:$0xff] %v4908_v41  ;;  %v1966_v20 = vand.u32 2147483647, %v7360_v60  ;;  %v2468_v56 = vadd.f32 1.0, %v7360_v60  ;;  %v2986_v27 = vadd.f32 2.0, %v7360_v60  ;;  %v4948_v12 = vsub.f32 1.0, %v703_v61 }
 0x103   : > { %7353 = vst [vmem:[#allocation92_spill] sm:$0xff] %v4911_v34  ;;  %v7364_v42 = vand.u32 2147483647, %v7363_v38  ;;  %v926_v29 = vand.u32 2147483647, %v910_v30  ;;  %v499_v30 = vpop.f32.mrf.mxu0 }
 0x104   : > { %7354 = vst [vmem:[#allocation93_spill] sm:$0xff] %v4914_v28  ;;  %v1448_v7 = vand.u32 2147483647, %v1432_v2  ;;  %v3002_v25 = vand.u32 2147483647, %v2986_v27  ;;  %v7115_v27 = vmov 9  }
 0x105   : > { %7356 = vst [vmem:[#allocation9_spill] sm:$0xff] %v4918_v6  ;;  %v4938_v26 = vsub.f32 1.0, %v7364_v42  ;;  %v7370_v28 = vand.u32 2147483647, %v7369_v15  ;;  %v942_v31 = vsub.f32 1.0, %v926_v29  ;;  %v4950_v42 = vsub.f32 1.0, %v718_v45 }
 0x106   : > { %7357 = vst [vmem:[#allocation94_spill] sm:$0xff] %v4921_v19  ;;  %v2484_v19 = vand.u32 2147483647, %v2468_v56  ;;  %v1464_v34 = vsub.f32 1.0, %v1448_v7  ;;  %v612_v56 = vpop.f32.mrf.mxu1  ;;  %v1974_v61 = vand.u32 2147483647, %v4546_v24 }
 0x107   : > { %7358 = vst [vmem:[#allocation95_spill] sm:$0xff] %v4924_v13  ;;  %v7367_v13 = vand.u32 2147483647, %v7366_v14  ;;  %v4946_v44 = vsub.f32 1.0, %v7370_v28  ;;  %v958_v41 = vmax.f32 %v942_v31, 0.0  ;;  %v918_v28 = vadd.f32 -2.0, %v4546_v24 }
 0x108   : > { %7359 = vst [vmem:[#allocation96_spill] sm:$0xff] %v4927_v3  ;;  %v1982_v3 = vsub.f32 1.0, %v1966_v20  ;;  %v2500_v2 = vsub.f32 1.0, %v2484_v19  ;;  %v3018_v20 = vsub.f32 1.0, %v3002_v25  ;;  %v1480_v5 = vmax.f32 %v1464_v34, 0.0  ;;  %3820 = vset.pattern.permute.xlu0 %v7115_v27 }
 0x109   : > { %7365 = vst [vmem:[#allocation2_spill] sm:$0xff] %v4938_v26  ;;  %v4942_v36 = vsub.f32 1.0, %v7367_v13  ;;  %3323 = vperm.xlu0 %3820, %v4768_v9   ;;  %v994_v45 = vperm.slane %v958_v41, 0  ;;  %v995_v34 = vperm.slane %v958_v41, 1 }
 0x10a   : > { %7371 = vst [vmem:[#allocation11_spill] sm:$0xff] %v4946_v44  ;;  %v1998_v60 = vmax.f32 %v1982_v3, 0.0  ;;  %v2516_v15 = vmax.f32 %v2500_v2, 0.0  ;;  %v3034_v7 = vmax.f32 %v3018_v20, 0.0  ;;  %v1516_v25 = vperm.slane %v1480_v5, 0 }
 0x10b   : > { %7368 = vst [vmem:[#allocation10_spill] sm:$0xff] %v4942_v36  ;;  %v4961_v36 = vperm.slane %v1480_v5, 1  ;;  %v1067_v20 = vmul.f32 %v995_v34, %v612_v56 }
 0x10c   : > { %7372 = vst [vmem:[#allocation4_spill] sm:$0xff] %v4948_v12  ;;  %v4952_v13 = vperm.slane %v1998_v60, 0  ;;  %v4956_v3 = vperm.slane %v1998_v60, 1  ;;  %v2552_v19 = vperm.slane %v2516_v15, 0  ;;  %v3070_v29 = vperm.slane %v3034_v7, 0 }
 0x10d   : > { %7373 = vst [vmem:[#allocation5_spill] sm:$0xff] %v4950_v42  ;;  %v1066_v12 = vmul.f32 %v994_v45, %v499_v30  ;;  %v1588_v2 = vmul.f32 %v1516_v25, %v499_v30  ;;  %v1589_v44 = vmul.f32 %v4961_v36, %v612_v56  ;;  %v4978_v0 = vadd.f32 %v4806_v33, %v1067_v20 }
 0x10e   : > { %v2106_v31 = vmul.f32 %v4952_v13, %v499_v30  ;;  %v2107_v27 = vmul.f32 %v4956_v3, %v612_v56  ;;  %v2624_v26 = vmul.f32 %v2552_v19, %v499_v30  ;;  %v3142_v42 = vmul.f32 %v3070_v29, %v499_v30 }
 0x10f   : > { %v4972_v41 = vadd.f32 %v4800_v17, %v1066_v12  ;;  %v4975_v5 = vadd.f32 %v4803_v48, %v1588_v2  ;;  %v2553_v57 = vperm.slane %v2516_v15, 1  ;;  %v4990_v17 = vadd.f32 2.0, %v7363_v38 }
 0x110   : > { %v4965_v60 = vadd.f32 %v4790_v62, %v2106_v31  ;;  %v4969_v6 = vadd.f32 %v4797_v32, %v2107_v27  ;;  %v4981_v62 = vadd.f32 %v4812_v59, %v2624_v26  ;;  %v4984_v30 = vadd.f32 %v4815_v1, %v3142_v42  ;;  %v7374_v27 = vld [vmem:[#allocation12_spill] sm:$0xff] }
 0x111   : > { %v4987_v31 = vadd.f32 %v4818_v47, %v1589_v44  ;;  %v3071_v32 = vperm.slane %v3034_v7, 1  ;;  %v2625_v12 = vmul.f32 %v2553_v57, %v612_v56  ;;  %v4993_v48 = vadd.f32 -1.0, %v4546_v24  ;;  %v502_v7 = vpop.f32.mrf.mxu0 }
 0x112   : > { %v1990_v33 = vsub.f32 1.0, %v1974_v61  ;;  %v751_v15 = vand.u32 2147483647, %v7374_v27  ;;  %v2476_v59 = vadd.f32 1.0, %v4546_v24  ;;  %v2994_v1 = vadd.f32 2.0, %v4546_v24 }
 0x113   : > { %v3143_v2 = vmul.f32 %v3071_v32, %v612_v56  ;;  %v7375_v26 = vand.u32 2147483647, %v7361_v21  ;;  %v5003_v44 = vadd.f32 %v4830_v23, %v2625_v12  ;;  %v934_v38 = vand.u32 2147483647, %v918_v28  ;;  %v5011_v56 = vpop.f32.mrf.mxu2 }
 0x114   : > { %v2006_v42 = vmax.f32 %v1990_v33, 0.0  ;;  %v5006_v20 = vadd.f32 2.0, %v7366_v14  ;;  %v2492_v27 = vand.u32 2147483647, %v2476_v59  ;;  %v3010_v24 = vand.u32 2147483647, %v2994_v1  ;;  %v5019_v33 = vpop.f32.mrf.mxu3 }
 0x115   : > { %v5000_v47 = vsub.f32 1.0, %v7375_v26  ;;  %v5009_v61 = vadd.f32 %v4836_v43, %v3143_v2  ;;  %v766_v21 = vand.u32 2147483647, %v4990_v17  ;;  %v1456_v26 = vand.u32 2147483647, %v4993_v48  ;;  %v615_v43 = vpop.f32.mrf.mxu1 }
 0x116   : > { %7377 = vst [vmem:[#allocation12_spill] sm:$0xff] %v5006_v20  ;;  %v5017_v23 = vperm.slane %v2006_v42, 1  ;;  %v2508_v28 = vsub.f32 1.0, %v2492_v27  ;;  %v3026_v12 = vsub.f32 1.0, %v3010_v24  ;;  %v1068_v14 = vmul.f32 %v994_v45, %v502_v7 }
 0x117   : > { %7376 = vst [vmem:[#allocation6_spill] sm:$0xff] %v5000_v47  ;;  %v5015_v47 = vperm.slane %v2006_v42, 0  ;;  %v1590_v52 = vmul.f32 %v1516_v25, %v502_v7  ;;  %v5021_v2 = vsub.f32 1.0, %v934_v38  ;;  %v2108_v48 = vmul.f32 %v4952_v13, %v502_v7 }
 0x118   : > { %v5029_v17 = vmul.f32 %v5017_v23, %v5019_v33  ;;  %v2524_v1 = vmax.f32 %v2508_v28, 0.0  ;;  %v3042_v42 = vmax.f32 %v3026_v12, 0.0  ;;  %v5033_v27 = vadd.f32 %v4851_v51, %v1068_v14 }
 0x119   : > { %v5025_v59 = vmul.f32 %v5015_v47, %v5011_v56  ;;  %v5036_v45 = vadd.f32 %v4856_v46, %v1590_v52  ;;  %v5039_v25 = vadd.f32 %v4859_v63, %v2108_v48  ;;  %v2626_v38 = vmul.f32 %v2552_v19, %v502_v7 }
 0x11a   : > { %7379 = vst [vmem:[#allocation98_spill] sm:$0xff] %v5029_v17  ;;  %v3144_v24 = vmul.f32 %v3070_v29, %v502_v7  ;;  %v2568_v22 = vperm.slane %v2524_v1, 0  ;;  %v3086_v35 = vperm.slane %v3042_v42, 0  ;;  %v2569_v16 = vperm.slane %v2524_v1, 1 }
 0x11b   : > { %7378 = vst [vmem:[#allocation97_spill] sm:$0xff] %v5025_v59  ;;  %v1069_v59 = vmul.f32 %v995_v34, %v615_v43  ;;  %v3087_v17 = vperm.slane %v3042_v42, 1  ;;  %v5042_v13 = vadd.f32 %v4869_v4, %v2626_v38  ;;  %v1591_v52 = vmul.f32 %v4961_v36, %v615_v43 }
 0x11c   : > { %v5045_v28 = vadd.f32 %v4872_v40, %v3144_v24  ;;  %v5052_v46 = vmul.f32 %v2568_v22, %v5011_v56  ;;  %v5055_v63 = vmul.f32 %v3086_v35, %v5011_v56  ;;  %v5058_v34 = vmul.f32 %v2569_v16, %v5019_v33 }
 0x11d   : > { %v5048_v51 = vadd.f32 %v4885_v54, %v1069_v59  ;;  %v5061_v4 = vmul.f32 %v3087_v17, %v5019_v33  ;;  %v5064_v40 = vadd.f32 %v4888_v53, %v1591_v52  ;;  %v2109_v54 = vmul.f32 %v4956_v3, %v615_v43  ;;  %v5074_v59 = vpop.f32.mrf.mxu2 }
 0x11e   : > { %7380 = vst [vmem:[#allocation99_spill] sm:$0xff] %v5052_v46  ;;  %v2627_v19 = vmul.f32 %v2553_v57, %v615_v43  ;;  %v3145_v29 = vmul.f32 %v3071_v32, %v615_v43  ;;  %v7384_v36 = vand.u32 2147483647, %v7362_v10  ;;  %v5071_v12 = vsub.f32 1.0, %v751_v15 }
 0x11f   : > { %7381 = vst [vmem:[#allocation100_spill] sm:$0xff] %v5055_v63  ;;  %v5077_v48 = vadd.f32 %v4894_v37, %v2109_v54  ;;  %v7118_v57 = vmov 14   ;;  %v5087_v10 = vmul.f32 %v2568_v22, %v5074_v59  ;;  %v5089_v32 = vsub.f32 1.0, %v766_v21  ;;  %v7392_v22 = vld [vmem:[#allocation3_spill] sm:$0xff]  ;;  %v7394_v54 = vld [vmem:[#allocation36_spill] sm:$0xff] }
 0x120   : > { %7382 = vst [vmem:[#allocation101_spill] sm:$0xff] %v5058_v34  ;;  %v5069_v7 = vsub.f32 1.0, %v7384_v36  ;;  %v5080_v53 = vadd.f32 %v4897_v11, %v2627_v19  ;;  %v5083_v3 = vadd.f32 %v4904_v49, %v3145_v29  ;;  %3824 = vset.pattern.permute.xlu0 %v7118_v57  ;;  %v7120_v15 = vmax.f32 %v5021_v2, 0.0  ;;  %v5097_v11 = vpop.f32.mrf.mxu3  ;;  %v505_v34 = vpop.f32.mrf.mxu0 }
 0x121   : > { %7383 = vst [vmem:[#allocation102_spill] sm:$0xff] %v5061_v4  ;;  %v5092_v43 = vsub.f32 1.0, %v1456_v26  ;;  %v5095_v37 = vmul.f32 %v3086_v35, %v5074_v59  ;;  %3377 = vperm.xlu0 %3824, %v4714_v18   ;;  %v5101_v49 = vmul.f32 %v2569_v16, %v5097_v11  ;;  %v5104_v1 = vmul.f32 %v3087_v17, %v5097_v11 }
 0x122   : > { %7385 = vst [vmem:[#allocation103_spill] sm:$0xff] %v5069_v7  ;;  %v911_v21 = vadd.f32 -2.0, %v7392_v22  ;;  %v1433_v42 = vadd.f32 -1.0, %v7392_v22  ;;  %v5110_v26 = vmul.f32 %v4823_v50, %v4876_v58  ;;  %v1967_v35 = vand.u32 2147483647, %v7392_v22 }
 0x123   : > { %7386 = vst [vmem:[#allocation104_spill] sm:$0xff] %v5071_v12  ;;  %v2469_v38 = vadd.f32 1.0, %v7392_v22  ;;  %v2987_v24 = vadd.f32 2.0, %v7392_v22  ;;  %v919_v19 = vadd.f32 -2.0, %v7394_v54  ;;  %v5117_v17 = vadd.f32 -1.0, %v7394_v54 }
 0x124   : > { %7387 = vst [vmem:[#allocation105_spill] sm:$0xff] %v5087_v10  ;;  %v927_v52 = vand.u32 2147483647, %v911_v21  ;;  %v1449_v16 = vand.u32 2147483647, %v1433_v42  ;;  %v5121_v29 = vperm.slane %v7120_v15, 0  ;;  %v618_v10 = vpop.f32.mrf.mxu1 }
 0x125   : > { %7388 = vst [vmem:[#allocation106_spill] sm:$0xff] %v5089_v32  ;;  %v1983_v36 = vsub.f32 1.0, %v1967_v35  ;;  %v2485_v50 = vand.u32 2147483647, %v2469_v38  ;;  %v3003_v58 = vand.u32 2147483647, %v2987_v24 }
 0x126   : > { %7389 = vst [vmem:[#allocation107_spill] sm:$0xff] %v5095_v37  ;;  %v1488_v57 = vmax.f32 %v5092_v43, 0.0  ;;  %v943_v14 = vsub.f32 1.0, %v927_v52  ;;  %v2477_v22 = vadd.f32 1.0, %v7394_v54  ;;  %v935_v15 = vand.u32 2147483647, %v919_v19 }
 0x127   : > { %7390 = vst [vmem:[#allocation108_spill] sm:$0xff] %v5101_v49  ;;  %v1999_v21 = vmax.f32 %v1983_v36, 0.0  ;;  %v2501_v42 = vsub.f32 1.0, %v2485_v50  ;;  %v3019_v4 = vsub.f32 1.0, %v3003_v58  ;;  %v2995_v49 = vadd.f32 2.0, %v7394_v54 }
 0x128   : > { %7391 = vst [vmem:[#allocation109_spill] sm:$0xff] %v5104_v1  ;;  %v1465_v1 = vsub.f32 1.0, %v1449_v16  ;;  %v959_v37 = vmax.f32 %v943_v14, 0.0  ;;  %v1457_v35 = vand.u32 2147483647, %v5117_v17 }
 0x129   : > { %7393 = vst [vmem:[#allocation3_spill] sm:$0xff] %v5110_v26  ;;  %v5127_v38 = vperm.slane %v1999_v21, 0  ;;  %v2517_v24 = vmax.f32 %v2501_v42, 0.0  ;;  %v3035_v43 = vmax.f32 %v3019_v4, 0.0  ;;  %v5129_v52 = vperm.slane %v1999_v21, 1 }
 0x12a   : > { %v1481_v63 = vmax.f32 %v1465_v1, 0.0  ;;  %v996_v16 = vperm.slane %v959_v37, 0  ;;  %v5133_v36 = vperm.slane %v959_v37, 1 }
 0x12b   : > { %v2110_v14 = vmul.f32 %v5127_v38, %v505_v34  ;;  %v5138_v1 = vperm.slane %v2517_v24, 0  ;;  %v5140_v19 = vperm.slane %v3035_v43, 0  ;;  %v2111_v17 = vmul.f32 %v5129_v52, %v618_v10 }
 0x12c   : > { %v5131_v46 = vperm.slane %v1481_v63, 0  ;;  %v5135_v50 = vperm.slane %v1481_v63, 1  ;;  %v1070_v58 = vmul.f32 %v996_v16, %v505_v34  ;;  %v1071_v21 = vmul.f32 %v5133_v36, %v618_v10 }
 0x12d   : > { %v5147_v37 = vadd.f32 %v4965_v60, %v2110_v14  ;;  %v2628_v63 = vmul.f32 %v5138_v1, %v505_v34  ;;  %v3146_v12 = vmul.f32 %v5140_v19, %v505_v34  ;;  %v5152_v32 = vadd.f32 %v4969_v6, %v2111_v17 }
 0x12e   : > { %v1592_v4 = vmul.f32 %v5131_v46, %v505_v34  ;;  %v1593_v42 = vmul.f32 %v5135_v50, %v618_v10  ;;  %v5155_v7 = vadd.f32 %v4972_v41, %v1070_v58  ;;  %v5161_v20 = vadd.f32 %v4978_v0, %v1071_v21  ;;  %v5174_v21 = vpop.f32.mrf.mxu2 }
 0x12f   : > { %v5167_v60 = vadd.f32 %v4981_v62, %v2628_v63  ;;  %v5170_v34 = vadd.f32 %v4984_v30, %v3146_v12  ;;  %v2555_v6 = vperm.slane %v2517_v24, 1  ;;  %v3073_v14 = vperm.slane %v3035_v43, 1 }
 0x130   : > { %v5158_v26 = vadd.f32 %v4975_v5, %v1592_v4  ;;  %v5164_v18 = vadd.f32 %v4987_v31, %v1593_v42  ;;  %v1532_v17 = vperm.slane %v1488_v57, 0  ;;  %v7396_v41 = vmax.f32 %v5021_v2, 0.0 }
 0x131   : > { %v1533_v5 = vperm.slane %v1488_v57, 1  ;;  %v2493_v4 = vand.u32 2147483647, %v2477_v22  ;;  %v3147_v0 = vmul.f32 %v3073_v14, %v618_v10  ;;  %v3011_v31 = vand.u32 2147483647, %v2995_v49  ;;  %v5190_v22 = vpop.f32.mrf.mxu3 }
 0x132   : > { %7395 = vst [vmem:[#allocation36_spill] sm:$0xff] %v5158_v26  ;;  %v1011_v58 = vperm.slane %v7396_v41, 1  ;;  %v2629_v26 = vmul.f32 %v2555_v6, %v618_v10  ;;  %v5178_v62 = vmul.f32 %v4827_v8, %v4890_v39  ;;  %v951_v42 = vsub.f32 1.0, %v935_v15  ;;  %v508_v8 = vpop.f32.mrf.mxu0 }
 0x133   : > { %v1975_v30 = vand.u32 2147483647, %v7394_v54  ;;  %v2509_v12 = vsub.f32 1.0, %v2493_v4  ;;  %v7123_v24 = vmov 19   ;;  %v5186_v57 = vadd.f32 %v5009_v61, %v3147_v0 }
 0x134   : > { %7397 = vst [vmem:[#allocation110_spill] sm:$0xff] %v5178_v62  ;;  %3827 = vset.pattern.permute.xlu0 %v7123_v24  ;;  %v5183_v2 = vadd.f32 %v5003_v44, %v2629_v26  ;;  %v5188_v10 = vsub.f32 1.0, %v1457_v35  ;;  %v3027_v49 = vsub.f32 1.0, %v3011_v31  ;;  %v5195_v39 = vmul.f32 %v5121_v29, %v5011_v56 }
 0x135   : > { %3431 = vperm.xlu0 %3827, %v4651_v55   ;;  %v5198_v15 = vmul.f32 %v1532_v17, %v5011_v56  ;;  %v5201_v44 = vmul.f32 %v1011_v58, %v5019_v33  ;;  %v2525_v61 = vmax.f32 %v2509_v12, 0.0  ;;  %v5204_v26 = vmul.f32 %v1533_v5, %v5019_v33  ;;  %v621_v12 = vpop.f32.mrf.mxu1 }
 0x136   : > { %v5208_v54 = vmul.f32 %v5121_v29, %v5074_v59  ;;  %v5211_v55 = vmul.f32 %v1532_v17, %v5074_v59  ;;  %v3043_v35 = vmax.f32 %v3027_v49, 0.0  ;;  %v967_v43 = vmax.f32 %v951_v42, 0.0 }
 0x137   : > { %7398 = vst [vmem:[#allocation111_spill] sm:$0xff] %v5201_v44  ;;  %v5213_v63 = vperm.slane %v2525_v61, 0  ;;  %v5215_v56 = vperm.slane %v2525_v61, 1  ;;  %v1072_v41 = vmul.f32 %v996_v16, %v508_v8  ;;  %v5218_v0 = vsub.f32 1.0, %v1975_v30 }
 0x138   : > { %7399 = vst [vmem:[#allocation112_spill] sm:$0xff] %v5204_v26  ;;  %v3088_v33 = vperm.slane %v3043_v35, 0  ;;  %v3089_v31 = vperm.slane %v3043_v35, 1  ;;  %v1594_v16 = vmul.f32 %v5131_v46, %v508_v8  ;;  %v2112_v61 = vmul.f32 %v5127_v38, %v508_v8 }
 0x139   : > { %v5222_v29 = vmul.f32 %v5213_v63, %v5174_v21  ;;  %v5226_v17 = vmul.f32 %v5215_v56, %v5190_v22  ;;  %v5229_v42 = vadd.f32 %v5033_v27, %v1072_v41  ;;  %v2630_v35 = vmul.f32 %v5138_v1, %v508_v8 }
 0x13a   : > { %v5233_v49 = vmul.f32 %v3088_v33, %v5174_v21  ;;  %v5236_v30 = vmul.f32 %v3089_v31, %v5190_v22  ;;  %v5241_v24 = vadd.f32 %v5036_v45, %v1594_v16  ;;  %v3148_v4 = vmul.f32 %v5140_v19, %v508_v8  ;;  %v5277_v19 = vpop.f32.mrf.mxu3 }
 0x13b   : > { %7400 = vst [vmem:[#allocation113_spill] sm:$0xff] %v5222_v29  ;;  %v1073_v27 = vmul.f32 %v5133_v36, %v621_v12  ;;  %v1595_v41 = vmul.f32 %v5135_v50, %v621_v12  ;;  %v5247_v46 = vadd.f32 %v5039_v25, %v2112_v61  ;;  %v2631_v38 = vmul.f32 %v2555_v6, %v621_v12 }
 0x13c   : > { %7401 = vst [vmem:[#allocation114_spill] sm:$0xff] %v5226_v17  ;;  %v5250_v17 = vadd.f32 %v5042_v13, %v2630_v35  ;;  %v5256_v45 = vadd.f32 %v5045_v28, %v3148_v4  ;;  %v3149_v50 = vmul.f32 %v3073_v14, %v621_v12  ;;  %v5266_v25 = vmul.f32 %v5015_v47, %v5074_v59 }
 0x13d   : > { %7402 = vst [vmem:[#allocation115_spill] sm:$0xff] %v5233_v49  ;;  %v5253_v49 = vpop.f32.mrf.mxu2  ;;  %v5259_v1 = vadd.f32 %v5048_v51, %v1073_v27  ;;  %v5262_v36 = vadd.f32 %v5064_v40, %v1595_v41  ;;  %v5269_v13 = vmul.f32 %v1011_v58, %v5097_v11  ;;  %v5275_v28 = vadd.f32 %v5080_v53, %v2631_v38  ;;  %v511_v41 = vpop.f32.mrf.mxu0 }
 0x13e   : > { %7403 = vst [vmem:[#allocation116_spill] sm:$0xff] %v5236_v30  ;;  %v2113_v30 = vmul.f32 %v5129_v52, %v621_v12  ;;  %v5280_v51 = vmul.f32 %v1533_v5, %v5097_v11  ;;  %v5284_v40 = vmul.f32 %v5017_v23, %v5097_v11  ;;  %v5287_v47 = vadd.f32 %v5083_v3, %v3149_v50  ;;  %v7415_v23 = vld [vmem:[#allocation15_spill] sm:$0xff]  ;;  %v7416_v12 = vld [vmem:[#allocation13_spill] sm:$0xff] }
 0x13f   : > { %7404 = vst [vmem:[#allocation117_spill] sm:$0xff] %v5262_v36  ;;  %v5290_v59 = vmul.f32 %v3088_v33, %v5253_v49  ;;  %v7413_v53 = vmax.f32 %v5188_v10, 0.0  ;;  %v5299_v58 = vperm.slane %v967_v43, 1  ;;  %v5302_v5 = vmul.f32 %v3089_v31, %v5277_v19 }
 0x140   : > { %7405 = vst [vmem:[#allocation118_spill] sm:$0xff] %v5266_v25  ;;  %v5272_v52 = vadd.f32 %v5077_v48, %v2113_v30  ;;  %v5292_v48 = vperm.slane %v967_v43, 0  ;;  %v912_v11 = vadd.f32 -2.0, %v7415_v23  ;;  %v1434_v3 = vadd.f32 -1.0, %v7415_v23 }
 0x141   : > { %7406 = vst [vmem:[#allocation119_spill] sm:$0xff] %v5269_v13  ;;  %v5296_v6 = vperm.slane %v7413_v53, 0  ;;  %v1968_v8 = vand.u32 2147483647, %v7415_v23  ;;  %v2470_v4 = vadd.f32 1.0, %v7415_v23  ;;  %v2988_v33 = vadd.f32 2.0, %v7415_v23 }
 0x142   : > { %7407 = vst [vmem:[#allocation120_spill] sm:$0xff] %v5272_v52  ;;  %v920_v16 = vadd.f32 -2.0, %v7416_v12  ;;  %v928_v30 = vand.u32 2147483647, %v912_v11  ;;  %v1450_v61 = vand.u32 2147483647, %v1434_v3  ;;  %v5313_v27 = vmul.f32 %v5292_v48, %v5174_v21  ;;  %v5317_v11 = vpop.permute.xlu2 %1199 }
 0x143   : > { %7408 = vst [vmem:[#allocation121_spill] sm:$0xff] %v5275_v28  ;;  %v1984_v35 = vsub.f32 1.0, %v1968_v8  ;;  %v3889_v43 = vmov 22   ;;  %v1442_v31 = vadd.f32 -1.0, %v7416_v12  ;;  %v2486_v38 = vand.u32 2147483647, %v2470_v4 }
 0x144   : > { %7409 = vst [vmem:[#allocation122_spill] sm:$0xff] %v5280_v51  ;;  %3801 = vset.pattern.permute.xlu2 %v3889_v43  ;;  %3800 = vset.pattern.permute.xlu1 %v3889_v43  ;;  %v3004_v50 = vand.u32 2147483647, %v2988_v33  ;;  %v7417_v53 = vld [vmem:[#allocation59_spill] sm:$0xff]  ;;  %v936_v23 = vand.u32 2147483647, %v920_v16  ;;  %v5321_v3 = vmul.f32 %v5296_v6, %v5174_v21  ;;  %v624_v16 = vpop.f32.mrf.mxu1 }
 0x145   : > { %7410 = vst [vmem:[#allocation123_spill] sm:$0xff] %v5284_v40  ;;  %2437 = vperm.xlu2 %3801, %v4768_v9   ;;  %2433 = vperm.xlu1 %3800, %v7417_v53   ;;  %v944_v8 = vsub.f32 1.0, %v928_v30  ;;  %v1466_v43 = vsub.f32 1.0, %v1450_v61  ;;  %v2000_v14 = vmax.f32 %v1984_v35, 0.0  ;;  %v2502_v4 = vsub.f32 1.0, %v2486_v38  ;;  %v7422_v52 = vld [vmem:[#allocation36_spill] sm:$0xff] }
 0x146   : > { %7411 = vst [vmem:[#allocation124_spill] sm:$0xff] %v5287_v47  ;;  %v3020_v33 = vsub.f32 1.0, %v3004_v50  ;;  %v952_v47 = vsub.f32 1.0, %v936_v23  ;;  %v1976_v30 = vand.u32 2147483647, %v7416_v12 }
 0x147   : > { %7412 = vst [vmem:[#allocation125_spill] sm:$0xff] %v5290_v59  ;;  %v1458_v59 = vand.u32 2147483647, %v1442_v31  ;;  %v960_v29 = vmax.f32 %v944_v8, 0.0  ;;  %v1482_v25 = vmax.f32 %v1466_v43, 0.0  ;;  %v5327_v53 = vperm.slane %v2000_v14, 0 }
 0x148   : > { %7414 = vst [vmem:[#allocation126_spill] sm:$0xff] %v5302_v5  ;;  %v7419_v5 = vmax.f32 %v5218_v0, 0.0  ;;  %v2518_v51 = vmax.f32 %v2502_v4, 0.0  ;;  %v3036_v26 = vmax.f32 %v3020_v33, 0.0  ;;  %v5361_v28 = vld [vmem:[%s7072_s3 + $0x18] sm:$0x1] }
 0x149   : > { %7418 = vst [vmem:[#allocation15_spill] sm:$0xff] %v5317_v11  ;;  %v5329_v11 = vperm.slane %v2000_v14, 1  ;;  %v5332_v61 = vperm.slane %v960_v29, 0  ;;  %v5334_v35 = vperm.slane %v1482_v25, 0  ;;  %v5337_v38 = vperm.slane %v960_v29, 1 }
 0x14a   : > { %v5325_v40 = vperm.slane %v7419_v5, 0  ;;  %v2114_v5 = vmul.f32 %v5327_v53, %v511_v41  ;;  %v5339_v31 = vperm.slane %v2518_v51, 0  ;;  %v5341_v50 = vperm.slane %v3036_v26, 0 }
 0x14b   : > { %v5343_v8 = vperm.slane %v1482_v25, 1  ;;  %v2115_v14 = vmul.f32 %v5329_v11, %v624_v16  ;;  %v1074_v23 = vmul.f32 %v5332_v61, %v511_v41  ;;  %v1596_v43 = vmul.f32 %v5334_v35, %v511_v41 }
 0x14c   : > { %v5349_v4 = vadd.f32 %v5147_v37, %v2114_v5  ;;  %v1075_v33 = vmul.f32 %v5337_v38, %v624_v16  ;;  %v2632_v29 = vmul.f32 %v5339_v31, %v511_v41  ;;  %v3150_v13 = vmul.f32 %v5341_v50, %v511_v41  ;;  %v5364_v37 = vpop.permute.xlu2 %1247 }
 0x14d   : > { %v1597_v44 = vmul.f32 %v5343_v8, %v624_v16  ;;  %v5356_v25 = vadd.f32 %v5152_v32, %v2115_v14  ;;  %2445 = vperm.xlu2 %3801, %v5361_v28   ;;  %7421 = vst [vmem:[#allocation59_spill] sm:$0xff] %v5364_v37  ;;  %v5367_v5 = vadd.f32 %v5155_v7, %v1074_v23  ;;  %v5375_v32 = vperm.slane %v2518_v51, 1  ;;  %v7423_v14 = vld [vmem:[#allocation70_spill] sm:$0xff] }
 0x14e   : > { %v5370_v62 = vadd.f32 %v7422_v52, %v1596_v43  ;;  %v5373_v41 = vadd.f32 %v5161_v20, %v1075_v33  ;;  %2441 = vperm.xlu1 %3800, %v7423_v14   ;;  %v5382_v36 = vadd.f32 %v5170_v34, %v3150_v13  ;;  %v5387_v7 = vperm.slane %v3036_v26, 1  ;;  %v514_v52 = vpop.f32.mrf.mxu0 }
 0x14f   : > { %7420 = vst [vmem:[#allocation13_spill] sm:$0xff] %v5356_v25  ;;  %v5379_v25 = vadd.f32 %v5167_v60, %v2632_v29  ;;  %v5385_v37 = vadd.f32 %v5164_v18, %v1597_v44  ;;  %v5391_v20 = vmul.f32 %v5299_v58, %v5190_v22  ;;  %v2633_v51 = vmul.f32 %v5375_v32, %v624_v16 }
 0x150   : > { %v1474_v23 = vsub.f32 1.0, %v1458_v59  ;;  %v1992_v43 = vsub.f32 1.0, %v1976_v30  ;;  %v7424_v60 = vmax.f32 %v5188_v10, 0.0  ;;  %v3151_v34 = vmul.f32 %v5387_v7, %v624_v16 }
 0x151   : > { %v2478_v13 = vadd.f32 1.0, %v7416_v12  ;;  %v2996_v18 = vadd.f32 2.0, %v7416_v12  ;;  %v5401_v44 = vmul.f32 %v5325_v40, %v5174_v21  ;;  %v7426_v26 = vmax.f32 %v5218_v0, 0.0 }
 0x152   : > { %v1535_v33 = vperm.slane %v7424_v60, 1  ;;  %v5406_v14 = vadd.f32 %v5183_v2, %v2633_v51  ;;  %v968_v59 = vmax.f32 %v952_v47, 0.0  ;;  %v5412_v16 = vadd.f32 %v5186_v57, %v3151_v34  ;;  %v5429_v57 = vpop.f32.mrf.mxu2  ;;  %v5435_v34 = vpop.f32.mrf.mxu3 }
 0x153   : > { %7425 = vst [vmem:[#allocation36_spill] sm:$0xff] %v5401_v44  ;;  %v2053_v29 = vperm.slane %v7426_v26, 1  ;;  %v2494_v30 = vand.u32 2147483647, %v2478_v13  ;;  %v3012_v60 = vand.u32 2147483647, %v2996_v18  ;;  %v5419_v21 = vmul.f32 %v5292_v48, %v5253_v49 }
 0x154   : > { %v5409_v10 = vmul.f32 %v1535_v33, %v5190_v22  ;;  %7428 = vst [vmem:[#allocation127_spill] sm:$0xff] %v5412_v16  ;;  %v1490_v0 = vmax.f32 %v1474_v23, 0.0  ;;  %v2008_v26 = vmax.f32 %v1992_v43, 0.0  ;;  %v5423_v2 = vmul.f32 %v5296_v6, %v5253_v49  ;;  %v7437_v13 = vld [vmem:[#allocation12_spill] sm:$0xff]  ;;  %v7462_v16 = vld [vmem:[#allocation18_spill] sm:$0xff] }
 0x155   : > { %v5415_v12 = vmul.f32 %v2053_v29, %v5190_v22  ;;  %v5427_v47 = vmul.f32 %v5325_v40, %v5253_v49  ;;  %7431 = vst [vmem:[#allocation130_spill] sm:$0xff] %v5429_v57  ;;  %v5431_v51 = vsub.f32 1.0, %v2494_v30  ;;  %v5433_v22 = vsub.f32 1.0, %v3012_v60 }
 0x156   : > { %7427 = vst [vmem:[#allocation70_spill] sm:$0xff] %v5409_v10  ;;  %v7435_v48 = vmov 3   ;;  %v5440_v23 = vmul.f32 %v5213_v63, %v5253_v49  ;;  %v5444_v6 = vmul.f32 %v5299_v58, %v5277_v19  ;;  %v1014_v40 = vperm.slane %v968_v59, 0  ;;  %v5466_v49 = vld [vmem:[%s7072_s3 + $0x10] sm:$0xff]  ;;  %v5470_v58 = vpop.permute.xlu2 %1259 }
 0x157   : > { %7429 = vst [vmem:[#allocation128_spill] sm:$0xff] %v5415_v12  ;;  %3804 = vset.pattern.permute.xlu2 %v7435_v48  ;;  %v5446_v43 = vperm.slane %v968_v59, 1  ;;  %3803 = vset.pattern.permute.xlu1 %v7435_v48  ;;  %v7438_v18 = vand.u32 2147483647, %v7437_v13  ;;  %v5454_v60 = vmul.f32 %v1535_v33, %v5277_v19  ;;  %v5457_v12 = vmul.f32 %v2053_v29, %v5277_v19 }
 0x158   : > { %7430 = vst [vmem:[#allocation129_spill] sm:$0xff] %v5427_v47  ;;  %v5461_v63 = vmul.f32 %v5215_v56, %v5277_v19  ;;  %2759 = vperm.xlu2 %3804, %v5466_v49   ;;  %2755 = vperm.xlu1 %3803, %v4768_v9   ;;  %v5473_v33 = vmul.f32 %v1014_v40, %v5429_v57  ;;  %v1536_v29 = vperm.slane %v1490_v0, 0  ;;  %v5475_v59 = vperm.slane %v2008_v26, 0  ;;  %v627_v9 = vpop.f32.mrf.mxu1 }
 0x159   : > { %7432 = vst [vmem:[#allocation131_spill] sm:$0xff] %v5431_v51  ;;  %v5451_v30 = vsub.f32 1.0, %v7438_v18  ;;  %v5479_v56 = vmul.f32 %v5446_v43, %v5435_v34  ;;  %v1537_v13 = vperm.slane %v1490_v0, 1  ;;  %v5483_v18 = vperm.slane %v2008_v26, 1 }
 0x15a   : > { %7433 = vst [vmem:[#allocation132_spill] sm:$0xff] %v5433_v22  ;;  %v1598_v47 = vmul.f32 %v5334_v35, %v514_v52  ;;  %v2116_v26 = vmul.f32 %v5327_v53, %v514_v52  ;;  %v2634_v48 = vmul.f32 %v5339_v31, %v514_v52  ;;  %v3152_v44 = vmul.f32 %v5341_v50, %v514_v52  ;;  %v7454_v31 = vld [vmem:[#allocation14_spill] sm:$0xff] }
 0x15b   : > { %7434 = vst [vmem:[#allocation133_spill] sm:$0xff] %v5435_v34  ;;  %v5497_v19 = vmul.f32 %v1537_v13, %v5435_v34  ;;  %v5501_v0 = vmul.f32 %v5483_v18, %v5435_v34  ;;  %v7450_v35 = vmax.f32 %v5431_v51, 0.0  ;;  %v5522_v53 = vmul.f32 %v5375_v32, %v627_v9  ;;  %v5529_v34 = vpop.f32.mrf.mxu2 }
 0x15c   : > { %7436 = vst [vmem:[#allocation134_spill] sm:$0xff] %v5440_v23  ;;  %v1076_v23 = vmul.f32 %v5332_v61, %v514_v52  ;;  %v5511_v61 = vmul.f32 %v5329_v11, %v627_v9  ;;  %v913_v50 = vadd.f32 -2.0, %v7454_v31  ;;  %v1671_v11 = vadd.f32 %v5241_v24, %v1598_v47 }
 0x15d   : > { %7439 = vst [vmem:[#allocation12_spill] sm:$0xff] %v5451_v30  ;;  %v1969_v52 = vand.u32 2147483647, %v7454_v31  ;;  %v2707_v32 = vadd.f32 %v5250_v17, %v2634_v48  ;;  %v2989_v24 = vadd.f32 2.0, %v7454_v31  ;;  %v5540_v47 = vadd.f32 %v5256_v45, %v3152_v44 }
 0x15e   : > { %7440 = vst [vmem:[#allocation135_spill] sm:$0xff] %v5454_v60  ;;  %v5549_v17 = vmul.f32 %v5387_v7, %v627_v9  ;;  %v5557_v45 = vmul.f32 %v1014_v40, %v5529_v34  ;;  %v5562_v30 = vmul.f32 %v1536_v29, %v5529_v34 }
 0x15f   : > { %7441 = vst [vmem:[#allocation136_spill] sm:$0xff] %v5457_v12  ;;  %v5492_v12 = vmul.f32 %v5475_v59, %v5429_v57 }
 0x160   : > { %7442 = vst [vmem:[#allocation137_spill] sm:$0xff] %v5461_v63  ;;  %v5485_v63 = vpop.f32.mrf.mxu0  ;;  %2763 = vperm.xlu1 %3803, %v5361_v28  }
 0x161   : > { %7443 = vst [vmem:[#allocation138_spill] sm:$0xff] %v5466_v49 }
 0x162   : > { %7444 = vst [vmem:[#allocation139_spill] sm:$0xff] %v5470_v58  ;;  %v5488_v58 = vmul.f32 %v1536_v29, %v5429_v57  ;;  %v5515_v57 = vperm.slane %v7450_v35, 0  ;;  %v929_v35 = vand.u32 2147483647, %v913_v50 }
 0x163   : > { %7445 = vst [vmem:[#allocation140_spill] sm:$0xff] %v5475_v59  ;;  %v1077_v59 = vmul.f32 %v5337_v38, %v627_v9  ;;  %v1149_v38 = vadd.f32 %v5229_v42, %v1076_v23  ;;  %v5536_v42 = vpop.f32.mrf.mxu3 }
 0x164   : > { %7446 = vst [vmem:[#allocation141_spill] sm:$0xff] %v5483_v18  ;;  %v945_v48 = vsub.f32 1.0, %v929_v35  ;;  %v5566_v7 = vmul.f32 %v5446_v43, %v5536_v42  ;;  %v5575_v40 = vmul.f32 %v1537_v13, %v5536_v42 }
 0x165   : > { %7447 = vst [vmem:[#allocation142_spill] sm:$0xff] %v5492_v12  ;;  %v5508_v12 = vmul.f32 %v5343_v8, %v627_v9  ;;  %v1435_v8 = vadd.f32 -1.0, %v7454_v31  ;;  %v5552_v50 = vadd.f32 %v5259_v1, %v1077_v59  ;;  %v5568_v9 = vpop.f32.mrf.mxu1 }
 0x166   : > { %7448 = vst [vmem:[#allocation143_spill] sm:$0xff] %v5497_v19  ;;  %v961_v59 = vmax.f32 %v945_v48, 0.0 }
 0x167   : > { %7449 = vst [vmem:[#allocation144_spill] sm:$0xff] %v5501_v0  ;;  %v7452_v0 = vmax.f32 %v5433_v22, 0.0  ;;  %v1451_v23 = vand.u32 2147483647, %v1435_v8  ;;  %v1985_v22 = vsub.f32 1.0, %v1969_v52  ;;  %v5554_v8 = vpop.permute.xlu2 %1301 }
 0x168   : > { %7451 = vst [vmem:[#allocation145_spill] sm:$0xff] %v5515_v57  ;;  %v2189_v57 = vadd.f32 %v5247_v46, %v2116_v26  ;;  %v5545_v46 = vld [vmem:[%s7072_s3] sm:$0xff]  ;;  %v3005_v52 = vand.u32 2147483647, %v2989_v24  ;;  %v5570_v1 = vpop.f32.mrf.mxu0  ;;  %v1000_v29 = vperm.slane %v961_v59, 0  ;;  %v1001_v43 = vperm.slane %v961_v59, 1 }
 0x169   : > { %v5519_v18 = vperm.slane %v7452_v0, 0  ;;  %7455 = vst [vmem:[#allocation14_spill] sm:$0xff] %v5529_v34  ;;  %v2471_v0 = vadd.f32 1.0, %v7454_v31  ;;  %v5559_v44 = vsub.f32 1.0, %v1451_v23  ;;  %v2001_v31 = vmax.f32 %v1985_v22, 0.0 }
 0x16a   : > { %7457 = vst [vmem:[#allocation147_spill] sm:$0xff] %v5536_v42  ;;  %v5578_v23 = vsub.f32 1.0, %v3005_v52  ;;  %v1078_v42 = vmul.f32 %v1000_v29, %v5485_v63  ;;  %v1080_v52 = vmul.f32 %v1000_v29, %v5570_v1  ;;  %v1079_v59 = vmul.f32 %v1001_v43, %v5568_v9 }
 0x16b   : > { %7453 = vst [vmem:[#allocation146_spill] sm:$0xff] %v5519_v18  ;;  %v7456_v18 = vmov 8   ;;  %v2487_v26 = vand.u32 2147483647, %v2471_v0  ;;  %v7142_v22 = vmax.f32 %v5559_v44, 0.0  ;;  %v2040_v0 = vperm.slane %v2001_v31, 0 }
 0x16c   : > { %3805 = vset.pattern.permute.xlu2 %v7456_v18  ;;  %7458 = vst [vmem:[#allocation148_spill] sm:$0xff] %v5549_v17  ;;  %3807 = vset.pattern.permute.xlu1 %v7456_v18  ;;  %v1120_v13 = vadd.f32 %v5367_v5, %v1078_v42  ;;  %v1150_v60 = vadd.f32 %v1149_v38, %v1080_v52 }
 0x16d   : > { %2801 = vperm.xlu2 %3805, %v5545_v46   ;;  %7459 = vst [vmem:[#allocation149_spill] sm:$0xff] %v5554_v8  ;;  %v5572_v35 = vsub.f32 1.0, %v2487_v26  ;;  %v5581_v8 = vperm.slane %v2001_v31, 1  ;;  %v1522_v34 = vperm.slane %v7142_v22, 0  ;;  %v2118_v48 = vmul.f32 %v2040_v0, %v5485_v63  ;;  %2809 = vperm.xlu1 %3807, %v5466_v49  }
 0x16e   : > { %7460 = vst [vmem:[#allocation150_spill] sm:$0xff] %v5566_v7  ;;  %v2120_v26 = vmul.f32 %v2040_v0, %v5570_v1  ;;  %v7469_v7 = vld [vmem:[#allocation27_spill] sm:$0xff] }
 0x16f   : > { %7461 = vst [vmem:[#allocation151_spill] sm:$0xff] %v5575_v40  ;;  %v7143_v24 = vmax.f32 %v5572_v35, 0.0  ;;  %v1600_v31 = vmul.f32 %v1522_v34, %v5485_v63  ;;  %v1602_v22 = vmul.f32 %v1522_v34, %v5570_v1  ;;  %v2160_v19 = vadd.f32 %v5349_v4, %v2118_v48  ;;  %v7463_v34 = vld [vmem:[#allocation28_spill] sm:$0xff]  ;;  %v5605_v4 = vpop.permute.xlu1 %1194  ;;  %v5610_v52 = vpop.permute.xlu2 %1347 }
 0x170   : > { %v2190_v0 = vadd.f32 %v2189_v57, %v2120_v26  ;;  %7464 = vst [vmem:[#allocation18_spill] sm:$0xff] %v5605_v4  ;;  %v7465_v57 = vld [vmem:[#allocation16_spill] sm:$0xff]  ;;  %v7466_v26 = vld [vmem:[#allocation26_spill] sm:$0xff] }
 0x171   : > { %v2558_v40 = vperm.slane %v7143_v24, 0  ;;  %v1642_v18 = vadd.f32 %v5370_v62, %v1600_v31  ;;  %v1672_v10 = vadd.f32 %v1671_v11, %v1602_v22  ;;  %v2161_v51 = vadd.f32 %v2160_v19, %v7462_v16  ;;  %7467 = vst [vmem:[#allocation28_spill] sm:$0xff] %v5610_v52  ;;  %v7470_v11 = vld [vmem:[#allocation37_spill] sm:$0xff]  ;;  %v7472_v31 = vld [vmem:[#allocation39_spill] sm:$0xff] }
 0x172   : > { %v2191_v17 = vadd.f32 %v2190_v0, %v7463_v34  ;;  %v1121_v48 = vadd.f32 %v1120_v13, %v7465_v57  ;;  %v1151_v5 = vadd.f32 %v1150_v60, %v7466_v26  ;;  %v7471_v16 = vld [vmem:[#allocation49_spill] sm:$0xff]  ;;  %v7473_v34 = vld [vmem:[#allocation47_spill] sm:$0xff] }
 0x173   : > { %v2636_v29 = vmul.f32 %v2558_v40, %v5485_v63  ;;  %v2638_v24 = vmul.f32 %v2558_v40, %v5570_v1  ;;  %v7468_v40 = vld [vmem:[#allocation17_spill] sm:$0xff]  ;;  %v1673_v62 = vadd.f32 %v1672_v10, %v7469_v7  ;;  %v2162_v22 = vadd.f32 %v2161_v51, %v7470_v11  ;;  %v7474_v13 = vld [vmem:[#allocation19_spill] sm:$0xff]  ;;  %v7479_v51 = vld [vmem:[#allocation72_spill] sm:$0xff] }
 0x174   : > { %v1643_v49 = vadd.f32 %v1642_v18, %v7468_v40  ;;  %v2192_v19 = vadd.f32 %v2191_v17, %v7471_v16  ;;  %v1122_v0 = vadd.f32 %v1121_v48, %v7472_v31  ;;  %v1152_v4 = vadd.f32 %v1151_v5, %v7473_v34  ;;  %v7475_v60 = vld [vmem:[#allocation29_spill] sm:$0xff]  ;;  %v7478_v40 = vld [vmem:[#allocation63_spill] sm:$0xff]  ;;  %v7480_v17 = vld [vmem:[#allocation58_spill] sm:$0xff] }
 0x175   : > { %2813 = vperm.xlu2 %3805, %v5361_v28   ;;  %v2678_v38 = vadd.f32 %v5379_v25, %v2636_v29  ;;  %v2708_v42 = vadd.f32 %v2707_v32, %v2638_v24  ;;  %v5620_v25 = vpop.f32.mrf.mxu1  ;;  %v7476_v32 = vld [vmem:[#allocation40_spill] sm:$0xff]  ;;  %v5625_v10 = vadd.f32 %v2162_v22, %v7478_v40  ;;  %v7481_v11 = vld [vmem:[#allocation69_spill] sm:$0xff]  ;;  %v7482_v16 = vld [vmem:[#allocation43_spill] sm:$0xff] }
 0x176   : > { %v1644_v24 = vadd.f32 %v1643_v49, %v7476_v32  ;;  %v7477_v29 = vld [vmem:[#allocation48_spill] sm:$0xff]  ;;  %v5628_v7 = vadd.f32 %v2192_v19, %v7479_v51  ;;  %v1123_v48 = vadd.f32 %v1122_v0, %v7480_v17  ;;  %v1153_v5 = vadd.f32 %v1152_v4, %v7481_v11  ;;  %v7483_v31 = vld [vmem:[#allocation50_spill] sm:$0xff]  ;;  %v7484_v34 = vld [vmem:[#allocation61_spill] sm:$0xff] }
 0x177   : > { %v2679_v57 = vadd.f32 %v2678_v38, %v7474_v13  ;;  %v2709_v26 = vadd.f32 %v2708_v42, %v7475_v60  ;;  %v1674_v18 = vadd.f32 %v1673_v62, %v7477_v29  ;;  %v7485_v60 = vld [vmem:[#allocation71_spill] sm:$0xff]  ;;  %v7486_v62 = vmax.f32 %v5578_v23, 0.0  ;;  %v7488_v19 = vld [vmem:[#allocation81_spill] sm:$0xff]  ;;  %v7493_v11 = vld [vmem:[#allocation8_spill] sm:$0xff] }
 0x178   : > { %v1645_v13 = vadd.f32 %v1644_v24, %v7484_v34  ;;  %v1081_v22 = vmul.f32 %v1001_v43, %v5620_v25  ;;  %v7487_v29 = vmov 13   ;;  %v1124_v40 = vadd.f32 %v1123_v48, %v7488_v19  ;;  %v7489_v0 = vld [vmem:[#allocation3_spill] sm:$0xff]  ;;  %v7490_v4 = vld [vmem:[#allocation65_spill] sm:$0xff] }
 0x179   : > { %v2680_v38 = vadd.f32 %v2679_v57, %v7482_v16  ;;  %v2710_v42 = vadd.f32 %v2709_v26, %v7483_v31  ;;  %v1675_v49 = vadd.f32 %v1674_v18, %v7485_v60  ;;  %v3076_v32 = vperm.slane %v7486_v62, 0  ;;  %v7491_v57 = vld [vmem:[#allocation73_spill] sm:$0xff]  ;;  %3808 = vset.pattern.permute.xlu1 %v7487_v29  ;;  %v7492_v24 = vld [vmem:[#allocation83_spill] sm:$0xff] }
 0x17a   : > { %v1154_v51 = vadd.f32 %v1153_v5, %v7489_v0  ;;  %v1646_v18 = vadd.f32 %v1645_v13, %v7492_v24  ;;  %v5656_v48 = vld [vmem:[%s7072_s3 + $0x8] sm:$0xff]  ;;  %v1125_v5 = vadd.f32 %v1124_v40, %v5195_v39  ;;  %v1165_v34 = vadd.f32 %v5552_v50, %v1081_v22  ;;  %2851 = vperm.xlu1 %3808, %v5545_v46   ;;  %v7495_v62 = vld [vmem:[#allocation21_spill] sm:$0xff]  ;;  %v7498_v22 = vld [vmem:[#allocation20_spill] sm:$0xff] }
 0x17b   : > { %v5643_v17 = vadd.f32 %v2680_v38, %v7490_v4  ;;  %v5646_v26 = vadd.f32 %v2710_v42, %v7491_v57  ;;  %v1676_v16 = vadd.f32 %v1675_v49, %v7493_v11  ;;  %v3154_v43 = vmul.f32 %v3076_v32, %v5485_v63  ;;  %v5668_v49 = vpop.permute.xlu1 %1209  ;;  %v7501_v0 = vld [vmem:[#allocation52_spill] sm:$0xff]  ;;  %v7503_v24 = vld [vmem:[#allocation51_spill] sm:$0xff] }
 0x17c   : > { %v3156_v31 = vmul.f32 %v3076_v32, %v5570_v1  ;;  %v1155_v38 = vadd.f32 %v1154_v51, %v5208_v54  ;;  %v1135_v42 = vadd.f32 %v5373_v41, %v1079_v59  ;;  %v1647_v63 = vadd.f32 %v1646_v18, %v5198_v15  ;;  %7494 = vst [vmem:[#allocation16_spill] sm:$0xff] %v5668_v49  ;;  %v7496_v59 = vld [vmem:[#allocation31_spill] sm:$0xff]  ;;  %v5674_v32 = vpop.permute.xlu2 %1355  ;;  %v7504_v11 = vld [vmem:[#allocation60_spill] sm:$0xff] }
 0x17d   : > { %3809 = vset.pattern.permute.xlu2 %v7487_v29  ;;  %v1677_v1 = vadd.f32 %v1676_v16, %v5211_v55  ;;  %v3196_v13 = vadd.f32 %v5382_v36, %v3154_v43  ;;  %v1126_v39 = vadd.f32 %v1125_v5, %v5313_v27  ;;  %v1166_v50 = vadd.f32 %v1165_v34, %v7496_v59  ;;  %v7499_v29 = vld [vmem:[#allocation30_spill] sm:$0xff]  ;;  %v7505_v16 = vld [vmem:[#allocation75_spill] sm:$0xff]  ;;  %v7507_v5 = vld [vmem:[#allocation117_spill] sm:$0xff] }
 0x17e   : > { %2855 = vperm.xlu2 %3809, %v5656_v48   ;;  %v3226_v60 = vadd.f32 %v5540_v47, %v3156_v31  ;;  %v1156_v54 = vadd.f32 %v1155_v38, %v5419_v21  ;;  %v1136_v41 = vadd.f32 %v1135_v42, %v7495_v62  ;;  %7497 = vst [vmem:[#allocation26_spill] sm:$0xff] %v5674_v32  ;;  %v7500_v21 = vld [vmem:[#allocation41_spill] sm:$0xff]  ;;  %v7508_v42 = vld [vmem:[#allocation66_spill] sm:$0xff]  ;;  %v7598_v32 = vld [vmem:[#allocation132_spill] sm:$0xff] }
 0x17f   : > { %v1648_v15 = vadd.f32 %v1647_v63, %v5321_v3  ;;  %v1678_v55 = vadd.f32 %v1677_v1, %v5423_v2  ;;  %v3197_v36 = vadd.f32 %v3196_v13, %v7498_v22  ;;  %v5681_v19 = vadd.f32 %v1126_v39, %v5473_v33  ;;  %v7502_v2 = vld [vmem:[#allocation44_spill] sm:$0xff]  ;;  %v7509_v34 = vld [vmem:[#allocation74_spill] sm:$0xff]  ;;  %v7516_v22 = vld [vmem:[#allocation121_spill] sm:$0xff] }
 0x180   : > { %v3227_v47 = vadd.f32 %v3226_v60, %v7499_v29  ;;  %v5684_v27 = vadd.f32 %v1156_v54, %v5557_v45  ;;  %v1137_v40 = vadd.f32 %v1136_v41, %v7500_v21  ;;  %v1167_v51 = vadd.f32 %v1166_v50, %v7501_v0  ;;  %v7511_v60 = vld [vmem:[#allocation82_spill] sm:$0xff]  ;;  %v7513_v41 = vld [vmem:[#allocation13_spill] sm:$0xff]  ;;  %v7514_v50 = vld [vmem:[#allocation120_spill] sm:$0xff] }
 0x181   : > { %v5689_v4 = vadd.f32 %v1648_v15, %v5488_v58  ;;  %v5692_v3 = vadd.f32 %v1678_v55, %v5562_v30  ;;  %v3198_v57 = vadd.f32 %v3197_v36, %v7502_v2  ;;  %v7506_v45 = vmax.f32 %v5559_v44, 0.0  ;;  %v7512_v39 = vld [vmem:[#allocation110_spill] sm:$0xff]  ;;  %v7517_v29 = vld [vmem:[#allocation111_spill] sm:$0xff] }
 0x182   : > { %v3228_v18 = vadd.f32 %v3227_v47, %v7503_v24  ;;  %v1138_v33 = vadd.f32 %v1137_v40, %v7504_v11  ;;  %v1168_v43 = vadd.f32 %v1167_v51, %v7505_v16  ;;  %v1686_v38 = vadd.f32 %v7507_v5, %v5508_v12  ;;  %2863 = vperm.xlu1 %3808, %v5361_v28   ;;  %v7518_v21 = vld [vmem:[#allocation119_spill] sm:$0xff] }
 0x183   : > { %v1523_v31 = vperm.slane %v7506_v45, 1  ;;  %v5703_v58 = vadd.f32 %v3198_v57, %v7508_v42  ;;  %v2119_v63 = vmul.f32 %v5581_v8, %v5568_v9  ;;  %v2121_v1 = vmul.f32 %v5581_v8, %v5620_v25  ;;  %v7519_v51 = vld [vmem:[#allocation23_spill] sm:$0xff]  ;;  %v5732_v24 = vpop.permute.xlu1 %1255 }
 0x184   : > { %v5706_v30 = vadd.f32 %v3228_v18, %v7509_v34  ;;  %v7510_v13 = vmov 18   ;;  %v1139_v44 = vadd.f32 %v1138_v33, %v7511_v60  ;;  %v1169_v54 = vadd.f32 %v1168_v43, %v7512_v39  ;;  %7520 = vst [vmem:[#allocation17_spill] sm:$0xff] %v5732_v24  ;;  %v7521_v18 = vld [vmem:[#allocation22_spill] sm:$0xff]  ;;  %v7522_v33 = vld [vmem:[#allocation32_spill] sm:$0xff]  ;;  %v5738_v43 = vpop.permute.xlu2 %1401  ;;  %v7528_v60 = vld [vmem:[#allocation53_spill] sm:$0xff] }
 0x185   : > { %v1601_v12 = vmul.f32 %v1523_v31, %v5568_v9  ;;  %v1603_v62 = vmul.f32 %v1523_v31, %v5620_v25  ;;  %v2175_v59 = vadd.f32 %v7513_v41, %v2119_v63  ;;  %v2204_v15 = vadd.f32 %v7514_v50, %v5511_v61  ;;  %7523 = vst [vmem:[#allocation27_spill] sm:$0xff] %v5738_v43  ;;  %v7525_v31 = vld [vmem:[#allocation33_spill] sm:$0xff]  ;;  %v7526_v63 = vld [vmem:[#allocation150_spill] sm:$0xff]  ;;  %v7529_v39 = vld [vmem:[#allocation64_spill] sm:$0xff] }
 0x186   : > { %3811 = vset.pattern.permute.xlu2 %v7510_v13  ;;  %v7515_v55 = vmax.f32 %v5572_v35, 0.0  ;;  %v2722_v36 = vadd.f32 %v7516_v22, %v5522_v53  ;;  %v1140_v47 = vadd.f32 %v1139_v44, %v7517_v29  ;;  %v1170_v40 = vadd.f32 %v1169_v54, %v7518_v21  ;;  %v7531_v41 = vld [vmem:[#allocation24_spill] sm:$0xff]  ;;  %v7532_v50 = vld [vmem:[#allocation34_spill] sm:$0xff] }
 0x187   : > { %2901 = vperm.xlu2 %3811, %v5545_v46   ;;  %v1657_v0 = vadd.f32 %v5385_v37, %v1601_v12  ;;  %v1687_v28 = vadd.f32 %v1686_v38, %v1603_v62  ;;  %v2176_v2 = vadd.f32 %v2175_v59, %v7519_v51  ;;  %v2205_v57 = vadd.f32 %v2204_v15, %v2121_v1  ;;  %v7524_v37 = vld [vmem:[#allocation38_spill] sm:$0xff]  ;;  %v7536_v29 = vld [vmem:[#allocation148_spill] sm:$0xff]  ;;  %v7540_v51 = vld [vmem:[#allocation77_spill] sm:$0xff] }
 0x188   : > { %v2559_v8 = vperm.slane %v7515_v55, 1  ;;  %v1141_v53 = vadd.f32 %v1140_v47, %v5391_v20  ;;  %v1171_v46 = vadd.f32 %v1170_v40, %v5444_v6  ;;  %v7527_v6 = vld [vmem:[#allocation42_spill] sm:$0xff]  ;;  %v7535_v22 = vmax.f32 %v5578_v23, 0.0  ;;  %v7537_v47 = vld [vmem:[#allocation124_spill] sm:$0xff]  ;;  %v7538_v40 = vld [vmem:[#allocation131_spill] sm:$0xff] }
 0x189   : > { %v1658_v11 = vadd.f32 %v1657_v0, %v7521_v18  ;;  %v1688_v16 = vadd.f32 %v1687_v28, %v7522_v33  ;;  %v2177_v45 = vadd.f32 %v2176_v2, %v7524_v37  ;;  %v2206_v5 = vadd.f32 %v2205_v57, %v7525_v31  ;;  %v7530_v12 = vld [vmem:[#allocation54_spill] sm:$0xff]  ;;  %v7541_v57 = vld [vmem:[#allocation45_spill] sm:$0xff]  ;;  %v7546_v37 = vld [vmem:[#allocation67_spill] sm:$0xff] }
 0x18a   : > { %v2637_v61 = vmul.f32 %v2559_v8, %v5568_v9  ;;  %v2639_v35 = vmul.f32 %v2559_v8, %v5620_v25  ;;  %v5744_v34 = vadd.f32 %v1141_v53, %v5479_v56  ;;  %v5747_v20 = vadd.f32 %v1171_v46, %v7526_v63  ;;  %v7533_v15 = vld [vmem:[#allocation62_spill] sm:$0xff]  ;;  %v7534_v56 = vld [vmem:[#allocation76_spill] sm:$0xff]  ;;  %3812 = vset.pattern.permute.xlu1 %v7510_v13  ;;  %v7544_v23 = vld [vmem:[#allocation85_spill] sm:$0xff] }
 0x18b   : > { %v1659_v1 = vadd.f32 %v1658_v11, %v7527_v6  ;;  %v1689_v44 = vadd.f32 %v1688_v16, %v7528_v60  ;;  %v5752_v54 = vadd.f32 %v2177_v45, %v7529_v39  ;;  %v2207_v62 = vadd.f32 %v2206_v5, %v7530_v12  ;;  %v7543_v46 = vld [vmem:[#allocation138_spill] sm:$0xff]  ;;  %2905 = vperm.xlu1 %3812, %v5656_v48   ;;  %v7545_v11 = vld [vmem:[#allocation9_spill] sm:$0xff]  ;;  %v7554_v48 = vld [vmem:[#allocation112_spill] sm:$0xff] }
 0x18c   : > { %v2693_v38 = vadd.f32 %v5406_v14, %v2637_v61  ;;  %v2723_v42 = vadd.f32 %v2722_v36, %v2639_v35  ;;  %v3077_v36 = vperm.slane %v7535_v22, 1  ;;  %v3240_v21 = vadd.f32 %v7537_v47, %v7536_v29  ;;  %v7542_v35 = vld [vmem:[#allocation55_spill] sm:$0xff]  ;;  %v7548_v31 = vld [vmem:[#allocation78_spill] sm:$0xff]  ;;  %v7552_v63 = vld [vmem:[#allocation5_spill] sm:$0xff] }
 0x18d   : > { %v1660_v55 = vadd.f32 %v1659_v1, %v7533_v15  ;;  %v1690_v8 = vadd.f32 %v1689_v44, %v7534_v56  ;;  %v7539_v0 = vmax.f32 %v7538_v40, 0.0  ;;  %v5769_v2 = vadd.f32 %v2207_v62, %v7540_v51  ;;  %v7555_v60 = vld [vmem:[#allocation122_spill] sm:$0xff]  ;;  %v7556_v39 = vld [vmem:[#allocation127_spill] sm:$0xff]  ;;  %v5804_v56 = vpop.permute.xlu1 %1297  ;;  %v7565_v47 = vld [vmem:[#allocation25_spill] sm:$0xff]  ;;  %v5810_v51 = vpop.permute.xlu2 %1409 }
 0x18e   : > { %v2694_v59 = vadd.f32 %v2693_v38, %v7531_v41  ;;  %v2724_v14 = vadd.f32 %v2723_v42, %v7532_v50  ;;  %v3155_v13 = vmul.f32 %v3077_v36, %v5568_v9  ;;  %v3157_v16 = vmul.f32 %v3077_v36, %v5620_v25  ;;  %v7550_v38 = vld [vmem:[#allocation11_spill] sm:$0xff]  ;;  %v5794_v25 = vpop.f32.mrf.mxu2  ;;  %v7557_v62 = vld [vmem:[#allocation2_spill] sm:$0xff]  ;;  %7562 = vst [vmem:[#allocation40_spill] sm:$0xff] %v5804_v56 }
 0x18f   : > { %v5766_v28 = vperm.slane %v7539_v0, 1  ;;  %2909 = vperm.xlu2 %3811, %v7543_v46   ;;  %v1661_v18 = vadd.f32 %v1660_v55, %v7544_v23  ;;  %v1691_v33 = vadd.f32 %v1690_v8, %v7545_v11  ;;  %v5786_v42 = vmax.f32 %v7550_v38, 0.0  ;;  %v7563_v8 = vld [vmem:[#allocation70_spill] sm:$0xff]  ;;  %v7564_v36 = vld [vmem:[#allocation135_spill] sm:$0xff]  ;;  %7567 = vst [vmem:[#allocation48_spill] sm:$0xff] %v5810_v51  ;;  %v7570_v46 = vld [vmem:[#allocation4_spill] sm:$0xff] }
 0x190   : > { %v2695_v61 = vadd.f32 %v2694_v59, %v7541_v57  ;;  %v2725_v53 = vadd.f32 %v2724_v14, %v7542_v35  ;;  %v5789_v6 = vmax.f32 %v7552_v63, 0.0  ;;  %v3211_v9 = vadd.f32 %v7556_v39, %v3155_v13  ;;  %v7559_v59 = vld [vmem:[#allocation103_spill] sm:$0xff]  ;;  %v7561_v14 = vld [vmem:[#allocation57_spill] sm:$0xff]  ;;  %v7568_v57 = vld [vmem:[#allocation106_spill] sm:$0xff] }
 0x191   : > { %7551 = vst [vmem:[#allocation39_spill] sm:$0xff] %v5786_v42  ;;  %v1662_v1 = vadd.f32 %v1661_v18, %v7554_v48  ;;  %v1692_v44 = vadd.f32 %v1691_v33, %v7555_v60  ;;  %v3241_v12 = vadd.f32 %v3240_v21, %v3157_v16  ;;  %v5797_v41 = vmax.f32 %v7557_v62, 0.0  ;;  %v7566_v40 = vld [vmem:[#allocation35_spill] sm:$0xff]  ;;  %v7574_v16 = vld [vmem:[#allocation46_spill] sm:$0xff] }
 0x192   : > { %v5780_v45 = vadd.f32 %v2695_v61, %v7546_v37  ;;  %v5783_v5 = vadd.f32 %v2725_v53, %v7548_v31  ;;  %7553 = vst [vmem:[#allocation47_spill] sm:$0xff] %v5789_v6  ;;  %v5800_v50 = vmax.f32 %v7559_v59, 0.0  ;;  %v921_v15 = vadd.f32 -2.0, %v7561_v14  ;;  %v7572_v18 = vld [vmem:[#allocation143_spill] sm:$0xff]  ;;  %v7575_v31 = vld [vmem:[#allocation56_spill] sm:$0xff] }
 0x193   : > { %7558 = vst [vmem:[#allocation19_spill] sm:$0xff] %v5797_v41  ;;  %v1443_v55 = vadd.f32 -1.0, %v7561_v14  ;;  %v1663_v22 = vadd.f32 %v1662_v1, %v7563_v8  ;;  %v1693_v29 = vadd.f32 %v1692_v44, %v7564_v36  ;;  %v3212_v21 = vadd.f32 %v3211_v9, %v7565_v47  ;;  %v7573_v33 = vld [vmem:[#allocation151_spill] sm:$0xff]  ;;  %v7576_v1 = vld [vmem:[#allocation6_spill] sm:$0xff]  ;;  %v7580_v9 = vld [vmem:[#allocation68_spill] sm:$0xff] }
 0x194   : > { %7547 = vst [vmem:[#allocation37_spill] sm:$0xff] %v5780_v45  ;;  %v3242_v0 = vadd.f32 %v3241_v12, %v7566_v40  ;;  %v5813_v61 = vmax.f32 %v7568_v57, 0.0  ;;  %v937_v35 = vand.u32 2147483647, %v921_v15  ;;  %v5816_v23 = vmax.f32 %v7570_v46, 0.0  ;;  %v7578_v44 = vld [vmem:[#allocation10_spill] sm:$0xff]  ;;  %v5842_v40 = vpop.f32.mrf.mxu3 }
 0x195   : > { %7549 = vst [vmem:[#allocation49_spill] sm:$0xff] %v5783_v5  ;;  %v1459_v53 = vand.u32 2147483647, %v1443_v55  ;;  %v1664_v11 = vadd.f32 %v1663_v22, %v7572_v18  ;;  %v5820_v13 = vadd.f32 %v1693_v29, %v7573_v33  ;;  %v3213_v37 = vadd.f32 %v3212_v21, %v7574_v16  ;;  %v7582_v62 = vld [vmem:[#allocation79_spill] sm:$0xff]  ;;  %v7584_v15 = vld [vmem:[#allocation104_spill] sm:$0xff] }
 0x196   : > { %7560 = vst [vmem:[#allocation29_spill] sm:$0xff] %v5800_v50  ;;  %v3243_v38 = vadd.f32 %v3242_v0, %v7575_v31  ;;  %v953_v63 = vsub.f32 1.0, %v937_v35  ;;  %v5825_v60 = vmax.f32 %v7576_v1, 0.0  ;;  %v5828_v39 = vmax.f32 %v7578_v44, 0.0  ;;  %v7586_v8 = vld [vmem:[#allocation7_spill] sm:$0xff]  ;;  %v7588_v0 = vld [vmem:[#allocation12_spill] sm:$0xff] }
 0x197   : > { %7569 = vst [vmem:[#allocation63_spill] sm:$0xff] %v5813_v61  ;;  %v1475_v48 = vsub.f32 1.0, %v1459_v53  ;;  %v5831_v12 = vadd.f32 %v3213_v37, %v7580_v9  ;;  %v5837_v55 = vmax.f32 %v7584_v15, 0.0  ;;  %v700_v22 = vadd.f32 -2.0, %v7586_v8  ;;  %v5859_v15 = vpop.f32.mrf.mxu2  ;;  %v7610_v45 = vld [vmem:[#allocation140_spill] sm:$0xff] }
 0x198   : > { %7571 = vst [vmem:[#allocation72_spill] sm:$0xff] %v5816_v23  ;;  %v5834_v59 = vadd.f32 %v3243_v38, %v7582_v62  ;;  %v969_v36 = vmax.f32 %v953_v63, 0.0  ;;  %v716_v47 = vadd.f32 -1.0, %v7586_v8  ;;  %v736_v21 = vand.u32 2147483647, %v7586_v8 }
 0x199   : > { %7577 = vst [vmem:[#allocation58_spill] sm:$0xff] %v5825_v60  ;;  %v1491_v29 = vmax.f32 %v1475_v48, 0.0  ;;  %v5845_v57 = vmax.f32 %v7588_v0, 0.0  ;;  %v704_v35 = vand.u32 2147483647, %v700_v22  ;;  %v748_v53 = vadd.f32 1.0, %v7586_v8 }
 0x19a   : > { %7579 = vst [vmem:[#allocation69_spill] sm:$0xff] %v5828_v39  ;;  %v764_v46 = vadd.f32 2.0, %v7586_v8  ;;  %v1016_v18 = vperm.slane %v969_v36, 0  ;;  %v5849_v16 = vperm.slane %v969_v36, 1  ;;  %v720_v38 = vand.u32 2147483647, %v716_v47  ;;  %v5861_v8 = vpop.permute.xlu1 %1309 }
 0x19b   : > { %7581 = vst [vmem:[#allocation43_spill] sm:$0xff] %v5831_v12  ;;  %v1538_v33 = vperm.slane %v1491_v29, 0  ;;  %v5851_v37 = vperm.slane %v1491_v29, 1  ;;  %v708_v31 = vsub.f32 1.0, %v704_v35  ;;  %v740_v63 = vsub.f32 1.0, %v736_v21  ;;  %v5867_v21 = vpop.permute.xlu2 %1723  ;;  %v7608_v12 = vld [vmem:[#allocation145_spill] sm:$0xff] }
 0x19c   : > { %7583 = vst [vmem:[#allocation50_spill] sm:$0xff] %v5834_v59  ;;  %v752_v48 = vand.u32 2147483647, %v748_v53  ;;  %v1110_v1 = vmul.f32 %v1016_v18, %v5794_v25  ;;  %v1111_v9 = vmul.f32 %v5849_v16, %v5842_v40  ;;  %v724_v36 = vsub.f32 1.0, %v720_v38 }
 0x19d   : > { %7585 = vst [vmem:[#allocation61_spill] sm:$0xff] %v5837_v55  ;;  %v1632_v44 = vmul.f32 %v1538_v33, %v5794_v25  ;;  %v1633_v62 = vmul.f32 %v5851_v37, %v5842_v40  ;;  %v5863_v22 = vmax.f32 %v708_v31, 0.0  ;;  %v5865_v29 = vmax.f32 %v740_v63, 0.0 }
 0x19e   : > { %7587 = vst [vmem:[#allocation71_spill] sm:$0xff] %v5842_v40  ;;  %v756_v47 = vsub.f32 1.0, %v752_v48  ;;  %v1128_v0 = vadd.f32 %v5681_v19, %v1110_v1  ;;  %v1143_v53 = vadd.f32 %v5744_v34, %v1111_v9  ;;  %v5876_v49 = vmax.f32 %v724_v36, 0.0 }
 0x19f   : > { %7589 = vst [vmem:[#allocation81_spill] sm:$0xff] %v5845_v57  ;;  %v5871_v35 = vadd.f32 %v5689_v4, %v1632_v44  ;;  %v5874_v51 = vadd.f32 %v1664_v11, %v1633_v62  ;;  %v768_v31 = vand.u32 2147483647, %v764_v46  ;;  %v1112_v38 = vmul.f32 %v1016_v18, %v5859_v15 }
 0x1a0   : > { %7590 = vst [vmem:[#allocation3_spill] sm:$0xff] %v5861_v8  ;;  %v5878_v8 = vmax.f32 %v756_v47, 0.0  ;;  %v1174_v63 = vmul.f32 %v1128_v0, %v5786_v42  ;;  %v1228_v48 = vmul.f32 %v1128_v0, %v5789_v6  ;;  %v1278_v19 = vmul.f32 %v1128_v0, %v5797_v41 }
 0x1a1   : > { %7591 = vst [vmem:[#allocation65_spill] sm:$0xff] %v5863_v22  ;;  %v1328_v4 = vmul.f32 %v1128_v0, %v5800_v50  ;;  %v1378_v1 = vmul.f32 %v1128_v0, %v5813_v61  ;;  %v1696_v34 = vmul.f32 %v5871_v35, %v5786_v42  ;;  %v1746_v11 = vmul.f32 %v5871_v35, %v5789_v6  ;;  %v7601_v61 = vld [vmem:[#allocation91_spill] sm:$0xff] }
 0x1a2   : > { %7592 = vst [vmem:[#allocation73_spill] sm:$0xff] %v5865_v29  ;;  %v1796_v46 = vmul.f32 %v5871_v35, %v5797_v41  ;;  %v5894_v18 = vmul.f32 %v5871_v35, %v5800_v50  ;;  %v5897_v44 = vmul.f32 %v1143_v53, %v5816_v23  ;;  %v5900_v9 = vmul.f32 %v1143_v53, %v5825_v60 }
 0x1a3   : > { %7593 = vst [vmem:[#allocation83_spill] sm:$0xff] %v5867_v21  ;;  %v5903_v62 = vmul.f32 %v1143_v53, %v5828_v39  ;;  %v5906_v36 = vmul.f32 %v1143_v53, %v5837_v55  ;;  %v5909_v47 = vmul.f32 %v1143_v53, %v5845_v57  ;;  %v5913_v0 = vmul.f32 %v5874_v51, %v5816_v23 }
 0x1a4   : > { %7594 = vst [vmem:[#allocation8_spill] sm:$0xff] %v5871_v35  ;;  %v5917_v50 = vmul.f32 %v5874_v51, %v5825_v60  ;;  %v5921_v43 = vmul.f32 %v5874_v51, %v5828_v39  ;;  %v5925_v41 = vmul.f32 %v5874_v51, %v5837_v55  ;;  %v772_v21 = vsub.f32 1.0, %v768_v31  ;;  %v7600_v35 = vld [vmem:[#allocation84_spill] sm:$0xff] }
 0x1a5   : > { %7595 = vst [vmem:[#allocation21_spill] sm:$0xff] %v5874_v51  ;;  %v1158_v53 = vadd.f32 %v5684_v27, %v1112_v38  ;;  %v7599_v24 = vmax.f32 %v7598_v32, 0.0  ;;  %v1634_v57 = vmul.f32 %v1538_v33, %v5859_v15  ;;  %v2164_v60 = vadd.f32 %v5625_v10, %v7600_v35  ;;  %v5942_v38 = vpop.permute.xlu1 %1351  ;;  %v7605_v33 = vld [vmem:[#allocation97_spill] sm:$0xff] }
 0x1a6   : > { %7596 = vst [vmem:[#allocation31_spill] sm:$0xff] %v5876_v49  ;;  %v5935_v52 = vadd.f32 %v5628_v7, %v7601_v61  ;;  %v5937_v39 = vmax.f32 %v772_v21, 0.0  ;;  %v1977_v10 = vand.u32 2147483647, %v7561_v14  ;;  %v5950_v61 = vpop.permute.xlu2 %1765 }
 0x1a7   : > { %7597 = vst [vmem:[#allocation20_spill] sm:$0xff] %v5878_v8  ;;  %v3091_v6 = vperm.slane %v7599_v24, 1  ;;  %v1176_v55 = vmul.f32 %v1158_v53, %v5863_v22  ;;  %v1230_v31 = vmul.f32 %v1158_v53, %v5876_v49  ;;  %v1280_v27 = vmul.f32 %v1158_v53, %v5865_v29 }
 0x1a8   : > { %7602 = vst [vmem:[#allocation30_spill] sm:$0xff] %v5937_v39  ;;  %v1330_v32 = vmul.f32 %v1158_v53, %v5878_v8  ;;  %v5946_v24 = vadd.f32 %v5692_v3, %v1634_v57  ;;  %v2165_v7 = vadd.f32 %v2164_v60, %v7605_v33  ;;  %v1380_v56 = vmul.f32 %v1158_v53, %v5937_v39 }
 0x1a9   : > { %7603 = vst [vmem:[#allocation41_spill] sm:$0xff] %v5942_v38  ;;  %v1178_v21 = vadd.f32 %v1176_v55, %v1174_v63  ;;  %v1232_v35 = vadd.f32 %v1230_v31, %v1228_v48  ;;  %v1282_v51 = vadd.f32 %v1280_v27, %v1278_v19 }
 0x1aa   : > { %7604 = vst [vmem:[#allocation52_spill] sm:$0xff] %v5946_v24  ;;  %v1332_v23 = vadd.f32 %v1330_v32, %v1328_v4  ;;  %v1698_v38 = vmul.f32 %v5946_v24, %v5863_v22  ;;  %v1748_v42 = vmul.f32 %v5946_v24, %v5876_v49  ;;  %v1798_v3 = vmul.f32 %v5946_v24, %v5865_v29  ;;  %v7607_v49 = vld [vmem:[#allocation130_spill] sm:$0xff] }
 0x1ab   : > { %7606 = vst [vmem:[#allocation44_spill] sm:$0xff] %v5950_v61  ;;  %v1179_v57 = vrot.slane %v1178_v21, 4  ;;  %v1233_v59 = vrot.slane %v1232_v35, 4  ;;  %v1283_v60 = vrot.slane %v1282_v51, 4  ;;  %v1382_v33 = vadd.f32 %v1380_v56, %v1378_v1  ;;  %v7609_v29 = vld [vmem:[#allocation14_spill] sm:$0xff] }
 0x1ac   : > { %v1333_v61 = vrot.slane %v1332_v23, 4  ;;  %v1700_v55 = vadd.f32 %v1698_v38, %v1696_v34  ;;  %v1750_v63 = vadd.f32 %v1748_v42, %v1746_v11  ;;  %v1800_v48 = vadd.f32 %v1798_v3, %v1796_v46  ;;  %v7611_v42 = vld [vmem:[#allocation146_spill] sm:$0xff] }
 0x1ad   : > { %v1180_v19 = vadd.f32 %v1179_v57, %v1178_v21  ;;  %v1234_v53 = vadd.f32 %v1233_v59, %v1232_v35  ;;  %v1284_v4 = vadd.f32 %v1283_v60, %v1282_v51  ;;  %v1383_v31 = vrot.slane %v1382_v33, 4 }
 0x1ae   : > { %v1334_v27 = vadd.f32 %v1333_v61, %v1332_v23  ;;  %v1701_v32 = vrot.slane %v1700_v55, 4  ;;  %v1751_v39 = vrot.slane %v1750_v63, 4  ;;  %v1801_v22 = vrot.slane %v1800_v48, 4  ;;  %v7612_v23 = vld [vmem:[#allocation133_spill] sm:$0xff]  ;;  %v5990_v60 = vpop.permute.xlu2 %1777 }
 0x1af   : > { %v5961_v5 = vmul.f32 %v7608_v12, %v7607_v49  ;;  %v2148_v40 = vmul.f32 %v7610_v45, %v7609_v29  ;;  %v1181_v56 = vrot.slane %v1180_v19, 2  ;;  %v1235_v1 = vrot.slane %v1234_v53, 2  ;;  %v5979_v45 = vpop.permute.xlu1 %1397  ;;  %7614 = vst [vmem:[#allocation60_spill] sm:$0xff] %v5990_v60 }
 0x1b0   : > { %v5967_v34 = vmul.f32 %v7611_v42, %v7607_v49  ;;  %v1285_v59 = vrot.slane %v1284_v4, 2  ;;  %v1335_v51 = vrot.slane %v1334_v27, 2  ;;  %v1384_v11 = vadd.f32 %v1383_v31, %v1382_v33  ;;  %7613 = vst [vmem:[#allocation51_spill] sm:$0xff] %v5979_v45  ;;  %v7622_v31 = vld [vmem:[#allocation92_spill] sm:$0xff] }
 0x1b1   : > { %v5971_v46 = vmul.f32 %v5766_v28, %v7612_v23  ;;  %v5973_v38 = vadd.f32 %v1701_v32, %v1700_v55  ;;  %v5975_v61 = vadd.f32 %v1751_v39, %v1750_v63  ;;  %v5977_v21 = vadd.f32 %v1801_v22, %v1800_v48  ;;  %v7615_v22 = vld [vmem:[#allocation147_spill] sm:$0xff]  ;;  %v7616_v55 = vld [vmem:[#allocation141_spill] sm:$0xff] }
 0x1b2   : > { %v5982_v35 = vmul.f32 %v3091_v6, %v7612_v23  ;;  %v5984_v49 = vadd.f32 %v1181_v56, %v1180_v19  ;;  %v5986_v3 = vadd.f32 %v1235_v1, %v1234_v53  ;;  %v5988_v57 = vsub.f32 1.0, %v1977_v10 }
 0x1b3   : > { %v2666_v33 = vmul.f32 %v7608_v12, %v7609_v29  ;;  %v5996_v39 = vmul.f32 %v7611_v42, %v7609_v29  ;;  %v6000_v63 = vmul.f32 %v7616_v55, %v7615_v22  ;;  %v6004_v48 = vmul.f32 %v5766_v28, %v7615_v22  ;;  %v7620_v55 = vld [vmem:[#allocation87_spill] sm:$0xff]  ;;  %v7621_v28 = vld [vmem:[#allocation142_spill] sm:$0xff] }
 0x1b4   : > { %v6007_v10 = vmul.f32 %v3091_v6, %v7615_v22  ;;  %v6009_v19 = vadd.f32 %v1285_v59, %v1284_v4  ;;  %v6011_v53 = vadd.f32 %v1335_v51, %v1334_v27  ;;  %v1385_v12 = vrot.slane %v1384_v11, 2  ;;  %v7617_v4 = vld [vmem:[#allocation36_spill] sm:$0xff]  ;;  %v6022_v27 = vpop.permute.xlu0 %1204  ;;  %v7619_v51 = vld [vmem:[#allocation118_spill] sm:$0xff] }
 0x1b5   : > { %v1848_v56 = vmul.f32 %v5946_v24, %v5878_v8  ;;  %v7194_v6 = vmax.f32 %v5988_v57, 0.0  ;;  %v2166_v42 = vadd.f32 %v2165_v7, %v7617_v4  ;;  %7618 = vst [vmem:[#allocation75_spill] sm:$0xff] %v6022_v27  ;;  %v2195_v23 = vadd.f32 %v5935_v52, %v7619_v51  ;;  %v7624_v51 = vld [vmem:[#allocation99_spill] sm:$0xff] }
 0x1b6   : > { %v2479_v22 = vadd.f32 1.0, %v7561_v14  ;;  %v2682_v32 = vadd.f32 %v5643_v17, %v7620_v55  ;;  %v2712_v7 = vadd.f32 %v5646_v26, %v7622_v31  ;;  %v2997_v4 = vadd.f32 2.0, %v7561_v14  ;;  %v7625_v55 = vld [vmem:[#allocation105_spill] sm:$0xff] }
 0x1b7   : > { %v6025_v59 = vadd.f32 %v1848_v56, %v5894_v18  ;;  %v2056_v1 = vperm.slane %v7194_v6, 0  ;;  %v2167_v29 = vadd.f32 %v2166_v42, %v7621_v28  ;;  %v7623_v56 = vld [vmem:[#allocation129_spill] sm:$0xff]  ;;  %v6044_v28 = vadd.f32 %v1385_v12, %v1384_v11  ;;  %v6049_v18 = vpop.permute.xlu1 %1405 }
 0x1b8   : > { %v2196_v60 = vadd.f32 %v2195_v23, %v7623_v56  ;;  %v2495_v52 = vand.u32 2147483647, %v2479_v22  ;;  %v2683_v8 = vadd.f32 %v2682_v32, %v7624_v51  ;;  %v2713_v6 = vadd.f32 %v2712_v7, %v7625_v55  ;;  %v7626_v14 = vld [vmem:[#allocation113_spill] sm:$0xff]  ;;  %7627 = vst [vmem:[#allocation117_spill] sm:$0xff] %v6049_v18  ;;  %v7628_v22 = vld [vmem:[#allocation134_spill] sm:$0xff]  ;;  %v6058_v7 = vpop.permute.xlu2 %1819 }
 0x1b9   : > { %v2150_v27 = vmul.f32 %v2056_v1, %v5794_v25  ;;  %v2152_v17 = vmul.f32 %v2056_v1, %v5859_v15  ;;  %v3013_v24 = vand.u32 2147483647, %v2997_v4  ;;  %v7629_v51 = vld [vmem:[#allocation89_spill] sm:$0xff]  ;;  %7630 = vst [vmem:[#allocation66_spill] sm:$0xff] %v6058_v7 }
 0x1ba   : > { %v2197_v42 = vadd.f32 %v2196_v60, %v2148_v40  ;;  %v6046_v26 = vsub.f32 1.0, %v2495_v52  ;;  %v2684_v31 = vadd.f32 %v2683_v8, %v7626_v14  ;;  %v2714_v32 = vadd.f32 %v2713_v6, %v7628_v22  ;;  %v7634_v52 = vld [vmem:[#allocation80_spill] sm:$0xff]  ;;  %v7638_v7 = vld [vmem:[#allocation125_spill] sm:$0xff] }
 0x1bb   : > { %v6051_v23 = vadd.f32 %v2167_v29, %v2150_v27  ;;  %v6054_v56 = vsub.f32 1.0, %v3013_v24  ;;  %v3200_v1 = vadd.f32 %v5703_v58, %v7629_v51  ;;  %v7632_v27 = vld [vmem:[#allocation100_spill] sm:$0xff]  ;;  %v7633_v24 = vld [vmem:[#allocation93_spill] sm:$0xff]  ;;  %v701_v55 = vadd.f32 -2.0, %v7634_v52 }
 0x1bc   : > { %v6061_v40 = vadd.f32 %v2197_v42, %v2152_v17  ;;  %v7196_v60 = vmax.f32 %v6046_v26, 0.0  ;;  %v2685_v8 = vadd.f32 %v2684_v31, %v5961_v5  ;;  %v2715_v12 = vadd.f32 %v2714_v32, %v2666_v33  ;;  %v7635_v33 = vld [vmem:[#allocation115_spill] sm:$0xff]  ;;  %v6079_v51 = vpop.permute.xlu0 %1251 }
 0x1bd   : > { %v7197_v29 = vmax.f32 %v6054_v56, 0.0  ;;  %v3201_v6 = vadd.f32 %v3200_v1, %v7632_v27  ;;  %v3230_v4 = vadd.f32 %v5706_v30, %v7633_v24  ;;  %v717_v17 = vadd.f32 -1.0, %v7634_v52  ;;  %v7636_v31 = vld [vmem:[#allocation107_spill] sm:$0xff]  ;;  %7637 = vst [vmem:[#allocation82_spill] sm:$0xff] %v6079_v51 }
 0x1be   : > { %7631 = vst [vmem:[#allocation74_spill] sm:$0xff] %v6061_v40  ;;  %v2574_v58 = vperm.slane %v7196_v60, 0  ;;  %v737_v42 = vand.u32 2147483647, %v7634_v52  ;;  %v749_v32 = vadd.f32 1.0, %v7634_v52 }
 0x1bf   : > { %v3092_v5 = vperm.slane %v7197_v29, 0  ;;  %v3202_v14 = vadd.f32 %v3201_v6, %v7635_v33  ;;  %v3231_v22 = vadd.f32 %v3230_v4, %v7636_v31  ;;  %v705_v27 = vand.u32 2147483647, %v701_v55  ;;  %v6087_v33 = vpop.f32.mrf.mxu3 }
 0x1c0   : > { %v2668_v30 = vmul.f32 %v2574_v58, %v5794_v25  ;;  %v2670_v1 = vmul.f32 %v2574_v58, %v5859_v15  ;;  %v721_v24 = vand.u32 2147483647, %v717_v17  ;;  %v741_v55 = vsub.f32 1.0, %v737_v42 }
 0x1c1   : > { %v3186_v11 = vmul.f32 %v3092_v5, %v5794_v25  ;;  %v3188_v60 = vmul.f32 %v3092_v5, %v5859_v15  ;;  %v3203_v29 = vadd.f32 %v3202_v14, %v5967_v34  ;;  %v3232_v6 = vadd.f32 %v3231_v22, %v7638_v7  ;;  %v7648_v14 = vld [vmem:[#allocation86_spill] sm:$0xff] }
 0x1c2   : > { %v6089_v4 = vadd.f32 %v2685_v8, %v2668_v30  ;;  %v6091_v31 = vadd.f32 %v2715_v12, %v2670_v1  ;;  %v709_v51 = vsub.f32 1.0, %v705_v27  ;;  %v725_v18 = vsub.f32 1.0, %v721_v24  ;;  %v6103_v8 = vpop.permute.xlu1 %1719  ;;  %v7651_v30 = vld [vmem:[#allocation94_spill] sm:$0xff] }
 0x1c3   : > { %v6093_v45 = vadd.f32 %v3203_v29, %v3186_v11  ;;  %v3233_v58 = vadd.f32 %v3232_v6, %v5996_v39  ;;  %v753_v25 = vand.u32 2147483647, %v749_v32  ;;  %v765_v34 = vadd.f32 2.0, %v7634_v52  ;;  %7644 = vst [vmem:[#allocation119_spill] sm:$0xff] %v6103_v8  ;;  %v6111_v29 = vpop.permute.xlu2 %1865  ;;  %v7676_v8 = vld [vmem:[#allocation144_spill] sm:$0xff] }
 0x1c4   : > { %7639 = vst [vmem:[#allocation110_spill] sm:$0xff] %v6089_v4  ;;  %v6096_v17 = vmax.f32 %v709_v51, 0.0  ;;  %v6098_v15 = vmax.f32 %v725_v18, 0.0  ;;  %v1113_v7 = vmul.f32 %v5849_v16, %v6087_v33  ;;  %v6107_v5 = vmax.f32 %v741_v55, 0.0 }
 0x1c5   : > { %7640 = vst [vmem:[#allocation13_spill] sm:$0xff] %v6091_v31  ;;  %v6105_v12 = vadd.f32 %v3233_v58, %v3188_v60  ;;  %v757_v11 = vsub.f32 1.0, %v753_v25  ;;  %v1635_v39 = vmul.f32 %v5851_v37, %v6087_v33  ;;  %v7647_v18 = vrot.slane %v5973_v38, 2 }
 0x1c6   : > { %7641 = vst [vmem:[#allocation120_spill] sm:$0xff] %v6093_v45  ;;  %v769_v52 = vand.u32 2147483647, %v765_v34  ;;  %v1173_v16 = vadd.f32 %v5747_v20, %v1113_v7  ;;  %v6121_v60 = vadd.f32 %v5752_v54, %v7648_v14  ;;  %v7649_v22 = vrot.slane %v5975_v61, 2 }
 0x1c7   : > { %7642 = vst [vmem:[#allocation121_spill] sm:$0xff] %v6096_v17  ;;  %v6116_v42 = vadd.f32 %v7647_v18, %v5973_v38  ;;  %v6128_v37 = vmax.f32 %v757_v11, 0.0  ;;  %v6131_v51 = vadd.f32 %v5820_v13, %v1635_v39  ;;  %v6135_v38 = vadd.f32 %v5769_v2, %v7651_v30  ;;  %v6147_v2 = vpop.permute.xlu0 %1305 }
 0x1c8   : > { %7643 = vst [vmem:[#allocation111_spill] sm:$0xff] %v6098_v15  ;;  %v6126_v32 = vadd.f32 %v7649_v22, %v5975_v61  ;;  %v773_v1 = vsub.f32 1.0, %v769_v52  ;;  %v1177_v20 = vmul.f32 %v1173_v16, %v6096_v17  ;;  %v1231_v54 = vmul.f32 %v1173_v16, %v6098_v15 }
 0x1c9   : > { %7645 = vst [vmem:[#allocation23_spill] sm:$0xff] %v6105_v12  ;;  %v1281_v27 = vmul.f32 %v1173_v16, %v6107_v5  ;;  %v1331_v24 = vmul.f32 %v1173_v16, %v6128_v37  ;;  %v1699_v61 = vmul.f32 %v6131_v51, %v6096_v17  ;;  %v1749_v13 = vmul.f32 %v6131_v51, %v6098_v15 }
 0x1ca   : > { %7646 = vst [vmem:[#allocation22_spill] sm:$0xff] %v6107_v5  ;;  %v1799_v6 = vmul.f32 %v6131_v51, %v6107_v5  ;;  %v6149_v58 = vmax.f32 %v773_v1, 0.0  ;;  %v1185_v55 = vadd.f32 %v1177_v20, %v5897_v44  ;;  %v1239_v25 = vadd.f32 %v1231_v54, %v5900_v9 }
 0x1cb   : > { %7650 = vst [vmem:[#allocation32_spill] sm:$0xff] %v6128_v37  ;;  %v1289_v34 = vadd.f32 %v1281_v27, %v5903_v62  ;;  %v1339_v7 = vadd.f32 %v1331_v24, %v5906_v36  ;;  %v1707_v11 = vadd.f32 %v1699_v61, %v5913_v0  ;;  %v1757_v39 = vadd.f32 %v1749_v13, %v5917_v50  ;;  %v6160_v27 = vpop.permute.xlu1 %1727 }
 0x1cc   : > { %7652 = vst [vmem:[#allocation38_spill] sm:$0xff] %v6149_v58  ;;  %v1807_v18 = vadd.f32 %v1799_v6, %v5921_v43  ;;  %v1186_v52 = vrot.slane %v1185_v55, 4  ;;  %v1240_v14 = vrot.slane %v1239_v25, 4  ;;  %v1381_v30 = vmul.f32 %v1173_v16, %v6149_v58  ;;  %v6177_v6 = vpop.permute.xlu2 %1873 }
 0x1cd   : > { %v1290_v22 = vrot.slane %v1289_v34, 4  ;;  %v1340_v1 = vrot.slane %v1339_v7, 4  ;;  %v1708_v12 = vrot.slane %v1707_v11, 4  ;;  %v1758_v44 = vrot.slane %v1757_v39, 4  ;;  %7653 = vst [vmem:[#allocation33_spill] sm:$0xff] %v6160_v27  ;;  %v7672_v27 = vld [vmem:[#allocation90_spill] sm:$0xff] }
 0x1ce   : > { %v1808_v20 = vrot.slane %v1807_v18, 4  ;;  %v1187_v9 = vadd.f32 %v1186_v52, %v1185_v55  ;;  %v1241_v54 = vadd.f32 %v1240_v14, %v1239_v25  ;;  %v1389_v36 = vadd.f32 %v1381_v30, %v5909_v47 }
 0x1cf   : > { %v1291_v62 = vadd.f32 %v1290_v22, %v1289_v34  ;;  %v7654_v50 = vrot.slane %v5984_v49, 1  ;;  %v7655_v0 = vrot.slane %v5986_v3, 1  ;;  %v7656_v24 = vrot.slane %v5977_v21, 2  ;;  %v6192_v45 = vpop.permute.xlu0 %1359 }
 0x1d0   : > { %v1341_v13 = vadd.f32 %v1340_v1, %v1339_v7  ;;  %v1188_v47 = vrot.slane %v1187_v9, 2  ;;  %v1242_v55 = vrot.slane %v1241_v54, 2  ;;  %v1390_v34 = vrot.slane %v1389_v36, 4  ;;  %7657 = vst [vmem:[#allocation150_spill] sm:$0xff] %v6192_v45  ;;  %v7662_v7 = vld [vmem:[#allocation71_spill] sm:$0xff]  ;;  %v7674_v45 = vld [vmem:[#allocation96_spill] sm:$0xff] }
 0x1d1   : > { %v6165_v43 = vadd.f32 %v7654_v50, %v5984_v49  ;;  %v6170_v16 = vadd.f32 %v7655_v0, %v5986_v3  ;;  %v6175_v61 = vadd.f32 %v7656_v24, %v5977_v21  ;;  %v1292_v25 = vrot.slane %v1291_v62, 2  ;;  %v7661_v0 = vld [vmem:[#allocation123_spill] sm:$0xff] }
 0x1d2   : > { %v1342_v52 = vrot.slane %v1341_v13, 2  ;;  %v6179_v49 = vadd.f32 %v1708_v12, %v1707_v11  ;;  %v6181_v14 = vadd.f32 %v1758_v44, %v1757_v39  ;;  %v6183_v22 = vadd.f32 %v1808_v20, %v1807_v18 }
 0x1d3   : > { %v1189_v3 = vadd.f32 %v1188_v47, %v1187_v9  ;;  %v1243_v30 = vadd.f32 %v1242_v55, %v1241_v54  ;;  %v6185_v50 = vadd.f32 %v1292_v25, %v1291_v62  ;;  %v1391_v21 = vadd.f32 %v1390_v34, %v1389_v36  ;;  %v7663_v55 = vld [vmem:[#allocation88_spill] sm:$0xff]  ;;  %v7664_v47 = vld [vmem:[#allocation37_spill] sm:$0xff] }
 0x1d4   : > { %v6190_v24 = vadd.f32 %v1342_v52, %v1341_v13  ;;  %v7658_v18 = vmax.f32 %v5988_v57, 0.0  ;;  %v1849_v54 = vmul.f32 %v6131_v51, %v6128_v37  ;;  %v7659_v62 = vmax.f32 %v6046_v26, 0.0  ;;  %v7660_v52 = vld [vmem:[#allocation98_spill] sm:$0xff]  ;;  %v7666_v13 = vld [vmem:[#allocation136_spill] sm:$0xff]  ;;  %v7668_v9 = vld [vmem:[#allocation49_spill] sm:$0xff] }
 0x1d5   : > { %v1190_v12 = vrot.slane %v1189_v3, 1  ;;  %v1244_v11 = vrot.slane %v1243_v30, 1  ;;  %v1392_v39 = vrot.slane %v1391_v21, 2  ;;  %v2210_v26 = vadd.f32 %v6135_v38, %v7661_v0  ;;  %v7675_v37 = vld [vmem:[#allocation50_spill] sm:$0xff] }
 0x1d6   : > { %v2057_v44 = vperm.slane %v7658_v18, 1  ;;  %v2575_v36 = vperm.slane %v7659_v62, 1  ;;  %v6209_v34 = vadd.f32 %v1849_v54, %v5925_v41  ;;  %v2180_v18 = vadd.f32 %v6121_v60, %v7660_v52  ;;  %v7667_v52 = vld [vmem:[#allocation95_spill] sm:$0xff] }
 0x1d7   : > { %v6206_v57 = vadd.f32 %v1190_v12, %v1189_v3  ;;  %v6215_v62 = vadd.f32 %v1244_v11, %v1243_v30  ;;  %v6217_v1 = vadd.f32 %v1392_v39, %v1391_v21  ;;  %v2697_v25 = vadd.f32 %v7664_v47, %v7663_v55  ;;  %v6222_v3 = vpop.permute.xlu1 %1773  ;;  %v7665_v12 = vld [vmem:[#allocation128_spill] sm:$0xff]  ;;  %v6229_v30 = vpop.permute.xlu2 %1919  ;;  %v7670_v21 = vld [vmem:[#allocation101_spill] sm:$0xff]  ;;  %v7673_v47 = vld [vmem:[#allocation43_spill] sm:$0xff] }
 0x1d8   : > { %v2151_v20 = vmul.f32 %v2057_v44, %v7662_v7  ;;  %v2153_v41 = vmul.f32 %v2057_v44, %v6087_v33  ;;  %v2181_v54 = vadd.f32 %v2180_v18, %v7665_v12  ;;  %v2211_v60 = vadd.f32 %v2210_v26, %v7666_v13  ;;  %7669 = vst [vmem:[#allocation42_spill] sm:$0xff] %v6229_v30 }
 0x1d9   : > { %v2727_v38 = vadd.f32 %v7668_v9, %v7667_v52  ;;  %v2698_v0 = vadd.f32 %v2697_v25, %v7670_v21  ;;  %v7671_v11 = vmax.f32 %v6054_v56, 0.0  ;;  %v3215_v55 = vadd.f32 %v7673_v47, %v7672_v27  ;;  %v7677_v9 = vld [vmem:[#allocation108_spill] sm:$0xff]  ;;  %v7678_v25 = vld [vmem:[#allocation114_spill] sm:$0xff] }
 0x1da   : > { %v3245_v44 = vadd.f32 %v7675_v37, %v7674_v45  ;;  %v2182_v18 = vadd.f32 %v2181_v54, %v7676_v8  ;;  %v2212_v13 = vadd.f32 %v2211_v60, %v6000_v63  ;;  %v2669_v26 = vmul.f32 %v2575_v36, %v7662_v7  ;;  %v7681_v45 = vld [vmem:[#allocation137_spill] sm:$0xff]  ;;  %v6252_v37 = vpop.permute.xlu0 %1715  ;;  %v7682_v60 = vld [vmem:[#allocation116_spill] sm:$0xff] }
 0x1db   : > { %v3093_v39 = vperm.slane %v7671_v11, 1  ;;  %v2728_v12 = vadd.f32 %v2727_v38, %v7677_v9  ;;  %v2671_v52 = vmul.f32 %v2575_v36, %v6087_v33  ;;  %v2699_v21 = vadd.f32 %v2698_v0, %v7678_v25  ;;  %v7679_v11 = vld [vmem:[#allocation102_spill] sm:$0xff]  ;;  %v7683_v38 = vld [vmem:[#allocation109_spill] sm:$0xff]  ;;  %v7684_v9 = vld [vmem:[#allocation39_spill] sm:$0xff] }
 0x1dc   : > { %v3216_v30 = vadd.f32 %v3215_v55, %v7679_v11  ;;  %v6246_v27 = vadd.f32 %v2182_v18, %v2151_v20  ;;  %v6248_v47 = vadd.f32 %v2212_v13, %v2153_v41  ;;  %v3246_v0 = vadd.f32 %v3245_v44, %v7683_v38  ;;  %v7685_v55 = vld [vmem:[#allocation72_spill] sm:$0xff]  ;;  %v7686_v18 = vld [vmem:[#allocation65_spill] sm:$0xff] }
 0x1dd   : > { %v3187_v56 = vmul.f32 %v3093_v39, %v7662_v7  ;;  %v2729_v8 = vadd.f32 %v2728_v12, %v7681_v45  ;;  %v3189_v63 = vmul.f32 %v3093_v39, %v6087_v33  ;;  %v2700_v54 = vadd.f32 %v2699_v21, %v5971_v46 }
 0x1de   : > { %7680 = vst [vmem:[#allocation53_spill] sm:$0xff] %v6248_v47  ;;  %v3217_v36 = vadd.f32 %v3216_v30, %v7682_v60  ;;  %v2214_v7 = vmul.f32 %v6051_v23, %v7684_v9  ;;  %v2215_v41 = vmul.f32 %v6246_v27, %v7685_v55  ;;  %v2216_v13 = vmul.f32 %v6061_v40, %v7686_v18  ;;  %v7688_v30 = vld [vmem:[#allocation126_spill] sm:$0xff] }
 0x1df   : > { %v2730_v20 = vadd.f32 %v2729_v8, %v6004_v48  ;;  %v2217_v33 = vmul.f32 %v6248_v47, %v6096_v17  ;;  %v6266_v39 = vadd.f32 %v2700_v54, %v2669_v26  ;;  %v3247_v44 = vadd.f32 %v3246_v0, %v7688_v30  ;;  %v6283_v60 = vpop.permute.xlu1 %1815 }
 0x1e0   : > { %v3218_v46 = vadd.f32 %v3217_v36, %v5982_v35  ;;  %v2732_v12 = vmul.f32 %v6089_v4, %v7684_v9  ;;  %v2218_v48 = vadd.f32 %v2216_v13, %v2214_v7  ;;  %v2734_v11 = vmul.f32 %v6091_v31, %v7686_v18  ;;  %v7691_v35 = vld [vmem:[#allocation18_spill] sm:$0xff]  ;;  %v6289_v7 = vpop.permute.xlu2 %1927 }
 0x1e1   : > { %7687 = vst [vmem:[#allocation64_spill] sm:$0xff] %v6266_v39  ;;  %v6272_v25 = vadd.f32 %v2730_v20, %v2671_v52  ;;  %v2225_v21 = vadd.f32 %v2217_v33, %v2215_v41  ;;  %v3248_v8 = vadd.f32 %v3247_v44, %v6007_v10  ;;  %v2733_v26 = vmul.f32 %v6266_v39, %v7685_v55  ;;  %v7695_v20 = vld [vmem:[#allocation59_spill] sm:$0xff] }
 0x1e2   : > { %v6276_v45 = vadd.f32 %v3218_v46, %v3187_v56  ;;  %v1212_v54 = vmul.f32 %v7691_v35, %v6165_v43  ;;  %v2219_v36 = vrot.slane %v2218_v48, 4  ;;  %v6287_v0 = vadd.f32 %v2734_v11, %v2732_v12  ;;  %7693 = vst [vmem:[#allocation62_spill] sm:$0xff] %v6289_v7 }
 0x1e3   : > { %7689 = vst [vmem:[#allocation54_spill] sm:$0xff] %v6272_v25  ;;  %v2226_v52 = vrot.slane %v2225_v21, 4  ;;  %v2735_v38 = vmul.f32 %v6272_v25, %v6096_v17  ;;  %v6291_v56 = vadd.f32 %v3248_v8, %v3189_v63  ;;  %v1213_v10 = vmul.f32 %v7691_v35, %v6206_v57 }
 0x1e4   : > { %7690 = vst [vmem:[#allocation24_spill] sm:$0xff] %v6276_v45  ;;  %v1262_v41 = vmul.f32 %v7695_v20, %v6170_v16  ;;  %v1263_v13 = vmul.f32 %v7695_v20, %v6215_v62  ;;  %v7696_v33 = vrot.slane %v6179_v49, 2  ;;  %v2220_v30 = vadd.f32 %v2219_v36, %v2218_v48 }
 0x1e5   : > { %7692 = vst [vmem:[#allocation34_spill] sm:$0xff] %v6287_v0  ;;  %v2227_v44 = vadd.f32 %v2226_v52, %v2225_v21  ;;  %v6302_v12 = vadd.f32 %v2735_v38, %v2733_v26  ;;  %v7698_v8 = vrot.slane %v6009_v19, 1  ;;  %v1394_v20 = vrot.slane %v6217_v1, 1  ;;  %v6316_v26 = vpop.permute.xlu0 %1769 }
 0x1e6   : > { %7694 = vst [vmem:[#allocation76_spill] sm:$0xff] %v6291_v56  ;;  %v1711_v46 = vadd.f32 %v7696_v33, %v6179_v49  ;;  %v1270_v11 = vadd.f32 %v1262_v41, %v1212_v54  ;;  %v1271_v63 = vadd.f32 %v1263_v13, %v1213_v10  ;;  %v7699_v56 = vrot.slane %v6185_v50, 1  ;;  %v7700_v54 = vld [vmem:[#allocation40_spill] sm:$0xff] }
 0x1e7   : > { %7697 = vst [vmem:[#allocation148_spill] sm:$0xff] %v6302_v12  ;;  %v6307_v35 = vadd.f32 %v7698_v8, %v6009_v19  ;;  %v1858_v49 = vrot.slane %v6209_v34, 4  ;;  %v2221_v48 = vrot.slane %v2220_v30, 2  ;;  %v2228_v21 = vrot.slane %v2227_v44, 2 }
 0x1e8   : > { %v6312_v17 = vadd.f32 %v7699_v56, %v6185_v50  ;;  %v7701_v52 = vrot.slane %v6011_v53, 1  ;;  %v7702_v50 = vrot.slane %v6190_v24, 1  ;;  %v1712_v10 = vrot.slane %v1711_v46, 1 }
 0x1e9   : > { %v1312_v36 = vmul.f32 %v7700_v54, %v6307_v35  ;;  %v7703_v41 = vrot.slane %v6181_v14, 2  ;;  %v2222_v33 = vadd.f32 %v2221_v48, %v2220_v30  ;;  %v2229_v8 = vadd.f32 %v2228_v21, %v2227_v44 }
 0x1ea   : > { %v1313_v19 = vmul.f32 %v7700_v54, %v6312_v17  ;;  %v6325_v38 = vadd.f32 %v7701_v52, %v6011_v53  ;;  %v6330_v56 = vadd.f32 %v7702_v50, %v6190_v24  ;;  %v7704_v54 = vld [vmem:[#allocation28_spill] sm:$0xff]  ;;  %v7705_v52 = vrot.slane %v6025_v59, 4 }
 0x1eb   : > { %v1761_v13 = vadd.f32 %v7703_v41, %v6181_v14  ;;  %v1320_v18 = vadd.f32 %v1312_v36, %v1270_v11  ;;  %v1859_v50 = vadd.f32 %v1858_v49, %v6209_v34  ;;  %v2223_v9 = vrot.slane %v2222_v33, 1 }
 0x1ec   : > { %v1321_v45 = vadd.f32 %v1313_v19, %v1271_v63  ;;  %v1362_v55 = vmul.f32 %v7704_v54, %v6325_v38  ;;  %v1363_v53 = vmul.f32 %v7704_v54, %v6330_v56  ;;  %v1852_v24 = vadd.f32 %v7705_v52, %v6025_v59  ;;  %v6351_v63 = vpop.permute.xlu1 %1827 }
 0x1ed   : > { %v2230_v7 = vrot.slane %v2229_v8, 1  ;;  %v7706_v30 = vrot.slane %v6044_v28, 1  ;;  %v6349_v11 = vadd.f32 %v1394_v20, %v6217_v1  ;;  %7707 = vst [vmem:[#allocation124_spill] sm:$0xff] %v6351_v63  ;;  %v1762_v48 = vrot.slane %v1761_v13, 1 }
 0x1ee   : > { %v1370_v12 = vadd.f32 %v1362_v55, %v1320_v18  ;;  %v1371_v14 = vadd.f32 %v1363_v53, %v1321_v45  ;;  %v7708_v59 = vrot.slane %v6183_v22, 2  ;;  %v6356_v34 = vadd.f32 %v2223_v9, %v2222_v33  ;;  %v2242_v55 = vpop.permute.xlu2 %2241  ;;  %v7709_v18 = vld [vmem:[#allocation51_spill] sm:$0xff]  ;;  %v6388_v53 = vpop.permute.xlu0 %1823 }
 0x1ef   : > { %v6346_v44 = vadd.f32 %v7706_v30, %v6044_v28  ;;  %v6358_v49 = vadd.f32 %v2230_v7, %v2229_v8  ;;  %v1413_v28 = vmul.f32 %v7709_v18, %v6349_v11  ;;  %v7710_v1 = vrot.slane %v6116_v42, 1 }
 0x1f0   : > { %v1811_v21 = vadd.f32 %v7708_v59, %v6183_v22  ;;  %v6369_v36 = vadd.f32 %v1712_v10, %v1711_v46  ;;  %v1853_v19 = vrot.slane %v1852_v24, 2  ;;  %v1860_v22 = vrot.slane %v1859_v50, 2  ;;  %v7714_v59 = vld [vmem:[#allocation44_spill] sm:$0xff] }
 0x1f1   : > { %v1412_v45 = vmul.f32 %v7709_v18, %v6346_v44  ;;  %v6367_v20 = vadd.f32 %v7710_v1, %v6116_v42  ;;  %v6372_v9 = vmul.f32 %v2242_v55, %v6356_v34  ;;  %v6375_v7 = vmul.f32 %v2242_v55, %v6358_v49 }
 0x1f2   : > { %v1421_v33 = vadd.f32 %v1413_v28, %v1371_v14  ;;  %v1731_v54 = vmul.f32 %v6252_v37, %v6369_v36  ;;  %v7713_v42 = vrot.slane %v6126_v32, 1  ;;  %v6386_v10 = vadd.f32 %v1762_v48, %v1761_v13  ;;  %v7715_v48 = vld [vmem:[#allocation63_spill] sm:$0xff]  ;;  %v7716_v28 = vld [vmem:[#allocation8_spill] sm:$0xff] }
 0x1f3   : > { %7711 = vst [vmem:[#allocation131_spill] sm:$0xff] %v6372_v9  ;;  %v1420_v41 = vadd.f32 %v1412_v45, %v1370_v12  ;;  %v1730_v8 = vmul.f32 %v6252_v37, %v6367_v20  ;;  %v1805_v12 = vrot.slane %v6175_v61, 1  ;;  %v1812_v14 = vrot.slane %v1811_v21, 1 }
 0x1f4   : > { %7712 = vst [vmem:[#allocation77_spill] sm:$0xff] %v6375_v7  ;;  %v6384_v46 = vadd.f32 %v7713_v42, %v6126_v32  ;;  %v1739_v30 = vadd.f32 %v1731_v54, %v1421_v33  ;;  %v1781_v37 = vmul.f32 %v7714_v59, %v6386_v10  ;;  %v1854_v18 = vadd.f32 %v1853_v19, %v1852_v24  ;;  %v7717_v54 = vld [vmem:[#allocation81_spill] sm:$0xff]  ;;  %v7719_v19 = vld [vmem:[#allocation30_spill] sm:$0xff] }
 0x1f5   : > { %v1738_v52 = vadd.f32 %v1730_v8, %v1420_v41  ;;  %v6396_v45 = vadd.f32 %v1805_v12, %v6175_v61  ;;  %v6398_v32 = vadd.f32 %v1812_v14, %v1811_v21  ;;  %v1861_v13 = vadd.f32 %v1860_v22, %v1859_v50  ;;  %v7718_v42 = vld [vmem:[#allocation21_spill] sm:$0xff]  ;;  %v7720_v21 = vld [vmem:[#allocation52_spill] sm:$0xff]  ;;  %v6410_v50 = vpop.permute.xlu1 %1869 }
 0x1f6   : > { %v1780_v55 = vmul.f32 %v7714_v59, %v6384_v46  ;;  %v1896_v1 = vmul.f32 %v7716_v28, %v7715_v48  ;;  %v1789_v33 = vadd.f32 %v1781_v37, %v1739_v30  ;;  %v1855_v8 = vrot.slane %v1854_v18, 1  ;;  %v7721_v28 = vld [vmem:[#allocation47_spill] sm:$0xff] }
 0x1f7   : > { %v1897_v7 = vmul.f32 %v7718_v42, %v7717_v54  ;;  %v1830_v9 = vmul.f32 %v6283_v60, %v6396_v45  ;;  %v1831_v24 = vmul.f32 %v6283_v60, %v6398_v32  ;;  %v1862_v61 = vrot.slane %v1861_v13, 1 }
 0x1f8   : > { %v1788_v41 = vadd.f32 %v1780_v55, %v1738_v52  ;;  %v1898_v12 = vmul.f32 %v7720_v21, %v7719_v19  ;;  %v6412_v22 = vadd.f32 %v1855_v8, %v1854_v18  ;;  %v1899_v52 = vmul.f32 %v6131_v51, %v6149_v58  ;;  %v7722_v21 = vld [vmem:[#allocation58_spill] sm:$0xff]  ;;  %v7723_v51 = vld [vmem:[#allocation31_spill] sm:$0xff] }
 0x1f9   : > { %v1839_v14 = vadd.f32 %v1831_v24, %v1789_v33  ;;  %v6416_v59 = vadd.f32 %v1862_v61, %v1861_v13  ;;  %v2264_v42 = vmul.f32 %v6051_v23, %v7721_v28  ;;  %v2265_v19 = vmul.f32 %v6246_v27, %v7722_v21  ;;  %v6434_v24 = vpop.permute.xlu0 %1877 }
 0x1fa   : > { %v1838_v30 = vadd.f32 %v1830_v9, %v1788_v41  ;;  %v1900_v55 = vadd.f32 %v1898_v12, %v1896_v1  ;;  %v1880_v37 = vmul.f32 %v6111_v29, %v6412_v22  ;;  %v1907_v60 = vadd.f32 %v1899_v52, %v1897_v7  ;;  %7724 = vst [vmem:[#allocation45_spill] sm:$0xff] %v6434_v24 }
 0x1fb   : > { %v1881_v18 = vmul.f32 %v6111_v29, %v6416_v59  ;;  %v2266_v9 = vmul.f32 %v6061_v40, %v7723_v51  ;;  %v2267_v13 = vmul.f32 %v6248_v47, %v6098_v15  ;;  %v2782_v7 = vmul.f32 %v6089_v4, %v7721_v28 }
 0x1fc   : > { %v1901_v8 = vrot.slane %v1900_v55, 4  ;;  %v1888_v1 = vadd.f32 %v1880_v37, %v1838_v30  ;;  %v1908_v41 = vrot.slane %v1907_v60, 4  ;;  %v2783_v33 = vmul.f32 %v6266_v39, %v7722_v21  ;;  %v7725_v37 = vld [vmem:[#allocation75_spill] sm:$0xff] }
 0x1fd   : > { %v1889_v61 = vadd.f32 %v1881_v18, %v1839_v14  ;;  %v2268_v29 = vadd.f32 %v2266_v9, %v2264_v42  ;;  %v2275_v52 = vadd.f32 %v2267_v13, %v2265_v19  ;;  %v2784_v54 = vmul.f32 %v6091_v31, %v7723_v51  ;;  %v2284_v51 = vpop.permute.xlu2 %2283 }
 0x1fe   : > { %v1902_v12 = vadd.f32 %v1901_v8, %v1900_v55  ;;  %v1909_v58 = vadd.f32 %v1908_v41, %v1907_v60  ;;  %v2785_v30 = vmul.f32 %v6272_v25, %v6098_v15  ;;  %v1216_v48 = vmul.f32 %v7725_v37, %v6165_v43  ;;  %v7728_v60 = vld [vmem:[#allocation17_spill] sm:$0xff]  ;;  %v1916_v41 = vpop.permute.xlu1 %1915 }
 0x1ff   : > { %v2269_v63 = vrot.slane %v2268_v29, 4  ;;  %v2276_v0 = vrot.slane %v2275_v52, 4  ;;  %v1217_v21 = vmul.f32 %v7725_v37, %v6206_v57  ;;  %v6444_v55 = vadd.f32 %v2784_v54, %v2782_v7 }
 0x200   : > { %v1903_v28 = vrot.slane %v1902_v12, 2  ;;  %v1910_v14 = vrot.slane %v1909_v58, 2  ;;  %v6446_v19 = vadd.f32 %v2785_v30, %v2783_v33  ;;  %v1266_v42 = vmul.f32 %v7728_v60, %v6170_v16 }
 0x201   : > { %7726 = vst [vmem:[#allocation55_spill] sm:$0xff] %v6444_v55  ;;  %v2270_v8 = vadd.f32 %v2269_v63, %v2268_v29  ;;  %v2277_v9 = vadd.f32 %v2276_v0, %v2275_v52  ;;  %v1267_v13 = vmul.f32 %v7728_v60, %v6215_v62  ;;  %v1316_v33 = vmul.f32 %v6147_v2, %v6307_v35  ;;  %v2234_v29 = vpop.permute.xlu0 %2233 }
 0x202   : > { %7727 = vst [vmem:[#allocation138_spill] sm:$0xff] %v6446_v19  ;;  %v1904_v18 = vadd.f32 %v1903_v28, %v1902_v12  ;;  %v1911_v15 = vadd.f32 %v1910_v14, %v1909_v58  ;;  %v1274_v24 = vadd.f32 %v1266_v42, %v1216_v48  ;;  %v1317_v0 = vmul.f32 %v6147_v2, %v6312_v17 }
 0x203   : > { %v2271_v37 = vrot.slane %v2270_v8, 2  ;;  %v2278_v40 = vrot.slane %v2277_v9, 2  ;;  %v1275_v54 = vadd.f32 %v1267_v13, %v1217_v21  ;;  %v2248_v42 = vmul.f32 %v2234_v29, %v6356_v34 }
 0x204   : > { %v1905_v47 = vrot.slane %v1904_v18, 1  ;;  %v1912_v7 = vrot.slane %v1911_v15, 1  ;;  %v1324_v58 = vadd.f32 %v1316_v33, %v1274_v24 }
 0x205   : > { %v2272_v28 = vadd.f32 %v2271_v37, %v2270_v8  ;;  %v2279_v63 = vadd.f32 %v2278_v40, %v2277_v9  ;;  %v1325_v21 = vadd.f32 %v1317_v0, %v1275_v54  ;;  %v2249_v9 = vmul.f32 %v2234_v29, %v6358_v49  ;;  %v7735_v29 = vld [vmem:[#allocation83_spill] sm:$0xff] }
 0x206   : > { %v6454_v30 = vadd.f32 %v1905_v47, %v1904_v18  ;;  %v6458_v12 = vadd.f32 %v1912_v7, %v1911_v15  ;;  %v7729_v47 = vld [vmem:[#allocation26_spill] sm:$0xff]  ;;  %v1924_v0 = vpop.permute.xlu1 %1923 }
 0x207   : > { %v2273_v52 = vrot.slane %v2272_v28, 1  ;;  %v2280_v14 = vrot.slane %v2279_v63, 1  ;;  %v1366_v18 = vmul.f32 %v7729_v47, %v6325_v38  ;;  %v1367_v15 = vmul.f32 %v7729_v47, %v6330_v56 }
 0x208   : > { %v1930_v48 = vmul.f32 %v1916_v41, %v6454_v30  ;;  %v1931_v60 = vmul.f32 %v1916_v41, %v6458_v12  ;;  %v1834_v47 = vmul.f32 %v6388_v53, %v6396_v45 }
 0x209   : > { %v6465_v8 = vadd.f32 %v2273_v52, %v2272_v28  ;;  %v6467_v2 = vadd.f32 %v2280_v14, %v2279_v63  ;;  %v1374_v13 = vadd.f32 %v1366_v18, %v1324_v58  ;;  %v1375_v7 = vadd.f32 %v1367_v15, %v1325_v21  ;;  %v2296_v63 = vpop.permute.xlu2 %2295 }
 0x20a   : > { %v1938_v40 = vadd.f32 %v1930_v48, %v1888_v1  ;;  %v1939_v24 = vadd.f32 %v1931_v60, %v1889_v61  ;;  %v7732_v1 = vld [vmem:[#allocation117_spill] sm:$0xff]  ;;  %v1734_v14 = vmul.f32 %v7735_v29, %v6367_v20  ;;  %v1784_v60 = vmul.f32 %v6222_v3, %v6384_v46 }
 0x20b   : > { %7730 = vst [vmem:[#allocation85_spill] sm:$0xff] %v6465_v8  ;;  %v2298_v41 = vmul.f32 %v2284_v51, %v6465_v8  ;;  %v2299_v54 = vmul.f32 %v2284_v51, %v6467_v2  ;;  %v1416_v28 = vmul.f32 %v7732_v1, %v6346_v44  ;;  %v1417_v61 = vmul.f32 %v7732_v1, %v6349_v11 }
 0x20c   : > { %7731 = vst [vmem:[#allocation9_spill] sm:$0xff] %v6467_v2  ;;  %v2256_v37 = vadd.f32 %v2248_v42, %v1938_v40  ;;  %v2257_v33 = vadd.f32 %v2249_v9, %v1939_v24  ;;  %v1735_v51 = vmul.f32 %v7735_v29, %v6369_v36  ;;  %v1785_v42 = vmul.f32 %v6222_v3, %v6386_v10 }
 0x20d   : > { %v1424_v58 = vadd.f32 %v1416_v28, %v1374_v13  ;;  %v1425_v21 = vadd.f32 %v1417_v61, %v1375_v7  ;;  %v1835_v40 = vmul.f32 %v6388_v53, %v6398_v32  ;;  %v1884_v15 = vmul.f32 %v6177_v6, %v6412_v22  ;;  %v7738_v7 = vld [vmem:[#allocation19_spill] sm:$0xff] }
 0x20e   : > { %v6476_v48 = vadd.f32 %v2298_v41, %v2256_v37  ;;  %v6480_v52 = vadd.f32 %v2299_v54, %v2257_v33  ;;  %v1885_v24 = vmul.f32 %v6177_v6, %v6416_v59  ;;  %v1934_v13 = vmul.f32 %v1924_v0, %v6454_v30  ;;  %v7739_v33 = vld [vmem:[#allocation69_spill] sm:$0xff] }
 0x20f   : > { %v1742_v18 = vadd.f32 %v1734_v14, %v1424_v58  ;;  %v1743_v9 = vadd.f32 %v1735_v51, %v1425_v21  ;;  %v1935_v37 = vmul.f32 %v1924_v0, %v6458_v12  ;;  %v6501_v3 = vmul.f32 %v2296_v63, %v6465_v8  ;;  %v7740_v6 = vld [vmem:[#allocation73_spill] sm:$0xff]  ;;  %v7741_v58 = vld [vmem:[#allocation15_spill] sm:$0xff]  ;;  %v7742_v51 = vld [vmem:[#allocation82_spill] sm:$0xff] }
 0x210   : > { %7733 = vst [vmem:[#allocation67_spill] sm:$0xff] %v6476_v48  ;;  %v6504_v54 = vmul.f32 %v2296_v63, %v6467_v2  ;;  %v2832_v53 = vmul.f32 %v6089_v4, %v7738_v7  ;;  %v2833_v1 = vmul.f32 %v6266_v39, %v7739_v33  ;;  %v2834_v61 = vmul.f32 %v6091_v31, %v7740_v6  ;;  %v2238_v48 = vpop.permute.xlu1 %2237 }
 0x211   : > { %7734 = vst [vmem:[#allocation78_spill] sm:$0xff] %v6480_v52  ;;  %v1792_v41 = vadd.f32 %v1784_v60, %v1742_v18  ;;  %v1793_v28 = vadd.f32 %v1785_v42, %v1743_v9  ;;  %v2835_v0 = vmul.f32 %v6272_v25, %v6107_v5  ;;  %v1214_v29 = vmul.f32 %v7741_v58, %v6165_v43  ;;  %v6530_v19 = vpop.permute.xlu2 %2337 }
 0x212   : > { %7736 = vst [vmem:[#allocation11_spill] sm:$0xff] %v6501_v3  ;;  %v1215_v63 = vmul.f32 %v7741_v58, %v6206_v57  ;;  %v1264_v21 = vmul.f32 %v7742_v51, %v6170_v16  ;;  %v1265_v60 = vmul.f32 %v7742_v51, %v6215_v62  ;;  %v6522_v18 = vadd.f32 %v2834_v61, %v2832_v53  ;;  %v7746_v51 = vld [vmem:[#allocation41_spill] sm:$0xff] }
 0x213   : > { %7737 = vst [vmem:[#allocation5_spill] sm:$0xff] %v6504_v54  ;;  %v1842_v14 = vadd.f32 %v1834_v47, %v1792_v41  ;;  %v1843_v42 = vadd.f32 %v1835_v40, %v1793_v28  ;;  %v6524_v9 = vadd.f32 %v2835_v0, %v2833_v1  ;;  %v7745_v54 = vld [vmem:[#allocation149_spill] sm:$0xff]  ;;  %v1364_v40 = vmul.f32 %v7746_v51, %v6325_v38 }
 0x214   : > { %7743 = vst [vmem:[#allocation112_spill] sm:$0xff] %v6522_v18  ;;  %v1314_v3 = vmul.f32 %v7745_v54, %v6307_v35  ;;  %v1272_v47 = vadd.f32 %v1264_v21, %v1214_v29  ;;  %v1273_v41 = vadd.f32 %v1265_v60, %v1215_v63  ;;  %v1315_v58 = vmul.f32 %v7745_v54, %v6312_v17  ;;  %v7756_v18 = vld [vmem:[#allocation20_spill] sm:$0xff] }
 0x215   : > { %7744 = vst [vmem:[#allocation122_spill] sm:$0xff] %v6524_v9  ;;  %v1892_v52 = vadd.f32 %v1884_v15, %v1842_v14  ;;  %v1893_v55 = vadd.f32 %v1885_v24, %v1843_v42  ;;  %v1365_v61 = vmul.f32 %v7746_v51, %v6330_v56  ;;  %v7747_v14 = vld [vmem:[#allocation27_spill] sm:$0xff] }
 0x216   : > { %v1322_v1 = vadd.f32 %v1314_v3, %v1272_v47  ;;  %v1323_v28 = vadd.f32 %v1315_v58, %v1273_v41  ;;  %v1414_v54 = vmul.f32 %v7747_v14, %v6346_v44  ;;  %v1415_v24 = vmul.f32 %v7747_v14, %v6349_v11  ;;  %v2288_v47 = vpop.permute.xlu0 %2287  ;;  %v7749_v41 = vld [vmem:[#allocation66_spill] sm:$0xff] }
 0x217   : > { %v6534_v53 = vadd.f32 %v1934_v13, %v1892_v52  ;;  %v6538_v15 = vadd.f32 %v1935_v37, %v1893_v55  ;;  %v7748_v52 = vld [vmem:[#allocation119_spill] sm:$0xff]  ;;  %v1782_v55 = vmul.f32 %v6316_v26, %v6384_v46  ;;  %v1783_v37 = vmul.f32 %v6316_v26, %v6386_v10 }
 0x218   : > { %v1372_v0 = vadd.f32 %v1364_v40, %v1322_v1  ;;  %v1373_v29 = vadd.f32 %v1365_v61, %v1323_v28  ;;  %v1732_v13 = vmul.f32 %v7748_v52, %v6367_v20  ;;  %v1733_v3 = vmul.f32 %v7748_v52, %v6369_v36 }
 0x219   : > { %v1832_v58 = vmul.f32 %v7749_v41, %v6396_v45  ;;  %v1833_v51 = vmul.f32 %v7749_v41, %v6398_v32  ;;  %v2250_v40 = vmul.f32 %v2238_v48, %v6356_v34  ;;  %v1882_v61 = vmul.f32 %v6410_v50, %v6412_v22  ;;  %v6562_v14 = vpop.permute.xlu2 %2383  ;;  %v7754_v41 = vld [vmem:[#allocation29_spill] sm:$0xff] }
 0x21a   : > { %v1422_v63 = vadd.f32 %v1414_v54, %v1372_v0  ;;  %v1423_v21 = vadd.f32 %v1415_v24, %v1373_v29  ;;  %v2251_v0 = vmul.f32 %v2238_v48, %v6358_v49  ;;  %v6560_v29 = vpop.permute.xlu1 %2245  ;;  %7750 = vst [vmem:[#allocation127_spill] sm:$0xff] %v6562_v14  ;;  %v1883_v26 = vmul.f32 %v6410_v50, %v6416_v59  ;;  %v7751_v54 = vld [vmem:[#allocation42_spill] sm:$0xff]  ;;  %v7757_v14 = vld [vmem:[#allocation32_spill] sm:$0xff] }
 0x21b   : > { %v1932_v24 = vmul.f32 %v7751_v54, %v6454_v30  ;;  %v2315_v48 = vmul.f32 %v6246_v27, %v7739_v33  ;;  %v2300_v50 = vmul.f32 %v2288_v47, %v6465_v8  ;;  %v2882_v9 = vmul.f32 %v6089_v4, %v7754_v41 }
 0x21c   : > { %v1740_v60 = vadd.f32 %v1732_v13, %v1422_v63  ;;  %v1741_v42 = vadd.f32 %v1733_v3, %v1423_v21  ;;  %v2301_v63 = vmul.f32 %v2288_v47, %v6467_v2  ;;  %v2314_v21 = vmul.f32 %v6051_v23, %v7738_v7  ;;  %v7752_v3 = vld [vmem:[#allocation74_spill] sm:$0xff] }
 0x21e   : > { %v1790_v1 = vadd.f32 %v1782_v55, %v1740_v60  ;;  %v1791_v28 = vadd.f32 %v1783_v37, %v1741_v42  ;;  %v2316_v60 = vmul.f32 %v7752_v3, %v7740_v6  ;;  %v1933_v42 = vmul.f32 %v7751_v54, %v6458_v12  ;;  %v7753_v55 = vld [vmem:[#allocation53_spill] sm:$0xff] }
 0x21f   : > { %v2317_v37 = vmul.f32 %v7753_v55, %v6107_v5  ;;  %v2884_v6 = vmul.f32 %v6091_v31, %v7756_v18  ;;  %v2885_v54 = vmul.f32 %v6272_v25, %v7757_v14  ;;  %v3890_v5 = vmov 23  }
 0x220   : > { %v1840_v52 = vadd.f32 %v1832_v58, %v1790_v1  ;;  %v1841_v13 = vadd.f32 %v1833_v51, %v1791_v28  ;;  %v2318_v51 = vadd.f32 %v2316_v60, %v2314_v21  ;;  %v7755_v1 = vld [vmem:[#allocation61_spill] sm:$0xff]  ;;  %3815 = vset.pattern.permute.xlu2 %v3890_v5  ;;  %3814 = vset.pattern.permute.xlu1 %v3890_v5 }
 0x221   : > { %v2883_v28 = vmul.f32 %v6266_v39, %v7755_v1  ;;  %v2325_v33 = vadd.f32 %v2317_v37, %v2315_v48  ;;  %v6597_v48 = vld [vmem:[%s7072_s3 + $0x8] sm:$0xff]  ;;  %v6614_v39 = vpop.permute.xlu2 %2391 }
 0x222   : > { %v1890_v7 = vadd.f32 %v1882_v61, %v1840_v52  ;;  %v1891_v58 = vadd.f32 %v1883_v26, %v1841_v13  ;;  %v2319_v8 = vrot.slane %v2318_v51, 4  ;;  %v7758_v61 = vld [vmem:[#allocation16_spill] sm:$0xff]  ;;  %v6590_v52 = vadd.f32 %v2884_v6, %v2882_v9  ;;  %2955 = vperm.xlu2 %3815, %v6597_v48   ;;  %v6612_v31 = vpop.permute.xlu1 %2291 }
 0x223   : > { %v1218_v26 = vmul.f32 %v7758_v61, %v6165_v43  ;;  %v2326_v21 = vrot.slane %v2325_v33, 4  ;;  %v6592_v13 = vadd.f32 %v2885_v54, %v2883_v28  ;;  %v1219_v5 = vmul.f32 %v7758_v61, %v6206_v57 }
 0x224   : > { %v1940_v47 = vadd.f32 %v1932_v24, %v1890_v7  ;;  %v1941_v2 = vadd.f32 %v1933_v42, %v1891_v58  ;;  %v6603_v7 = vld [vmem:[%s7072_s3] sm:$0xff]  ;;  %v2320_v9 = vadd.f32 %v2319_v8, %v2318_v51  ;;  %v7759_v24 = vld [vmem:[#allocation139_spill] sm:$0xff] }
 0x225   : > { %2951 = vperm.xlu1 %3814, %v6603_v7   ;;  %v1268_v60 = vmul.f32 %v7759_v24, %v6170_v16  ;;  %v2327_v42 = vadd.f32 %v2326_v21, %v2325_v33  ;;  %v1269_v37 = vmul.f32 %v7759_v24, %v6215_v62  ;;  %v7760_v8 = vld [vmem:[#allocation3_spill] sm:$0xff]  ;;  %v7761_v62 = vld [vmem:[#allocation150_spill] sm:$0xff] }
 0x226   : > { %v2258_v43 = vadd.f32 %v2250_v40, %v1940_v47  ;;  %v2259_v6 = vadd.f32 %v2251_v0, %v1941_v2  ;;  %v2321_v54 = vrot.slane %v2320_v9, 2  ;;  %v1318_v2 = vmul.f32 %v7760_v8, %v6307_v35  ;;  %v6629_v35 = vld [vmem:[%s7072_s3 + $0x18] sm:$0x1] }
 0x227   : > { %v1276_v25 = vadd.f32 %v1268_v60, %v1218_v26  ;;  %v2328_v4 = vrot.slane %v2327_v42, 2  ;;  %v1277_v57 = vadd.f32 %v1269_v37, %v1219_v5  ;;  %v1319_v16 = vmul.f32 %v7760_v8, %v6312_v17  ;;  %v7762_v26 = vld [vmem:[#allocation48_spill] sm:$0xff]  ;;  %v7764_v5 = vld [vmem:[#allocation33_spill] sm:$0xff] }
 0x228   : > { %v2308_v58 = vadd.f32 %v2300_v50, %v2258_v43  ;;  %v2309_v28 = vadd.f32 %v2301_v63, %v2259_v6  ;;  %v2322_v40 = vadd.f32 %v2321_v54, %v2320_v9  ;;  %v1368_v0 = vmul.f32 %v7761_v62, %v6325_v38 }
 0x229   : > { %v2329_v33 = vadd.f32 %v2328_v4, %v2327_v42  ;;  %v1326_v50 = vadd.f32 %v1318_v2, %v1276_v25  ;;  %v1327_v51 = vadd.f32 %v1319_v16, %v1277_v57  ;;  %v1369_v47 = vmul.f32 %v7761_v62, %v6330_v56  ;;  %v6635_v4 = vld [vmem:[%s7072_s3 + $0x10] sm:$0xff]  ;;  %v7765_v42 = vld [vmem:[#allocation34_spill] sm:$0xff] }
 0x22a   : > { %v2323_v63 = vrot.slane %v2322_v40, 1  ;;  %v1418_v21 = vmul.f32 %v7762_v26, %v6346_v44  ;;  %2963 = vperm.xlu2 %3815, %v6629_v35   ;;  %7763 = vst [vmem:[#allocation2_spill] sm:$0xff] %v6635_v4  ;;  %v1419_v56 = vmul.f32 %v7762_v26, %v6349_v11  ;;  %v1736_v43 = vmul.f32 %v7764_v5, %v6367_v20  ;;  %v7766_v11 = vld [vmem:[#allocation60_spill] sm:$0xff]  ;;  %v6659_v16 = vpop.permute.xlu1 %2333 }
 0x22b   : > { %v2330_v61 = vrot.slane %v2329_v33, 1  ;;  %v1376_v25 = vadd.f32 %v1368_v0, %v1326_v50  ;;  %v1377_v38 = vadd.f32 %v1369_v47, %v1327_v51  ;;  %v1737_v60 = vmul.f32 %v7764_v5, %v6369_v36  ;;  %v7767_v36 = vld [vmem:[#allocation148_spill] sm:$0xff]  ;;  %v7769_v51 = vld [vmem:[#allocation45_spill] sm:$0xff] }
 0x22c   : > { %v6638_v17 = vadd.f32 %v2323_v63, %v2322_v40  ;;  %v2737_v37 = vrot.slane %v7765_v42, 4  ;;  %v1786_v57 = vmul.f32 %v7766_v11, %v6384_v46  ;;  %v1787_v2 = vmul.f32 %v7766_v11, %v6386_v10  ;;  %v7775_v5 = vld [vmem:[#allocation24_spill] sm:$0xff]  ;;  %v7778_v11 = vld [vmem:[#allocation121_spill] sm:$0xff] }
 0x22d   : > { %2959 = vperm.xlu1 %3814, %v6635_v4   ;;  %v6642_v44 = vadd.f32 %v2330_v61, %v2329_v33  ;;  %v1426_v9 = vadd.f32 %v1418_v21, %v1376_v25  ;;  %v1427_v24 = vadd.f32 %v1419_v56, %v1377_v38  ;;  %v6661_v33 = vpop.permute.xlu2 %2437  ;;  %v2744_v62 = vrot.slane %v7767_v36, 4  ;;  %v7770_v61 = vld [vmem:[#allocation62_spill] sm:$0xff]  ;;  %v7774_v56 = vld [vmem:[#allocation72_spill] sm:$0xff] }
 0x22e   : > { %v2350_v6 = vmul.f32 %v6530_v19, %v6638_v17  ;;  %v1886_v47 = vmul.f32 %v7769_v51, %v6412_v22  ;;  %v1887_v10 = vmul.f32 %v7769_v51, %v6416_v59  ;;  %v1936_v26 = vmul.f32 %v7770_v61, %v6454_v30 }
 0x22f   : > { %v2351_v54 = vmul.f32 %v6530_v19, %v6642_v44  ;;  %v1744_v8 = vadd.f32 %v1736_v43, %v1426_v9  ;;  %v1745_v20 = vadd.f32 %v1737_v60, %v1427_v24  ;;  %v7768_v19 = vld [vmem:[#allocation124_spill] sm:$0xff]  ;;  %v7771_v21 = vmov 4   ;;  %v7776_v24 = vld [vmem:[#allocation65_spill] sm:$0xff]  ;;  %v7777_v60 = vld [vmem:[#allocation23_spill] sm:$0xff] }
 0x230   : > { %v6655_v40 = vadd.f32 %v2350_v6, %v2308_v58  ;;  %v1836_v63 = vmul.f32 %v7768_v19, %v6396_v45  ;;  %v1837_v46 = vmul.f32 %v7768_v19, %v6398_v32  ;;  %v2254_v45 = vmul.f32 %v6560_v29, %v6356_v34  ;;  %v7780_v19 = vld [vmem:[#allocation131_spill] sm:$0xff] }
 0x231   : > { %v6664_v0 = vadd.f32 %v2351_v54, %v2309_v28  ;;  %v1794_v58 = vadd.f32 %v1786_v57, %v1744_v8  ;;  %v1795_v50 = vadd.f32 %v1787_v2, %v1745_v20  ;;  %v1937_v28 = vmul.f32 %v7770_v61, %v6458_v12  ;;  %v7772_v12 = vld [vmem:[#allocation39_spill] sm:$0xff]  ;;  %v7779_v57 = vld [vmem:[#allocation76_spill] sm:$0xff] }
 0x232   : > { %v2255_v32 = vmul.f32 %v6560_v29, %v6358_v49  ;;  %3818 = vset.pattern.permute.xlu2 %v7771_v21  ;;  %v2364_v22 = vmul.f32 %v6051_v23, %v7754_v41  ;;  %v2365_v59 = vmul.f32 %v6246_v27, %v7755_v1  ;;  %v2366_v30 = vmul.f32 %v7752_v3, %v7756_v18  ;;  %v7773_v49 = vld [vmem:[#allocation120_spill] sm:$0xff] }
 0x233   : > { %v1844_v25 = vadd.f32 %v1836_v63, %v1794_v58  ;;  %v1845_v38 = vadd.f32 %v1837_v46, %v1795_v50  ;;  %v2367_v34 = vmul.f32 %v7753_v55, %v7757_v14  ;;  %v3250_v29 = vmul.f32 %v7773_v49, %v7772_v12  ;;  %3277 = vperm.xlu2 %3818, %v6635_v4   ;;  %v7781_v46 = vld [vmem:[#allocation77_spill] sm:$0xff] }
 0x234   : > { %v3251_v43 = vmul.f32 %v7775_v5, %v7774_v56  ;;  %v3252_v54 = vmul.f32 %v7777_v60, %v7776_v24  ;;  %v3253_v8 = vmul.f32 %v7779_v57, %v7778_v11  ;;  %v2368_v20 = vadd.f32 %v2366_v30, %v2364_v22  ;;  %v7785_v12 = vld [vmem:[#allocation9_spill] sm:$0xff]  ;;  %v6718_v30 = vpop.permute.xlu1 %2345  ;;  %v7786_v24 = vld [vmem:[#allocation47_spill] sm:$0xff]  ;;  %v7787_v11 = vld [vmem:[#allocation58_spill] sm:$0xff] }
 0x235   : > { %3817 = vset.pattern.permute.xlu1 %v7771_v21  ;;  %v1894_v6 = vadd.f32 %v1886_v47, %v1844_v25  ;;  %v1895_v9 = vadd.f32 %v1887_v10, %v1845_v38  ;;  %v2375_v2 = vadd.f32 %v2367_v34, %v2365_v59  ;;  %v2260_v63 = vadd.f32 %v7780_v19, %v6534_v53  ;;  %v7784_v25 = vld [vmem:[#allocation85_spill] sm:$0xff] }
 0x236   : > { %3273 = vperm.xlu1 %3817, %v6597_v48   ;;  %v2261_v58 = vadd.f32 %v7781_v46, %v6538_v15  ;;  %v6706_v47 = vadd.f32 %v3252_v54, %v3250_v29  ;;  %v6708_v10 = vadd.f32 %v3253_v8, %v3251_v43  ;;  %v2369_v61 = vrot.slane %v2368_v20, 4  ;;  %v6720_v15 = vpop.permute.xlu2 %2445 }
 0x237   : > { %v1944_v50 = vadd.f32 %v1936_v26, %v1894_v6  ;;  %v1945_v51 = vadd.f32 %v1937_v28, %v1895_v9  ;;  %v2376_v21 = vrot.slane %v2375_v2, 4  ;;  %v2302_v38 = vmul.f32 %v6612_v31, %v7784_v25  ;;  %v2342_v26 = vpop.permute.xlu0 %2341 }
 0x238   : > { %7782 = vst [vmem:[#allocation103_spill] sm:$0xff] %v6706_v47  ;;  %v2303_v22 = vmul.f32 %v6612_v31, %v7785_v12  ;;  %v2370_v28 = vadd.f32 %v2369_v61, %v2368_v20  ;;  %v2738_v43 = vadd.f32 %v2737_v37, %v7765_v42  ;;  %v2745_v6 = vadd.f32 %v2744_v62, %v7767_v36  ;;  %v7808_v47 = vld [vmem:[#allocation11_spill] sm:$0xff] }
 0x239   : > { %7783 = vst [vmem:[#allocation57_spill] sm:$0xff] %v6708_v10  ;;  %v6714_v59 = vadd.f32 %v2254_v45, %v1944_v50  ;;  %v6716_v53 = vadd.f32 %v2255_v32, %v1945_v51  ;;  %v2377_v34 = vadd.f32 %v2376_v21, %v2375_v2  ;;  %v2310_v29 = vadd.f32 %v2302_v38, %v2260_v63  ;;  %v7789_v2 = vld [vmem:[#allocation55_spill] sm:$0xff]  ;;  %v7790_v63 = vld [vmem:[#allocation138_spill] sm:$0xff] }
 0x23a   : > { %v2311_v56 = vadd.f32 %v2303_v22, %v2261_v58  ;;  %v2352_v9 = vmul.f32 %v2342_v26, %v6638_v17  ;;  %v2353_v31 = vmul.f32 %v2342_v26, %v6642_v44  ;;  %v2371_v45 = vrot.slane %v2370_v28, 2  ;;  %v7791_v58 = vld [vmem:[#allocation31_spill] sm:$0xff] }
 0x23b   : > { %v2378_v32 = vrot.slane %v2377_v34, 2  ;;  %v3300_v54 = vmul.f32 %v7773_v49, %v7786_v24  ;;  %v3301_v8 = vmul.f32 %v7775_v5, %v7787_v11  ;;  %v7788_v20 = vmov 9   ;;  %v7792_v51 = vld [vmem:[#allocation111_spill] sm:$0xff] }
 0x23c   : > { %3819 = vset.pattern.permute.xlu2 %v7788_v20  ;;  %v2787_v19 = vrot.slane %v7789_v2, 4  ;;  %v2794_v42 = vrot.slane %v7790_v63, 4  ;;  %v2360_v37 = vadd.f32 %v2352_v9, %v2310_v29  ;;  %v2361_v36 = vadd.f32 %v2353_v31, %v2311_v56  ;;  %v7795_v9 = vld [vmem:[#allocation67_spill] sm:$0xff] }
 0x23d   : > { %3319 = vperm.xlu2 %3819, %v6603_v7   ;;  %v2372_v62 = vadd.f32 %v2371_v45, %v2370_v28  ;;  %v2379_v46 = vadd.f32 %v2378_v32, %v2377_v34  ;;  %v3302_v50 = vmul.f32 %v7777_v60, %v7791_v58  ;;  %v3303_v61 = vmul.f32 %v7779_v57, %v7792_v51  ;;  %v7796_v45 = vld [vmem:[#allocation78_spill] sm:$0xff]  ;;  %v7798_v58 = vld [vmem:[#allocation81_spill] sm:$0xff] }
 0x23e   : > { %3281 = vperm.xlu1 %3817, %v6629_v35   ;;  %v2739_v21 = vrot.slane %v2738_v43, 2  ;;  %v2746_v25 = vrot.slane %v2745_v6, 2  ;;  %v2348_v38 = vmul.f32 %v6659_v16, %v6638_v17  ;;  %v2349_v12 = vmul.f32 %v6659_v16, %v6642_v44  ;;  %v7797_v16 = vld [vmem:[#allocation63_spill] sm:$0xff] }
 0x23f   : > { %v2373_v22 = vrot.slane %v2372_v62, 1  ;;  %v2380_v26 = vrot.slane %v2379_v46, 1  ;;  %v6743_v29 = vadd.f32 %v3302_v50, %v3300_v54  ;;  %v6745_v28 = vadd.f32 %v3303_v61, %v3301_v8  ;;  %v6763_v50 = vpop.permute.xlu1 %2387 }
 0x240   : > { %v2788_v34 = vadd.f32 %v2787_v19, %v7789_v2  ;;  %v2795_v56 = vadd.f32 %v2794_v42, %v7790_v63  ;;  %v6750_v31 = vadd.f32 %v2348_v38, %v7795_v9  ;;  %v6753_v32 = vadd.f32 %v2349_v12, %v7796_v45  ;;  %v6765_v2 = vpop.permute.xlu2 %2759  ;;  %v7799_v19 = vld [vmem:[#allocation127_spill] sm:$0xff]  ;;  %v7801_v9 = vld [vmem:[#allocation38_spill] sm:$0xff] }
 0x241   : > { %7793 = vst [vmem:[#allocation70_spill] sm:$0xff] %v6743_v29  ;;  %v6755_v24 = vadd.f32 %v2373_v22, %v2372_v62  ;;  %v6757_v11 = vadd.f32 %v2380_v26, %v2379_v46  ;;  %v2414_v54 = vmul.f32 %v6051_v23, %v7797_v16  ;;  %v2415_v8 = vmul.f32 %v6246_v27, %v7798_v58  ;;  %v7800_v22 = vld [vmem:[#allocation30_spill] sm:$0xff]  ;;  %v2396_v58 = vpop.permute.xlu0 %2395 }
 0x242   : > { %7794 = vst [vmem:[#allocation135_spill] sm:$0xff] %v6745_v28  ;;  %v2740_v46 = vadd.f32 %v2739_v21, %v2738_v43  ;;  %v2747_v27 = vadd.f32 %v2746_v25, %v2745_v6  ;;  %v2789_v51 = vrot.slane %v2788_v34, 2  ;;  %v2796_v61 = vrot.slane %v2795_v56, 2  ;;  %v7803_v43 = vld [vmem:[#allocation122_spill] sm:$0xff]  ;;  %v7804_v21 = vld [vmem:[#allocation19_spill] sm:$0xff] }
 0x243   : > { %v6769_v63 = vmul.f32 %v7799_v19, %v6755_v24  ;;  %v6773_v42 = vmul.f32 %v7799_v19, %v6757_v11  ;;  %v2402_v62 = vmul.f32 %v6614_v39, %v6755_v24  ;;  %v2403_v23 = vmul.f32 %v6614_v39, %v6757_v11  ;;  %v7802_v19 = vld [vmem:[#allocation112_spill] sm:$0xff] }
 0x244   : > { %v2416_v26 = vmul.f32 %v7752_v3, %v7800_v22  ;;  %v2417_v45 = vmul.f32 %v7753_v55, %v7801_v9  ;;  %v2837_v39 = vrot.slane %v7802_v19, 4  ;;  %v2844_v6 = vrot.slane %v7803_v43, 4  ;;  %v7806_v3 = vld [vmem:[#allocation73_spill] sm:$0xff]  ;;  %v7807_v55 = vld [vmem:[#allocation22_spill] sm:$0xff] }
 0x245   : > { %v6780_v38 = vadd.f32 %v2402_v62, %v2360_v37  ;;  %v6782_v12 = vadd.f32 %v2403_v23, %v2361_v36  ;;  %3331 = vperm.xlu2 %3819, %v6629_v35   ;;  %v3350_v25 = vmul.f32 %v7773_v49, %v7804_v21  ;;  %v3352_v23 = vmul.f32 %v7777_v60, %v7806_v3  ;;  %v7809_v21 = vld [vmem:[#allocation5_spill] sm:$0xff] }
 0x246   : > { %3821 = vset.pattern.permute.xlu1 %v7788_v20  ;;  %v7805_v20 = vld [vmem:[#allocation69_spill] sm:$0xff]  ;;  %v2418_v36 = vadd.f32 %v2416_v26, %v2414_v54  ;;  %v2425_v62 = vadd.f32 %v2417_v45, %v2415_v8  ;;  %v3353_v28 = vmul.f32 %v7779_v57, %v7807_v55  ;;  %v2741_v29 = vrot.slane %v2740_v46, 1 }
 0x247   : > { %v3351_v37 = vmul.f32 %v7775_v5, %v7805_v20  ;;  %3327 = vperm.xlu1 %3821, %v6635_v4   ;;  %v2748_v10 = vrot.slane %v2747_v27, 1  ;;  %v2312_v9 = vadd.f32 %v7808_v47, %v6714_v59  ;;  %v2313_v22 = vadd.f32 %v7809_v21, %v6716_v53  ;;  %v6812_v55 = vpop.permute.xlu1 %2433 }
 0x248   : > { %v2419_v20 = vrot.slane %v2418_v36, 4  ;;  %v2426_v16 = vrot.slane %v2425_v62, 4  ;;  %v6804_v4 = vadd.f32 %v3352_v23, %v3350_v25  ;;  %v2790_v8 = vadd.f32 %v2789_v51, %v2788_v34  ;;  %v6814_v47 = vpop.permute.xlu2 %2801 }
 0x249   : > { %v6806_v54 = vadd.f32 %v3353_v28, %v3351_v37  ;;  %v2797_v26 = vadd.f32 %v2796_v61, %v2795_v56  ;;  %v2354_v45 = vmul.f32 %v6718_v30, %v6638_v17  ;;  %v2355_v3 = vmul.f32 %v6718_v30, %v6642_v44 }
 0x24a   : > { %v2838_v59 = vadd.f32 %v2837_v39, %v7802_v19  ;;  %v2845_v53 = vadd.f32 %v2844_v6, %v7803_v43  ;;  %v2420_v25 = vadd.f32 %v2419_v20, %v2418_v36  ;;  %v2427_v23 = vadd.f32 %v2426_v16, %v2425_v62 }
 0x24b   : > { %v6818_v28 = vadd.f32 %v2741_v29, %v2740_v46  ;;  %v6820_v34 = vadd.f32 %v2748_v10, %v2747_v27  ;;  %v2362_v56 = vadd.f32 %v2354_v45, %v2312_v9  ;;  %v2363_v51 = vadd.f32 %v2355_v3, %v2313_v22 }
 0x24c   : > { %v2887_v17 = vrot.slane %v6590_v52, 4  ;;  %v2894_v44 = vrot.slane %v6592_v13, 4  ;;  %v2421_v30 = vrot.slane %v2420_v25, 2  ;;  %v2428_v61 = vrot.slane %v2427_v23, 2 }
 0x24d   : > { %v7810_v37 = vmov 14   ;;  %v2791_v21 = vrot.slane %v2790_v8, 1  ;;  %v2798_v19 = vrot.slane %v2797_v26, 1  ;;  %v2404_v39 = vmul.f32 %v2396_v58, %v6755_v24 }
 0x24e   : > { %3823 = vset.pattern.permute.xlu2 %v7810_v37  ;;  %v2405_v16 = vmul.f32 %v2396_v58, %v6757_v11  ;;  %v2839_v10 = vrot.slane %v2838_v59, 2  ;;  %v2846_v29 = vrot.slane %v2845_v53, 2  ;;  %v2422_v46 = vadd.f32 %v2421_v30, %v2420_v25 }
 0x24f   : > { %3822 = vset.pattern.permute.xlu1 %v7810_v37  ;;  %v2429_v27 = vadd.f32 %v2428_v61, %v2427_v23  ;;  %3373 = vperm.xlu2 %3823, %v6597_v48   ;;  %v2412_v22 = vadd.f32 %v2404_v39, %v2362_v56  ;;  %v3400_v43 = vmul.f32 %v7773_v49, %v7754_v41  ;;  %v2442_v23 = vpop.permute.xlu1 %2441 }
 0x250   : > { %3369 = vperm.xlu1 %3822, %v6603_v7   ;;  %v2413_v9 = vadd.f32 %v2405_v16, %v2363_v51  ;;  %v3401_v6 = vmul.f32 %v7775_v5, %v7755_v1  ;;  %v2888_v58 = vadd.f32 %v2887_v17, %v6590_v52  ;;  %v2895_v36 = vadd.f32 %v2894_v44, %v6592_v13  ;;  %v2814_v1 = vpop.permute.xlu2 %2813  ;;  %v2752_v17 = vpop.permute.xlu0 %2751 }
 0x251   : > { %v2423_v62 = vrot.slane %v2422_v46, 1  ;;  %v2430_v20 = vrot.slane %v2429_v27, 1  ;;  %v3402_v45 = vmul.f32 %v7777_v60, %v7756_v18  ;;  %v3403_v3 = vmul.f32 %v7779_v57, %v7757_v14 }
 0x252   : > { %v2400_v25 = vmul.f32 %v6763_v50, %v6755_v24  ;;  %v2401_v41 = vmul.f32 %v6763_v50, %v6757_v11  ;;  %v2840_v56 = vadd.f32 %v2839_v10, %v2838_v59  ;;  %v2847_v52 = vadd.f32 %v2846_v29, %v2845_v53 }
 0x253   : > { %v2424_v51 = vadd.f32 %v2423_v62, %v2422_v46  ;;  %v2431_v13 = vadd.f32 %v2430_v20, %v2429_v27  ;;  %v6844_v44 = vadd.f32 %v3402_v45, %v3400_v43  ;;  %v6846_v30 = vadd.f32 %v3403_v3, %v3401_v6 }
 0x254   : > { %v2408_v18 = vadd.f32 %v2400_v25, %v6655_v40  ;;  %v2409_v14 = vadd.f32 %v2401_v41, %v6664_v0  ;;  %v2766_v24 = vmul.f32 %v2752_v17, %v6818_v28  ;;  %v2767_v61 = vmul.f32 %v2752_v17, %v6820_v34 }
 0x255   : > { %v2450_v11 = vmul.f32 %v6661_v33, %v2424_v51  ;;  %v2451_v50 = vmul.f32 %v6661_v33, %v2431_v13  ;;  %v2889_v59 = vrot.slane %v2888_v58, 2  ;;  %v2896_v53 = vrot.slane %v2895_v36, 2 }
 0x256   : > { %v2454_v37 = vmul.f32 %v6720_v15, %v2424_v51  ;;  %v2455_v39 = vmul.f32 %v6720_v15, %v2431_v13  ;;  %v6856_v16 = vadd.f32 %v2791_v21, %v2790_v8  ;;  %v6858_v10 = vadd.f32 %v2798_v19, %v2797_v26 }
 0x257   : > { %v2770_v40 = vmul.f32 %v6765_v2, %v6818_v28  ;;  %v2771_v0 = vmul.f32 %v6765_v2, %v6820_v34  ;;  %v7811_v29 = vmov 19   ;;  %v2841_v46 = vrot.slane %v2840_v56, 1  ;;  %v2756_v6 = vpop.permute.xlu1 %2755 }
 0x258   : > { %3825 = vset.pattern.permute.xlu2 %v7811_v29  ;;  %v2848_v33 = vrot.slane %v2847_v52, 1  ;;  %v6865_v27 = vadd.f32 %v2454_v37, %v2412_v22  ;;  %v6867_v43 = vadd.f32 %v2455_v39, %v2413_v9  ;;  %3381 = vperm.xlu1 %3822, %v6629_v35   ;;  %v2406_v15 = vadd.f32 %v6769_v63, %v6750_v31  ;;  %v2856_v62 = vpop.permute.xlu2 %2855 }
 0x259   : > { %v2407_v8 = vadd.f32 %v6773_v42, %v6753_v32  ;;  %v2448_v26 = vmul.f32 %v6812_v55, %v2424_v51  ;;  %v2449_v2 = vmul.f32 %v6812_v55, %v2431_v13  ;;  %3419 = vperm.xlu2 %3825, %v6603_v7   ;;  %v2890_v21 = vadd.f32 %v2889_v59, %v2888_v58 }
 0x25a   : > { %v2897_v19 = vadd.f32 %v2896_v53, %v2895_v36  ;;  %v2816_v22 = vmul.f32 %v6814_v47, %v6856_v16  ;;  %v2817_v9 = vmul.f32 %v6814_v47, %v6858_v10  ;;  %v2452_v20 = vmul.f32 %v2442_v23, %v2424_v51  ;;  %v2806_v51 = vpop.permute.xlu0 %2805 }
 0x25b   : > { %v2456_v31 = vadd.f32 %v2448_v26, %v2406_v15  ;;  %v2457_v63 = vadd.f32 %v2449_v2, %v2407_v8  ;;  %v2453_v32 = vmul.f32 %v2442_v23, %v2431_v13  ;;  %v6881_v42 = vadd.f32 %v2841_v46, %v2840_v56  ;;  %v7813_v15 = vld [vmem:[#allocation63_spill] sm:$0xff] }
 0x25c   : > { %v6883_v45 = vadd.f32 %v2848_v33, %v2847_v52  ;;  %v2822_v55 = vmul.f32 %v2814_v1, %v6856_v16  ;;  %v2823_v58 = vmul.f32 %v2814_v1, %v6858_v10  ;;  %v2460_v25 = vadd.f32 %v2452_v20, %v6780_v38 }
 0x25d   : > { %v2774_v36 = vadd.f32 %v2766_v24, %v2456_v31  ;;  %v2775_v3 = vadd.f32 %v2767_v61, %v2457_v63  ;;  %v2461_v47 = vadd.f32 %v2453_v32, %v6782_v12  ;;  %v2891_v41 = vrot.slane %v2890_v21, 1  ;;  %v7817_v63 = vld [vmem:[#allocation30_spill] sm:$0xff] }
 0x25e   : > { %v2898_v17 = vrot.slane %v2897_v19, 1  ;;  %v2458_v59 = vadd.f32 %v2450_v11, %v2408_v18  ;;  %v2459_v53 = vadd.f32 %v2451_v50, %v2409_v14  ;;  %v2768_v52 = vmul.f32 %v2756_v6, %v6818_v28  ;;  %v7812_v18 = vld [vmem:[#allocation2_spill] sm:$0xff] }
 0x25f   : > { %v6889_v23 = vadd.f32 %v2816_v22, %v2774_v36  ;;  %v6891_v56 = vadd.f32 %v2817_v9, %v2775_v3  ;;  %v2769_v13 = vmul.f32 %v2756_v6, %v6820_v34  ;;  %v2818_v1 = vmul.f32 %v2806_v51, %v6856_v16  ;;  %v2764_v39 = vpop.permute.xlu1 %2763 }
 0x260   : > { %v2819_v24 = vmul.f32 %v2806_v51, %v6858_v10  ;;  %3826 = vset.pattern.permute.xlu1 %v7811_v29  ;;  %v2868_v38 = vmul.f32 %v2856_v62, %v6881_v42  ;;  %v2869_v12 = vmul.f32 %v2856_v62, %v6883_v45  ;;  %v2776_v14 = vadd.f32 %v2768_v52, %v2458_v59  ;;  %v2902_v46 = vpop.permute.xlu2 %2901  ;;  %v7814_v29 = vld [vmem:[#allocation110_spill] sm:$0xff]  ;;  %v7816_v62 = vld [vmem:[#allocation64_spill] sm:$0xff] }
 0x261   : > { %3427 = vperm.xlu2 %3825, %v7812_v18   ;;  %3423 = vperm.xlu1 %3826, %v6597_v48   ;;  %v2777_v61 = vadd.f32 %v2769_v13, %v2459_v53  ;;  %v2778_v11 = vadd.f32 %v2770_v40, %v2460_v25  ;;  %v6902_v50 = vadd.f32 %v2891_v41, %v2890_v21  ;;  %v3891_v26 = vmov 24   ;;  %v7819_v25 = vld [vmem:[#allocation38_spill] sm:$0xff] }
 0x262   : > { %v6904_v37 = vadd.f32 %v2898_v17, %v2897_v19  ;;  %v2779_v33 = vadd.f32 %v2771_v0, %v2461_v47  ;;  %v2932_v8 = vmul.f32 %v7814_v29, %v7813_v15  ;;  %3830 = vset.pattern.permute.xlu0 %v3891_v26  ;;  %v2826_v2 = vadd.f32 %v2818_v1, %v2776_v14  ;;  %v7815_v19 = vld [vmem:[#allocation81_spill] sm:$0xff]  ;;  %v2860_v1 = vpop.permute.xlu0 %2859 }
 0x263   : > { %v2827_v22 = vadd.f32 %v2819_v24, %v2777_v61  ;;  %v2772_v9 = vmul.f32 %v2764_v39, %v6818_v28  ;;  %v2773_v6 = vmul.f32 %v2764_v39, %v6820_v34  ;;  %v2916_v40 = vmul.f32 %v2902_v46, %v6902_v50  ;;  %v7818_v0 = vld [vmem:[#allocation13_spill] sm:$0xff]  ;;  %v7820_v34 = vld [vmem:[#allocation54_spill] sm:$0xff] }
 0x264   : > { %v2917_v21 = vmul.f32 %v2902_v46, %v6904_v37  ;;  %v2933_v31 = vmul.f32 %v7816_v62, %v7815_v19  ;;  %v2934_v20 = vmul.f32 %v7818_v0, %v7817_v63  ;;  %v6916_v32 = vadd.f32 %v2868_v38, %v2826_v2 }
 0x265   : > { %v6918_v36 = vadd.f32 %v2869_v12, %v2827_v22  ;;  %v2780_v3 = vadd.f32 %v2772_v9, %v6865_v27  ;;  %v2781_v28 = vadd.f32 %v2773_v6, %v6867_v43  ;;  %v2935_v47 = vmul.f32 %v7820_v34, %v7819_v25 }
 0x266   : > { %v2936_v41 = vadd.f32 %v2934_v20, %v2932_v8  ;;  %v3450_v17 = vmul.f32 %v7773_v49, %v7813_v15  ;;  %v3451_v59 = vmul.f32 %v7775_v5, %v7815_v19  ;;  %v3452_v52 = vmul.f32 %v7777_v60, %v7817_v63 }
 0x267   : > { %v2830_v53 = vadd.f32 %v2822_v55, %v2780_v3  ;;  %v2831_v51 = vadd.f32 %v2823_v58, %v2781_v28  ;;  %v3453_v27 = vmul.f32 %v7779_v57, %v7819_v25  ;;  %v2943_v43 = vadd.f32 %v2935_v47, %v2933_v31  ;;  %v2810_v49 = vpop.permute.xlu1 %2809 }
 0x268   : > { %v2937_v13 = vrot.slane %v2936_v41, 4  ;;  %v6932_v24 = vadd.f32 %v3452_v52, %v3450_v17  ;;  %v2910_v5 = vpop.permute.xlu2 %2909  ;;  %v2820_v58 = vmul.f32 %v2810_v49, %v6856_v16  ;;  %v2821_v57 = vmul.f32 %v2810_v49, %v6858_v10 }
 0x269   : > { %3829 = vset.pattern.permute.xlu2 %v3891_v26  ;;  %3828 = vset.pattern.permute.xlu1 %v3891_v26  ;;  %v6934_v38 = vadd.f32 %v3453_v27, %v3451_v59  ;;  %v2944_v60 = vrot.slane %v2943_v43, 4  ;;  %v2920_v12 = vmul.f32 %v2910_v5, %v6902_v50  ;;  %v2921_v14 = vmul.f32 %v2910_v5, %v6904_v37 }
 0x26a   : > { %3473 = vperm.xlu2 %3829, %v6597_v48   ;;  %3469 = vperm.xlu1 %3828, %v6603_v7   ;;  %v2938_v55 = vadd.f32 %v2937_v13, %v2936_v41  ;;  %v2870_v39 = vmul.f32 %v2860_v1, %v6881_v42  ;;  %v2871_v46 = vmul.f32 %v2860_v1, %v6883_v45  ;;  %v2914_v28 = vpop.permute.xlu0 %2913 }
 0x26b   : > { %v2945_v61 = vadd.f32 %v2944_v60, %v2943_v43  ;;  %v2828_v48 = vadd.f32 %v2820_v58, %v2778_v11  ;;  %v2829_v15 = vadd.f32 %v2821_v57, %v2779_v33  ;;  %v2922_v52 = vmul.f32 %v2914_v28, %v6902_v50  ;;  %v7824_v60 = vld [vmem:[#allocation135_spill] sm:$0xff] }
 0x26c   : > { %v2939_v7 = vrot.slane %v2938_v55, 2  ;;  %v2923_v27 = vmul.f32 %v2914_v28, %v6904_v37  ;;  %v3312_v58 = vrot.slane %v7824_v60, 4 }
 0x26d   : > { %v2946_v29 = vrot.slane %v2945_v61, 2  ;;  %v2878_v8 = vadd.f32 %v2870_v39, %v2828_v48  ;;  %v2879_v26 = vadd.f32 %v2871_v46, %v2829_v15 }
 0x26e   : > { %v2940_v22 = vadd.f32 %v2939_v7, %v2938_v55  ;;  %v7823_v55 = vld [vmem:[#allocation70_spill] sm:$0xff] }
 0x26f   : > { %v6944_v2 = vadd.f32 %v2920_v12, %v2878_v8  ;;  %v6946_v16 = vadd.f32 %v2921_v14, %v2879_v26  ;;  %v2852_v10 = vpop.permute.xlu1 %2851  ;;  %v2947_v9 = vadd.f32 %v2946_v29, %v2945_v61  ;;  %v3313_v29 = vadd.f32 %v3312_v58, %v7824_v60 }
 0x270   : > { %v2866_v6 = vmul.f32 %v2852_v10, %v6881_v42  ;;  %v2867_v11 = vmul.f32 %v2852_v10, %v6883_v45  ;;  %v2941_v62 = vrot.slane %v2940_v22, 1 }
 0x271   : > { %v2948_v31 = vrot.slane %v2947_v9, 1 }
 0x272   : > { %3481 = vperm.xlu2 %3829, %v6629_v35   ;;  %3477 = vperm.xlu1 %3828, %v7812_v18   ;;  %v2874_v33 = vadd.f32 %v2866_v6, %v6889_v23  ;;  %v2875_v19 = vadd.f32 %v2867_v11, %v6891_v56  ;;  %v7821_v35 = vld [vmem:[#allocation103_spill] sm:$0xff]  ;;  %v7822_v18 = vld [vmem:[#allocation57_spill] sm:$0xff]  ;;  %v6960_v25 = vadd.f32 %v2941_v62, %v2940_v22  ;;  %v3314_v6 = vrot.slane %v3313_v29, 2 }
 0x273   : > { %v3255_v20 = vrot.slane %v7821_v35, 4  ;;  %v3262_v3 = vrot.slane %v7822_v18, 4  ;;  %v6962_v34 = vadd.f32 %v2948_v31, %v2947_v9 }
 0x274   : > { %v6954_v63 = vadd.f32 %v2916_v40, %v2874_v33  ;;  %v6956_v0 = vadd.f32 %v2917_v21, %v2875_v19  ;;  %v3315_v19 = vadd.f32 %v3314_v6, %v3313_v29 }
 0x275   : > { %v3256_v40 = vadd.f32 %v3255_v20, %v7821_v35  ;;  %v3263_v21 = vadd.f32 %v3262_v3, %v7822_v18  ;;  %v3270_v35 = vpop.permute.xlu0 %3269 }
 0x276   : > { %v3316_v18 = vrot.slane %v3315_v19, 1 }
 0x277   : > { %v2864_v47 = vpop.permute.xlu1 %2863  ;;  %v3257_v5 = vrot.slane %v3256_v40, 2 }
 0x278   : > { %v2872_v23 = vmul.f32 %v2864_v47, %v6881_v42  ;;  %v2873_v56 = vmul.f32 %v2864_v47, %v6883_v45  ;;  %v3264_v42 = vrot.slane %v3263_v21, 2  ;;  %v3305_v45 = vrot.slane %v7823_v55, 4 }
 0x279   : > { %v3258_v39 = vadd.f32 %v3257_v5, %v3256_v40  ;;  %v3362_v40 = vrot.slane %v6806_v54, 4 }
 0x27a   : > { %v2880_v13 = vadd.f32 %v2872_v23, %v2830_v53  ;;  %v2881_v43 = vadd.f32 %v2873_v56, %v2831_v51  ;;  %v3265_v46 = vadd.f32 %v3264_v42, %v3263_v21  ;;  %v3306_v7 = vadd.f32 %v3305_v45, %v7823_v55 }
 0x27b   : > { %v3259_v10 = vrot.slane %v3258_v39, 1  ;;  %v3355_v56 = vrot.slane %v6804_v4, 4  ;;  %v3363_v42 = vadd.f32 %v3362_v40, %v6806_v54 }
 0x27c   : > { %v2956_v41 = vpop.permute.xlu2 %2955  ;;  %v2930_v1 = vadd.f32 %v2922_v52, %v2880_v13  ;;  %v2931_v49 = vadd.f32 %v2923_v27, %v2881_v43  ;;  %v3266_v22 = vrot.slane %v3265_v46, 1  ;;  %v3307_v9 = vrot.slane %v3306_v7, 2 }
 0x27d   : > { %v2968_v17 = vmul.f32 %v2956_v41, %v6960_v25  ;;  %v2969_v59 = vmul.f32 %v2956_v41, %v6962_v34  ;;  %v6986_v11 = vadd.f32 %v3259_v10, %v3258_v39  ;;  %v3356_v5 = vadd.f32 %v3355_v56, %v6804_v4 }
 0x27e   : > { %v6988_v33 = vadd.f32 %v3266_v22, %v3265_v46 }
 0x27f   : > { %v2906_v57 = vpop.permute.xlu1 %2905  ;;  %v3284_v41 = vmul.f32 %v3270_v35, %v6986_v11  ;;  %v3357_v58 = vrot.slane %v3356_v5, 2 }
 0x280   : > { %v2918_v14 = vmul.f32 %v2906_v57, %v6902_v50  ;;  %v2919_v61 = vmul.f32 %v2906_v57, %v6904_v37  ;;  %v3285_v23 = vmul.f32 %v3270_v35, %v6988_v33  ;;  %v3364_v57 = vrot.slane %v3363_v42, 2 }
 0x281   : > { %v3358_v46 = vadd.f32 %v3357_v58, %v3356_v5 }
 0x282   : > { %v2926_v51 = vadd.f32 %v2918_v14, %v6916_v32  ;;  %v2927_v15 = vadd.f32 %v2919_v61, %v6918_v36  ;;  %v3308_v36 = vadd.f32 %v3307_v9, %v3306_v7  ;;  %v3365_v54 = vadd.f32 %v3364_v57, %v3363_v42 }
 0x284   : > { %v2964_v12 = vpop.permute.xlu2 %2963  ;;  %v2976_v50 = vadd.f32 %v2968_v17, %v2926_v51  ;;  %v2977_v37 = vadd.f32 %v2969_v59, %v2927_v15  ;;  %v3309_v20 = vrot.slane %v3308_v36, 1  ;;  %v7000_v17 = vadd.f32 %v3316_v18, %v3315_v19 }
 0x285   : > { %v2972_v48 = vmul.f32 %v2964_v12, %v6960_v25  ;;  %v2973_v53 = vmul.f32 %v2964_v12, %v6962_v34  ;;  %v3366_v51 = vrot.slane %v3365_v54, 1  ;;  %v3405_v15 = vrot.slane %v6844_v44, 4 }
 0x286   : > { %v6998_v21 = vadd.f32 %v3309_v20, %v3308_v36 }
 0x287   : > { %v6982_v8 = vadd.f32 %v2972_v48, %v2930_v1  ;;  %v6984_v26 = vadd.f32 %v2973_v53, %v2931_v49  ;;  %v3324_v48 = vpop.permute.xlu0 %3323  ;;  %v3359_v53 = vrot.slane %v3358_v46, 1  ;;  %v7024_v22 = vadd.f32 %v3366_v51, %v3365_v54 }
 0x288   : > { %v3406_v36 = vadd.f32 %v3405_v15, %v6844_v44 }
 0x289   : > { %v7022_v10 = vadd.f32 %v3359_v53, %v3358_v46 }
 0x28d   : > { %v3278_v32 = vpop.permute.xlu2 %3277 }
 0x28e   : > { %v3288_v62 = vmul.f32 %v3278_v32, %v6986_v11  ;;  %v3289_v31 = vmul.f32 %v3278_v32, %v6988_v33 }
 0x297   : > { %v2952_v3 = vpop.permute.xlu1 %2951  ;;  %v3320_v27 = vpop.permute.xlu2 %3319 }
 0x298   : > { %v2966_v28 = vmul.f32 %v2952_v3, %v6960_v25  ;;  %v2967_v47 = vmul.f32 %v2952_v3, %v6962_v34  ;;  %v3334_v1 = vmul.f32 %v3320_v27, %v6998_v21  ;;  %v3335_v49 = vmul.f32 %v3320_v27, %v7000_v17 }
 0x29a   : > { %v2974_v59 = vadd.f32 %v2966_v28, %v6954_v63  ;;  %v2975_v52 = vadd.f32 %v2967_v47, %v6956_v0  ;;  %v3407_v47 = vrot.slane %v3406_v36, 2 }
 0x29c   : > { %v3292_v13 = vadd.f32 %v3284_v41, %v2974_v59  ;;  %v3293_v43 = vadd.f32 %v3285_v23, %v2975_v52  ;;  %v3408_v40 = vadd.f32 %v3407_v47, %v3406_v36 }
 0x29e   : > { %v7008_v55 = vadd.f32 %v3334_v1, %v3292_v13  ;;  %v7010_v45 = vadd.f32 %v3335_v49, %v3293_v43  ;;  %v3378_v43 = vpop.permute.xlu0 %3377  ;;  %v3409_v1 = vrot.slane %v3408_v40, 1 }
 0x29f   : > { %v2960_v60 = vpop.permute.xlu1 %2959  ;;  %v3332_v61 = vpop.permute.xlu2 %3331 }
 0x2a0   : > { %v2970_v63 = vmul.f32 %v2960_v60, %v6960_v25  ;;  %v2971_v0 = vmul.f32 %v2960_v60, %v6962_v34  ;;  %v3412_v25 = vrot.slane %v6846_v30, 4  ;;  %v3340_v44 = vmul.f32 %v3332_v61, %v6998_v21 }
 0x2a2   : > { %v2978_v12 = vadd.f32 %v2970_v63, %v6944_v2  ;;  %v2979_v14 = vadd.f32 %v2971_v0, %v6946_v16  ;;  %v3336_v2 = vmul.f32 %v3324_v48, %v6998_v21  ;;  %v3337_v16 = vmul.f32 %v3324_v48, %v7000_v17 }
 0x2a3   : > { %v3413_v19 = vadd.f32 %v3412_v25, %v6846_v30  ;;  %v3341_v30 = vmul.f32 %v3332_v61, %v7000_v17  ;;  %v3410_v63 = vadd.f32 %v3409_v1, %v3408_v40 }
 0x2a4   : > { %v3296_v39 = vadd.f32 %v3288_v62, %v2978_v12  ;;  %v3297_v4 = vadd.f32 %v3289_v31, %v2979_v14 }
 0x2a5   : > { %v3414_v41 = vrot.slane %v3413_v19, 2 }
 0x2a7   : > { %v3415_v59 = vadd.f32 %v3414_v41, %v3413_v19 }
 0x2a8   : > { %v3274_v7 = vpop.permute.xlu1 %3273 }
 0x2a9   : > { %v3286_v34 = vmul.f32 %v3274_v7, %v6986_v11  ;;  %v3287_v29 = vmul.f32 %v3274_v7, %v6988_v33  ;;  %v3374_v32 = vpop.permute.xlu2 %3373  ;;  %v3416_v49 = vrot.slane %v3415_v59, 1 }
 0x2aa   : > { %v3386_v35 = vmul.f32 %v3374_v32, %v7022_v10  ;;  %v3387_v20 = vmul.f32 %v3374_v32, %v7024_v22  ;;  %v3432_v32 = vpop.permute.xlu0 %3431 }
 0x2ab   : > { %v3294_v9 = vadd.f32 %v3286_v34, %v2976_v50  ;;  %v3295_v6 = vadd.f32 %v3287_v29, %v2977_v37  ;;  %v3417_v0 = vadd.f32 %v3416_v49, %v3415_v59 }
 0x2ad   : > { %v3344_v62 = vadd.f32 %v3336_v2, %v3294_v9  ;;  %v3345_v31 = vadd.f32 %v3337_v16, %v3295_v6 }
 0x2af   : > { %v7030_v18 = vadd.f32 %v3386_v35, %v3344_v62  ;;  %v7032_v3 = vadd.f32 %v3387_v20, %v3345_v31  ;;  %v3440_v20 = vmul.f32 %v3432_v32, %v3410_v63 }
 0x2b0   : > { %v3282_v28 = vpop.permute.xlu1 %3281 }
 0x2b1   : > { %v3290_v50 = vmul.f32 %v3282_v28, %v6986_v11  ;;  %v3291_v37 = vmul.f32 %v3282_v28, %v6988_v33  ;;  %v3455_v11 = vrot.slane %v6932_v24, 4  ;;  %v3462_v33 = vrot.slane %v6934_v38, 4 }
 0x2b2   : > { %v3441_v28 = vmul.f32 %v3432_v32, %v3417_v0 }
 0x2b3   : > { %v3298_v23 = vadd.f32 %v3290_v50, %v6982_v8  ;;  %v3299_v56 = vadd.f32 %v3291_v37, %v6984_v26  ;;  %v3420_v52 = vpop.permute.xlu2 %3419  ;;  %v3388_v8 = vmul.f32 %v3378_v43, %v7022_v10  ;;  %v3389_v26 = vmul.f32 %v3378_v43, %v7024_v22 }
 0x2b4   : > { %v3456_v14 = vadd.f32 %v3455_v11, %v6932_v24  ;;  %v3463_v61 = vadd.f32 %v3462_v33, %v6934_v38 }
 0x2b5   : > { %v3348_v27 = vadd.f32 %v3340_v44, %v3298_v23  ;;  %v3349_v13 = vadd.f32 %v3341_v30, %v3299_v56 }
 0x2b6   : > { %v3457_v15 = vrot.slane %v3456_v14, 2  ;;  %v3464_v25 = vrot.slane %v3463_v61, 2 }
 0x2b8   : > { %v3458_v2 = vadd.f32 %v3457_v15, %v3456_v14  ;;  %v3465_v16 = vadd.f32 %v3464_v25, %v3463_v61 }
 0x2b9   : > { %v3328_v5 = vpop.permute.xlu1 %3327 }
 0x2ba   : > { %v3338_v42 = vmul.f32 %v3328_v5, %v6998_v21  ;;  %v3339_v60 = vmul.f32 %v3328_v5, %v7000_v17  ;;  %v3459_v36 = vrot.slane %v3458_v2, 1  ;;  %v3466_v19 = vrot.slane %v3465_v16, 1 }
 0x2bb   : > { %v3428_v12 = vpop.permute.xlu2 %3427 }
 0x2bc   : > { %v3346_v58 = vadd.f32 %v3338_v42, %v3296_v39  ;;  %v3347_v57 = vadd.f32 %v3339_v60, %v3297_v4  ;;  %v3438_v48 = vmul.f32 %v3428_v12, %v3410_v63  ;;  %v3439_v53 = vmul.f32 %v3428_v12, %v3417_v0 }
 0x2bd   : > { %v3434_v39 = vmul.f32 %v3420_v52, %v3410_v63  ;;  %v3435_v4 = vmul.f32 %v3420_v52, %v3417_v0  ;;  %v3467_v41 = vadd.f32 %v3466_v19, %v3465_v16 }
 0x2be   : > { %v3396_v46 = vadd.f32 %v3388_v8, %v3346_v58  ;;  %v3397_v54 = vadd.f32 %v3389_v26, %v3347_v57 }
 0x2c0   : > { %v3446_v21 = vadd.f32 %v3438_v48, %v3396_v46  ;;  %v3447_v51 = vadd.f32 %v3439_v53, %v3397_v54 }
 0x2c2   : > { %v3370_v17 = vpop.permute.xlu1 %3369 }
 0x2c3   : > { %v3384_v7 = vmul.f32 %v3370_v17, %v7022_v10  ;;  %v3385_v34 = vmul.f32 %v3370_v17, %v7024_v22 }
 0x2c4   : > { %v3474_v38 = vpop.permute.xlu2 %3473 }
 0x2c5   : > { %v3392_v29 = vadd.f32 %v3384_v7, %v7008_v55  ;;  %v3393_v24 = vadd.f32 %v3385_v34, %v7010_v45  ;;  %v3460_v55 = vadd.f32 %v3459_v36, %v3458_v2  ;;  %v3487_v43 = vmul.f32 %v3474_v38, %v3467_v41 }
 0x2c7   : > { %v3442_v9 = vadd.f32 %v3434_v39, %v3392_v29  ;;  %v3443_v6 = vadd.f32 %v3435_v4, %v3393_v24  ;;  %v3486_v52 = vmul.f32 %v3474_v38, %v3460_v55 }
 0x2ca   : > { %v3382_v62 = vpop.permute.xlu1 %3381 }
 0x2cb   : > { %v3390_v31 = vmul.f32 %v3382_v62, %v7022_v10  ;;  %v3391_v35 = vmul.f32 %v3382_v62, %v7024_v22 }
 0x2cc   : > { %v3482_v47 = vpop.permute.xlu2 %3481 }
 0x2cd   : > { %v3398_v45 = vadd.f32 %v3390_v31, %v3348_v27  ;;  %v3399_v50 = vadd.f32 %v3391_v35, %v3349_v13  ;;  %v3490_v30 = vmul.f32 %v3482_v47, %v3460_v55  ;;  %v3491_v23 = vmul.f32 %v3482_v47, %v3467_v41 }
 0x2cf   : > { %v3448_v37 = vadd.f32 %v3440_v20, %v3398_v45  ;;  %v3449_v44 = vadd.f32 %v3441_v28, %v3399_v50 }
 0x2d1   : > { %v3498_v56 = vadd.f32 %v3490_v30, %v3448_v37  ;;  %v3499_v10 = vadd.f32 %v3491_v23, %v3449_v44 }
 0x2d3   : > { %3506 = vst [vmem:[%s318_s14 + $0x30] sm:$0x1] %v3498_v56  ;;  %v3424_v22 = vpop.permute.xlu1 %3423 }
 0x2d4   : > { %3507 = vst [vmem:[%s318_s14 + $0x38] sm:$0x1] %v3499_v10  ;;  %v3436_v40 = vmul.f32 %v3424_v22, %v3410_v63  ;;  %v3437_v59 = vmul.f32 %v3424_v22, %v3417_v0 }
 0x2d6   : > { %v3444_v27 = vadd.f32 %v3436_v40, %v7030_v18  ;;  %v3445_v13 = vadd.f32 %v3437_v59, %v7032_v3 }
 0x2d8   : > { %v3494_v1 = vadd.f32 %v3486_v52, %v3444_v27  ;;  %v3495_v49 = vadd.f32 %v3487_v43, %v3445_v13 }
 0x2da   : > { %3502 = vst [vmem:[%s318_s14 + $0x10] sm:$0xff] %v3494_v1 }
 0x2db   : > { %3503 = vst [vmem:[%s318_s14 + $0x18] sm:$0xff] %v3495_v49 }
 0x2dc   : > { %v3470_v5 = vpop.permute.xlu1 %3469 }
 0x2dd   : > { %v3484_v11 = vmul.f32 %v3470_v5, %v3460_v55  ;;  %v3485_v33 = vmul.f32 %v3470_v5, %v3467_v41 }
 0x2df   : > { %v3492_v42 = vadd.f32 %v3484_v11, %v3442_v9  ;;  %v3493_v60 = vadd.f32 %v3485_v33, %v3443_v6 }
 0x2e1   : > { %3500 = vst [vmem:[%s318_s14] sm:$0xff] %v3492_v42 }
 0x2e2   : > { %3501 = vst [vmem:[%s318_s14 + $0x8] sm:$0xff] %v3493_v60 }
 0x2e4   : > { %v3478_v8 = vpop.permute.xlu1 %3477 }
 0x2e5   : > { %v3488_v26 = vmul.f32 %v3478_v8, %v3460_v55  ;;  %v3489_v63 = vmul.f32 %v3478_v8, %v3467_v41 }
 0x2e7   : > { %v3496_v0 = vadd.f32 %v3488_v26, %v3446_v21  ;;  %v3497_v58 = vadd.f32 %v3489_v63, %v3447_v51 }
 0x2e9   : > { %3504 = vst [vmem:[%s318_s14 + $0x20] sm:$0xff] %v3496_v0 }
 0x2ea   : > { %3505 = vst [vmem:[%s318_s14 + $0x28] sm:$0xff] %v3497_v58 }
 0x2eb PF: > { %s15_s20 = sadd.s32 1, %s3865_s20   ;;  %s7825_s18 = smov %s3861_s19 }
 0x2ec   : > { %p12_p5 = scmp.ge.s32.totalorder %s15_s20, 4   ;;  %s7826_s19 = smov %s7828_s21 }
 0x2ee   :  { %14 = sbr.rel (!%p12_p5) target bundleno = 2 (0x2), region = 77 }

</bundles_post_ra>
